<compile_context>
chip_gen: v5e
topology: v5e:2x2
jax: 0.10.0
libtpu: 0.0.40
codegen_flags: <defaults>
</compile_context>

<pallas_src>
import functools

import jax
import jax.numpy as jnp
from jax import lax
from jax.experimental import pallas as pl
from jax.experimental.pallas import tpu as pltpu

NUM_CLASSES = 4
UNIFIED_CH = 32
IN_CH_PAD = 8                      # pad RGB (3) input channels to 8 lanes once
ACT_DTYPE = jnp.bfloat16           # intermediate activations / MXU inputs
VMEM_LIMIT = 32 * 1024 * 1024      # safe scoped-VMEM limit on v5e/v6e/v7x
BAND_ROWS = 512                    # target M (= TH*Wo) per conv band dot


def _round_up(x, m):
    return (x + m - 1) // m * m


def _apply_act(x, act):
    # epilogue math kept in f32 (no bf16 VPU on v5e); cast at the store
    if act == "hswish":                       # x * relu6(x + 3) / 6
        return x * jnp.clip(x + 3.0, 0.0, 6.0) * (1.0 / 6.0)
    if act == "sigmoid":
        return jax.nn.sigmoid(x)
    return x


def _pick_tm(m):
    """GEMM M tile: split into >=2 multiple-of-8 tiles when possible so both
    v7x TensorCores get a grid step; whole-array tile for tiny M (block equal
    to the full dim is the only legal non-multiple-of-8 choice)."""
    if m <= 8:
        return m
    return min(512, _round_up(-(-m // 2), 8))


# ----------------------------------------------------------------------------
# Pallas kernel 1: fused GEMM + bias + activation   (1x1 convs)
# ----------------------------------------------------------------------------
def _mm_bias_act_kernel(a_ref, w_ref, b_ref, o_ref, *, act):
    acc = jnp.dot(a_ref[...], w_ref[...], preferred_element_type=jnp.float32)
    acc = _apply_act(acc + b_ref[...], act)
    o_ref[...] = acc.astype(o_ref.dtype)


def matmul_bias_act(a, w, b, act="none", out_dtype=ACT_DTYPE):
    """act(a @ w + b). a:(M,K) bf16, w:(K,N) bf16, b:(1,N) f32 -> (M,N)."""
    M, K = a.shape
    Kw, N = w.shape
    assert K == Kw and b.shape == (1, N)
    TM = _pick_tm(M)
    # NOTE: when M % TM != 0 the last (TM,K) input block reads past M; this is
    # benign because the GEMM is row-independent (garbage rows feed only rows
    # that are never written back).  Do not add cross-row reductions here.
    return pl.pallas_call(
        functools.partial(_mm_bias_act_kernel, act=act),
        out_shape=jax.ShapeDtypeStruct((M, N), out_dtype),
        grid_spec=pltpu.PrefetchScalarGridSpec(
            num_scalar_prefetch=0,
            grid=(pl.cdiv(M, TM),),
            in_specs=[
                pl.BlockSpec((TM, K), lambda i: (i, 0)),
                pl.BlockSpec((K, N), lambda i: (0, 0)),
                pl.BlockSpec((1, N), lambda i: (0, 0)),
            ],
            out_specs=pl.BlockSpec((TM, N), lambda i: (i, 0)),
        ),
        compiler_params=pltpu.CompilerParams(
            dimension_semantics=("parallel",),
            vmem_limit_bytes=VMEM_LIMIT),
    )(a, w, b)


# ----------------------------------------------------------------------------
# Pallas kernel 2: dual-input fused GEMM  act(a1@w1 + a2@w2 + b)
#   (neck f4/f3: 1x1 conv on concat([hi, up(lo)]) without materializing concat)
# ----------------------------------------------------------------------------
def _mm2_bias_act_kernel(a1_ref, a2_ref, w1_ref, w2_ref, b_ref, o_ref, *, act):
    acc = jnp.dot(a1_ref[...], w1_ref[...], preferred_element_type=jnp.float32)
    acc = acc + jnp.dot(a2_ref[...], w2_ref[...],
                        preferred_element_type=jnp.float32)
    acc = _apply_act(acc + b_ref[...], act)
    o_ref[...] = acc.astype(o_ref.dtype)


def matmul2_bias_act(a1, a2, w1, w2, b, act="hswish", out_dtype=ACT_DTYPE):
    M, K1 = a1.shape
    M2, K2 = a2.shape
    assert M == M2
    N = w1.shape[1]
    TM = _pick_tm(M)
    return pl.pallas_call(
        functools.partial(_mm2_bias_act_kernel, act=act),
        out_shape=jax.ShapeDtypeStruct((M, N), out_dtype),
        grid_spec=pltpu.PrefetchScalarGridSpec(
            num_scalar_prefetch=0,
            grid=(pl.cdiv(M, TM),),
            in_specs=[
                pl.BlockSpec((TM, K1), lambda i: (i, 0)),
                pl.BlockSpec((TM, K2), lambda i: (i, 0)),
                pl.BlockSpec((K1, N), lambda i: (0, 0)),
                pl.BlockSpec((K2, N), lambda i: (0, 0)),
                pl.BlockSpec((1, N), lambda i: (0, 0)),
            ],
            out_specs=pl.BlockSpec((TM, N), lambda i: (i, 0)),
        ),
        compiler_params=pltpu.CompilerParams(
            dimension_semantics=("parallel",),
            vmem_limit_bytes=VMEM_LIMIT),
    )(a1, a2, w1, w2, b)


# ----------------------------------------------------------------------------
# Pallas kernel 3: banded direct kxk conv (+ optional fused pred epilogue)
#   x_ref : (stride*stride, Hph, Wph, Cin)  H/W phase-split padded image
#   w_ref : (kh*kw, Cin, Cout) bf16
#   b_ref : (1, Cout) f32
#   [pw_ref: (Cout, nc+4) bf16, pb_ref: (1, nc+4) f32]   (fused pred heads)
#   o_ref : (1, Ho, Wo, Cout or nc+4)
#
#   Each kernel tap (dy, dx) on a band of TH output rows is one contiguous
#   (TH, Wo, Cin) slab -> reshaped (TH*Wo, Cin) @ (Cin, Cout) dot, so M is
#   large and there is one dense store per band (no per-row masked stores).
# ----------------------------------------------------------------------------
def _conv_direct_kernel(x_ref, w_ref, b_ref, *rest,
                        kh, kw, stride, ho, wo, th, act, nc):
    if nc is None:
        (o_ref,) = rest
        pw_ref = pb_ref = None
    else:
        pw_ref, pb_ref, o_ref = rest

    bias = b_ref[...]                                  # (1, Cout) f32
    cout = w_ref.shape[-1]

    # Statically-unrolled band loop (short trip count; review item 2).
    oh0 = 0
    while oh0 < ho:
        tb = min(th, ho - oh0)
        acc = jnp.zeros((tb * wo, cout), jnp.float32)
        for dy in range(kh):
            r0 = oh0 + dy // stride                    # row start in its phase
            prow = dy % stride
            for dx in range(kw):
                pcol = dx % stride
                c0 = dx // stride                      # col start in its phase
                p = prow * stride + pcol               # combined phase index
                a = x_ref[p, pl.ds(r0, tb), pl.ds(c0, wo), :]   # (tb, wo, Cin)
                a = a.reshape(tb * wo, a.shape[-1])
                acc = acc + jnp.dot(a, w_ref[dy * kw + dx],
                                    preferred_element_type=jnp.float32)
        acc = _apply_act(acc + bias, act)

        if nc is None:
            o_ref[0, pl.ds(oh0, tb), :, :] = (
                acc.reshape(tb, wo, cout).astype(o_ref.dtype))
        else:
            # fused decoupled-head epilogue: block-diagonal (Cout, nc+4) pred
            # dot while the conv activation is still in vregs; sigmoid on the
            # cls lanes only (reg distribution stays linear).
            pacc = jnp.dot(acc.astype(pw_ref.dtype), pw_ref[...],
                           preferred_element_type=jnp.float32) + pb_ref[...]
            col = lax.broadcasted_iota(jnp.int32, pacc.shape, 1)
            pacc = jnp.where(col < nc, jax.nn.sigmoid(pacc), pacc)
            o_ref[0, pl.ds(oh0, tb), :, :] = (
                pacc.reshape(tb, wo, nc + 4).astype(o_ref.dtype))
        oh0 += th


def conv_bn_act(x, p, stride=1, act="hswish", pred=None):
    """ConvBN(+act), NHWC bf16 in/out.  1x1 -> fused GEMM; kxk -> banded
    direct conv.  `pred` (optional) fuses a 1x1 prediction head epilogue."""
    kh, kw = p["kh"], p["kw"]
    n, h, w, cin = x.shape

    if kh == 1 and kw == 1 and stride == 1 and pred is None:
        out = matmul_bias_act(x.reshape(n * h * w, cin), p["w"], p["b"],
                              act=act)
        return out.reshape(n, h, w, -1)

    pad = (kh - 1) // 2
    ho = (h + 2 * pad - kh) // stride + 1
    wo = (w + 2 * pad - kw) // stride + 1
    hp, wp = h + 2 * pad, w + 2 * pad
    hph, wph = -(-hp // stride), -(-wp // stride)

    # One pad covers both the conv halo and the phase-rounding; a single
    # reshape+transpose splits H and W into `stride` phases so every tap is a
    # contiguous slab in-kernel (TODO(synk): do this in-kernel via strided ds).
    xp = jnp.pad(x, ((0, 0),
                     (pad, hph * stride - h - pad),
                     (pad, wph * stride - w - pad),
                     (0, 0)))
    if stride == 1:
        nphase = 1
        xps = xp                                        # (n, hph, wph, cin)
    else:
        nphase = stride * stride
        xps = xp.reshape(n, hph, stride, wph, stride, cin)
        xps = xps.transpose(0, 2, 4, 1, 3, 5).reshape(n * nphase, hph, wph,
                                                      cin)

    cout = p["w3"].shape[-1]
    th = max(1, min(ho, BAND_ROWS // max(wo, 1)))       # band height (static)

    nc = None if pred is None else pred["nc"]
    kernel = functools.partial(_conv_direct_kernel, kh=kh, kw=kw,
                               stride=stride, ho=ho, wo=wo, th=th, act=act,
                               nc=nc)

    in_specs = [
        pl.BlockSpec((nphase, hph, wph, cin), lambda i: (i, 0, 0, 0)),
        pl.BlockSpec((kh * kw, cin, cout), lambda i: (0, 0, 0)),
        pl.BlockSpec((1, cout), lambda i: (0, 0)),
    ]
    args = [xps, p["w3"], p["b"]]
    if pred is None:
        out_ch, out_dtype = cout, ACT_DTYPE
    else:
        out_ch, out_dtype = nc + 4, jnp.float32
        in_specs += [
            pl.BlockSpec((cout, out_ch), lambda i: (0, 0)),
            pl.BlockSpec((1, out_ch), lambda i: (0, 0)),
        ]
        args += [pred["w"], pred["b"]]

    return pl.pallas_call(
        kernel,
        out_shape=jax.ShapeDtypeStruct((n, ho, wo, out_ch), out_dtype),
        grid_spec=pltpu.PrefetchScalarGridSpec(
            num_scalar_prefetch=0,
            grid=(n,),
            in_specs=in_specs,
            out_specs=pl.BlockSpec((1, ho, wo, out_ch), lambda i: (i, 0, 0, 0)),
        ),
        compiler_params=pltpu.CompilerParams(
            dimension_semantics=("parallel",),
            vmem_limit_bytes=VMEM_LIMIT),
    )(*args)


def _upsample2x(x):  # nearest-neighbor, matches nn.Upsample(scale_factor=2)
    # TODO(synk): fold into the dual-dot fuse kernel (index_map row // 2).
    return jnp.repeat(jnp.repeat(x, 2, axis=1), 2, axis=2)


# ----------------------------------------------------------------------------
# Deterministic parameter construction (weights stored in final kernel layout)
# ----------------------------------------------------------------------------
def _init_conv(key, kh, kw, cin, cout):
    wk, bk = jax.random.split(key)
    fan_in = kh * kw * cin
    w = jax.random.normal(wk, (kh, kw, cin, cout), jnp.float32) / jnp.sqrt(
        jnp.float32(fan_in))
    b = jax.random.normal(bk, (cout,), jnp.float32) * 0.01
    p = {"kh": kh, "kw": kw, "b": b.reshape(1, cout)}        # bias (1, N) f32
    if kh == 1 and kw == 1:
        p["w"] = w.reshape(cin, cout).astype(ACT_DTYPE)      # (K, N) bf16
    else:
        p["w3"] = w.reshape(kh * kw, cin, cout).astype(ACT_DTYPE)
    return p


def build_params(key, in_ch=IN_CH_PAD, num_classes=NUM_CLASSES):
    keys = iter(jax.random.split(key, 64))
    p = {}
    # backbone (simplified Lite_EffiBackbone): stride-2 ConvBNHS stages
    p["stem"] = _init_conv(next(keys), 3, 3, in_ch, 16)   # /2
    p["b1"] = _init_conv(next(keys), 3, 3, 16, 32)        # /4
    p["b2"] = _init_conv(next(keys), 3, 3, 32, 32)        # /8   -> C3
    p["b3"] = _init_conv(next(keys), 3, 3, 32, 64)        # /16  -> C4
    p["b4"] = _init_conv(next(keys), 3, 3, 64, 64)        # /32  -> C5
    # neck (simplified Lite_EffiNeck): unify channels + top-down PAN fusion
    p["r3"] = _init_conv(next(keys), 1, 1, 32, UNIFIED_CH)
    p["r4"] = _init_conv(next(keys), 1, 1, 64, UNIFIED_CH)
    p["r5"] = _init_conv(next(keys), 1, 1, 64, UNIFIED_CH)
    for name in ("f4", "f3"):
        fp = _init_conv(next(keys), 1, 1, 2 * UNIFIED_CH, UNIFIED_CH)
        # split the 1x1-on-concat weight: top half acts on the lateral feature,
        # bottom half on the upsampled deeper feature -> dual-dot kernel.
        p[name] = {"wa": fp["w"][:UNIFIED_CH],
                   "wb": fp["w"][UNIFIED_CH:],
                   "b": fp["b"]}
    # efficient decoupled (lite) head, 3 detection levels
    p["head"] = []
    for _ in range(3):
        stem = _init_conv(next(keys), 1, 1, UNIFIED_CH, UNIFIED_CH)
        cls_conv = _init_conv(next(keys), 3, 3, UNIFIED_CH, UNIFIED_CH)
        reg_conv = _init_conv(next(keys), 3, 3, UNIFIED_CH, UNIFIED_CH)
        cls_pred = _init_conv(next(keys), 1, 1, UNIFIED_CH, num_classes)
        reg_pred = _init_conv(next(keys), 1, 1, UNIFIED_CH, 4)
        # cls_conv + reg_conv share the stem input -> ONE 3x3 conv, Cout=64
        clsreg = {"kh": 3, "kw": 3,
                  "w3": jnp.concatenate([cls_conv["w3"], reg_conv["w3"]],
                                        axis=-1),
                  "b": jnp.concatenate([cls_conv["b"], reg_conv["b"]],
                                       axis=-1)}
        # cls_pred + reg_pred fused into a single block-diagonal (64, nc+4)
        # epilogue dot inside the conv kernel (sigmoid applied to cls lanes).
        pw = jnp.zeros((2 * UNIFIED_CH, num_classes + 4), jnp.float32)
        pw = pw.at[:UNIFIED_CH, :num_classes].set(
            cls_pred["w"].astype(jnp.float32))
        pw = pw.at[UNIFIED_CH:, num_classes:].set(
            reg_pred["w"].astype(jnp.float32))
        pred = {"nc": num_classes,
                "w": pw.astype(ACT_DTYPE),
                "b": jnp.concatenate([cls_pred["b"], reg_pred["b"]], axis=-1)}
        p["head"].append({"stem": stem, "clsreg": clsreg, "pred": pred})
    return p


# ----------------------------------------------------------------------------
# Model.forward  (export_mode = False  ->  returns [detect_out, featmaps])
# ----------------------------------------------------------------------------
def model_forward(params, x_nchw):
    x = jnp.transpose(x_nchw, (0, 2, 3, 1)).astype(ACT_DTYPE)  # NCHW -> NHWC
    cin = x.shape[-1]
    if cin < IN_CH_PAD:  # pad RGB channels once (weights built for IN_CH_PAD)
        x = jnp.pad(x, ((0, 0), (0, 0), (0, 0), (0, IN_CH_PAD - cin)))

    # backbone
    x = conv_bn_act(x, params["stem"], stride=2)
    x = conv_bn_act(x, params["b1"], stride=2)
    c3 = conv_bn_act(x, params["b2"], stride=2)
    c4 = conv_bn_act(c3, params["b3"], stride=2)
    c5 = conv_bn_act(c4, params["b4"], stride=2)

    # neck: 1x1 channel unification + top-down fusion (dual-dot, no concat)
    p5 = conv_bn_act(c5, params["r5"])
    r4 = conv_bn_act(c4, params["r4"])
    r3 = conv_bn_act(c3, params["r3"])

    def fuse(lateral, deeper, fp):
        n, h, w, c = lateral.shape
        up = _upsample2x(deeper)
        out = matmul2_bias_act(lateral.reshape(n * h * w, c),
                               up.reshape(n * h * w, -1),
                               fp["wa"], fp["wb"], fp["b"], act="hswish")
        return out.reshape(n, h, w, -1)

    p4 = fuse(r4, p5, params["f4"])
    p3 = fuse(r3, p4, params["f3"])
    feats = [p3, p4, p5]          # featmaps returned alongside the head output

    # detect head (training branch): stem 1x1 + fused (clsreg 3x3 -> pred) conv
    nc = params["head"][0]["pred"]["nc"]
    stem_feats, cls_list, reg_list = [], [], []
    for f, hparams in zip(feats, params["head"]):
        s = conv_bn_act(f, hparams["stem"])                     # 1x1, hswish
        out = conv_bn_act(s, hparams["clsreg"], stride=1, act="hswish",
                          pred=hparams["pred"])                 # (n,h,w,nc+4) f32
        n, h, w, _ = out.shape
        # matches torch: flatten(2).permute(0, 2, 1) -> (b, h*w, C)
        cls_list.append(out[..., :nc].reshape(n, h * w, nc))
        reg_list.append(out[..., nc:].reshape(n, h * w, 4))
        stem_feats.append(s)
    cls_scores = jnp.concatenate(cls_list, axis=1)  # (N, total_anchors, nc)
    reg_distri = jnp.concatenate(reg_list, axis=1)  # (N, total_anchors, 4)

    head_out = (stem_feats, cls_scores, reg_distri)
    return head_out, feats


if __name__ == "__main__":
    key = jax.random.PRNGKey(0)
    pkey, xkey = jax.random.split(key)
    params = build_params(pkey, in_ch=IN_CH_PAD, num_classes=NUM_CLASSES)
    # 32x32 spatial so the deepest stride-32 level is 1x1 (small but valid)
    x = jax.random.normal(xkey, (2, 3, 32, 32), jnp.float32)  # NCHW like torch

    fwd = jax.jit(functools.partial(model_forward, params))
    (stem_feats, cls_scores, reg_distri), feats = fwd(x)
    jax.block_until_ready(cls_scores)
    jax.block_until_ready(reg_distri)
    for f in feats + stem_feats:
        jax.block_until_ready(f)

    assert cls_scores.shape == (2, 16 + 4 + 1, NUM_CLASSES)
    assert reg_distri.shape == (2, 16 + 4 + 1, 4)
    print("KERNEL_OK")
</pallas_src>

<mosaic_0001>
module attributes {stable_mosaic.version = 11 : i64} {
  func.func @_conv_direct_kernel(%arg0: i32, %arg1: memref<4x17x17x8xbf16, #tpu.memory_space<vmem>>, %arg2: memref<9x8x16xbf16, #tpu.memory_space<vmem>>, %arg3: memref<1x16xf32, #tpu.memory_space<vmem>>, %arg4: memref<1x16x16x16xbf16, #tpu.memory_space<vmem>>) attributes {dimension_semantics = [#tpu.dimension_semantics<parallel>], iteration_bounds = array<i64: 2>, scalar_prefetch = 0 : i64, scratch_operands = 0 : i64, tpu.core_type = #tpu.core_type<tc>, window_params = [{transform_indices = @transform_0, window_bounds = array<i64: 4, 17, 17, 8>}, {pipeline_mode = #tpu.pipeline_mode<synchronous>, transform_indices = @transform_1, window_bounds = array<i64: 9, 8, 16>}, {pipeline_mode = #tpu.pipeline_mode<synchronous>, transform_indices = @transform_2, window_bounds = array<i64: 1, 16>}, {transform_indices = @transform_3, window_bounds = array<i64: 1, 16, 16, 16>}]} {
    %c0 = arith.constant 0 : index
    %c0_0 = arith.constant 0 : index
    %0 = vector.load %arg3[%c0, %c0_0] : memref<1x16xf32, #tpu.memory_space<vmem>>, vector<1x16xf32>
    %cst = arith.constant 0.000000e+00 : f32
    %1 = vector.broadcast %cst : f32 to vector<256x16xf32>
    %c0_1 = arith.constant 0 : index
    %c0_2 = arith.constant 0 : index
    %c0_3 = arith.constant 0 : index
    %c0_4 = arith.constant 0 : index
    %2 = vector.load %arg1[%c0_1, %c0_2, %c0_3, %c0_4] : memref<4x17x17x8xbf16, #tpu.memory_space<vmem>>, vector<1x16x16x8xbf16>
    %3 = vector.shape_cast %2 : vector<1x16x16x8xbf16> to vector<16x16x8xbf16>
    %4 = vector.shape_cast %3 : vector<16x16x8xbf16> to vector<256x8xbf16>
    %c0_5 = arith.constant 0 : index
    %c0_6 = arith.constant 0 : index
    %c0_7 = arith.constant 0 : index
    %5 = vector.load %arg2[%c0_5, %c0_6, %c0_7] : memref<9x8x16xbf16, #tpu.memory_space<vmem>>, vector<1x8x16xbf16>
    %6 = vector.shape_cast %5 : vector<1x8x16xbf16> to vector<8x16xbf16>
    %cst_8 = arith.constant dense<0.000000e+00> : vector<256x16xf32>
    %7 = tpu.matmul %4, %6, %cst_8 {dimension_numbers = #tpu.dot_dimension_numbers<[1], [0], [0], [1], [0, 0, 1, 1], [], []>} : vector<256x8xbf16>, vector<8x16xbf16>, vector<256x16xf32> -> vector<256x16xf32>
    %8 = arith.addf %1, %7 : vector<256x16xf32>
    %c1 = arith.constant 1 : index
    %c0_9 = arith.constant 0 : index
    %c0_10 = arith.constant 0 : index
    %c0_11 = arith.constant 0 : index
    %9 = vector.load %arg1[%c1, %c0_9, %c0_10, %c0_11] : memref<4x17x17x8xbf16, #tpu.memory_space<vmem>>, vector<1x16x16x8xbf16>
    %10 = vector.shape_cast %9 : vector<1x16x16x8xbf16> to vector<16x16x8xbf16>
    %11 = vector.shape_cast %10 : vector<16x16x8xbf16> to vector<256x8xbf16>
    %c1_12 = arith.constant 1 : index
    %c0_13 = arith.constant 0 : index
    %c0_14 = arith.constant 0 : index
    %12 = vector.load %arg2[%c1_12, %c0_13, %c0_14] : memref<9x8x16xbf16, #tpu.memory_space<vmem>>, vector<1x8x16xbf16>
    %13 = vector.shape_cast %12 : vector<1x8x16xbf16> to vector<8x16xbf16>
    %cst_15 = arith.constant dense<0.000000e+00> : vector<256x16xf32>
    %14 = tpu.matmul %11, %13, %cst_15 {dimension_numbers = #tpu.dot_dimension_numbers<[1], [0], [0], [1], [0, 0, 1, 1], [], []>} : vector<256x8xbf16>, vector<8x16xbf16>, vector<256x16xf32> -> vector<256x16xf32>
    %15 = arith.addf %8, %14 : vector<256x16xf32>
    %c0_16 = arith.constant 0 : index
    %c0_17 = arith.constant 0 : index
    %c1_18 = arith.constant 1 : index
    %c0_19 = arith.constant 0 : index
    %16 = vector.load %arg1[%c0_16, %c0_17, %c1_18, %c0_19] : memref<4x17x17x8xbf16, #tpu.memory_space<vmem>>, vector<1x16x16x8xbf16>
    %17 = vector.shape_cast %16 : vector<1x16x16x8xbf16> to vector<16x16x8xbf16>
    %18 = vector.shape_cast %17 : vector<16x16x8xbf16> to vector<256x8xbf16>
    %c2 = arith.constant 2 : index
    %c0_20 = arith.constant 0 : index
    %c0_21 = arith.constant 0 : index
    %19 = vector.load %arg2[%c2, %c0_20, %c0_21] : memref<9x8x16xbf16, #tpu.memory_space<vmem>>, vector<1x8x16xbf16>
    %20 = vector.shape_cast %19 : vector<1x8x16xbf16> to vector<8x16xbf16>
    %cst_22 = arith.constant dense<0.000000e+00> : vector<256x16xf32>
    %21 = tpu.matmul %18, %20, %cst_22 {dimension_numbers = #tpu.dot_dimension_numbers<[1], [0], [0], [1], [0, 0, 1, 1], [], []>} : vector<256x8xbf16>, vector<8x16xbf16>, vector<256x16xf32> -> vector<256x16xf32>
    %22 = arith.addf %15, %21 : vector<256x16xf32>
    %c2_23 = arith.constant 2 : index
    %c0_24 = arith.constant 0 : index
    %c0_25 = arith.constant 0 : index
    %c0_26 = arith.constant 0 : index
    %23 = vector.load %arg1[%c2_23, %c0_24, %c0_25, %c0_26] : memref<4x17x17x8xbf16, #tpu.memory_space<vmem>>, vector<1x16x16x8xbf16>
    %24 = vector.shape_cast %23 : vector<1x16x16x8xbf16> to vector<16x16x8xbf16>
    %25 = vector.shape_cast %24 : vector<16x16x8xbf16> to vector<256x8xbf16>
    %c3 = arith.constant 3 : index
    %c0_27 = arith.constant 0 : index
    %c0_28 = arith.constant 0 : index
    %26 = vector.load %arg2[%c3, %c0_27, %c0_28] : memref<9x8x16xbf16, #tpu.memory_space<vmem>>, vector<1x8x16xbf16>
    %27 = vector.shape_cast %26 : vector<1x8x16xbf16> to vector<8x16xbf16>
    %cst_29 = arith.constant dense<0.000000e+00> : vector<256x16xf32>
    %28 = tpu.matmul %25, %27, %cst_29 {dimension_numbers = #tpu.dot_dimension_numbers<[1], [0], [0], [1], [0, 0, 1, 1], [], []>} : vector<256x8xbf16>, vector<8x16xbf16>, vector<256x16xf32> -> vector<256x16xf32>
    %29 = arith.addf %22, %28 : vector<256x16xf32>
    %c3_30 = arith.constant 3 : index
    %c0_31 = arith.constant 0 : index
    %c0_32 = arith.constant 0 : index
    %c0_33 = arith.constant 0 : index
    %30 = vector.load %arg1[%c3_30, %c0_31, %c0_32, %c0_33] : memref<4x17x17x8xbf16, #tpu.memory_space<vmem>>, vector<1x16x16x8xbf16>
    %31 = vector.shape_cast %30 : vector<1x16x16x8xbf16> to vector<16x16x8xbf16>
    %32 = vector.shape_cast %31 : vector<16x16x8xbf16> to vector<256x8xbf16>
    %c4 = arith.constant 4 : index
    %c0_34 = arith.constant 0 : index
    %c0_35 = arith.constant 0 : index
    %33 = vector.load %arg2[%c4, %c0_34, %c0_35] : memref<9x8x16xbf16, #tpu.memory_space<vmem>>, vector<1x8x16xbf16>
    %34 = vector.shape_cast %33 : vector<1x8x16xbf16> to vector<8x16xbf16>
    %cst_36 = arith.constant dense<0.000000e+00> : vector<256x16xf32>
    %35 = tpu.matmul %32, %34, %cst_36 {dimension_numbers = #tpu.dot_dimension_numbers<[1], [0], [0], [1], [0, 0, 1, 1], [], []>} : vector<256x8xbf16>, vector<8x16xbf16>, vector<256x16xf32> -> vector<256x16xf32>
    %36 = arith.addf %29, %35 : vector<256x16xf32>
    %c2_37 = arith.constant 2 : index
    %c0_38 = arith.constant 0 : index
    %c1_39 = arith.constant 1 : index
    %c0_40 = arith.constant 0 : index
    %37 = vector.load %arg1[%c2_37, %c0_38, %c1_39, %c0_40] : memref<4x17x17x8xbf16, #tpu.memory_space<vmem>>, vector<1x16x16x8xbf16>
    %38 = vector.shape_cast %37 : vector<1x16x16x8xbf16> to vector<16x16x8xbf16>
    %39 = vector.shape_cast %38 : vector<16x16x8xbf16> to vector<256x8xbf16>
    %c5 = arith.constant 5 : index
    %c0_41 = arith.constant 0 : index
    %c0_42 = arith.constant 0 : index
    %40 = vector.load %arg2[%c5, %c0_41, %c0_42] : memref<9x8x16xbf16, #tpu.memory_space<vmem>>, vector<1x8x16xbf16>
    %41 = vector.shape_cast %40 : vector<1x8x16xbf16> to vector<8x16xbf16>
    %cst_43 = arith.constant dense<0.000000e+00> : vector<256x16xf32>
    %42 = tpu.matmul %39, %41, %cst_43 {dimension_numbers = #tpu.dot_dimension_numbers<[1], [0], [0], [1], [0, 0, 1, 1], [], []>} : vector<256x8xbf16>, vector<8x16xbf16>, vector<256x16xf32> -> vector<256x16xf32>
    %43 = arith.addf %36, %42 : vector<256x16xf32>
    %c0_44 = arith.constant 0 : index
    %c1_45 = arith.constant 1 : index
    %c0_46 = arith.constant 0 : index
    %c0_47 = arith.constant 0 : index
    %44 = vector.load %arg1[%c0_44, %c1_45, %c0_46, %c0_47] : memref<4x17x17x8xbf16, #tpu.memory_space<vmem>>, vector<1x16x16x8xbf16>
    %45 = vector.shape_cast %44 : vector<1x16x16x8xbf16> to vector<16x16x8xbf16>
    %46 = vector.shape_cast %45 : vector<16x16x8xbf16> to vector<256x8xbf16>
    %c6 = arith.constant 6 : index
    %c0_48 = arith.constant 0 : index
    %c0_49 = arith.constant 0 : index
    %47 = vector.load %arg2[%c6, %c0_48, %c0_49] : memref<9x8x16xbf16, #tpu.memory_space<vmem>>, vector<1x8x16xbf16>
    %48 = vector.shape_cast %47 : vector<1x8x16xbf16> to vector<8x16xbf16>
    %cst_50 = arith.constant dense<0.000000e+00> : vector<256x16xf32>
    %49 = tpu.matmul %46, %48, %cst_50 {dimension_numbers = #tpu.dot_dimension_numbers<[1], [0], [0], [1], [0, 0, 1, 1], [], []>} : vector<256x8xbf16>, vector<8x16xbf16>, vector<256x16xf32> -> vector<256x16xf32>
    %50 = arith.addf %43, %49 : vector<256x16xf32>
    %c1_51 = arith.constant 1 : index
    %c1_52 = arith.constant 1 : index
    %c0_53 = arith.constant 0 : index
    %c0_54 = arith.constant 0 : index
    %51 = vector.load %arg1[%c1_51, %c1_52, %c0_53, %c0_54] : memref<4x17x17x8xbf16, #tpu.memory_space<vmem>>, vector<1x16x16x8xbf16>
    %52 = vector.shape_cast %51 : vector<1x16x16x8xbf16> to vector<16x16x8xbf16>
    %53 = vector.shape_cast %52 : vector<16x16x8xbf16> to vector<256x8xbf16>
    %c7 = arith.constant 7 : index
    %c0_55 = arith.constant 0 : index
    %c0_56 = arith.constant 0 : index
    %54 = vector.load %arg2[%c7, %c0_55, %c0_56] : memref<9x8x16xbf16, #tpu.memory_space<vmem>>, vector<1x8x16xbf16>
    %55 = vector.shape_cast %54 : vector<1x8x16xbf16> to vector<8x16xbf16>
    %cst_57 = arith.constant dense<0.000000e+00> : vector<256x16xf32>
    %56 = tpu.matmul %53, %55, %cst_57 {dimension_numbers = #tpu.dot_dimension_numbers<[1], [0], [0], [1], [0, 0, 1, 1], [], []>} : vector<256x8xbf16>, vector<8x16xbf16>, vector<256x16xf32> -> vector<256x16xf32>
    %57 = arith.addf %50, %56 : vector<256x16xf32>
    %c0_58 = arith.constant 0 : index
    %c1_59 = arith.constant 1 : index
    %c1_60 = arith.constant 1 : index
    %c0_61 = arith.constant 0 : index
    %58 = vector.load %arg1[%c0_58, %c1_59, %c1_60, %c0_61] : memref<4x17x17x8xbf16, #tpu.memory_space<vmem>>, vector<1x16x16x8xbf16>
    %59 = vector.shape_cast %58 : vector<1x16x16x8xbf16> to vector<16x16x8xbf16>
    %60 = vector.shape_cast %59 : vector<16x16x8xbf16> to vector<256x8xbf16>
    %c8 = arith.constant 8 : index
    %c0_62 = arith.constant 0 : index
    %c0_63 = arith.constant 0 : index
    %61 = vector.load %arg2[%c8, %c0_62, %c0_63] : memref<9x8x16xbf16, #tpu.memory_space<vmem>>, vector<1x8x16xbf16>
    %62 = vector.shape_cast %61 : vector<1x8x16xbf16> to vector<8x16xbf16>
    %cst_64 = arith.constant dense<0.000000e+00> : vector<256x16xf32>
    %63 = tpu.matmul %60, %62, %cst_64 {dimension_numbers = #tpu.dot_dimension_numbers<[1], [0], [0], [1], [0, 0, 1, 1], [], []>} : vector<256x8xbf16>, vector<8x16xbf16>, vector<256x16xf32> -> vector<256x16xf32>
    %64 = arith.addf %57, %63 : vector<256x16xf32>
    %65 = vector.broadcast %0 : vector<1x16xf32> to vector<256x16xf32>
    %66 = arith.addf %64, %65 : vector<256x16xf32>
    %cst_65 = arith.constant 3.000000e+00 : f32
    %67 = vector.broadcast %cst_65 : f32 to vector<256x16xf32>
    %68 = arith.addf %66, %67 : vector<256x16xf32>
    %cst_66 = arith.constant 0.000000e+00 : f32
    %cst_67 = arith.constant 6.000000e+00 : f32
    %69 = vector.broadcast %cst_66 : f32 to vector<256x16xf32>
    %70 = arith.maximumf %69, %68 : vector<256x16xf32>
    %71 = vector.broadcast %cst_67 : f32 to vector<256x16xf32>
    %72 = arith.minimumf %71, %70 : vector<256x16xf32>
    %73 = arith.mulf %66, %72 : vector<256x16xf32>
    %cst_68 = arith.constant 0.166666672 : f32
    %74 = vector.broadcast %cst_68 : f32 to vector<256x16xf32>
    %75 = arith.mulf %73, %74 : vector<256x16xf32>
    %76 = vector.shape_cast %75 : vector<256x16xf32> to vector<16x16x16xf32>
    %77 = arith.truncf %76 : vector<16x16x16xf32> to vector<16x16x16xbf16>
    %c0_69 = arith.constant 0 : index
    %c0_70 = arith.constant 0 : index
    %c0_71 = arith.constant 0 : index
    %c0_72 = arith.constant 0 : index
    %78 = vector.load %arg4[%c0_69, %c0_70, %c0_71, %c0_72] : memref<1x16x16x16xbf16, #tpu.memory_space<vmem>>, vector<1x16x16x16xbf16>
    %79 = vector.shape_cast %78 : vector<1x16x16x16xbf16> to vector<16x16x16xbf16>
    %80 = vector.shape_cast %77 : vector<16x16x16xbf16> to vector<1x16x16x16xbf16>
    tpu.vector_store %arg4[%c0_69, %c0_70, %c0_71, %c0_72], %80 {strides = array<i32>} : memref<1x16x16x16xbf16, #tpu.memory_space<vmem>>, vector<1x16x16x16xbf16>,
    return
  }
  func.func @transform_0(%arg0: i32) -> (i32, i32, i32, i32) {
    %c0_i32 = arith.constant 0 : i32
    %c0_i32_0 = arith.constant 0 : i32
    %c0_i32_1 = arith.constant 0 : i32
    %c0_i32_2 = arith.constant 0 : i32
    return %arg0, %c0_i32, %c0_i32_0, %c0_i32_1 : i32, i32, i32, i32
  }
  func.func @transform_1(%arg0: i32) -> (i32, i32, i32) {
    %c0_i32 = arith.constant 0 : i32
    %c0_i32_0 = arith.constant 0 : i32
    %c0_i32_1 = arith.constant 0 : i32
    %c0_i32_2 = arith.constant 0 : i32
    return %c0_i32, %c0_i32_0, %c0_i32_1 : i32, i32, i32
  }
  func.func @transform_2(%arg0: i32) -> (i32, i32) {
    %c0_i32 = arith.constant 0 : i32
    %c0_i32_0 = arith.constant 0 : i32
    %c0_i32_1 = arith.constant 0 : i32
    return %c0_i32, %c0_i32_0 : i32, i32
  }
  func.func @transform_3(%arg0: i32) -> (i32, i32, i32, i32) {
    %c0_i32 = arith.constant 0 : i32
    %c0_i32_0 = arith.constant 0 : i32
    %c0_i32_1 = arith.constant 0 : i32
    %c0_i32_2 = arith.constant 0 : i32
    return %arg0, %c0_i32, %c0_i32_0, %c0_i32_1 : i32, i32, i32, i32
  }
}

module attributes {stable_mosaic.version = 11 : i64} {
  func.func @_conv_direct_kernel(%arg0: i32, %arg1: memref<4x9x9x16xbf16, #tpu.memory_space<vmem>>, %arg2: memref<9x16x32xbf16, #tpu.memory_space<vmem>>, %arg3: memref<1x32xf32, #tpu.memory_space<vmem>>, %arg4: memref<1x8x8x32xbf16, #tpu.memory_space<vmem>>) attributes {dimension_semantics = [#tpu.dimension_semantics<parallel>], iteration_bounds = array<i64: 2>, scalar_prefetch = 0 : i64, scratch_operands = 0 : i64, tpu.core_type = #tpu.core_type<tc>, window_params = [{transform_indices = @transform_0, window_bounds = array<i64: 4, 9, 9, 16>}, {pipeline_mode = #tpu.pipeline_mode<synchronous>, transform_indices = @transform_1, window_bounds = array<i64: 9, 16, 32>}, {pipeline_mode = #tpu.pipeline_mode<synchronous>, transform_indices = @transform_2, window_bounds = array<i64: 1, 32>}, {transform_indices = @transform_3, window_bounds = array<i64: 1, 8, 8, 32>}]} {
    %c0 = arith.constant 0 : index
    %c0_0 = arith.constant 0 : index
    %0 = vector.load %arg3[%c0, %c0_0] : memref<1x32xf32, #tpu.memory_space<vmem>>, vector<1x32xf32>
    %cst = arith.constant 0.000000e+00 : f32
    %1 = vector.broadcast %cst : f32 to vector<64x32xf32>
    %c0_1 = arith.constant 0 : index
    %c0_2 = arith.constant 0 : index
    %c0_3 = arith.constant 0 : index
    %c0_4 = arith.constant 0 : index
    %2 = vector.load %arg1[%c0_1, %c0_2, %c0_3, %c0_4] : memref<4x9x9x16xbf16, #tpu.memory_space<vmem>>, vector<1x8x8x16xbf16>
    %3 = vector.shape_cast %2 : vector<1x8x8x16xbf16> to vector<8x8x16xbf16>
    %4 = vector.shape_cast %3 : vector<8x8x16xbf16> to vector<64x16xbf16>
    %c0_5 = arith.constant 0 : index
    %c0_6 = arith.constant 0 : index
    %c0_7 = arith.constant 0 : index
    %5 = vector.load %arg2[%c0_5, %c0_6, %c0_7] : memref<9x16x32xbf16, #tpu.memory_space<vmem>>, vector<1x16x32xbf16>
    %6 = vector.shape_cast %5 : vector<1x16x32xbf16> to vector<16x32xbf16>
    %cst_8 = arith.constant dense<0.000000e+00> : vector<64x32xf32>
    %7 = tpu.matmul %4, %6, %cst_8 {dimension_numbers = #tpu.dot_dimension_numbers<[1], [0], [0], [1], [0, 0, 1, 1], [], []>} : vector<64x16xbf16>, vector<16x32xbf16>, vector<64x32xf32> -> vector<64x32xf32>
    %8 = arith.addf %1, %7 : vector<64x32xf32>
    %c1 = arith.constant 1 : index
    %c0_9 = arith.constant 0 : index
    %c0_10 = arith.constant 0 : index
    %c0_11 = arith.constant 0 : index
    %9 = vector.load %arg1[%c1, %c0_9, %c0_10, %c0_11] : memref<4x9x9x16xbf16, #tpu.memory_space<vmem>>, vector<1x8x8x16xbf16>
    %10 = vector.shape_cast %9 : vector<1x8x8x16xbf16> to vector<8x8x16xbf16>
    %11 = vector.shape_cast %10 : vector<8x8x16xbf16> to vector<64x16xbf16>
    %c1_12 = arith.constant 1 : index
    %c0_13 = arith.constant 0 : index
    %c0_14 = arith.constant 0 : index
    %12 = vector.load %arg2[%c1_12, %c0_13, %c0_14] : memref<9x16x32xbf16, #tpu.memory_space<vmem>>, vector<1x16x32xbf16>
    %13 = vector.shape_cast %12 : vector<1x16x32xbf16> to vector<16x32xbf16>
    %cst_15 = arith.constant dense<0.000000e+00> : vector<64x32xf32>
    %14 = tpu.matmul %11, %13, %cst_15 {dimension_numbers = #tpu.dot_dimension_numbers<[1], [0], [0], [1], [0, 0, 1, 1], [], []>} : vector<64x16xbf16>, vector<16x32xbf16>, vector<64x32xf32> -> vector<64x32xf32>
    %15 = arith.addf %8, %14 : vector<64x32xf32>
    %c0_16 = arith.constant 0 : index
    %c0_17 = arith.constant 0 : index
    %c1_18 = arith.constant 1 : index
    %c0_19 = arith.constant 0 : index
    %16 = vector.load %arg1[%c0_16, %c0_17, %c1_18, %c0_19] : memref<4x9x9x16xbf16, #tpu.memory_space<vmem>>, vector<1x8x8x16xbf16>
    %17 = vector.shape_cast %16 : vector<1x8x8x16xbf16> to vector<8x8x16xbf16>
    %18 = vector.shape_cast %17 : vector<8x8x16xbf16> to vector<64x16xbf16>
    %c2 = arith.constant 2 : index
    %c0_20 = arith.constant 0 : index
    %c0_21 = arith.constant 0 : index
    %19 = vector.load %arg2[%c2, %c0_20, %c0_21] : memref<9x16x32xbf16, #tpu.memory_space<vmem>>, vector<1x16x32xbf16>
    %20 = vector.shape_cast %19 : vector<1x16x32xbf16> to vector<16x32xbf16>
    %cst_22 = arith.constant dense<0.000000e+00> : vector<64x32xf32>
    %21 = tpu.matmul %18, %20, %cst_22 {dimension_numbers = #tpu.dot_dimension_numbers<[1], [0], [0], [1], [0, 0, 1, 1], [], []>} : vector<64x16xbf16>, vector<16x32xbf16>, vector<64x32xf32> -> vector<64x32xf32>
    %22 = arith.addf %15, %21 : vector<64x32xf32>
    %c2_23 = arith.constant 2 : index
    %c0_24 = arith.constant 0 : index
    %c0_25 = arith.constant 0 : index
    %c0_26 = arith.constant 0 : index
    %23 = vector.load %arg1[%c2_23, %c0_24, %c0_25, %c0_26] : memref<4x9x9x16xbf16, #tpu.memory_space<vmem>>, vector<1x8x8x16xbf16>
    %24 = vector.shape_cast %23 : vector<1x8x8x16xbf16> to vector<8x8x16xbf16>
    %25 = vector.shape_cast %24 : vector<8x8x16xbf16> to vector<64x16xbf16>
    %c3 = arith.constant 3 : index
    %c0_27 = arith.constant 0 : index
    %c0_28 = arith.constant 0 : index
    %26 = vector.load %arg2[%c3, %c0_27, %c0_28] : memref<9x16x32xbf16, #tpu.memory_space<vmem>>, vector<1x16x32xbf16>
    %27 = vector.shape_cast %26 : vector<1x16x32xbf16> to vector<16x32xbf16>
    %cst_29 = arith.constant dense<0.000000e+00> : vector<64x32xf32>
    %28 = tpu.matmul %25, %27, %cst_29 {dimension_numbers = #tpu.dot_dimension_numbers<[1], [0], [0], [1], [0, 0, 1, 1], [], []>} : vector<64x16xbf16>, vector<16x32xbf16>, vector<64x32xf32> -> vector<64x32xf32>
    %29 = arith.addf %22, %28 : vector<64x32xf32>
    %c3_30 = arith.constant 3 : index
    %c0_31 = arith.constant 0 : index
    %c0_32 = arith.constant 0 : index
    %c0_33 = arith.constant 0 : index
    %30 = vector.load %arg1[%c3_30, %c0_31, %c0_32, %c0_33] : memref<4x9x9x16xbf16, #tpu.memory_space<vmem>>, vector<1x8x8x16xbf16>
    %31 = vector.shape_cast %30 : vector<1x8x8x16xbf16> to vector<8x8x16xbf16>
    %32 = vector.shape_cast %31 : vector<8x8x16xbf16> to vector<64x16xbf16>
    %c4 = arith.constant 4 : index
    %c0_34 = arith.constant 0 : index
    %c0_35 = arith.constant 0 : index
    %33 = vector.load %arg2[%c4, %c0_34, %c0_35] : memref<9x16x32xbf16, #tpu.memory_space<vmem>>, vector<1x16x32xbf16>
    %34 = vector.shape_cast %33 : vector<1x16x32xbf16> to vector<16x32xbf16>
    %cst_36 = arith.constant dense<0.000000e+00> : vector<64x32xf32>
    %35 = tpu.matmul %32, %34, %cst_36 {dimension_numbers = #tpu.dot_dimension_numbers<[1], [0], [0], [1], [0, 0, 1, 1], [], []>} : vector<64x16xbf16>, vector<16x32xbf16>, vector<64x32xf32> -> vector<64x32xf32>
    %36 = arith.addf %29, %35 : vector<64x32xf32>
    %c2_37 = arith.constant 2 : index
    %c0_38 = arith.constant 0 : index
    %c1_39 = arith.constant 1 : index
    %c0_40 = arith.constant 0 : index
    %37 = vector.load %arg1[%c2_37, %c0_38, %c1_39, %c0_40] : memref<4x9x9x16xbf16, #tpu.memory_space<vmem>>, vector<1x8x8x16xbf16>
    %38 = vector.shape_cast %37 : vector<1x8x8x16xbf16> to vector<8x8x16xbf16>
    %39 = vector.shape_cast %38 : vector<8x8x16xbf16> to vector<64x16xbf16>
    %c5 = arith.constant 5 : index
    %c0_41 = arith.constant 0 : index
    %c0_42 = arith.constant 0 : index
    %40 = vector.load %arg2[%c5, %c0_41, %c0_42] : memref<9x16x32xbf16, #tpu.memory_space<vmem>>, vector<1x16x32xbf16>
    %41 = vector.shape_cast %40 : vector<1x16x32xbf16> to vector<16x32xbf16>
    %cst_43 = arith.constant dense<0.000000e+00> : vector<64x32xf32>
    %42 = tpu.matmul %39, %41, %cst_43 {dimension_numbers = #tpu.dot_dimension_numbers<[1], [0], [0], [1], [0, 0, 1, 1], [], []>} : vector<64x16xbf16>, vector<16x32xbf16>, vector<64x32xf32> -> vector<64x32xf32>
    %43 = arith.addf %36, %42 : vector<64x32xf32>
    %c0_44 = arith.constant 0 : index
    %c1_45 = arith.constant 1 : index
    %c0_46 = arith.constant 0 : index
    %c0_47 = arith.constant 0 : index
    %44 = vector.load %arg1[%c0_44, %c1_45, %c0_46, %c0_47] : memref<4x9x9x16xbf16, #tpu.memory_space<vmem>>, vector<1x8x8x16xbf16>
    %45 = vector.shape_cast %44 : vector<1x8x8x16xbf16> to vector<8x8x16xbf16>
    %46 = vector.shape_cast %45 : vector<8x8x16xbf16> to vector<64x16xbf16>
    %c6 = arith.constant 6 : index
    %c0_48 = arith.constant 0 : index
    %c0_49 = arith.constant 0 : index
    %47 = vector.load %arg2[%c6, %c0_48, %c0_49] : memref<9x16x32xbf16, #tpu.memory_space<vmem>>, vector<1x16x32xbf16>
    %48 = vector.shape_cast %47 : vector<1x16x32xbf16> to vector<16x32xbf16>
    %cst_50 = arith.constant dense<0.000000e+00> : vector<64x32xf32>
    %49 = tpu.matmul %46, %48, %cst_50 {dimension_numbers = #tpu.dot_dimension_numbers<[1], [0], [0], [1], [0, 0, 1, 1], [], []>} : vector<64x16xbf16>, vector<16x32xbf16>, vector<64x32xf32> -> vector<64x32xf32>
    %50 = arith.addf %43, %49 : vector<64x32xf32>
    %c1_51 = arith.constant 1 : index
    %c1_52 = arith.constant 1 : index
    %c0_53 = arith.constant 0 : index
    %c0_54 = arith.constant 0 : index
    %51 = vector.load %arg1[%c1_51, %c1_52, %c0_53, %c0_54] : memref<4x9x9x16xbf16, #tpu.memory_space<vmem>>, vector<1x8x8x16xbf16>
    %52 = vector.shape_cast %51 : vector<1x8x8x16xbf16> to vector<8x8x16xbf16>
    %53 = vector.shape_cast %52 : vector<8x8x16xbf16> to vector<64x16xbf16>
    %c7 = arith.constant 7 : index
    %c0_55 = arith.constant 0 : index
    %c0_56 = arith.constant 0 : index
    %54 = vector.load %arg2[%c7, %c0_55, %c0_56] : memref<9x16x32xbf16, #tpu.memory_space<vmem>>, vector<1x16x32xbf16>
    %55 = vector.shape_cast %54 : vector<1x16x32xbf16> to vector<16x32xbf16>
    %cst_57 = arith.constant dense<0.000000e+00> : vector<64x32xf32>
    %56 = tpu.matmul %53, %55, %cst_57 {dimension_numbers = #tpu.dot_dimension_numbers<[1], [0], [0], [1], [0, 0, 1, 1], [], []>} : vector<64x16xbf16>, vector<16x32xbf16>, vector<64x32xf32> -> vector<64x32xf32>
    %57 = arith.addf %50, %56 : vector<64x32xf32>
    %c0_58 = arith.constant 0 : index
    %c1_59 = arith.constant 1 : index
    %c1_60 = arith.constant 1 : index
    %c0_61 = arith.constant 0 : index
    %58 = vector.load %arg1[%c0_58, %c1_59, %c1_60, %c0_61] : memref<4x9x9x16xbf16, #tpu.memory_space<vmem>>, vector<1x8x8x16xbf16>
    %59 = vector.shape_cast %58 : vector<1x8x8x16xbf16> to vector<8x8x16xbf16>
    %60 = vector.shape_cast %59 : vector<8x8x16xbf16> to vector<64x16xbf16>
    %c8 = arith.constant 8 : index
    %c0_62 = arith.constant 0 : index
    %c0_63 = arith.constant 0 : index
    %61 = vector.load %arg2[%c8, %c0_62, %c0_63] : memref<9x16x32xbf16, #tpu.memory_space<vmem>>, vector<1x16x32xbf16>
    %62 = vector.shape_cast %61 : vector<1x16x32xbf16> to vector<16x32xbf16>
    %cst_64 = arith.constant dense<0.000000e+00> : vector<64x32xf32>
    %63 = tpu.matmul %60, %62, %cst_64 {dimension_numbers = #tpu.dot_dimension_numbers<[1], [0], [0], [1], [0, 0, 1, 1], [], []>} : vector<64x16xbf16>, vector<16x32xbf16>, vector<64x32xf32> -> vector<64x32xf32>
    %64 = arith.addf %57, %63 : vector<64x32xf32>
    %65 = vector.broadcast %0 : vector<1x32xf32> to vector<64x32xf32>
    %66 = arith.addf %64, %65 : vector<64x32xf32>
    %cst_65 = arith.constant 3.000000e+00 : f32
    %67 = vector.broadcast %cst_65 : f32 to vector<64x32xf32>
    %68 = arith.addf %66, %67 : vector<64x32xf32>
    %cst_66 = arith.constant 0.000000e+00 : f32
    %cst_67 = arith.constant 6.000000e+00 : f32
    %69 = vector.broadcast %cst_66 : f32 to vector<64x32xf32>
    %70 = arith.maximumf %69, %68 : vector<64x32xf32>
    %71 = vector.broadcast %cst_67 : f32 to vector<64x32xf32>
    %72 = arith.minimumf %71, %70 : vector<64x32xf32>
    %73 = arith.mulf %66, %72 : vector<64x32xf32>
    %cst_68 = arith.constant 0.166666672 : f32
    %74 = vector.broadcast %cst_68 : f32 to vector<64x32xf32>
    %75 = arith.mulf %73, %74 : vector<64x32xf32>
    %76 = vector.shape_cast %75 : vector<64x32xf32> to vector<8x8x32xf32>
    %77 = arith.truncf %76 : vector<8x8x32xf32> to vector<8x8x32xbf16>
    %c0_69 = arith.constant 0 : index
    %c0_70 = arith.constant 0 : index
    %c0_71 = arith.constant 0 : index
    %c0_72 = arith.constant 0 : index
    %78 = vector.load %arg4[%c0_69, %c0_70, %c0_71, %c0_72] : memref<1x8x8x32xbf16, #tpu.memory_space<vmem>>, vector<1x8x8x32xbf16>
    %79 = vector.shape_cast %78 : vector<1x8x8x32xbf16> to vector<8x8x32xbf16>
    %80 = vector.shape_cast %77 : vector<8x8x32xbf16> to vector<1x8x8x32xbf16>
    tpu.vector_store %arg4[%c0_69, %c0_70, %c0_71, %c0_72], %80 {strides = array<i32>} : memref<1x8x8x32xbf16, #tpu.memory_space<vmem>>, vector<1x8x8x32xbf16>,
    return
  }
  func.func @transform_0(%arg0: i32) -> (i32, i32, i32, i32) {
    %c0_i32 = arith.constant 0 : i32
    %c0_i32_0 = arith.constant 0 : i32
    %c0_i32_1 = arith.constant 0 : i32
    %c0_i32_2 = arith.constant 0 : i32
    return %arg0, %c0_i32, %c0_i32_0, %c0_i32_1 : i32, i32, i32, i32
  }
  func.func @transform_1(%arg0: i32) -> (i32, i32, i32) {
    %c0_i32 = arith.constant 0 : i32
    %c0_i32_0 = arith.constant 0 : i32
    %c0_i32_1 = arith.constant 0 : i32
    %c0_i32_2 = arith.constant 0 : i32
    return %c0_i32, %c0_i32_0, %c0_i32_1 : i32, i32, i32
  }
  func.func @transform_2(%arg0: i32) -> (i32, i32) {
    %c0_i32 = arith.constant 0 : i32
    %c0_i32_0 = arith.constant 0 : i32
    %c0_i32_1 = arith.constant 0 : i32
    return %c0_i32, %c0_i32_0 : i32, i32
  }
  func.func @transform_3(%arg0: i32) -> (i32, i32, i32, i32) {
    %c0_i32 = arith.constant 0 : i32
    %c0_i32_0 = arith.constant 0 : i32
    %c0_i32_1 = arith.constant 0 : i32
    %c0_i32_2 = arith.constant 0 : i32
    return %arg0, %c0_i32, %c0_i32_0, %c0_i32_1 : i32, i32, i32, i32
  }
}

module attributes {stable_mosaic.version = 11 : i64} {
  func.func @_conv_direct_kernel(%arg0: i32, %arg1: memref<4x5x5x32xbf16, #tpu.memory_space<vmem>>, %arg2: memref<9x32x32xbf16, #tpu.memory_space<vmem>>, %arg3: memref<1x32xf32, #tpu.memory_space<vmem>>, %arg4: memref<1x4x4x32xbf16, #tpu.memory_space<vmem>>) attributes {dimension_semantics = [#tpu.dimension_semantics<parallel>], iteration_bounds = array<i64: 2>, scalar_prefetch = 0 : i64, scratch_operands = 0 : i64, tpu.core_type = #tpu.core_type<tc>, window_params = [{transform_indices = @transform_0, window_bounds = array<i64: 4, 5, 5, 32>}, {pipeline_mode = #tpu.pipeline_mode<synchronous>, transform_indices = @transform_1, window_bounds = array<i64: 9, 32, 32>}, {pipeline_mode = #tpu.pipeline_mode<synchronous>, transform_indices = @transform_2, window_bounds = array<i64: 1, 32>}, {transform_indices = @transform_3, window_bounds = array<i64: 1, 4, 4, 32>}]} {
    %c0 = arith.constant 0 : index
    %c0_0 = arith.constant 0 : index
    %0 = vector.load %arg3[%c0, %c0_0] : memref<1x32xf32, #tpu.memory_space<vmem>>, vector<1x32xf32>
    %cst = arith.constant 0.000000e+00 : f32
    %1 = vector.broadcast %cst : f32 to vector<16x32xf32>
    %c0_1 = arith.constant 0 : index
    %c0_2 = arith.constant 0 : index
    %c0_3 = arith.constant 0 : index
    %c0_4 = arith.constant 0 : index
    %2 = vector.load %arg1[%c0_1, %c0_2, %c0_3, %c0_4] : memref<4x5x5x32xbf16, #tpu.memory_space<vmem>>, vector<1x4x4x32xbf16>
    %3 = vector.shape_cast %2 : vector<1x4x4x32xbf16> to vector<4x4x32xbf16>
    %4 = vector.shape_cast %3 : vector<4x4x32xbf16> to vector<16x32xbf16>
    %c0_5 = arith.constant 0 : index
    %c0_6 = arith.constant 0 : index
    %c0_7 = arith.constant 0 : index
    %5 = vector.load %arg2[%c0_5, %c0_6, %c0_7] : memref<9x32x32xbf16, #tpu.memory_space<vmem>>, vector<1x32x32xbf16>
    %6 = vector.shape_cast %5 : vector<1x32x32xbf16> to vector<32x32xbf16>
    %cst_8 = arith.constant dense<0.000000e+00> : vector<16x32xf32>
    %7 = tpu.matmul %4, %6, %cst_8 {dimension_numbers = #tpu.dot_dimension_numbers<[1], [0], [0], [1], [0, 0, 1, 1], [], []>} : vector<16x32xbf16>, vector<32x32xbf16>, vector<16x32xf32> -> vector<16x32xf32>
    %8 = arith.addf %1, %7 : vector<16x32xf32>
    %c1 = arith.constant 1 : index
    %c0_9 = arith.constant 0 : index
    %c0_10 = arith.constant 0 : index
    %c0_11 = arith.constant 0 : index
    %9 = vector.load %arg1[%c1, %c0_9, %c0_10, %c0_11] : memref<4x5x5x32xbf16, #tpu.memory_space<vmem>>, vector<1x4x4x32xbf16>
    %10 = vector.shape_cast %9 : vector<1x4x4x32xbf16> to vector<4x4x32xbf16>
    %11 = vector.shape_cast %10 : vector<4x4x32xbf16> to vector<16x32xbf16>
    %c1_12 = arith.constant 1 : index
    %c0_13 = arith.constant 0 : index
    %c0_14 = arith.constant 0 : index
    %12 = vector.load %arg2[%c1_12, %c0_13, %c0_14] : memref<9x32x32xbf16, #tpu.memory_space<vmem>>, vector<1x32x32xbf16>
    %13 = vector.shape_cast %12 : vector<1x32x32xbf16> to vector<32x32xbf16>
    %cst_15 = arith.constant dense<0.000000e+00> : vector<16x32xf32>
    %14 = tpu.matmul %11, %13, %cst_15 {dimension_numbers = #tpu.dot_dimension_numbers<[1], [0], [0], [1], [0, 0, 1, 1], [], []>} : vector<16x32xbf16>, vector<32x32xbf16>, vector<16x32xf32> -> vector<16x32xf32>
    %15 = arith.addf %8, %14 : vector<16x32xf32>
    %c0_16 = arith.constant 0 : index
    %c0_17 = arith.constant 0 : index
    %c1_18 = arith.constant 1 : index
    %c0_19 = arith.constant 0 : index
    %16 = vector.load %arg1[%c0_16, %c0_17, %c1_18, %c0_19] : memref<4x5x5x32xbf16, #tpu.memory_space<vmem>>, vector<1x4x4x32xbf16>
    %17 = vector.shape_cast %16 : vector<1x4x4x32xbf16> to vector<4x4x32xbf16>
    %18 = vector.shape_cast %17 : vector<4x4x32xbf16> to vector<16x32xbf16>
    %c2 = arith.constant 2 : index
    %c0_20 = arith.constant 0 : index
    %c0_21 = arith.constant 0 : index
    %19 = vector.load %arg2[%c2, %c0_20, %c0_21] : memref<9x32x32xbf16, #tpu.memory_space<vmem>>, vector<1x32x32xbf16>
    %20 = vector.shape_cast %19 : vector<1x32x32xbf16> to vector<32x32xbf16>
    %cst_22 = arith.constant dense<0.000000e+00> : vector<16x32xf32>
    %21 = tpu.matmul %18, %20, %cst_22 {dimension_numbers = #tpu.dot_dimension_numbers<[1], [0], [0], [1], [0, 0, 1, 1], [], []>} : vector<16x32xbf16>, vector<32x32xbf16>, vector<16x32xf32> -> vector<16x32xf32>
    %22 = arith.addf %15, %21 : vector<16x32xf32>
    %c2_23 = arith.constant 2 : index
    %c0_24 = arith.constant 0 : index
    %c0_25 = arith.constant 0 : index
    %c0_26 = arith.constant 0 : index
    %23 = vector.load %arg1[%c2_23, %c0_24, %c0_25, %c0_26] : memref<4x5x5x32xbf16, #tpu.memory_space<vmem>>, vector<1x4x4x32xbf16>
    %24 = vector.shape_cast %23 : vector<1x4x4x32xbf16> to vector<4x4x32xbf16>
    %25 = vector.shape_cast %24 : vector<4x4x32xbf16> to vector<16x32xbf16>
    %c3 = arith.constant 3 : index
    %c0_27 = arith.constant 0 : index
    %c0_28 = arith.constant 0 : index
    %26 = vector.load %arg2[%c3, %c0_27, %c0_28] : memref<9x32x32xbf16, #tpu.memory_space<vmem>>, vector<1x32x32xbf16>
    %27 = vector.shape_cast %26 : vector<1x32x32xbf16> to vector<32x32xbf16>
    %cst_29 = arith.constant dense<0.000000e+00> : vector<16x32xf32>
    %28 = tpu.matmul %25, %27, %cst_29 {dimension_numbers = #tpu.dot_dimension_numbers<[1], [0], [0], [1], [0, 0, 1, 1], [], []>} : vector<16x32xbf16>, vector<32x32xbf16>, vector<16x32xf32> -> vector<16x32xf32>
    %29 = arith.addf %22, %28 : vector<16x32xf32>
    %c3_30 = arith.constant 3 : index
    %c0_31 = arith.constant 0 : index
    %c0_32 = arith.constant 0 : index
    %c0_33 = arith.constant 0 : index
    %30 = vector.load %arg1[%c3_30, %c0_31, %c0_32, %c0_33] : memref<4x5x5x32xbf16, #tpu.memory_space<vmem>>, vector<1x4x4x32xbf16>
    %31 = vector.shape_cast %30 : vector<1x4x4x32xbf16> to vector<4x4x32xbf16>
    %32 = vector.shape_cast %31 : vector<4x4x32xbf16> to vector<16x32xbf16>
    %c4 = arith.constant 4 : index
    %c0_34 = arith.constant 0 : index
    %c0_35 = arith.constant 0 : index
    %33 = vector.load %arg2[%c4, %c0_34, %c0_35] : memref<9x32x32xbf16, #tpu.memory_space<vmem>>, vector<1x32x32xbf16>
    %34 = vector.shape_cast %33 : vector<1x32x32xbf16> to vector<32x32xbf16>
    %cst_36 = arith.constant dense<0.000000e+00> : vector<16x32xf32>
    %35 = tpu.matmul %32, %34, %cst_36 {dimension_numbers = #tpu.dot_dimension_numbers<[1], [0], [0], [1], [0, 0, 1, 1], [], []>} : vector<16x32xbf16>, vector<32x32xbf16>, vector<16x32xf32> -> vector<16x32xf32>
    %36 = arith.addf %29, %35 : vector<16x32xf32>
    %c2_37 = arith.constant 2 : index
    %c0_38 = arith.constant 0 : index
    %c1_39 = arith.constant 1 : index
    %c0_40 = arith.constant 0 : index
    %37 = vector.load %arg1[%c2_37, %c0_38, %c1_39, %c0_40] : memref<4x5x5x32xbf16, #tpu.memory_space<vmem>>, vector<1x4x4x32xbf16>
    %38 = vector.shape_cast %37 : vector<1x4x4x32xbf16> to vector<4x4x32xbf16>
    %39 = vector.shape_cast %38 : vector<4x4x32xbf16> to vector<16x32xbf16>
    %c5 = arith.constant 5 : index
    %c0_41 = arith.constant 0 : index
    %c0_42 = arith.constant 0 : index
    %40 = vector.load %arg2[%c5, %c0_41, %c0_42] : memref<9x32x32xbf16, #tpu.memory_space<vmem>>, vector<1x32x32xbf16>
    %41 = vector.shape_cast %40 : vector<1x32x32xbf16> to vector<32x32xbf16>
    %cst_43 = arith.constant dense<0.000000e+00> : vector<16x32xf32>
    %42 = tpu.matmul %39, %41, %cst_43 {dimension_numbers = #tpu.dot_dimension_numbers<[1], [0], [0], [1], [0, 0, 1, 1], [], []>} : vector<16x32xbf16>, vector<32x32xbf16>, vector<16x32xf32> -> vector<16x32xf32>
    %43 = arith.addf %36, %42 : vector<16x32xf32>
    %c0_44 = arith.constant 0 : index
    %c1_45 = arith.constant 1 : index
    %c0_46 = arith.constant 0 : index
    %c0_47 = arith.constant 0 : index
    %44 = vector.load %arg1[%c0_44, %c1_45, %c0_46, %c0_47] : memref<4x5x5x32xbf16, #tpu.memory_space<vmem>>, vector<1x4x4x32xbf16>
    %45 = vector.shape_cast %44 : vector<1x4x4x32xbf16> to vector<4x4x32xbf16>
    %46 = vector.shape_cast %45 : vector<4x4x32xbf16> to vector<16x32xbf16>
    %c6 = arith.constant 6 : index
    %c0_48 = arith.constant 0 : index
    %c0_49 = arith.constant 0 : index
    %47 = vector.load %arg2[%c6, %c0_48, %c0_49] : memref<9x32x32xbf16, #tpu.memory_space<vmem>>, vector<1x32x32xbf16>
    %48 = vector.shape_cast %47 : vector<1x32x32xbf16> to vector<32x32xbf16>
    %cst_50 = arith.constant dense<0.000000e+00> : vector<16x32xf32>
    %49 = tpu.matmul %46, %48, %cst_50 {dimension_numbers = #tpu.dot_dimension_numbers<[1], [0], [0], [1], [0, 0, 1, 1], [], []>} : vector<16x32xbf16>, vector<32x32xbf16>, vector<16x32xf32> -> vector<16x32xf32>
    %50 = arith.addf %43, %49 : vector<16x32xf32>
    %c1_51 = arith.constant 1 : index
    %c1_52 = arith.constant 1 : index
    %c0_53 = arith.constant 0 : index
    %c0_54 = arith.constant 0 : index
    %51 = vector.load %arg1[%c1_51, %c1_52, %c0_53, %c0_54] : memref<4x5x5x32xbf16, #tpu.memory_space<vmem>>, vector<1x4x4x32xbf16>
    %52 = vector.shape_cast %51 : vector<1x4x4x32xbf16> to vector<4x4x32xbf16>
    %53 = vector.shape_cast %52 : vector<4x4x32xbf16> to vector<16x32xbf16>
    %c7 = arith.constant 7 : index
    %c0_55 = arith.constant 0 : index
    %c0_56 = arith.constant 0 : index
    %54 = vector.load %arg2[%c7, %c0_55, %c0_56] : memref<9x32x32xbf16, #tpu.memory_space<vmem>>, vector<1x32x32xbf16>
    %55 = vector.shape_cast %54 : vector<1x32x32xbf16> to vector<32x32xbf16>
    %cst_57 = arith.constant dense<0.000000e+00> : vector<16x32xf32>
    %56 = tpu.matmul %53, %55, %cst_57 {dimension_numbers = #tpu.dot_dimension_numbers<[1], [0], [0], [1], [0, 0, 1, 1], [], []>} : vector<16x32xbf16>, vector<32x32xbf16>, vector<16x32xf32> -> vector<16x32xf32>
    %57 = arith.addf %50, %56 : vector<16x32xf32>
    %c0_58 = arith.constant 0 : index
    %c1_59 = arith.constant 1 : index
    %c1_60 = arith.constant 1 : index
    %c0_61 = arith.constant 0 : index
    %58 = vector.load %arg1[%c0_58, %c1_59, %c1_60, %c0_61] : memref<4x5x5x32xbf16, #tpu.memory_space<vmem>>, vector<1x4x4x32xbf16>
    %59 = vector.shape_cast %58 : vector<1x4x4x32xbf16> to vector<4x4x32xbf16>
    %60 = vector.shape_cast %59 : vector<4x4x32xbf16> to vector<16x32xbf16>
    %c8 = arith.constant 8 : index
    %c0_62 = arith.constant 0 : index
    %c0_63 = arith.constant 0 : index
    %61 = vector.load %arg2[%c8, %c0_62, %c0_63] : memref<9x32x32xbf16, #tpu.memory_space<vmem>>, vector<1x32x32xbf16>
    %62 = vector.shape_cast %61 : vector<1x32x32xbf16> to vector<32x32xbf16>
    %cst_64 = arith.constant dense<0.000000e+00> : vector<16x32xf32>
    %63 = tpu.matmul %60, %62, %cst_64 {dimension_numbers = #tpu.dot_dimension_numbers<[1], [0], [0], [1], [0, 0, 1, 1], [], []>} : vector<16x32xbf16>, vector<32x32xbf16>, vector<16x32xf32> -> vector<16x32xf32>
    %64 = arith.addf %57, %63 : vector<16x32xf32>
    %65 = vector.broadcast %0 : vector<1x32xf32> to vector<16x32xf32>
    %66 = arith.addf %64, %65 : vector<16x32xf32>
    %cst_65 = arith.constant 3.000000e+00 : f32
    %67 = vector.broadcast %cst_65 : f32 to vector<16x32xf32>
    %68 = arith.addf %66, %67 : vector<16x32xf32>
    %cst_66 = arith.constant 0.000000e+00 : f32
    %cst_67 = arith.constant 6.000000e+00 : f32
    %69 = vector.broadcast %cst_66 : f32 to vector<16x32xf32>
    %70 = arith.maximumf %69, %68 : vector<16x32xf32>
    %71 = vector.broadcast %cst_67 : f32 to vector<16x32xf32>
    %72 = arith.minimumf %71, %70 : vector<16x32xf32>
    %73 = arith.mulf %66, %72 : vector<16x32xf32>
    %cst_68 = arith.constant 0.166666672 : f32
    %74 = vector.broadcast %cst_68 : f32 to vector<16x32xf32>
    %75 = arith.mulf %73, %74 : vector<16x32xf32>
    %76 = vector.shape_cast %75 : vector<16x32xf32> to vector<4x4x32xf32>
    %77 = arith.truncf %76 : vector<4x4x32xf32> to vector<4x4x32xbf16>
    %c0_69 = arith.constant 0 : index
    %c0_70 = arith.constant 0 : index
    %c0_71 = arith.constant 0 : index
    %c0_72 = arith.constant 0 : index
    %78 = vector.load %arg4[%c0_69, %c0_70, %c0_71, %c0_72] : memref<1x4x4x32xbf16, #tpu.memory_space<vmem>>, vector<1x4x4x32xbf16>
    %79 = vector.shape_cast %78 : vector<1x4x4x32xbf16> to vector<4x4x32xbf16>
    %80 = vector.shape_cast %77 : vector<4x4x32xbf16> to vector<1x4x4x32xbf16>
    tpu.vector_store %arg4[%c0_69, %c0_70, %c0_71, %c0_72], %80 {strides = array<i32>} : memref<1x4x4x32xbf16, #tpu.memory_space<vmem>>, vector<1x4x4x32xbf16>,
    return
  }
  func.func @transform_0(%arg0: i32) -> (i32, i32, i32, i32) {
    %c0_i32 = arith.constant 0 : i32
    %c0_i32_0 = arith.constant 0 : i32
    %c0_i32_1 = arith.constant 0 : i32
    %c0_i32_2 = arith.constant 0 : i32
    return %arg0, %c0_i32, %c0_i32_0, %c0_i32_1 : i32, i32, i32, i32
  }
  func.func @transform_1(%arg0: i32) -> (i32, i32, i32) {
    %c0_i32 = arith.constant 0 : i32
    %c0_i32_0 = arith.constant 0 : i32
    %c0_i32_1 = arith.constant 0 : i32
    %c0_i32_2 = arith.constant 0 : i32
    return %c0_i32, %c0_i32_0, %c0_i32_1 : i32, i32, i32
  }
  func.func @transform_2(%arg0: i32) -> (i32, i32) {
    %c0_i32 = arith.constant 0 : i32
    %c0_i32_0 = arith.constant 0 : i32
    %c0_i32_1 = arith.constant 0 : i32
    return %c0_i32, %c0_i32_0 : i32, i32
  }
  func.func @transform_3(%arg0: i32) -> (i32, i32, i32, i32) {
    %c0_i32 = arith.constant 0 : i32
    %c0_i32_0 = arith.constant 0 : i32
    %c0_i32_1 = arith.constant 0 : i32
    %c0_i32_2 = arith.constant 0 : i32
    return %arg0, %c0_i32, %c0_i32_0, %c0_i32_1 : i32, i32, i32, i32
  }
}

module attributes {stable_mosaic.version = 11 : i64} {
  func.func @_mm_bias_act_kernel(%arg0: i32, %arg1: memref<16x32xbf16, #tpu.memory_space<vmem>>, %arg2: memref<32x32xbf16, #tpu.memory_space<vmem>>, %arg3: memref<1x32xf32, #tpu.memory_space<vmem>>, %arg4: memref<16x32xbf16, #tpu.memory_space<vmem>>) attributes {dimension_semantics = [#tpu.dimension_semantics<parallel>], iteration_bounds = array<i64: 2>, scalar_prefetch = 0 : i64, scratch_operands = 0 : i64, tpu.core_type = #tpu.core_type<tc>, window_params = [{transform_indices = @transform_0, window_bounds = array<i64: 16, 32>}, {pipeline_mode = #tpu.pipeline_mode<synchronous>, transform_indices = @transform_1, window_bounds = array<i64: 32, 32>}, {pipeline_mode = #tpu.pipeline_mode<synchronous>, transform_indices = @transform_2, window_bounds = array<i64: 1, 32>}, {transform_indices = @transform_3, window_bounds = array<i64: 16, 32>}]} {
    %c0 = arith.constant 0 : index
    %c0_0 = arith.constant 0 : index
    %0 = vector.load %arg1[%c0, %c0_0] : memref<16x32xbf16, #tpu.memory_space<vmem>>, vector<16x32xbf16>
    %c0_1 = arith.constant 0 : index
    %c0_2 = arith.constant 0 : index
    %1 = vector.load %arg2[%c0_1, %c0_2] : memref<32x32xbf16, #tpu.memory_space<vmem>>, vector<32x32xbf16>
    %cst = arith.constant dense<0.000000e+00> : vector<16x32xf32>
    %2 = tpu.matmul %0, %1, %cst {dimension_numbers = #tpu.dot_dimension_numbers<[1], [0], [0], [1], [0, 0, 1, 1], [], []>} : vector<16x32xbf16>, vector<32x32xbf16>, vector<16x32xf32> -> vector<16x32xf32>
    %c0_3 = arith.constant 0 : index
    %c0_4 = arith.constant 0 : index
    %3 = vector.load %arg3[%c0_3, %c0_4] : memref<1x32xf32, #tpu.memory_space<vmem>>, vector<1x32xf32>
    %4 = vector.broadcast %3 : vector<1x32xf32> to vector<16x32xf32>
    %5 = arith.addf %2, %4 : vector<16x32xf32>
    %cst_5 = arith.constant 3.000000e+00 : f32
    %6 = vector.broadcast %cst_5 : f32 to vector<16x32xf32>
    %7 = arith.addf %5, %6 : vector<16x32xf32>
    %cst_6 = arith.constant 0.000000e+00 : f32
    %cst_7 = arith.constant 6.000000e+00 : f32
    %8 = vector.broadcast %cst_6 : f32 to vector<16x32xf32>
    %9 = arith.maximumf %8, %7 : vector<16x32xf32>
    %10 = vector.broadcast %cst_7 : f32 to vector<16x32xf32>
    %11 = arith.minimumf %10, %9 : vector<16x32xf32>
    %12 = arith.mulf %5, %11 : vector<16x32xf32>
    %cst_8 = arith.constant 0.166666672 : f32
    %13 = vector.broadcast %cst_8 : f32 to vector<16x32xf32>
    %14 = arith.mulf %12, %13 : vector<16x32xf32>
    %15 = arith.truncf %14 : vector<16x32xf32> to vector<16x32xbf16>
    %c0_9 = arith.constant 0 : index
    %c0_10 = arith.constant 0 : index
    %16 = vector.load %arg4[%c0_9, %c0_10] : memref<16x32xbf16, #tpu.memory_space<vmem>>, vector<16x32xbf16>
    tpu.vector_store %arg4[%c0_9, %c0_10], %15 {strides = array<i32>} : memref<16x32xbf16, #tpu.memory_space<vmem>>, vector<16x32xbf16>,
    return
  }
  func.func @transform_0(%arg0: i32) -> (i32, i32) {
    %c0_i32 = arith.constant 0 : i32
    %c0_i32_0 = arith.constant 0 : i32
    return %arg0, %c0_i32 : i32, i32
  }
  func.func @transform_1(%arg0: i32) -> (i32, i32) {
    %c0_i32 = arith.constant 0 : i32
    %c0_i32_0 = arith.constant 0 : i32
    %c0_i32_1 = arith.constant 0 : i32
    return %c0_i32, %c0_i32_0 : i32, i32
  }
  func.func @transform_2(%arg0: i32) -> (i32, i32) {
    %c0_i32 = arith.constant 0 : i32
    %c0_i32_0 = arith.constant 0 : i32
    %c0_i32_1 = arith.constant 0 : i32
    return %c0_i32, %c0_i32_0 : i32, i32
  }
  func.func @transform_3(%arg0: i32) -> (i32, i32) {
    %c0_i32 = arith.constant 0 : i32
    %c0_i32_0 = arith.constant 0 : i32
    return %arg0, %c0_i32 : i32, i32
  }
}

module attributes {stable_mosaic.version = 11 : i64} {
  func.func @_mm_bias_act_kernel(%arg0: i32, %arg1: memref<8x64xbf16, #tpu.memory_space<vmem>>, %arg2: memref<64x32xbf16, #tpu.memory_space<vmem>>, %arg3: memref<1x32xf32, #tpu.memory_space<vmem>>, %arg4: memref<8x32xbf16, #tpu.memory_space<vmem>>) attributes {dimension_semantics = [#tpu.dimension_semantics<parallel>], iteration_bounds = array<i64: 1>, scalar_prefetch = 0 : i64, scratch_operands = 0 : i64, tpu.core_type = #tpu.core_type<tc>, window_params = [{transform_indices = @transform_0, window_bounds = array<i64: 8, 64>}, {pipeline_mode = #tpu.pipeline_mode<synchronous>, transform_indices = @transform_1, window_bounds = array<i64: 64, 32>}, {pipeline_mode = #tpu.pipeline_mode<synchronous>, transform_indices = @transform_2, window_bounds = array<i64: 1, 32>}, {transform_indices = @transform_3, window_bounds = array<i64: 8, 32>}]} {
    %c0 = arith.constant 0 : index
    %c0_0 = arith.constant 0 : index
    %0 = vector.load %arg1[%c0, %c0_0] : memref<8x64xbf16, #tpu.memory_space<vmem>>, vector<8x64xbf16>
    %c0_1 = arith.constant 0 : index
    %c0_2 = arith.constant 0 : index
    %1 = vector.load %arg2[%c0_1, %c0_2] : memref<64x32xbf16, #tpu.memory_space<vmem>>, vector<64x32xbf16>
    %cst = arith.constant dense<0.000000e+00> : vector<8x32xf32>
    %2 = tpu.matmul %0, %1, %cst {dimension_numbers = #tpu.dot_dimension_numbers<[1], [0], [0], [1], [0, 0, 1, 1], [], []>} : vector<8x64xbf16>, vector<64x32xbf16>, vector<8x32xf32> -> vector<8x32xf32>
    %c0_3 = arith.constant 0 : index
    %c0_4 = arith.constant 0 : index
    %3 = vector.load %arg3[%c0_3, %c0_4] : memref<1x32xf32, #tpu.memory_space<vmem>>, vector<1x32xf32>
    %4 = vector.broadcast %3 : vector<1x32xf32> to vector<8x32xf32>
    %5 = arith.addf %2, %4 : vector<8x32xf32>
    %cst_5 = arith.constant 3.000000e+00 : f32
    %6 = vector.broadcast %cst_5 : f32 to vector<8x32xf32>
    %7 = arith.addf %5, %6 : vector<8x32xf32>
    %cst_6 = arith.constant 0.000000e+00 : f32
    %cst_7 = arith.constant 6.000000e+00 : f32
    %8 = vector.broadcast %cst_6 : f32 to vector<8x32xf32>
    %9 = arith.maximumf %8, %7 : vector<8x32xf32>
    %10 = vector.broadcast %cst_7 : f32 to vector<8x32xf32>
    %11 = arith.minimumf %10, %9 : vector<8x32xf32>
    %12 = arith.mulf %5, %11 : vector<8x32xf32>
    %cst_8 = arith.constant 0.166666672 : f32
    %13 = vector.broadcast %cst_8 : f32 to vector<8x32xf32>
    %14 = arith.mulf %12, %13 : vector<8x32xf32>
    %15 = arith.truncf %14 : vector<8x32xf32> to vector<8x32xbf16>
    %c0_9 = arith.constant 0 : index
    %c0_10 = arith.constant 0 : index
    %16 = vector.load %arg4[%c0_9, %c0_10] : memref<8x32xbf16, #tpu.memory_space<vmem>>, vector<8x32xbf16>
    tpu.vector_store %arg4[%c0_9, %c0_10], %15 {strides = array<i32>} : memref<8x32xbf16, #tpu.memory_space<vmem>>, vector<8x32xbf16>,
    return
  }
  func.func @transform_0(%arg0: i32) -> (i32, i32) {
    %c0_i32 = arith.constant 0 : i32
    %c0_i32_0 = arith.constant 0 : i32
    return %arg0, %c0_i32 : i32, i32
  }
  func.func @transform_1(%arg0: i32) -> (i32, i32) {
    %c0_i32 = arith.constant 0 : i32
    %c0_i32_0 = arith.constant 0 : i32
    %c0_i32_1 = arith.constant 0 : i32
    return %c0_i32, %c0_i32_0 : i32, i32
  }
  func.func @transform_2(%arg0: i32) -> (i32, i32) {
    %c0_i32 = arith.constant 0 : i32
    %c0_i32_0 = arith.constant 0 : i32
    %c0_i32_1 = arith.constant 0 : i32
    return %c0_i32, %c0_i32_0 : i32, i32
  }
  func.func @transform_3(%arg0: i32) -> (i32, i32) {
    %c0_i32 = arith.constant 0 : i32
    %c0_i32_0 = arith.constant 0 : i32
    return %arg0, %c0_i32 : i32, i32
  }
}

module attributes {stable_mosaic.version = 11 : i64} {
  func.func @_conv_direct_kernel(%arg0: i32, %arg1: memref<4x3x3x32xbf16, #tpu.memory_space<vmem>>, %arg2: memref<9x32x64xbf16, #tpu.memory_space<vmem>>, %arg3: memref<1x64xf32, #tpu.memory_space<vmem>>, %arg4: memref<1x2x2x64xbf16, #tpu.memory_space<vmem>>) attributes {dimension_semantics = [#tpu.dimension_semantics<parallel>], iteration_bounds = array<i64: 2>, scalar_prefetch = 0 : i64, scratch_operands = 0 : i64, tpu.core_type = #tpu.core_type<tc>, window_params = [{transform_indices = @transform_0, window_bounds = array<i64: 4, 3, 3, 32>}, {pipeline_mode = #tpu.pipeline_mode<synchronous>, transform_indices = @transform_1, window_bounds = array<i64: 9, 32, 64>}, {pipeline_mode = #tpu.pipeline_mode<synchronous>, transform_indices = @transform_2, window_bounds = array<i64: 1, 64>}, {transform_indices = @transform_3, window_bounds = array<i64: 1, 2, 2, 64>}]} {
    %c0 = arith.constant 0 : index
    %c0_0 = arith.constant 0 : index
    %0 = vector.load %arg3[%c0, %c0_0] : memref<1x64xf32, #tpu.memory_space<vmem>>, vector<1x64xf32>
    %cst = arith.constant 0.000000e+00 : f32
    %1 = vector.broadcast %cst : f32 to vector<4x64xf32>
    %c0_1 = arith.constant 0 : index
    %c0_2 = arith.constant 0 : index
    %c0_3 = arith.constant 0 : index
    %c0_4 = arith.constant 0 : index
    %2 = vector.load %arg1[%c0_1, %c0_2, %c0_3, %c0_4] : memref<4x3x3x32xbf16, #tpu.memory_space<vmem>>, vector<1x2x2x32xbf16>
    %3 = vector.shape_cast %2 : vector<1x2x2x32xbf16> to vector<2x2x32xbf16>
    %4 = vector.shape_cast %3 : vector<2x2x32xbf16> to vector<4x32xbf16>
    %c0_5 = arith.constant 0 : index
    %c0_6 = arith.constant 0 : index
    %c0_7 = arith.constant 0 : index
    %5 = vector.load %arg2[%c0_5, %c0_6, %c0_7] : memref<9x32x64xbf16, #tpu.memory_space<vmem>>, vector<1x32x64xbf16>
    %6 = vector.shape_cast %5 : vector<1x32x64xbf16> to vector<32x64xbf16>
    %cst_8 = arith.constant dense<0.000000e+00> : vector<4x64xf32>
    %7 = tpu.matmul %4, %6, %cst_8 {dimension_numbers = #tpu.dot_dimension_numbers<[1], [0], [0], [1], [0, 0, 1, 1], [], []>} : vector<4x32xbf16>, vector<32x64xbf16>, vector<4x64xf32> -> vector<4x64xf32>
    %8 = arith.addf %1, %7 : vector<4x64xf32>
    %c1 = arith.constant 1 : index
    %c0_9 = arith.constant 0 : index
    %c0_10 = arith.constant 0 : index
    %c0_11 = arith.constant 0 : index
    %9 = vector.load %arg1[%c1, %c0_9, %c0_10, %c0_11] : memref<4x3x3x32xbf16, #tpu.memory_space<vmem>>, vector<1x2x2x32xbf16>
    %10 = vector.shape_cast %9 : vector<1x2x2x32xbf16> to vector<2x2x32xbf16>
    %11 = vector.shape_cast %10 : vector<2x2x32xbf16> to vector<4x32xbf16>
    %c1_12 = arith.constant 1 : index
    %c0_13 = arith.constant 0 : index
    %c0_14 = arith.constant 0 : index
    %12 = vector.load %arg2[%c1_12, %c0_13, %c0_14] : memref<9x32x64xbf16, #tpu.memory_space<vmem>>, vector<1x32x64xbf16>
    %13 = vector.shape_cast %12 : vector<1x32x64xbf16> to vector<32x64xbf16>
    %cst_15 = arith.constant dense<0.000000e+00> : vector<4x64xf32>
    %14 = tpu.matmul %11, %13, %cst_15 {dimension_numbers = #tpu.dot_dimension_numbers<[1], [0], [0], [1], [0, 0, 1, 1], [], []>} : vector<4x32xbf16>, vector<32x64xbf16>, vector<4x64xf32> -> vector<4x64xf32>
    %15 = arith.addf %8, %14 : vector<4x64xf32>
    %c0_16 = arith.constant 0 : index
    %c0_17 = arith.constant 0 : index
    %c1_18 = arith.constant 1 : index
    %c0_19 = arith.constant 0 : index
    %16 = vector.load %arg1[%c0_16, %c0_17, %c1_18, %c0_19] : memref<4x3x3x32xbf16, #tpu.memory_space<vmem>>, vector<1x2x2x32xbf16>
    %17 = vector.shape_cast %16 : vector<1x2x2x32xbf16> to vector<2x2x32xbf16>
    %18 = vector.shape_cast %17 : vector<2x2x32xbf16> to vector<4x32xbf16>
    %c2 = arith.constant 2 : index
    %c0_20 = arith.constant 0 : index
    %c0_21 = arith.constant 0 : index
    %19 = vector.load %arg2[%c2, %c0_20, %c0_21] : memref<9x32x64xbf16, #tpu.memory_space<vmem>>, vector<1x32x64xbf16>
    %20 = vector.shape_cast %19 : vector<1x32x64xbf16> to vector<32x64xbf16>
    %cst_22 = arith.constant dense<0.000000e+00> : vector<4x64xf32>
    %21 = tpu.matmul %18, %20, %cst_22 {dimension_numbers = #tpu.dot_dimension_numbers<[1], [0], [0], [1], [0, 0, 1, 1], [], []>} : vector<4x32xbf16>, vector<32x64xbf16>, vector<4x64xf32> -> vector<4x64xf32>
    %22 = arith.addf %15, %21 : vector<4x64xf32>
    %c2_23 = arith.constant 2 : index
    %c0_24 = arith.constant 0 : index
    %c0_25 = arith.constant 0 : index
    %c0_26 = arith.constant 0 : index
    %23 = vector.load %arg1[%c2_23, %c0_24, %c0_25, %c0_26] : memref<4x3x3x32xbf16, #tpu.memory_space<vmem>>, vector<1x2x2x32xbf16>
    %24 = vector.shape_cast %23 : vector<1x2x2x32xbf16> to vector<2x2x32xbf16>
    %25 = vector.shape_cast %24 : vector<2x2x32xbf16> to vector<4x32xbf16>
    %c3 = arith.constant 3 : index
    %c0_27 = arith.constant 0 : index
    %c0_28 = arith.constant 0 : index
    %26 = vector.load %arg2[%c3, %c0_27, %c0_28] : memref<9x32x64xbf16, #tpu.memory_space<vmem>>, vector<1x32x64xbf16>
    %27 = vector.shape_cast %26 : vector<1x32x64xbf16> to vector<32x64xbf16>
    %cst_29 = arith.constant dense<0.000000e+00> : vector<4x64xf32>
    %28 = tpu.matmul %25, %27, %cst_29 {dimension_numbers = #tpu.dot_dimension_numbers<[1], [0], [0], [1], [0, 0, 1, 1], [], []>} : vector<4x32xbf16>, vector<32x64xbf16>, vector<4x64xf32> -> vector<4x64xf32>
    %29 = arith.addf %22, %28 : vector<4x64xf32>
    %c3_30 = arith.constant 3 : index
    %c0_31 = arith.constant 0 : index
    %c0_32 = arith.constant 0 : index
    %c0_33 = arith.constant 0 : index
    %30 = vector.load %arg1[%c3_30, %c0_31, %c0_32, %c0_33] : memref<4x3x3x32xbf16, #tpu.memory_space<vmem>>, vector<1x2x2x32xbf16>
    %31 = vector.shape_cast %30 : vector<1x2x2x32xbf16> to vector<2x2x32xbf16>
    %32 = vector.shape_cast %31 : vector<2x2x32xbf16> to vector<4x32xbf16>
    %c4 = arith.constant 4 : index
    %c0_34 = arith.constant 0 : index
    %c0_35 = arith.constant 0 : index
    %33 = vector.load %arg2[%c4, %c0_34, %c0_35] : memref<9x32x64xbf16, #tpu.memory_space<vmem>>, vector<1x32x64xbf16>
    %34 = vector.shape_cast %33 : vector<1x32x64xbf16> to vector<32x64xbf16>
    %cst_36 = arith.constant dense<0.000000e+00> : vector<4x64xf32>
    %35 = tpu.matmul %32, %34, %cst_36 {dimension_numbers = #tpu.dot_dimension_numbers<[1], [0], [0], [1], [0, 0, 1, 1], [], []>} : vector<4x32xbf16>, vector<32x64xbf16>, vector<4x64xf32> -> vector<4x64xf32>
    %36 = arith.addf %29, %35 : vector<4x64xf32>
    %c2_37 = arith.constant 2 : index
    %c0_38 = arith.constant 0 : index
    %c1_39 = arith.constant 1 : index
    %c0_40 = arith.constant 0 : index
    %37 = vector.load %arg1[%c2_37, %c0_38, %c1_39, %c0_40] : memref<4x3x3x32xbf16, #tpu.memory_space<vmem>>, vector<1x2x2x32xbf16>
    %38 = vector.shape_cast %37 : vector<1x2x2x32xbf16> to vector<2x2x32xbf16>
    %39 = vector.shape_cast %38 : vector<2x2x32xbf16> to vector<4x32xbf16>
    %c5 = arith.constant 5 : index
    %c0_41 = arith.constant 0 : index
    %c0_42 = arith.constant 0 : index
    %40 = vector.load %arg2[%c5, %c0_41, %c0_42] : memref<9x32x64xbf16, #tpu.memory_space<vmem>>, vector<1x32x64xbf16>
    %41 = vector.shape_cast %40 : vector<1x32x64xbf16> to vector<32x64xbf16>
    %cst_43 = arith.constant dense<0.000000e+00> : vector<4x64xf32>
    %42 = tpu.matmul %39, %41, %cst_43 {dimension_numbers = #tpu.dot_dimension_numbers<[1], [0], [0], [1], [0, 0, 1, 1], [], []>} : vector<4x32xbf16>, vector<32x64xbf16>, vector<4x64xf32> -> vector<4x64xf32>
    %43 = arith.addf %36, %42 : vector<4x64xf32>
    %c0_44 = arith.constant 0 : index
    %c1_45 = arith.constant 1 : index
    %c0_46 = arith.constant 0 : index
    %c0_47 = arith.constant 0 : index
    %44 = vector.load %arg1[%c0_44, %c1_45, %c0_46, %c0_47] : memref<4x3x3x32xbf16, #tpu.memory_space<vmem>>, vector<1x2x2x32xbf16>
    %45 = vector.shape_cast %44 : vector<1x2x2x32xbf16> to vector<2x2x32xbf16>
    %46 = vector.shape_cast %45 : vector<2x2x32xbf16> to vector<4x32xbf16>
    %c6 = arith.constant 6 : index
    %c0_48 = arith.constant 0 : index
    %c0_49 = arith.constant 0 : index
    %47 = vector.load %arg2[%c6, %c0_48, %c0_49] : memref<9x32x64xbf16, #tpu.memory_space<vmem>>, vector<1x32x64xbf16>
    %48 = vector.shape_cast %47 : vector<1x32x64xbf16> to vector<32x64xbf16>
    %cst_50 = arith.constant dense<0.000000e+00> : vector<4x64xf32>
    %49 = tpu.matmul %46, %48, %cst_50 {dimension_numbers = #tpu.dot_dimension_numbers<[1], [0], [0], [1], [0, 0, 1, 1], [], []>} : vector<4x32xbf16>, vector<32x64xbf16>, vector<4x64xf32> -> vector<4x64xf32>
    %50 = arith.addf %43, %49 : vector<4x64xf32>
    %c1_51 = arith.constant 1 : index
    %c1_52 = arith.constant 1 : index
    %c0_53 = arith.constant 0 : index
    %c0_54 = arith.constant 0 : index
    %51 = vector.load %arg1[%c1_51, %c1_52, %c0_53, %c0_54] : memref<4x3x3x32xbf16, #tpu.memory_space<vmem>>, vector<1x2x2x32xbf16>
    %52 = vector.shape_cast %51 : vector<1x2x2x32xbf16> to vector<2x2x32xbf16>
    %53 = vector.shape_cast %52 : vector<2x2x32xbf16> to vector<4x32xbf16>
    %c7 = arith.constant 7 : index
    %c0_55 = arith.constant 0 : index
    %c0_56 = arith.constant 0 : index
    %54 = vector.load %arg2[%c7, %c0_55, %c0_56] : memref<9x32x64xbf16, #tpu.memory_space<vmem>>, vector<1x32x64xbf16>
    %55 = vector.shape_cast %54 : vector<1x32x64xbf16> to vector<32x64xbf16>
    %cst_57 = arith.constant dense<0.000000e+00> : vector<4x64xf32>
    %56 = tpu.matmul %53, %55, %cst_57 {dimension_numbers = #tpu.dot_dimension_numbers<[1], [0], [0], [1], [0, 0, 1, 1], [], []>} : vector<4x32xbf16>, vector<32x64xbf16>, vector<4x64xf32> -> vector<4x64xf32>
    %57 = arith.addf %50, %56 : vector<4x64xf32>
    %c0_58 = arith.constant 0 : index
    %c1_59 = arith.constant 1 : index
    %c1_60 = arith.constant 1 : index
    %c0_61 = arith.constant 0 : index
    %58 = vector.load %arg1[%c0_58, %c1_59, %c1_60, %c0_61] : memref<4x3x3x32xbf16, #tpu.memory_space<vmem>>, vector<1x2x2x32xbf16>
    %59 = vector.shape_cast %58 : vector<1x2x2x32xbf16> to vector<2x2x32xbf16>
    %60 = vector.shape_cast %59 : vector<2x2x32xbf16> to vector<4x32xbf16>
    %c8 = arith.constant 8 : index
    %c0_62 = arith.constant 0 : index
    %c0_63 = arith.constant 0 : index
    %61 = vector.load %arg2[%c8, %c0_62, %c0_63] : memref<9x32x64xbf16, #tpu.memory_space<vmem>>, vector<1x32x64xbf16>
    %62 = vector.shape_cast %61 : vector<1x32x64xbf16> to vector<32x64xbf16>
    %cst_64 = arith.constant dense<0.000000e+00> : vector<4x64xf32>
    %63 = tpu.matmul %60, %62, %cst_64 {dimension_numbers = #tpu.dot_dimension_numbers<[1], [0], [0], [1], [0, 0, 1, 1], [], []>} : vector<4x32xbf16>, vector<32x64xbf16>, vector<4x64xf32> -> vector<4x64xf32>
    %64 = arith.addf %57, %63 : vector<4x64xf32>
    %65 = vector.broadcast %0 : vector<1x64xf32> to vector<4x64xf32>
    %66 = arith.addf %64, %65 : vector<4x64xf32>
    %cst_65 = arith.constant 3.000000e+00 : f32
    %67 = vector.broadcast %cst_65 : f32 to vector<4x64xf32>
    %68 = arith.addf %66, %67 : vector<4x64xf32>
    %cst_66 = arith.constant 0.000000e+00 : f32
    %cst_67 = arith.constant 6.000000e+00 : f32
    %69 = vector.broadcast %cst_66 : f32 to vector<4x64xf32>
    %70 = arith.maximumf %69, %68 : vector<4x64xf32>
    %71 = vector.broadcast %cst_67 : f32 to vector<4x64xf32>
    %72 = arith.minimumf %71, %70 : vector<4x64xf32>
    %73 = arith.mulf %66, %72 : vector<4x64xf32>
    %cst_68 = arith.constant 0.166666672 : f32
    %74 = vector.broadcast %cst_68 : f32 to vector<4x64xf32>
    %75 = arith.mulf %73, %74 : vector<4x64xf32>
    %76 = vector.shape_cast %75 : vector<4x64xf32> to vector<2x2x64xf32>
    %77 = arith.truncf %76 : vector<2x2x64xf32> to vector<2x2x64xbf16>
    %c0_69 = arith.constant 0 : index
    %c0_70 = arith.constant 0 : index
    %c0_71 = arith.constant 0 : index
    %c0_72 = arith.constant 0 : index
    %78 = vector.load %arg4[%c0_69, %c0_70, %c0_71, %c0_72] : memref<1x2x2x64xbf16, #tpu.memory_space<vmem>>, vector<1x2x2x64xbf16>
    %79 = vector.shape_cast %78 : vector<1x2x2x64xbf16> to vector<2x2x64xbf16>
    %80 = vector.shape_cast %77 : vector<2x2x64xbf16> to vector<1x2x2x64xbf16>
    tpu.vector_store %arg4[%c0_69, %c0_70, %c0_71, %c0_72], %80 {strides = array<i32>} : memref<1x2x2x64xbf16, #tpu.memory_space<vmem>>, vector<1x2x2x64xbf16>,
    return
  }
  func.func @transform_0(%arg0: i32) -> (i32, i32, i32, i32) {
    %c0_i32 = arith.constant 0 : i32
    %c0_i32_0 = arith.constant 0 : i32
    %c0_i32_1 = arith.constant 0 : i32
    %c0_i32_2 = arith.constant 0 : i32
    return %arg0, %c0_i32, %c0_i32_0, %c0_i32_1 : i32, i32, i32, i32
  }
  func.func @transform_1(%arg0: i32) -> (i32, i32, i32) {
    %c0_i32 = arith.constant 0 : i32
    %c0_i32_0 = arith.constant 0 : i32
    %c0_i32_1 = arith.constant 0 : i32
    %c0_i32_2 = arith.constant 0 : i32
    return %c0_i32, %c0_i32_0, %c0_i32_1 : i32, i32, i32
  }
  func.func @transform_2(%arg0: i32) -> (i32, i32) {
    %c0_i32 = arith.constant 0 : i32
    %c0_i32_0 = arith.constant 0 : i32
    %c0_i32_1 = arith.constant 0 : i32
    return %c0_i32, %c0_i32_0 : i32, i32
  }
  func.func @transform_3(%arg0: i32) -> (i32, i32, i32, i32) {
    %c0_i32 = arith.constant 0 : i32
    %c0_i32_0 = arith.constant 0 : i32
    %c0_i32_1 = arith.constant 0 : i32
    %c0_i32_2 = arith.constant 0 : i32
    return %arg0, %c0_i32, %c0_i32_0, %c0_i32_1 : i32, i32, i32, i32
  }
}

module attributes {stable_mosaic.version = 11 : i64} {
  func.func @_conv_direct_kernel(%arg0: i32, %arg1: memref<4x2x2x64xbf16, #tpu.memory_space<vmem>>, %arg2: memref<9x64x64xbf16, #tpu.memory_space<vmem>>, %arg3: memref<1x64xf32, #tpu.memory_space<vmem>>, %arg4: memref<1x1x1x64xbf16, #tpu.memory_space<vmem>>) attributes {dimension_semantics = [#tpu.dimension_semantics<parallel>], iteration_bounds = array<i64: 2>, scalar_prefetch = 0 : i64, scratch_operands = 0 : i64, tpu.core_type = #tpu.core_type<tc>, window_params = [{transform_indices = @transform_0, window_bounds = array<i64: 4, 2, 2, 64>}, {pipeline_mode = #tpu.pipeline_mode<synchronous>, transform_indices = @transform_1, window_bounds = array<i64: 9, 64, 64>}, {pipeline_mode = #tpu.pipeline_mode<synchronous>, transform_indices = @transform_2, window_bounds = array<i64: 1, 64>}, {transform_indices = @transform_3, window_bounds = array<i64: 1, 1, 1, 64>}]} {
    %c0 = arith.constant 0 : index
    %c0_0 = arith.constant 0 : index
    %0 = vector.load %arg3[%c0, %c0_0] : memref<1x64xf32, #tpu.memory_space<vmem>>, vector<1x64xf32>
    %cst = arith.constant 0.000000e+00 : f32
    %1 = vector.broadcast %cst : f32 to vector<1x64xf32>
    %c0_1 = arith.constant 0 : index
    %c0_2 = arith.constant 0 : index
    %c0_3 = arith.constant 0 : index
    %c0_4 = arith.constant 0 : index
    %2 = vector.load %arg1[%c0_1, %c0_2, %c0_3, %c0_4] : memref<4x2x2x64xbf16, #tpu.memory_space<vmem>>, vector<1x1x1x64xbf16>
    %3 = vector.shape_cast %2 : vector<1x1x1x64xbf16> to vector<1x1x64xbf16>
    %4 = vector.shape_cast %3 : vector<1x1x64xbf16> to vector<1x64xbf16>
    %c0_5 = arith.constant 0 : index
    %c0_6 = arith.constant 0 : index
    %c0_7 = arith.constant 0 : index
    %5 = vector.load %arg2[%c0_5, %c0_6, %c0_7] : memref<9x64x64xbf16, #tpu.memory_space<vmem>>, vector<1x64x64xbf16>
    %6 = vector.shape_cast %5 : vector<1x64x64xbf16> to vector<64x64xbf16>
    %cst_8 = arith.constant dense<0.000000e+00> : vector<1x64xf32>
    %7 = tpu.matmul %4, %6, %cst_8 {dimension_numbers = #tpu.dot_dimension_numbers<[1], [0], [0], [1], [0, 0, 1, 1], [], []>} : vector<1x64xbf16>, vector<64x64xbf16>, vector<1x64xf32> -> vector<1x64xf32>
    %8 = arith.addf %1, %7 : vector<1x64xf32>
    %c1 = arith.constant 1 : index
    %c0_9 = arith.constant 0 : index
    %c0_10 = arith.constant 0 : index
    %c0_11 = arith.constant 0 : index
    %9 = vector.load %arg1[%c1, %c0_9, %c0_10, %c0_11] : memref<4x2x2x64xbf16, #tpu.memory_space<vmem>>, vector<1x1x1x64xbf16>
    %10 = vector.shape_cast %9 : vector<1x1x1x64xbf16> to vector<1x1x64xbf16>
    %11 = vector.shape_cast %10 : vector<1x1x64xbf16> to vector<1x64xbf16>
    %c1_12 = arith.constant 1 : index
    %c0_13 = arith.constant 0 : index
    %c0_14 = arith.constant 0 : index
    %12 = vector.load %arg2[%c1_12, %c0_13, %c0_14] : memref<9x64x64xbf16, #tpu.memory_space<vmem>>, vector<1x64x64xbf16>
    %13 = vector.shape_cast %12 : vector<1x64x64xbf16> to vector<64x64xbf16>
    %cst_15 = arith.constant dense<0.000000e+00> : vector<1x64xf32>
    %14 = tpu.matmul %11, %13, %cst_15 {dimension_numbers = #tpu.dot_dimension_numbers<[1], [0], [0], [1], [0, 0, 1, 1], [], []>} : vector<1x64xbf16>, vector<64x64xbf16>, vector<1x64xf32> -> vector<1x64xf32>
    %15 = arith.addf %8, %14 : vector<1x64xf32>
    %c0_16 = arith.constant 0 : index
    %c0_17 = arith.constant 0 : index
    %c1_18 = arith.constant 1 : index
    %c0_19 = arith.constant 0 : index
    %16 = vector.load %arg1[%c0_16, %c0_17, %c1_18, %c0_19] : memref<4x2x2x64xbf16, #tpu.memory_space<vmem>>, vector<1x1x1x64xbf16>
    %17 = vector.shape_cast %16 : vector<1x1x1x64xbf16> to vector<1x1x64xbf16>
    %18 = vector.shape_cast %17 : vector<1x1x64xbf16> to vector<1x64xbf16>
    %c2 = arith.constant 2 : index
    %c0_20 = arith.constant 0 : index
    %c0_21 = arith.constant 0 : index
    %19 = vector.load %arg2[%c2, %c0_20, %c0_21] : memref<9x64x64xbf16, #tpu.memory_space<vmem>>, vector<1x64x64xbf16>
    %20 = vector.shape_cast %19 : vector<1x64x64xbf16> to vector<64x64xbf16>
    %cst_22 = arith.constant dense<0.000000e+00> : vector<1x64xf32>
    %21 = tpu.matmul %18, %20, %cst_22 {dimension_numbers = #tpu.dot_dimension_numbers<[1], [0], [0], [1], [0, 0, 1, 1], [], []>} : vector<1x64xbf16>, vector<64x64xbf16>, vector<1x64xf32> -> vector<1x64xf32>
    %22 = arith.addf %15, %21 : vector<1x64xf32>
    %c2_23 = arith.constant 2 : index
    %c0_24 = arith.constant 0 : index
    %c0_25 = arith.constant 0 : index
    %c0_26 = arith.constant 0 : index
    %23 = vector.load %arg1[%c2_23, %c0_24, %c0_25, %c0_26] : memref<4x2x2x64xbf16, #tpu.memory_space<vmem>>, vector<1x1x1x64xbf16>
    %24 = vector.shape_cast %23 : vector<1x1x1x64xbf16> to vector<1x1x64xbf16>
    %25 = vector.shape_cast %24 : vector<1x1x64xbf16> to vector<1x64xbf16>
    %c3 = arith.constant 3 : index
    %c0_27 = arith.constant 0 : index
    %c0_28 = arith.constant 0 : index
    %26 = vector.load %arg2[%c3, %c0_27, %c0_28] : memref<9x64x64xbf16, #tpu.memory_space<vmem>>, vector<1x64x64xbf16>
    %27 = vector.shape_cast %26 : vector<1x64x64xbf16> to vector<64x64xbf16>
    %cst_29 = arith.constant dense<0.000000e+00> : vector<1x64xf32>
    %28 = tpu.matmul %25, %27, %cst_29 {dimension_numbers = #tpu.dot_dimension_numbers<[1], [0], [0], [1], [0, 0, 1, 1], [], []>} : vector<1x64xbf16>, vector<64x64xbf16>, vector<1x64xf32> -> vector<1x64xf32>
    %29 = arith.addf %22, %28 : vector<1x64xf32>
    %c3_30 = arith.constant 3 : index
    %c0_31 = arith.constant 0 : index
    %c0_32 = arith.constant 0 : index
    %c0_33 = arith.constant 0 : index
    %30 = vector.load %arg1[%c3_30, %c0_31, %c0_32, %c0_33] : memref<4x2x2x64xbf16, #tpu.memory_space<vmem>>, vector<1x1x1x64xbf16>
    %31 = vector.shape_cast %30 : vector<1x1x1x64xbf16> to vector<1x1x64xbf16>
    %32 = vector.shape_cast %31 : vector<1x1x64xbf16> to vector<1x64xbf16>
    %c4 = arith.constant 4 : index
    %c0_34 = arith.constant 0 : index
    %c0_35 = arith.constant 0 : index
    %33 = vector.load %arg2[%c4, %c0_34, %c0_35] : memref<9x64x64xbf16, #tpu.memory_space<vmem>>, vector<1x64x64xbf16>
    %34 = vector.shape_cast %33 : vector<1x64x64xbf16> to vector<64x64xbf16>
    %cst_36 = arith.constant dense<0.000000e+00> : vector<1x64xf32>
    %35 = tpu.matmul %32, %34, %cst_36 {dimension_numbers = #tpu.dot_dimension_numbers<[1], [0], [0], [1], [0, 0, 1, 1], [], []>} : vector<1x64xbf16>, vector<64x64xbf16>, vector<1x64xf32> -> vector<1x64xf32>
    %36 = arith.addf %29, %35 : vector<1x64xf32>
    %c2_37 = arith.constant 2 : index
    %c0_38 = arith.constant 0 : index
    %c1_39 = arith.constant 1 : index
    %c0_40 = arith.constant 0 : index
    %37 = vector.load %arg1[%c2_37, %c0_38, %c1_39, %c0_40] : memref<4x2x2x64xbf16, #tpu.memory_space<vmem>>, vector<1x1x1x64xbf16>
    %38 = vector.shape_cast %37 : vector<1x1x1x64xbf16> to vector<1x1x64xbf16>
    %39 = vector.shape_cast %38 : vector<1x1x64xbf16> to vector<1x64xbf16>
    %c5 = arith.constant 5 : index
    %c0_41 = arith.constant 0 : index
    %c0_42 = arith.constant 0 : index
    %40 = vector.load %arg2[%c5, %c0_41, %c0_42] : memref<9x64x64xbf16, #tpu.memory_space<vmem>>, vector<1x64x64xbf16>
    %41 = vector.shape_cast %40 : vector<1x64x64xbf16> to vector<64x64xbf16>
    %cst_43 = arith.constant dense<0.000000e+00> : vector<1x64xf32>
    %42 = tpu.matmul %39, %41, %cst_43 {dimension_numbers = #tpu.dot_dimension_numbers<[1], [0], [0], [1], [0, 0, 1, 1], [], []>} : vector<1x64xbf16>, vector<64x64xbf16>, vector<1x64xf32> -> vector<1x64xf32>
    %43 = arith.addf %36, %42 : vector<1x64xf32>
    %c0_44 = arith.constant 0 : index
    %c1_45 = arith.constant 1 : index
    %c0_46 = arith.constant 0 : index
    %c0_47 = arith.constant 0 : index
    %44 = vector.load %arg1[%c0_44, %c1_45, %c0_46, %c0_47] : memref<4x2x2x64xbf16, #tpu.memory_space<vmem>>, vector<1x1x1x64xbf16>
    %45 = vector.shape_cast %44 : vector<1x1x1x64xbf16> to vector<1x1x64xbf16>
    %46 = vector.shape_cast %45 : vector<1x1x64xbf16> to vector<1x64xbf16>
    %c6 = arith.constant 6 : index
    %c0_48 = arith.constant 0 : index
    %c0_49 = arith.constant 0 : index
    %47 = vector.load %arg2[%c6, %c0_48, %c0_49] : memref<9x64x64xbf16, #tpu.memory_space<vmem>>, vector<1x64x64xbf16>
    %48 = vector.shape_cast %47 : vector<1x64x64xbf16> to vector<64x64xbf16>
    %cst_50 = arith.constant dense<0.000000e+00> : vector<1x64xf32>
    %49 = tpu.matmul %46, %48, %cst_50 {dimension_numbers = #tpu.dot_dimension_numbers<[1], [0], [0], [1], [0, 0, 1, 1], [], []>} : vector<1x64xbf16>, vector<64x64xbf16>, vector<1x64xf32> -> vector<1x64xf32>
    %50 = arith.addf %43, %49 : vector<1x64xf32>
    %c1_51 = arith.constant 1 : index
    %c1_52 = arith.constant 1 : index
    %c0_53 = arith.constant 0 : index
    %c0_54 = arith.constant 0 : index
    %51 = vector.load %arg1[%c1_51, %c1_52, %c0_53, %c0_54] : memref<4x2x2x64xbf16, #tpu.memory_space<vmem>>, vector<1x1x1x64xbf16>
    %52 = vector.shape_cast %51 : vector<1x1x1x64xbf16> to vector<1x1x64xbf16>
    %53 = vector.shape_cast %52 : vector<1x1x64xbf16> to vector<1x64xbf16>
    %c7 = arith.constant 7 : index
    %c0_55 = arith.constant 0 : index
    %c0_56 = arith.constant 0 : index
    %54 = vector.load %arg2[%c7, %c0_55, %c0_56] : memref<9x64x64xbf16, #tpu.memory_space<vmem>>, vector<1x64x64xbf16>
    %55 = vector.shape_cast %54 : vector<1x64x64xbf16> to vector<64x64xbf16>
    %cst_57 = arith.constant dense<0.000000e+00> : vector<1x64xf32>
    %56 = tpu.matmul %53, %55, %cst_57 {dimension_numbers = #tpu.dot_dimension_numbers<[1], [0], [0], [1], [0, 0, 1, 1], [], []>} : vector<1x64xbf16>, vector<64x64xbf16>, vector<1x64xf32> -> vector<1x64xf32>
    %57 = arith.addf %50, %56 : vector<1x64xf32>
    %c0_58 = arith.constant 0 : index
    %c1_59 = arith.constant 1 : index
    %c1_60 = arith.constant 1 : index
    %c0_61 = arith.constant 0 : index
    %58 = vector.load %arg1[%c0_58, %c1_59, %c1_60, %c0_61] : memref<4x2x2x64xbf16, #tpu.memory_space<vmem>>, vector<1x1x1x64xbf16>
    %59 = vector.shape_cast %58 : vector<1x1x1x64xbf16> to vector<1x1x64xbf16>
    %60 = vector.shape_cast %59 : vector<1x1x64xbf16> to vector<1x64xbf16>
    %c8 = arith.constant 8 : index
    %c0_62 = arith.constant 0 : index
    %c0_63 = arith.constant 0 : index
    %61 = vector.load %arg2[%c8, %c0_62, %c0_63] : memref<9x64x64xbf16, #tpu.memory_space<vmem>>, vector<1x64x64xbf16>
    %62 = vector.shape_cast %61 : vector<1x64x64xbf16> to vector<64x64xbf16>
    %cst_64 = arith.constant dense<0.000000e+00> : vector<1x64xf32>
    %63 = tpu.matmul %60, %62, %cst_64 {dimension_numbers = #tpu.dot_dimension_numbers<[1], [0], [0], [1], [0, 0, 1, 1], [], []>} : vector<1x64xbf16>, vector<64x64xbf16>, vector<1x64xf32> -> vector<1x64xf32>
    %64 = arith.addf %57, %63 : vector<1x64xf32>
    %65 = arith.addf %64, %0 : vector<1x64xf32>
    %cst_65 = arith.constant 3.000000e+00 : f32
    %66 = vector.broadcast %cst_65 : f32 to vector<1x64xf32>
    %67 = arith.addf %65, %66 : vector<1x64xf32>
    %cst_66 = arith.constant 0.000000e+00 : f32
    %cst_67 = arith.constant 6.000000e+00 : f32
    %68 = vector.broadcast %cst_66 : f32 to vector<1x64xf32>
    %69 = arith.maximumf %68, %67 : vector<1x64xf32>
    %70 = vector.broadcast %cst_67 : f32 to vector<1x64xf32>
    %71 = arith.minimumf %70, %69 : vector<1x64xf32>
    %72 = arith.mulf %65, %71 : vector<1x64xf32>
    %cst_68 = arith.constant 0.166666672 : f32
    %73 = vector.broadcast %cst_68 : f32 to vector<1x64xf32>
    %74 = arith.mulf %72, %73 : vector<1x64xf32>
    %75 = vector.shape_cast %74 : vector<1x64xf32> to vector<1x1x64xf32>
    %76 = arith.truncf %75 : vector<1x1x64xf32> to vector<1x1x64xbf16>
    %c0_69 = arith.constant 0 : index
    %c0_70 = arith.constant 0 : index
    %c0_71 = arith.constant 0 : index
    %c0_72 = arith.constant 0 : index
    %77 = vector.load %arg4[%c0_69, %c0_70, %c0_71, %c0_72] : memref<1x1x1x64xbf16, #tpu.memory_space<vmem>>, vector<1x1x1x64xbf16>
    %78 = vector.shape_cast %77 : vector<1x1x1x64xbf16> to vector<1x1x64xbf16>
    %79 = vector.shape_cast %76 : vector<1x1x64xbf16> to vector<1x1x1x64xbf16>
    tpu.vector_store %arg4[%c0_69, %c0_70, %c0_71, %c0_72], %79 {strides = array<i32>} : memref<1x1x1x64xbf16, #tpu.memory_space<vmem>>, vector<1x1x1x64xbf16>,
    return
  }
  func.func @transform_0(%arg0: i32) -> (i32, i32, i32, i32) {
    %c0_i32 = arith.constant 0 : i32
    %c0_i32_0 = arith.constant 0 : i32
    %c0_i32_1 = arith.constant 0 : i32
    %c0_i32_2 = arith.constant 0 : i32
    return %arg0, %c0_i32, %c0_i32_0, %c0_i32_1 : i32, i32, i32, i32
  }
  func.func @transform_1(%arg0: i32) -> (i32, i32, i32) {
    %c0_i32 = arith.constant 0 : i32
    %c0_i32_0 = arith.constant 0 : i32
    %c0_i32_1 = arith.constant 0 : i32
    %c0_i32_2 = arith.constant 0 : i32
    return %c0_i32, %c0_i32_0, %c0_i32_1 : i32, i32, i32
  }
  func.func @transform_2(%arg0: i32) -> (i32, i32) {
    %c0_i32 = arith.constant 0 : i32
    %c0_i32_0 = arith.constant 0 : i32
    %c0_i32_1 = arith.constant 0 : i32
    return %c0_i32, %c0_i32_0 : i32, i32
  }
  func.func @transform_3(%arg0: i32) -> (i32, i32, i32, i32) {
    %c0_i32 = arith.constant 0 : i32
    %c0_i32_0 = arith.constant 0 : i32
    %c0_i32_1 = arith.constant 0 : i32
    %c0_i32_2 = arith.constant 0 : i32
    return %arg0, %c0_i32, %c0_i32_0, %c0_i32_1 : i32, i32, i32, i32
  }
}

module attributes {stable_mosaic.version = 11 : i64} {
  func.func @_mm_bias_act_kernel(%arg0: i32, %arg1: memref<2x32xbf16, #tpu.memory_space<vmem>>, %arg2: memref<32x32xbf16, #tpu.memory_space<vmem>>, %arg3: memref<1x32xf32, #tpu.memory_space<vmem>>, %arg4: memref<2x32xbf16, #tpu.memory_space<vmem>>) attributes {dimension_semantics = [#tpu.dimension_semantics<parallel>], iteration_bounds = array<i64: 1>, scalar_prefetch = 0 : i64, scratch_operands = 0 : i64, tpu.core_type = #tpu.core_type<tc>, window_params = [{transform_indices = @transform_0, window_bounds = array<i64: 2, 32>}, {pipeline_mode = #tpu.pipeline_mode<synchronous>, transform_indices = @transform_1, window_bounds = array<i64: 32, 32>}, {pipeline_mode = #tpu.pipeline_mode<synchronous>, transform_indices = @transform_2, window_bounds = array<i64: 1, 32>}, {transform_indices = @transform_3, window_bounds = array<i64: 2, 32>}]} {
    %c0 = arith.constant 0 : index
    %c0_0 = arith.constant 0 : index
    %0 = vector.load %arg1[%c0, %c0_0] : memref<2x32xbf16, #tpu.memory_space<vmem>>, vector<2x32xbf16>
    %c0_1 = arith.constant 0 : index
    %c0_2 = arith.constant 0 : index
    %1 = vector.load %arg2[%c0_1, %c0_2] : memref<32x32xbf16, #tpu.memory_space<vmem>>, vector<32x32xbf16>
    %cst = arith.constant dense<0.000000e+00> : vector<2x32xf32>
    %2 = tpu.matmul %0, %1, %cst {dimension_numbers = #tpu.dot_dimension_numbers<[1], [0], [0], [1], [0, 0, 1, 1], [], []>} : vector<2x32xbf16>, vector<32x32xbf16>, vector<2x32xf32> -> vector<2x32xf32>
    %c0_3 = arith.constant 0 : index
    %c0_4 = arith.constant 0 : index
    %3 = vector.load %arg3[%c0_3, %c0_4] : memref<1x32xf32, #tpu.memory_space<vmem>>, vector<1x32xf32>
    %4 = vector.broadcast %3 : vector<1x32xf32> to vector<2x32xf32>
    %5 = arith.addf %2, %4 : vector<2x32xf32>
    %cst_5 = arith.constant 3.000000e+00 : f32
    %6 = vector.broadcast %cst_5 : f32 to vector<2x32xf32>
    %7 = arith.addf %5, %6 : vector<2x32xf32>
    %cst_6 = arith.constant 0.000000e+00 : f32
    %cst_7 = arith.constant 6.000000e+00 : f32
    %8 = vector.broadcast %cst_6 : f32 to vector<2x32xf32>
    %9 = arith.maximumf %8, %7 : vector<2x32xf32>
    %10 = vector.broadcast %cst_7 : f32 to vector<2x32xf32>
    %11 = arith.minimumf %10, %9 : vector<2x32xf32>
    %12 = arith.mulf %5, %11 : vector<2x32xf32>
    %cst_8 = arith.constant 0.166666672 : f32
    %13 = vector.broadcast %cst_8 : f32 to vector<2x32xf32>
    %14 = arith.mulf %12, %13 : vector<2x32xf32>
    %15 = arith.truncf %14 : vector<2x32xf32> to vector<2x32xbf16>
    %c0_9 = arith.constant 0 : index
    %c0_10 = arith.constant 0 : index
    %16 = vector.load %arg4[%c0_9, %c0_10] : memref<2x32xbf16, #tpu.memory_space<vmem>>, vector<2x32xbf16>
    tpu.vector_store %arg4[%c0_9, %c0_10], %15 {strides = array<i32>} : memref<2x32xbf16, #tpu.memory_space<vmem>>, vector<2x32xbf16>,
    return
  }
  func.func @transform_0(%arg0: i32) -> (i32, i32) {
    %c0_i32 = arith.constant 0 : i32
    %c0_i32_0 = arith.constant 0 : i32
    return %arg0, %c0_i32 : i32, i32
  }
  func.func @transform_1(%arg0: i32) -> (i32, i32) {
    %c0_i32 = arith.constant 0 : i32
    %c0_i32_0 = arith.constant 0 : i32
    %c0_i32_1 = arith.constant 0 : i32
    return %c0_i32, %c0_i32_0 : i32, i32
  }
  func.func @transform_2(%arg0: i32) -> (i32, i32) {
    %c0_i32 = arith.constant 0 : i32
    %c0_i32_0 = arith.constant 0 : i32
    %c0_i32_1 = arith.constant 0 : i32
    return %c0_i32, %c0_i32_0 : i32, i32
  }
  func.func @transform_3(%arg0: i32) -> (i32, i32) {
    %c0_i32 = arith.constant 0 : i32
    %c0_i32_0 = arith.constant 0 : i32
    return %arg0, %c0_i32 : i32, i32
  }
}

module attributes {stable_mosaic.version = 11 : i64} {
  func.func @_mm_bias_act_kernel(%arg0: i32, %arg1: memref<2x64xbf16, #tpu.memory_space<vmem>>, %arg2: memref<64x32xbf16, #tpu.memory_space<vmem>>, %arg3: memref<1x32xf32, #tpu.memory_space<vmem>>, %arg4: memref<2x32xbf16, #tpu.memory_space<vmem>>) attributes {dimension_semantics = [#tpu.dimension_semantics<parallel>], iteration_bounds = array<i64: 1>, scalar_prefetch = 0 : i64, scratch_operands = 0 : i64, tpu.core_type = #tpu.core_type<tc>, window_params = [{transform_indices = @transform_0, window_bounds = array<i64: 2, 64>}, {pipeline_mode = #tpu.pipeline_mode<synchronous>, transform_indices = @transform_1, window_bounds = array<i64: 64, 32>}, {pipeline_mode = #tpu.pipeline_mode<synchronous>, transform_indices = @transform_2, window_bounds = array<i64: 1, 32>}, {transform_indices = @transform_3, window_bounds = array<i64: 2, 32>}]} {
    %c0 = arith.constant 0 : index
    %c0_0 = arith.constant 0 : index
    %0 = vector.load %arg1[%c0, %c0_0] : memref<2x64xbf16, #tpu.memory_space<vmem>>, vector<2x64xbf16>
    %c0_1 = arith.constant 0 : index
    %c0_2 = arith.constant 0 : index
    %1 = vector.load %arg2[%c0_1, %c0_2] : memref<64x32xbf16, #tpu.memory_space<vmem>>, vector<64x32xbf16>
    %cst = arith.constant dense<0.000000e+00> : vector<2x32xf32>
    %2 = tpu.matmul %0, %1, %cst {dimension_numbers = #tpu.dot_dimension_numbers<[1], [0], [0], [1], [0, 0, 1, 1], [], []>} : vector<2x64xbf16>, vector<64x32xbf16>, vector<2x32xf32> -> vector<2x32xf32>
    %c0_3 = arith.constant 0 : index
    %c0_4 = arith.constant 0 : index
    %3 = vector.load %arg3[%c0_3, %c0_4] : memref<1x32xf32, #tpu.memory_space<vmem>>, vector<1x32xf32>
    %4 = vector.broadcast %3 : vector<1x32xf32> to vector<2x32xf32>
    %5 = arith.addf %2, %4 : vector<2x32xf32>
    %cst_5 = arith.constant 3.000000e+00 : f32
    %6 = vector.broadcast %cst_5 : f32 to vector<2x32xf32>
    %7 = arith.addf %5, %6 : vector<2x32xf32>
    %cst_6 = arith.constant 0.000000e+00 : f32
    %cst_7 = arith.constant 6.000000e+00 : f32
    %8 = vector.broadcast %cst_6 : f32 to vector<2x32xf32>
    %9 = arith.maximumf %8, %7 : vector<2x32xf32>
    %10 = vector.broadcast %cst_7 : f32 to vector<2x32xf32>
    %11 = arith.minimumf %10, %9 : vector<2x32xf32>
    %12 = arith.mulf %5, %11 : vector<2x32xf32>
    %cst_8 = arith.constant 0.166666672 : f32
    %13 = vector.broadcast %cst_8 : f32 to vector<2x32xf32>
    %14 = arith.mulf %12, %13 : vector<2x32xf32>
    %15 = arith.truncf %14 : vector<2x32xf32> to vector<2x32xbf16>
    %c0_9 = arith.constant 0 : index
    %c0_10 = arith.constant 0 : index
    %16 = vector.load %arg4[%c0_9, %c0_10] : memref<2x32xbf16, #tpu.memory_space<vmem>>, vector<2x32xbf16>
    tpu.vector_store %arg4[%c0_9, %c0_10], %15 {strides = array<i32>} : memref<2x32xbf16, #tpu.memory_space<vmem>>, vector<2x32xbf16>,
    return
  }
  func.func @transform_0(%arg0: i32) -> (i32, i32) {
    %c0_i32 = arith.constant 0 : i32
    %c0_i32_0 = arith.constant 0 : i32
    return %arg0, %c0_i32 : i32, i32
  }
  func.func @transform_1(%arg0: i32) -> (i32, i32) {
    %c0_i32 = arith.constant 0 : i32
    %c0_i32_0 = arith.constant 0 : i32
    %c0_i32_1 = arith.constant 0 : i32
    return %c0_i32, %c0_i32_0 : i32, i32
  }
  func.func @transform_2(%arg0: i32) -> (i32, i32) {
    %c0_i32 = arith.constant 0 : i32
    %c0_i32_0 = arith.constant 0 : i32
    %c0_i32_1 = arith.constant 0 : i32
    return %c0_i32, %c0_i32_0 : i32, i32
  }
  func.func @transform_3(%arg0: i32) -> (i32, i32) {
    %c0_i32 = arith.constant 0 : i32
    %c0_i32_0 = arith.constant 0 : i32
    return %arg0, %c0_i32 : i32, i32
  }
}

module attributes {stable_mosaic.version = 11 : i64} {
  func.func @_mm2_bias_act_kernel(%arg0: i32, %arg1: memref<8x32xbf16, #tpu.memory_space<vmem>>, %arg2: memref<8x32xbf16, #tpu.memory_space<vmem>>, %arg3: memref<32x32xbf16, #tpu.memory_space<vmem>>, %arg4: memref<32x32xbf16, #tpu.memory_space<vmem>>, %arg5: memref<1x32xf32, #tpu.memory_space<vmem>>, %arg6: memref<8x32xbf16, #tpu.memory_space<vmem>>) attributes {dimension_semantics = [#tpu.dimension_semantics<parallel>], iteration_bounds = array<i64: 1>, scalar_prefetch = 0 : i64, scratch_operands = 0 : i64, tpu.core_type = #tpu.core_type<tc>, window_params = [{transform_indices = @transform_0, window_bounds = array<i64: 8, 32>}, {transform_indices = @transform_1, window_bounds = array<i64: 8, 32>}, {pipeline_mode = #tpu.pipeline_mode<synchronous>, transform_indices = @transform_2, window_bounds = array<i64: 32, 32>}, {pipeline_mode = #tpu.pipeline_mode<synchronous>, transform_indices = @transform_3, window_bounds = array<i64: 32, 32>}, {pipeline_mode = #tpu.pipeline_mode<synchronous>, transform_indices = @transform_4, window_bounds = array<i64: 1, 32>}, {transform_indices = @transform_5, window_bounds = array<i64: 8, 32>}]} {
    %c0 = arith.constant 0 : index
    %c0_0 = arith.constant 0 : index
    %0 = vector.load %arg1[%c0, %c0_0] : memref<8x32xbf16, #tpu.memory_space<vmem>>, vector<8x32xbf16>
    %c0_1 = arith.constant 0 : index
    %c0_2 = arith.constant 0 : index
    %1 = vector.load %arg3[%c0_1, %c0_2] : memref<32x32xbf16, #tpu.memory_space<vmem>>, vector<32x32xbf16>
    %cst = arith.constant dense<0.000000e+00> : vector<8x32xf32>
    %2 = tpu.matmul %0, %1, %cst {dimension_numbers = #tpu.dot_dimension_numbers<[1], [0], [0], [1], [0, 0, 1, 1], [], []>} : vector<8x32xbf16>, vector<32x32xbf16>, vector<8x32xf32> -> vector<8x32xf32>
    %c0_3 = arith.constant 0 : index
    %c0_4 = arith.constant 0 : index
    %3 = vector.load %arg2[%c0_3, %c0_4] : memref<8x32xbf16, #tpu.memory_space<vmem>>, vector<8x32xbf16>
    %c0_5 = arith.constant 0 : index
    %c0_6 = arith.constant 0 : index
    %4 = vector.load %arg4[%c0_5, %c0_6] : memref<32x32xbf16, #tpu.memory_space<vmem>>, vector<32x32xbf16>
    %cst_7 = arith.constant dense<0.000000e+00> : vector<8x32xf32>
    %5 = tpu.matmul %3, %4, %cst_7 {dimension_numbers = #tpu.dot_dimension_numbers<[1], [0], [0], [1], [0, 0, 1, 1], [], []>} : vector<8x32xbf16>, vector<32x32xbf16>, vector<8x32xf32> -> vector<8x32xf32>
    %6 = arith.addf %2, %5 : vector<8x32xf32>
    %c0_8 = arith.constant 0 : index
    %c0_9 = arith.constant 0 : index
    %7 = vector.load %arg5[%c0_8, %c0_9] : memref<1x32xf32, #tpu.memory_space<vmem>>, vector<1x32xf32>
    %8 = vector.broadcast %7 : vector<1x32xf32> to vector<8x32xf32>
    %9 = arith.addf %6, %8 : vector<8x32xf32>
    %cst_10 = arith.constant 3.000000e+00 : f32
    %10 = vector.broadcast %cst_10 : f32 to vector<8x32xf32>
    %11 = arith.addf %9, %10 : vector<8x32xf32>
    %cst_11 = arith.constant 0.000000e+00 : f32
    %cst_12 = arith.constant 6.000000e+00 : f32
    %12 = vector.broadcast %cst_11 : f32 to vector<8x32xf32>
    %13 = arith.maximumf %12, %11 : vector<8x32xf32>
    %14 = vector.broadcast %cst_12 : f32 to vector<8x32xf32>
    %15 = arith.minimumf %14, %13 : vector<8x32xf32>
    %16 = arith.mulf %9, %15 : vector<8x32xf32>
    %cst_13 = arith.constant 0.166666672 : f32
    %17 = vector.broadcast %cst_13 : f32 to vector<8x32xf32>
    %18 = arith.mulf %16, %17 : vector<8x32xf32>
    %19 = arith.truncf %18 : vector<8x32xf32> to vector<8x32xbf16>
    %c0_14 = arith.constant 0 : index
    %c0_15 = arith.constant 0 : index
    %20 = vector.load %arg6[%c0_14, %c0_15] : memref<8x32xbf16, #tpu.memory_space<vmem>>, vector<8x32xbf16>
    tpu.vector_store %arg6[%c0_14, %c0_15], %19 {strides = array<i32>} : memref<8x32xbf16, #tpu.memory_space<vmem>>, vector<8x32xbf16>,
    return
  }
  func.func @transform_0(%arg0: i32) -> (i32, i32) {
    %c0_i32 = arith.constant 0 : i32
    %c0_i32_0 = arith.constant 0 : i32
    return %arg0, %c0_i32 : i32, i32
  }
  func.func @transform_1(%arg0: i32) -> (i32, i32) {
    %c0_i32 = arith.constant 0 : i32
    %c0_i32_0 = arith.constant 0 : i32
    return %arg0, %c0_i32 : i32, i32
  }
  func.func @transform_2(%arg0: i32) -> (i32, i32) {
    %c0_i32 = arith.constant 0 : i32
    %c0_i32_0 = arith.constant 0 : i32
    %c0_i32_1 = arith.constant 0 : i32
    return %c0_i32, %c0_i32_0 : i32, i32
  }
  func.func @transform_3(%arg0: i32) -> (i32, i32) {
    %c0_i32 = arith.constant 0 : i32
    %c0_i32_0 = arith.constant 0 : i32
    %c0_i32_1 = arith.constant 0 : i32
    return %c0_i32, %c0_i32_0 : i32, i32
  }
  func.func @transform_4(%arg0: i32) -> (i32, i32) {
    %c0_i32 = arith.constant 0 : i32
    %c0_i32_0 = arith.constant 0 : i32
    %c0_i32_1 = arith.constant 0 : i32
    return %c0_i32, %c0_i32_0 : i32, i32
  }
  func.func @transform_5(%arg0: i32) -> (i32, i32) {
    %c0_i32 = arith.constant 0 : i32
    %c0_i32_0 = arith.constant 0 : i32
    return %arg0, %c0_i32 : i32, i32
  }
}

module attributes {stable_mosaic.version = 11 : i64} {
  func.func @_mm_bias_act_kernel(%arg0: i32, %arg1: memref<8x32xbf16, #tpu.memory_space<vmem>>, %arg2: memref<32x32xbf16, #tpu.memory_space<vmem>>, %arg3: memref<1x32xf32, #tpu.memory_space<vmem>>, %arg4: memref<8x32xbf16, #tpu.memory_space<vmem>>) attributes {dimension_semantics = [#tpu.dimension_semantics<parallel>], iteration_bounds = array<i64: 1>, scalar_prefetch = 0 : i64, scratch_operands = 0 : i64, tpu.core_type = #tpu.core_type<tc>, window_params = [{transform_indices = @transform_0, window_bounds = array<i64: 8, 32>}, {pipeline_mode = #tpu.pipeline_mode<synchronous>, transform_indices = @transform_1, window_bounds = array<i64: 32, 32>}, {pipeline_mode = #tpu.pipeline_mode<synchronous>, transform_indices = @transform_2, window_bounds = array<i64: 1, 32>}, {transform_indices = @transform_3, window_bounds = array<i64: 8, 32>}]} {
    %c0 = arith.constant 0 : index
    %c0_0 = arith.constant 0 : index
    %0 = vector.load %arg1[%c0, %c0_0] : memref<8x32xbf16, #tpu.memory_space<vmem>>, vector<8x32xbf16>
    %c0_1 = arith.constant 0 : index
    %c0_2 = arith.constant 0 : index
    %1 = vector.load %arg2[%c0_1, %c0_2] : memref<32x32xbf16, #tpu.memory_space<vmem>>, vector<32x32xbf16>
    %cst = arith.constant dense<0.000000e+00> : vector<8x32xf32>
    %2 = tpu.matmul %0, %1, %cst {dimension_numbers = #tpu.dot_dimension_numbers<[1], [0], [0], [1], [0, 0, 1, 1], [], []>} : vector<8x32xbf16>, vector<32x32xbf16>, vector<8x32xf32> -> vector<8x32xf32>
    %c0_3 = arith.constant 0 : index
    %c0_4 = arith.constant 0 : index
    %3 = vector.load %arg3[%c0_3, %c0_4] : memref<1x32xf32, #tpu.memory_space<vmem>>, vector<1x32xf32>
    %4 = vector.broadcast %3 : vector<1x32xf32> to vector<8x32xf32>
    %5 = arith.addf %2, %4 : vector<8x32xf32>
    %cst_5 = arith.constant 3.000000e+00 : f32
    %6 = vector.broadcast %cst_5 : f32 to vector<8x32xf32>
    %7 = arith.addf %5, %6 : vector<8x32xf32>
    %cst_6 = arith.constant 0.000000e+00 : f32
    %cst_7 = arith.constant 6.000000e+00 : f32
    %8 = vector.broadcast %cst_6 : f32 to vector<8x32xf32>
    %9 = arith.maximumf %8, %7 : vector<8x32xf32>
    %10 = vector.broadcast %cst_7 : f32 to vector<8x32xf32>
    %11 = arith.minimumf %10, %9 : vector<8x32xf32>
    %12 = arith.mulf %5, %11 : vector<8x32xf32>
    %cst_8 = arith.constant 0.166666672 : f32
    %13 = vector.broadcast %cst_8 : f32 to vector<8x32xf32>
    %14 = arith.mulf %12, %13 : vector<8x32xf32>
    %15 = arith.truncf %14 : vector<8x32xf32> to vector<8x32xbf16>
    %c0_9 = arith.constant 0 : index
    %c0_10 = arith.constant 0 : index
    %16 = vector.load %arg4[%c0_9, %c0_10] : memref<8x32xbf16, #tpu.memory_space<vmem>>, vector<8x32xbf16>
    tpu.vector_store %arg4[%c0_9, %c0_10], %15 {strides = array<i32>} : memref<8x32xbf16, #tpu.memory_space<vmem>>, vector<8x32xbf16>,
    return
  }
  func.func @transform_0(%arg0: i32) -> (i32, i32) {
    %c0_i32 = arith.constant 0 : i32
    %c0_i32_0 = arith.constant 0 : i32
    return %arg0, %c0_i32 : i32, i32
  }
  func.func @transform_1(%arg0: i32) -> (i32, i32) {
    %c0_i32 = arith.constant 0 : i32
    %c0_i32_0 = arith.constant 0 : i32
    %c0_i32_1 = arith.constant 0 : i32
    return %c0_i32, %c0_i32_0 : i32, i32
  }
  func.func @transform_2(%arg0: i32) -> (i32, i32) {
    %c0_i32 = arith.constant 0 : i32
    %c0_i32_0 = arith.constant 0 : i32
    %c0_i32_1 = arith.constant 0 : i32
    return %c0_i32, %c0_i32_0 : i32, i32
  }
  func.func @transform_3(%arg0: i32) -> (i32, i32) {
    %c0_i32 = arith.constant 0 : i32
    %c0_i32_0 = arith.constant 0 : i32
    return %arg0, %c0_i32 : i32, i32
  }
}

module attributes {stable_mosaic.version = 11 : i64} {
  func.func @_mm2_bias_act_kernel(%arg0: i32, %arg1: memref<16x32xbf16, #tpu.memory_space<vmem>>, %arg2: memref<16x32xbf16, #tpu.memory_space<vmem>>, %arg3: memref<32x32xbf16, #tpu.memory_space<vmem>>, %arg4: memref<32x32xbf16, #tpu.memory_space<vmem>>, %arg5: memref<1x32xf32, #tpu.memory_space<vmem>>, %arg6: memref<16x32xbf16, #tpu.memory_space<vmem>>) attributes {dimension_semantics = [#tpu.dimension_semantics<parallel>], iteration_bounds = array<i64: 2>, scalar_prefetch = 0 : i64, scratch_operands = 0 : i64, tpu.core_type = #tpu.core_type<tc>, window_params = [{transform_indices = @transform_0, window_bounds = array<i64: 16, 32>}, {transform_indices = @transform_1, window_bounds = array<i64: 16, 32>}, {pipeline_mode = #tpu.pipeline_mode<synchronous>, transform_indices = @transform_2, window_bounds = array<i64: 32, 32>}, {pipeline_mode = #tpu.pipeline_mode<synchronous>, transform_indices = @transform_3, window_bounds = array<i64: 32, 32>}, {pipeline_mode = #tpu.pipeline_mode<synchronous>, transform_indices = @transform_4, window_bounds = array<i64: 1, 32>}, {transform_indices = @transform_5, window_bounds = array<i64: 16, 32>}]} {
    %c0 = arith.constant 0 : index
    %c0_0 = arith.constant 0 : index
    %0 = vector.load %arg1[%c0, %c0_0] : memref<16x32xbf16, #tpu.memory_space<vmem>>, vector<16x32xbf16>
    %c0_1 = arith.constant 0 : index
    %c0_2 = arith.constant 0 : index
    %1 = vector.load %arg3[%c0_1, %c0_2] : memref<32x32xbf16, #tpu.memory_space<vmem>>, vector<32x32xbf16>
    %cst = arith.constant dense<0.000000e+00> : vector<16x32xf32>
    %2 = tpu.matmul %0, %1, %cst {dimension_numbers = #tpu.dot_dimension_numbers<[1], [0], [0], [1], [0, 0, 1, 1], [], []>} : vector<16x32xbf16>, vector<32x32xbf16>, vector<16x32xf32> -> vector<16x32xf32>
    %c0_3 = arith.constant 0 : index
    %c0_4 = arith.constant 0 : index
    %3 = vector.load %arg2[%c0_3, %c0_4] : memref<16x32xbf16, #tpu.memory_space<vmem>>, vector<16x32xbf16>
    %c0_5 = arith.constant 0 : index
    %c0_6 = arith.constant 0 : index
    %4 = vector.load %arg4[%c0_5, %c0_6] : memref<32x32xbf16, #tpu.memory_space<vmem>>, vector<32x32xbf16>
    %cst_7 = arith.constant dense<0.000000e+00> : vector<16x32xf32>
    %5 = tpu.matmul %3, %4, %cst_7 {dimension_numbers = #tpu.dot_dimension_numbers<[1], [0], [0], [1], [0, 0, 1, 1], [], []>} : vector<16x32xbf16>, vector<32x32xbf16>, vector<16x32xf32> -> vector<16x32xf32>
    %6 = arith.addf %2, %5 : vector<16x32xf32>
    %c0_8 = arith.constant 0 : index
    %c0_9 = arith.constant 0 : index
    %7 = vector.load %arg5[%c0_8, %c0_9] : memref<1x32xf32, #tpu.memory_space<vmem>>, vector<1x32xf32>
    %8 = vector.broadcast %7 : vector<1x32xf32> to vector<16x32xf32>
    %9 = arith.addf %6, %8 : vector<16x32xf32>
    %cst_10 = arith.constant 3.000000e+00 : f32
    %10 = vector.broadcast %cst_10 : f32 to vector<16x32xf32>
    %11 = arith.addf %9, %10 : vector<16x32xf32>
    %cst_11 = arith.constant 0.000000e+00 : f32
    %cst_12 = arith.constant 6.000000e+00 : f32
    %12 = vector.broadcast %cst_11 : f32 to vector<16x32xf32>
    %13 = arith.maximumf %12, %11 : vector<16x32xf32>
    %14 = vector.broadcast %cst_12 : f32 to vector<16x32xf32>
    %15 = arith.minimumf %14, %13 : vector<16x32xf32>
    %16 = arith.mulf %9, %15 : vector<16x32xf32>
    %cst_13 = arith.constant 0.166666672 : f32
    %17 = vector.broadcast %cst_13 : f32 to vector<16x32xf32>
    %18 = arith.mulf %16, %17 : vector<16x32xf32>
    %19 = arith.truncf %18 : vector<16x32xf32> to vector<16x32xbf16>
    %c0_14 = arith.constant 0 : index
    %c0_15 = arith.constant 0 : index
    %20 = vector.load %arg6[%c0_14, %c0_15] : memref<16x32xbf16, #tpu.memory_space<vmem>>, vector<16x32xbf16>
    tpu.vector_store %arg6[%c0_14, %c0_15], %19 {strides = array<i32>} : memref<16x32xbf16, #tpu.memory_space<vmem>>, vector<16x32xbf16>,
    return
  }
  func.func @transform_0(%arg0: i32) -> (i32, i32) {
    %c0_i32 = arith.constant 0 : i32
    %c0_i32_0 = arith.constant 0 : i32
    return %arg0, %c0_i32 : i32, i32
  }
  func.func @transform_1(%arg0: i32) -> (i32, i32) {
    %c0_i32 = arith.constant 0 : i32
    %c0_i32_0 = arith.constant 0 : i32
    return %arg0, %c0_i32 : i32, i32
  }
  func.func @transform_2(%arg0: i32) -> (i32, i32) {
    %c0_i32 = arith.constant 0 : i32
    %c0_i32_0 = arith.constant 0 : i32
    %c0_i32_1 = arith.constant 0 : i32
    return %c0_i32, %c0_i32_0 : i32, i32
  }
  func.func @transform_3(%arg0: i32) -> (i32, i32) {
    %c0_i32 = arith.constant 0 : i32
    %c0_i32_0 = arith.constant 0 : i32
    %c0_i32_1 = arith.constant 0 : i32
    return %c0_i32, %c0_i32_0 : i32, i32
  }
  func.func @transform_4(%arg0: i32) -> (i32, i32) {
    %c0_i32 = arith.constant 0 : i32
    %c0_i32_0 = arith.constant 0 : i32
    %c0_i32_1 = arith.constant 0 : i32
    return %c0_i32, %c0_i32_0 : i32, i32
  }
  func.func @transform_5(%arg0: i32) -> (i32, i32) {
    %c0_i32 = arith.constant 0 : i32
    %c0_i32_0 = arith.constant 0 : i32
    return %arg0, %c0_i32 : i32, i32
  }
}

module attributes {stable_mosaic.version = 11 : i64} {
  func.func @_conv_direct_kernel(%arg0: i32, %arg1: memref<1x3x3x32xbf16, #tpu.memory_space<vmem>>, %arg2: memref<9x32x64xbf16, #tpu.memory_space<vmem>>, %arg3: memref<1x64xf32, #tpu.memory_space<vmem>>, %arg4: memref<64x8xbf16, #tpu.memory_space<vmem>>, %arg5: memref<1x8xf32, #tpu.memory_space<vmem>>, %arg6: memref<1x1x1x8xf32, #tpu.memory_space<vmem>>) attributes {dimension_semantics = [#tpu.dimension_semantics<parallel>], iteration_bounds = array<i64: 2>, scalar_prefetch = 0 : i64, scratch_operands = 0 : i64, tpu.core_type = #tpu.core_type<tc>, window_params = [{transform_indices = @transform_0, window_bounds = array<i64: 1, 3, 3, 32>}, {pipeline_mode = #tpu.pipeline_mode<synchronous>, transform_indices = @transform_1, window_bounds = array<i64: 9, 32, 64>}, {pipeline_mode = #tpu.pipeline_mode<synchronous>, transform_indices = @transform_2, window_bounds = array<i64: 1, 64>}, {pipeline_mode = #tpu.pipeline_mode<synchronous>, transform_indices = @transform_3, window_bounds = array<i64: 64, 8>}, {pipeline_mode = #tpu.pipeline_mode<synchronous>, transform_indices = @transform_4, window_bounds = array<i64: 1, 8>}, {transform_indices = @transform_5, window_bounds = array<i64: 1, 1, 1, 8>}]} {
    %c0 = arith.constant 0 : index
    %c0_0 = arith.constant 0 : index
    %0 = vector.load %arg3[%c0, %c0_0] : memref<1x64xf32, #tpu.memory_space<vmem>>, vector<1x64xf32>
    %cst = arith.constant 0.000000e+00 : f32
    %1 = vector.broadcast %cst : f32 to vector<1x64xf32>
    %c0_1 = arith.constant 0 : index
    %c0_2 = arith.constant 0 : index
    %c0_3 = arith.constant 0 : index
    %c0_4 = arith.constant 0 : index
    %2 = vector.load %arg1[%c0_1, %c0_2, %c0_3, %c0_4] : memref<1x3x3x32xbf16, #tpu.memory_space<vmem>>, vector<1x1x1x32xbf16>
    %3 = vector.shape_cast %2 : vector<1x1x1x32xbf16> to vector<1x1x32xbf16>
    %4 = vector.shape_cast %3 : vector<1x1x32xbf16> to vector<1x32xbf16>
    %c0_5 = arith.constant 0 : index
    %c0_6 = arith.constant 0 : index
    %c0_7 = arith.constant 0 : index
    %5 = vector.load %arg2[%c0_5, %c0_6, %c0_7] : memref<9x32x64xbf16, #tpu.memory_space<vmem>>, vector<1x32x64xbf16>
    %6 = vector.shape_cast %5 : vector<1x32x64xbf16> to vector<32x64xbf16>
    %cst_8 = arith.constant dense<0.000000e+00> : vector<1x64xf32>
    %7 = tpu.matmul %4, %6, %cst_8 {dimension_numbers = #tpu.dot_dimension_numbers<[1], [0], [0], [1], [0, 0, 1, 1], [], []>} : vector<1x32xbf16>, vector<32x64xbf16>, vector<1x64xf32> -> vector<1x64xf32>
    %8 = arith.addf %1, %7 : vector<1x64xf32>
    %c0_9 = arith.constant 0 : index
    %c0_10 = arith.constant 0 : index
    %c1 = arith.constant 1 : index
    %c0_11 = arith.constant 0 : index
    %9 = vector.load %arg1[%c0_9, %c0_10, %c1, %c0_11] : memref<1x3x3x32xbf16, #tpu.memory_space<vmem>>, vector<1x1x1x32xbf16>
    %10 = vector.shape_cast %9 : vector<1x1x1x32xbf16> to vector<1x1x32xbf16>
    %11 = vector.shape_cast %10 : vector<1x1x32xbf16> to vector<1x32xbf16>
    %c1_12 = arith.constant 1 : index
    %c0_13 = arith.constant 0 : index
    %c0_14 = arith.constant 0 : index
    %12 = vector.load %arg2[%c1_12, %c0_13, %c0_14] : memref<9x32x64xbf16, #tpu.memory_space<vmem>>, vector<1x32x64xbf16>
    %13 = vector.shape_cast %12 : vector<1x32x64xbf16> to vector<32x64xbf16>
    %cst_15 = arith.constant dense<0.000000e+00> : vector<1x64xf32>
    %14 = tpu.matmul %11, %13, %cst_15 {dimension_numbers = #tpu.dot_dimension_numbers<[1], [0], [0], [1], [0, 0, 1, 1], [], []>} : vector<1x32xbf16>, vector<32x64xbf16>, vector<1x64xf32> -> vector<1x64xf32>
    %15 = arith.addf %8, %14 : vector<1x64xf32>
    %c0_16 = arith.constant 0 : index
    %c0_17 = arith.constant 0 : index
    %c2 = arith.constant 2 : index
    %c0_18 = arith.constant 0 : index
    %16 = vector.load %arg1[%c0_16, %c0_17, %c2, %c0_18] : memref<1x3x3x32xbf16, #tpu.memory_space<vmem>>, vector<1x1x1x32xbf16>
    %17 = vector.shape_cast %16 : vector<1x1x1x32xbf16> to vector<1x1x32xbf16>
    %18 = vector.shape_cast %17 : vector<1x1x32xbf16> to vector<1x32xbf16>
    %c2_19 = arith.constant 2 : index
    %c0_20 = arith.constant 0 : index
    %c0_21 = arith.constant 0 : index
    %19 = vector.load %arg2[%c2_19, %c0_20, %c0_21] : memref<9x32x64xbf16, #tpu.memory_space<vmem>>, vector<1x32x64xbf16>
    %20 = vector.shape_cast %19 : vector<1x32x64xbf16> to vector<32x64xbf16>
    %cst_22 = arith.constant dense<0.000000e+00> : vector<1x64xf32>
    %21 = tpu.matmul %18, %20, %cst_22 {dimension_numbers = #tpu.dot_dimension_numbers<[1], [0], [0], [1], [0, 0, 1, 1], [], []>} : vector<1x32xbf16>, vector<32x64xbf16>, vector<1x64xf32> -> vector<1x64xf32>
    %22 = arith.addf %15, %21 : vector<1x64xf32>
    %c0_23 = arith.constant 0 : index
    %c1_24 = arith.constant 1 : index
    %c0_25 = arith.constant 0 : index
    %c0_26 = arith.constant 0 : index
    %23 = vector.load %arg1[%c0_23, %c1_24, %c0_25, %c0_26] : memref<1x3x3x32xbf16, #tpu.memory_space<vmem>>, vector<1x1x1x32xbf16>
    %24 = vector.shape_cast %23 : vector<1x1x1x32xbf16> to vector<1x1x32xbf16>
    %25 = vector.shape_cast %24 : vector<1x1x32xbf16> to vector<1x32xbf16>
    %c3 = arith.constant 3 : index
    %c0_27 = arith.constant 0 : index
    %c0_28 = arith.constant 0 : index
    %26 = vector.load %arg2[%c3, %c0_27, %c0_28] : memref<9x32x64xbf16, #tpu.memory_space<vmem>>, vector<1x32x64xbf16>
    %27 = vector.shape_cast %26 : vector<1x32x64xbf16> to vector<32x64xbf16>
    %cst_29 = arith.constant dense<0.000000e+00> : vector<1x64xf32>
    %28 = tpu.matmul %25, %27, %cst_29 {dimension_numbers = #tpu.dot_dimension_numbers<[1], [0], [0], [1], [0, 0, 1, 1], [], []>} : vector<1x32xbf16>, vector<32x64xbf16>, vector<1x64xf32> -> vector<1x64xf32>
    %29 = arith.addf %22, %28 : vector<1x64xf32>
    %c0_30 = arith.constant 0 : index
    %c1_31 = arith.constant 1 : index
    %c1_32 = arith.constant 1 : index
    %c0_33 = arith.constant 0 : index
    %30 = vector.load %arg1[%c0_30, %c1_31, %c1_32, %c0_33] : memref<1x3x3x32xbf16, #tpu.memory_space<vmem>>, vector<1x1x1x32xbf16>
    %31 = vector.shape_cast %30 : vector<1x1x1x32xbf16> to vector<1x1x32xbf16>
    %32 = vector.shape_cast %31 : vector<1x1x32xbf16> to vector<1x32xbf16>
    %c4 = arith.constant 4 : index
    %c0_34 = arith.constant 0 : index
    %c0_35 = arith.constant 0 : index
    %33 = vector.load %arg2[%c4, %c0_34, %c0_35] : memref<9x32x64xbf16, #tpu.memory_space<vmem>>, vector<1x32x64xbf16>
    %34 = vector.shape_cast %33 : vector<1x32x64xbf16> to vector<32x64xbf16>
    %cst_36 = arith.constant dense<0.000000e+00> : vector<1x64xf32>
    %35 = tpu.matmul %32, %34, %cst_36 {dimension_numbers = #tpu.dot_dimension_numbers<[1], [0], [0], [1], [0, 0, 1, 1], [], []>} : vector<1x32xbf16>, vector<32x64xbf16>, vector<1x64xf32> -> vector<1x64xf32>
    %36 = arith.addf %29, %35 : vector<1x64xf32>
    %c0_37 = arith.constant 0 : index
    %c1_38 = arith.constant 1 : index
    %c2_39 = arith.constant 2 : index
    %c0_40 = arith.constant 0 : index
    %37 = vector.load %arg1[%c0_37, %c1_38, %c2_39, %c0_40] : memref<1x3x3x32xbf16, #tpu.memory_space<vmem>>, vector<1x1x1x32xbf16>
    %38 = vector.shape_cast %37 : vector<1x1x1x32xbf16> to vector<1x1x32xbf16>
    %39 = vector.shape_cast %38 : vector<1x1x32xbf16> to vector<1x32xbf16>
    %c5 = arith.constant 5 : index
    %c0_41 = arith.constant 0 : index
    %c0_42 = arith.constant 0 : index
    %40 = vector.load %arg2[%c5, %c0_41, %c0_42] : memref<9x32x64xbf16, #tpu.memory_space<vmem>>, vector<1x32x64xbf16>
    %41 = vector.shape_cast %40 : vector<1x32x64xbf16> to vector<32x64xbf16>
    %cst_43 = arith.constant dense<0.000000e+00> : vector<1x64xf32>
    %42 = tpu.matmul %39, %41, %cst_43 {dimension_numbers = #tpu.dot_dimension_numbers<[1], [0], [0], [1], [0, 0, 1, 1], [], []>} : vector<1x32xbf16>, vector<32x64xbf16>, vector<1x64xf32> -> vector<1x64xf32>
    %43 = arith.addf %36, %42 : vector<1x64xf32>
    %c0_44 = arith.constant 0 : index
    %c2_45 = arith.constant 2 : index
    %c0_46 = arith.constant 0 : index
    %c0_47 = arith.constant 0 : index
    %44 = vector.load %arg1[%c0_44, %c2_45, %c0_46, %c0_47] : memref<1x3x3x32xbf16, #tpu.memory_space<vmem>>, vector<1x1x1x32xbf16>
    %45 = vector.shape_cast %44 : vector<1x1x1x32xbf16> to vector<1x1x32xbf16>
    %46 = vector.shape_cast %45 : vector<1x1x32xbf16> to vector<1x32xbf16>
    %c6 = arith.constant 6 : index
    %c0_48 = arith.constant 0 : index
    %c0_49 = arith.constant 0 : index
    %47 = vector.load %arg2[%c6, %c0_48, %c0_49] : memref<9x32x64xbf16, #tpu.memory_space<vmem>>, vector<1x32x64xbf16>
    %48 = vector.shape_cast %47 : vector<1x32x64xbf16> to vector<32x64xbf16>
    %cst_50 = arith.constant dense<0.000000e+00> : vector<1x64xf32>
    %49 = tpu.matmul %46, %48, %cst_50 {dimension_numbers = #tpu.dot_dimension_numbers<[1], [0], [0], [1], [0, 0, 1, 1], [], []>} : vector<1x32xbf16>, vector<32x64xbf16>, vector<1x64xf32> -> vector<1x64xf32>
    %50 = arith.addf %43, %49 : vector<1x64xf32>
    %c0_51 = arith.constant 0 : index
    %c2_52 = arith.constant 2 : index
    %c1_53 = arith.constant 1 : index
    %c0_54 = arith.constant 0 : index
    %51 = vector.load %arg1[%c0_51, %c2_52, %c1_53, %c0_54] : memref<1x3x3x32xbf16, #tpu.memory_space<vmem>>, vector<1x1x1x32xbf16>
    %52 = vector.shape_cast %51 : vector<1x1x1x32xbf16> to vector<1x1x32xbf16>
    %53 = vector.shape_cast %52 : vector<1x1x32xbf16> to vector<1x32xbf16>
    %c7 = arith.constant 7 : index
    %c0_55 = arith.constant 0 : index
    %c0_56 = arith.constant 0 : index
    %54 = vector.load %arg2[%c7, %c0_55, %c0_56] : memref<9x32x64xbf16, #tpu.memory_space<vmem>>, vector<1x32x64xbf16>
    %55 = vector.shape_cast %54 : vector<1x32x64xbf16> to vector<32x64xbf16>
    %cst_57 = arith.constant dense<0.000000e+00> : vector<1x64xf32>
    %56 = tpu.matmul %53, %55, %cst_57 {dimension_numbers = #tpu.dot_dimension_numbers<[1], [0], [0], [1], [0, 0, 1, 1], [], []>} : vector<1x32xbf16>, vector<32x64xbf16>, vector<1x64xf32> -> vector<1x64xf32>
    %57 = arith.addf %50, %56 : vector<1x64xf32>
    %c0_58 = arith.constant 0 : index
    %c2_59 = arith.constant 2 : index
    %c2_60 = arith.constant 2 : index
    %c0_61 = arith.constant 0 : index
    %58 = vector.load %arg1[%c0_58, %c2_59, %c2_60, %c0_61] : memref<1x3x3x32xbf16, #tpu.memory_space<vmem>>, vector<1x1x1x32xbf16>
    %59 = vector.shape_cast %58 : vector<1x1x1x32xbf16> to vector<1x1x32xbf16>
    %60 = vector.shape_cast %59 : vector<1x1x32xbf16> to vector<1x32xbf16>
    %c8 = arith.constant 8 : index
    %c0_62 = arith.constant 0 : index
    %c0_63 = arith.constant 0 : index
    %61 = vector.load %arg2[%c8, %c0_62, %c0_63] : memref<9x32x64xbf16, #tpu.memory_space<vmem>>, vector<1x32x64xbf16>
    %62 = vector.shape_cast %61 : vector<1x32x64xbf16> to vector<32x64xbf16>
    %cst_64 = arith.constant dense<0.000000e+00> : vector<1x64xf32>
    %63 = tpu.matmul %60, %62, %cst_64 {dimension_numbers = #tpu.dot_dimension_numbers<[1], [0], [0], [1], [0, 0, 1, 1], [], []>} : vector<1x32xbf16>, vector<32x64xbf16>, vector<1x64xf32> -> vector<1x64xf32>
    %64 = arith.addf %57, %63 : vector<1x64xf32>
    %65 = arith.addf %64, %0 : vector<1x64xf32>
    %cst_65 = arith.constant 3.000000e+00 : f32
    %66 = vector.broadcast %cst_65 : f32 to vector<1x64xf32>
    %67 = arith.addf %65, %66 : vector<1x64xf32>
    %cst_66 = arith.constant 0.000000e+00 : f32
    %cst_67 = arith.constant 6.000000e+00 : f32
    %68 = vector.broadcast %cst_66 : f32 to vector<1x64xf32>
    %69 = arith.maximumf %68, %67 : vector<1x64xf32>
    %70 = vector.broadcast %cst_67 : f32 to vector<1x64xf32>
    %71 = arith.minimumf %70, %69 : vector<1x64xf32>
    %72 = arith.mulf %65, %71 : vector<1x64xf32>
    %cst_68 = arith.constant 0.166666672 : f32
    %73 = vector.broadcast %cst_68 : f32 to vector<1x64xf32>
    %74 = arith.mulf %72, %73 : vector<1x64xf32>
    %75 = arith.truncf %74 : vector<1x64xf32> to vector<1x64xbf16>
    %c0_69 = arith.constant 0 : index
    %c0_70 = arith.constant 0 : index
    %76 = vector.load %arg4[%c0_69, %c0_70] : memref<64x8xbf16, #tpu.memory_space<vmem>>, vector<64x8xbf16>
    %cst_71 = arith.constant dense<0.000000e+00> : vector<1x8xf32>
    %77 = tpu.matmul %75, %76, %cst_71 {dimension_numbers = #tpu.dot_dimension_numbers<[1], [0], [0], [1], [0, 0, 1, 1], [], []>} : vector<1x64xbf16>, vector<64x8xbf16>, vector<1x8xf32> -> vector<1x8xf32>
    %c0_72 = arith.constant 0 : index
    %c0_73 = arith.constant 0 : index
    %78 = vector.load %arg5[%c0_72, %c0_73] : memref<1x8xf32, #tpu.memory_space<vmem>>, vector<1x8xf32>
    %79 = arith.addf %77, %78 : vector<1x8xf32>
    %80 = tpu.iota {dimensions = array<i32: 1>} : vector<1x8xi32>
    %c4_i32 = arith.constant 4 : i32
    %81 = vector.broadcast %c4_i32 : i32 to vector<1x8xi32>
    %82 = arith.cmpi slt, %80, %81 : vector<1x8xi32>
    %83 = arith.negf %79 : vector<1x8xf32>
    %84 = math.exp %83 : vector<1x8xf32>
    %cst_74 = arith.constant 1.000000e+00 : f32
    %85 = vector.broadcast %cst_74 : f32 to vector<1x8xf32>
    %86 = arith.addf %85, %84 : vector<1x8xf32>
    %87 = arith.divf %85, %86 : vector<1x8xf32>
    %88 = arith.select %82, %87, %79 : vector<1x8xi1>, vector<1x8xf32>
    %89 = vector.shape_cast %88 : vector<1x8xf32> to vector<1x1x8xf32>
    %c0_75 = arith.constant 0 : index
    %c0_76 = arith.constant 0 : index
    %c0_77 = arith.constant 0 : index
    %c0_78 = arith.constant 0 : index
    %90 = vector.load %arg6[%c0_75, %c0_76, %c0_77, %c0_78] : memref<1x1x1x8xf32, #tpu.memory_space<vmem>>, vector<1x1x1x8xf32>
    %91 = vector.shape_cast %90 : vector<1x1x1x8xf32> to vector<1x1x8xf32>
    %92 = vector.shape_cast %89 : vector<1x1x8xf32> to vector<1x1x1x8xf32>
    tpu.vector_store %arg6[%c0_75, %c0_76, %c0_77, %c0_78], %92 {strides = array<i32>} : memref<1x1x1x8xf32, #tpu.memory_space<vmem>>, vector<1x1x1x8xf32>,
    return
  }
  func.func @transform_0(%arg0: i32) -> (i32, i32, i32, i32) {
    %c0_i32 = arith.constant 0 : i32
    %c0_i32_0 = arith.constant 0 : i32
    %c0_i32_1 = arith.constant 0 : i32
    %c0_i32_2 = arith.constant 0 : i32
    return %arg0, %c0_i32, %c0_i32_0, %c0_i32_1 : i32, i32, i32, i32
  }
  func.func @transform_1(%arg0: i32) -> (i32, i32, i32) {
    %c0_i32 = arith.constant 0 : i32
    %c0_i32_0 = arith.constant 0 : i32
    %c0_i32_1 = arith.constant 0 : i32
    %c0_i32_2 = arith.constant 0 : i32
    return %c0_i32, %c0_i32_0, %c0_i32_1 : i32, i32, i32
  }
  func.func @transform_2(%arg0: i32) -> (i32, i32) {
    %c0_i32 = arith.constant 0 : i32
    %c0_i32_0 = arith.constant 0 : i32
    %c0_i32_1 = arith.constant 0 : i32
    return %c0_i32, %c0_i32_0 : i32, i32
  }
  func.func @transform_3(%arg0: i32) -> (i32, i32) {
    %c0_i32 = arith.constant 0 : i32
    %c0_i32_0 = arith.constant 0 : i32
    %c0_i32_1 = arith.constant 0 : i32
    return %c0_i32, %c0_i32_0 : i32, i32
  }
  func.func @transform_4(%arg0: i32) -> (i32, i32) {
    %c0_i32 = arith.constant 0 : i32
    %c0_i32_0 = arith.constant 0 : i32
    %c0_i32_1 = arith.constant 0 : i32
    return %c0_i32, %c0_i32_0 : i32, i32
  }
  func.func @transform_5(%arg0: i32) -> (i32, i32, i32, i32) {
    %c0_i32 = arith.constant 0 : i32
    %c0_i32_0 = arith.constant 0 : i32
    %c0_i32_1 = arith.constant 0 : i32
    %c0_i32_2 = arith.constant 0 : i32
    return %arg0, %c0_i32, %c0_i32_0, %c0_i32_1 : i32, i32, i32, i32
  }
}

module attributes {stable_mosaic.version = 11 : i64} {
  func.func @_conv_direct_kernel(%arg0: i32, %arg1: memref<1x4x4x32xbf16, #tpu.memory_space<vmem>>, %arg2: memref<9x32x64xbf16, #tpu.memory_space<vmem>>, %arg3: memref<1x64xf32, #tpu.memory_space<vmem>>, %arg4: memref<64x8xbf16, #tpu.memory_space<vmem>>, %arg5: memref<1x8xf32, #tpu.memory_space<vmem>>, %arg6: memref<1x2x2x8xf32, #tpu.memory_space<vmem>>) attributes {dimension_semantics = [#tpu.dimension_semantics<parallel>], iteration_bounds = array<i64: 2>, scalar_prefetch = 0 : i64, scratch_operands = 0 : i64, tpu.core_type = #tpu.core_type<tc>, window_params = [{transform_indices = @transform_0, window_bounds = array<i64: 1, 4, 4, 32>}, {pipeline_mode = #tpu.pipeline_mode<synchronous>, transform_indices = @transform_1, window_bounds = array<i64: 9, 32, 64>}, {pipeline_mode = #tpu.pipeline_mode<synchronous>, transform_indices = @transform_2, window_bounds = array<i64: 1, 64>}, {pipeline_mode = #tpu.pipeline_mode<synchronous>, transform_indices = @transform_3, window_bounds = array<i64: 64, 8>}, {pipeline_mode = #tpu.pipeline_mode<synchronous>, transform_indices = @transform_4, window_bounds = array<i64: 1, 8>}, {transform_indices = @transform_5, window_bounds = array<i64: 1, 2, 2, 8>}]} {
    %c0 = arith.constant 0 : index
    %c0_0 = arith.constant 0 : index
    %0 = vector.load %arg3[%c0, %c0_0] : memref<1x64xf32, #tpu.memory_space<vmem>>, vector<1x64xf32>
    %cst = arith.constant 0.000000e+00 : f32
    %1 = vector.broadcast %cst : f32 to vector<4x64xf32>
    %c0_1 = arith.constant 0 : index
    %c0_2 = arith.constant 0 : index
    %c0_3 = arith.constant 0 : index
    %c0_4 = arith.constant 0 : index
    %2 = vector.load %arg1[%c0_1, %c0_2, %c0_3, %c0_4] : memref<1x4x4x32xbf16, #tpu.memory_space<vmem>>, vector<1x2x2x32xbf16>
    %3 = vector.shape_cast %2 : vector<1x2x2x32xbf16> to vector<2x2x32xbf16>
    %4 = vector.shape_cast %3 : vector<2x2x32xbf16> to vector<4x32xbf16>
    %c0_5 = arith.constant 0 : index
    %c0_6 = arith.constant 0 : index
    %c0_7 = arith.constant 0 : index
    %5 = vector.load %arg2[%c0_5, %c0_6, %c0_7] : memref<9x32x64xbf16, #tpu.memory_space<vmem>>, vector<1x32x64xbf16>
    %6 = vector.shape_cast %5 : vector<1x32x64xbf16> to vector<32x64xbf16>
    %cst_8 = arith.constant dense<0.000000e+00> : vector<4x64xf32>
    %7 = tpu.matmul %4, %6, %cst_8 {dimension_numbers = #tpu.dot_dimension_numbers<[1], [0], [0], [1], [0, 0, 1, 1], [], []>} : vector<4x32xbf16>, vector<32x64xbf16>, vector<4x64xf32> -> vector<4x64xf32>
    %8 = arith.addf %1, %7 : vector<4x64xf32>
    %c0_9 = arith.constant 0 : index
    %c0_10 = arith.constant 0 : index
    %c1 = arith.constant 1 : index
    %c0_11 = arith.constant 0 : index
    %9 = vector.load %arg1[%c0_9, %c0_10, %c1, %c0_11] : memref<1x4x4x32xbf16, #tpu.memory_space<vmem>>, vector<1x2x2x32xbf16>
    %10 = vector.shape_cast %9 : vector<1x2x2x32xbf16> to vector<2x2x32xbf16>
    %11 = vector.shape_cast %10 : vector<2x2x32xbf16> to vector<4x32xbf16>
    %c1_12 = arith.constant 1 : index
    %c0_13 = arith.constant 0 : index
    %c0_14 = arith.constant 0 : index
    %12 = vector.load %arg2[%c1_12, %c0_13, %c0_14] : memref<9x32x64xbf16, #tpu.memory_space<vmem>>, vector<1x32x64xbf16>
    %13 = vector.shape_cast %12 : vector<1x32x64xbf16> to vector<32x64xbf16>
    %cst_15 = arith.constant dense<0.000000e+00> : vector<4x64xf32>
    %14 = tpu.matmul %11, %13, %cst_15 {dimension_numbers = #tpu.dot_dimension_numbers<[1], [0], [0], [1], [0, 0, 1, 1], [], []>} : vector<4x32xbf16>, vector<32x64xbf16>, vector<4x64xf32> -> vector<4x64xf32>
    %15 = arith.addf %8, %14 : vector<4x64xf32>
    %c0_16 = arith.constant 0 : index
    %c0_17 = arith.constant 0 : index
    %c2 = arith.constant 2 : index
    %c0_18 = arith.constant 0 : index
    %16 = vector.load %arg1[%c0_16, %c0_17, %c2, %c0_18] : memref<1x4x4x32xbf16, #tpu.memory_space<vmem>>, vector<1x2x2x32xbf16>
    %17 = vector.shape_cast %16 : vector<1x2x2x32xbf16> to vector<2x2x32xbf16>
    %18 = vector.shape_cast %17 : vector<2x2x32xbf16> to vector<4x32xbf16>
    %c2_19 = arith.constant 2 : index
    %c0_20 = arith.constant 0 : index
    %c0_21 = arith.constant 0 : index
    %19 = vector.load %arg2[%c2_19, %c0_20, %c0_21] : memref<9x32x64xbf16, #tpu.memory_space<vmem>>, vector<1x32x64xbf16>
    %20 = vector.shape_cast %19 : vector<1x32x64xbf16> to vector<32x64xbf16>
    %cst_22 = arith.constant dense<0.000000e+00> : vector<4x64xf32>
    %21 = tpu.matmul %18, %20, %cst_22 {dimension_numbers = #tpu.dot_dimension_numbers<[1], [0], [0], [1], [0, 0, 1, 1], [], []>} : vector<4x32xbf16>, vector<32x64xbf16>, vector<4x64xf32> -> vector<4x64xf32>
    %22 = arith.addf %15, %21 : vector<4x64xf32>
    %c0_23 = arith.constant 0 : index
    %c1_24 = arith.constant 1 : index
    %c0_25 = arith.constant 0 : index
    %c0_26 = arith.constant 0 : index
    %23 = vector.load %arg1[%c0_23, %c1_24, %c0_25, %c0_26] : memref<1x4x4x32xbf16, #tpu.memory_space<vmem>>, vector<1x2x2x32xbf16>
    %24 = vector.shape_cast %23 : vector<1x2x2x32xbf16> to vector<2x2x32xbf16>
    %25 = vector.shape_cast %24 : vector<2x2x32xbf16> to vector<4x32xbf16>
    %c3 = arith.constant 3 : index
    %c0_27 = arith.constant 0 : index
    %c0_28 = arith.constant 0 : index
    %26 = vector.load %arg2[%c3, %c0_27, %c0_28] : memref<9x32x64xbf16, #tpu.memory_space<vmem>>, vector<1x32x64xbf16>
    %27 = vector.shape_cast %26 : vector<1x32x64xbf16> to vector<32x64xbf16>
    %cst_29 = arith.constant dense<0.000000e+00> : vector<4x64xf32>
    %28 = tpu.matmul %25, %27, %cst_29 {dimension_numbers = #tpu.dot_dimension_numbers<[1], [0], [0], [1], [0, 0, 1, 1], [], []>} : vector<4x32xbf16>, vector<32x64xbf16>, vector<4x64xf32> -> vector<4x64xf32>
    %29 = arith.addf %22, %28 : vector<4x64xf32>
    %c0_30 = arith.constant 0 : index
    %c1_31 = arith.constant 1 : index
    %c1_32 = arith.constant 1 : index
    %c0_33 = arith.constant 0 : index
    %30 = vector.load %arg1[%c0_30, %c1_31, %c1_32, %c0_33] : memref<1x4x4x32xbf16, #tpu.memory_space<vmem>>, vector<1x2x2x32xbf16>
    %31 = vector.shape_cast %30 : vector<1x2x2x32xbf16> to vector<2x2x32xbf16>
    %32 = vector.shape_cast %31 : vector<2x2x32xbf16> to vector<4x32xbf16>
    %c4 = arith.constant 4 : index
    %c0_34 = arith.constant 0 : index
    %c0_35 = arith.constant 0 : index
    %33 = vector.load %arg2[%c4, %c0_34, %c0_35] : memref<9x32x64xbf16, #tpu.memory_space<vmem>>, vector<1x32x64xbf16>
    %34 = vector.shape_cast %33 : vector<1x32x64xbf16> to vector<32x64xbf16>
    %cst_36 = arith.constant dense<0.000000e+00> : vector<4x64xf32>
    %35 = tpu.matmul %32, %34, %cst_36 {dimension_numbers = #tpu.dot_dimension_numbers<[1], [0], [0], [1], [0, 0, 1, 1], [], []>} : vector<4x32xbf16>, vector<32x64xbf16>, vector<4x64xf32> -> vector<4x64xf32>
    %36 = arith.addf %29, %35 : vector<4x64xf32>
    %c0_37 = arith.constant 0 : index
    %c1_38 = arith.constant 1 : index
    %c2_39 = arith.constant 2 : index
    %c0_40 = arith.constant 0 : index
    %37 = vector.load %arg1[%c0_37, %c1_38, %c2_39, %c0_40] : memref<1x4x4x32xbf16, #tpu.memory_space<vmem>>, vector<1x2x2x32xbf16>
    %38 = vector.shape_cast %37 : vector<1x2x2x32xbf16> to vector<2x2x32xbf16>
    %39 = vector.shape_cast %38 : vector<2x2x32xbf16> to vector<4x32xbf16>
    %c5 = arith.constant 5 : index
    %c0_41 = arith.constant 0 : index
    %c0_42 = arith.constant 0 : index
    %40 = vector.load %arg2[%c5, %c0_41, %c0_42] : memref<9x32x64xbf16, #tpu.memory_space<vmem>>, vector<1x32x64xbf16>
    %41 = vector.shape_cast %40 : vector<1x32x64xbf16> to vector<32x64xbf16>
    %cst_43 = arith.constant dense<0.000000e+00> : vector<4x64xf32>
    %42 = tpu.matmul %39, %41, %cst_43 {dimension_numbers = #tpu.dot_dimension_numbers<[1], [0], [0], [1], [0, 0, 1, 1], [], []>} : vector<4x32xbf16>, vector<32x64xbf16>, vector<4x64xf32> -> vector<4x64xf32>
    %43 = arith.addf %36, %42 : vector<4x64xf32>
    %c0_44 = arith.constant 0 : index
    %c2_45 = arith.constant 2 : index
    %c0_46 = arith.constant 0 : index
    %c0_47 = arith.constant 0 : index
    %44 = vector.load %arg1[%c0_44, %c2_45, %c0_46, %c0_47] : memref<1x4x4x32xbf16, #tpu.memory_space<vmem>>, vector<1x2x2x32xbf16>
    %45 = vector.shape_cast %44 : vector<1x2x2x32xbf16> to vector<2x2x32xbf16>
    %46 = vector.shape_cast %45 : vector<2x2x32xbf16> to vector<4x32xbf16>
    %c6 = arith.constant 6 : index
    %c0_48 = arith.constant 0 : index
    %c0_49 = arith.constant 0 : index
    %47 = vector.load %arg2[%c6, %c0_48, %c0_49] : memref<9x32x64xbf16, #tpu.memory_space<vmem>>, vector<1x32x64xbf16>
    %48 = vector.shape_cast %47 : vector<1x32x64xbf16> to vector<32x64xbf16>
    %cst_50 = arith.constant dense<0.000000e+00> : vector<4x64xf32>
    %49 = tpu.matmul %46, %48, %cst_50 {dimension_numbers = #tpu.dot_dimension_numbers<[1], [0], [0], [1], [0, 0, 1, 1], [], []>} : vector<4x32xbf16>, vector<32x64xbf16>, vector<4x64xf32> -> vector<4x64xf32>
    %50 = arith.addf %43, %49 : vector<4x64xf32>
    %c0_51 = arith.constant 0 : index
    %c2_52 = arith.constant 2 : index
    %c1_53 = arith.constant 1 : index
    %c0_54 = arith.constant 0 : index
    %51 = vector.load %arg1[%c0_51, %c2_52, %c1_53, %c0_54] : memref<1x4x4x32xbf16, #tpu.memory_space<vmem>>, vector<1x2x2x32xbf16>
    %52 = vector.shape_cast %51 : vector<1x2x2x32xbf16> to vector<2x2x32xbf16>
    %53 = vector.shape_cast %52 : vector<2x2x32xbf16> to vector<4x32xbf16>
    %c7 = arith.constant 7 : index
    %c0_55 = arith.constant 0 : index
    %c0_56 = arith.constant 0 : index
    %54 = vector.load %arg2[%c7, %c0_55, %c0_56] : memref<9x32x64xbf16, #tpu.memory_space<vmem>>, vector<1x32x64xbf16>
    %55 = vector.shape_cast %54 : vector<1x32x64xbf16> to vector<32x64xbf16>
    %cst_57 = arith.constant dense<0.000000e+00> : vector<4x64xf32>
    %56 = tpu.matmul %53, %55, %cst_57 {dimension_numbers = #tpu.dot_dimension_numbers<[1], [0], [0], [1], [0, 0, 1, 1], [], []>} : vector<4x32xbf16>, vector<32x64xbf16>, vector<4x64xf32> -> vector<4x64xf32>
    %57 = arith.addf %50, %56 : vector<4x64xf32>
    %c0_58 = arith.constant 0 : index
    %c2_59 = arith.constant 2 : index
    %c2_60 = arith.constant 2 : index
    %c0_61 = arith.constant 0 : index
    %58 = vector.load %arg1[%c0_58, %c2_59, %c2_60, %c0_61] : memref<1x4x4x32xbf16, #tpu.memory_space<vmem>>, vector<1x2x2x32xbf16>
    %59 = vector.shape_cast %58 : vector<1x2x2x32xbf16> to vector<2x2x32xbf16>
    %60 = vector.shape_cast %59 : vector<2x2x32xbf16> to vector<4x32xbf16>
    %c8 = arith.constant 8 : index
    %c0_62 = arith.constant 0 : index
    %c0_63 = arith.constant 0 : index
    %61 = vector.load %arg2[%c8, %c0_62, %c0_63] : memref<9x32x64xbf16, #tpu.memory_space<vmem>>, vector<1x32x64xbf16>
    %62 = vector.shape_cast %61 : vector<1x32x64xbf16> to vector<32x64xbf16>
    %cst_64 = arith.constant dense<0.000000e+00> : vector<4x64xf32>
    %63 = tpu.matmul %60, %62, %cst_64 {dimension_numbers = #tpu.dot_dimension_numbers<[1], [0], [0], [1], [0, 0, 1, 1], [], []>} : vector<4x32xbf16>, vector<32x64xbf16>, vector<4x64xf32> -> vector<4x64xf32>
    %64 = arith.addf %57, %63 : vector<4x64xf32>
    %65 = vector.broadcast %0 : vector<1x64xf32> to vector<4x64xf32>
    %66 = arith.addf %64, %65 : vector<4x64xf32>
    %cst_65 = arith.constant 3.000000e+00 : f32
    %67 = vector.broadcast %cst_65 : f32 to vector<4x64xf32>
    %68 = arith.addf %66, %67 : vector<4x64xf32>
    %cst_66 = arith.constant 0.000000e+00 : f32
    %cst_67 = arith.constant 6.000000e+00 : f32
    %69 = vector.broadcast %cst_66 : f32 to vector<4x64xf32>
    %70 = arith.maximumf %69, %68 : vector<4x64xf32>
    %71 = vector.broadcast %cst_67 : f32 to vector<4x64xf32>
    %72 = arith.minimumf %71, %70 : vector<4x64xf32>
    %73 = arith.mulf %66, %72 : vector<4x64xf32>
    %cst_68 = arith.constant 0.166666672 : f32
    %74 = vector.broadcast %cst_68 : f32 to vector<4x64xf32>
    %75 = arith.mulf %73, %74 : vector<4x64xf32>
    %76 = arith.truncf %75 : vector<4x64xf32> to vector<4x64xbf16>
    %c0_69 = arith.constant 0 : index
    %c0_70 = arith.constant 0 : index
    %77 = vector.load %arg4[%c0_69, %c0_70] : memref<64x8xbf16, #tpu.memory_space<vmem>>, vector<64x8xbf16>
    %cst_71 = arith.constant dense<0.000000e+00> : vector<4x8xf32>
    %78 = tpu.matmul %76, %77, %cst_71 {dimension_numbers = #tpu.dot_dimension_numbers<[1], [0], [0], [1], [0, 0, 1, 1], [], []>} : vector<4x64xbf16>, vector<64x8xbf16>, vector<4x8xf32> -> vector<4x8xf32>
    %c0_72 = arith.constant 0 : index
    %c0_73 = arith.constant 0 : index
    %79 = vector.load %arg5[%c0_72, %c0_73] : memref<1x8xf32, #tpu.memory_space<vmem>>, vector<1x8xf32>
    %80 = vector.broadcast %79 : vector<1x8xf32> to vector<4x8xf32>
    %81 = arith.addf %78, %80 : vector<4x8xf32>
    %82 = tpu.iota {dimensions = array<i32: 1>} : vector<4x8xi32>
    %c4_i32 = arith.constant 4 : i32
    %83 = vector.broadcast %c4_i32 : i32 to vector<4x8xi32>
    %84 = arith.cmpi slt, %82, %83 : vector<4x8xi32>
    %85 = arith.negf %81 : vector<4x8xf32>
    %86 = math.exp %85 : vector<4x8xf32>
    %cst_74 = arith.constant 1.000000e+00 : f32
    %87 = vector.broadcast %cst_74 : f32 to vector<4x8xf32>
    %88 = arith.addf %87, %86 : vector<4x8xf32>
    %89 = arith.divf %87, %88 : vector<4x8xf32>
    %90 = arith.select %84, %89, %81 : vector<4x8xi1>, vector<4x8xf32>
    %91 = vector.shape_cast %90 : vector<4x8xf32> to vector<2x2x8xf32>
    %c0_75 = arith.constant 0 : index
    %c0_76 = arith.constant 0 : index
    %c0_77 = arith.constant 0 : index
    %c0_78 = arith.constant 0 : index
    %92 = vector.load %arg6[%c0_75, %c0_76, %c0_77, %c0_78] : memref<1x2x2x8xf32, #tpu.memory_space<vmem>>, vector<1x2x2x8xf32>
    %93 = vector.shape_cast %92 : vector<1x2x2x8xf32> to vector<2x2x8xf32>
    %94 = vector.shape_cast %91 : vector<2x2x8xf32> to vector<1x2x2x8xf32>
    tpu.vector_store %arg6[%c0_75, %c0_76, %c0_77, %c0_78], %94 {strides = array<i32>} : memref<1x2x2x8xf32, #tpu.memory_space<vmem>>, vector<1x2x2x8xf32>,
    return
  }
  func.func @transform_0(%arg0: i32) -> (i32, i32, i32, i32) {
    %c0_i32 = arith.constant 0 : i32
    %c0_i32_0 = arith.constant 0 : i32
    %c0_i32_1 = arith.constant 0 : i32
    %c0_i32_2 = arith.constant 0 : i32
    return %arg0, %c0_i32, %c0_i32_0, %c0_i32_1 : i32, i32, i32, i32
  }
  func.func @transform_1(%arg0: i32) -> (i32, i32, i32) {
    %c0_i32 = arith.constant 0 : i32
    %c0_i32_0 = arith.constant 0 : i32
    %c0_i32_1 = arith.constant 0 : i32
    %c0_i32_2 = arith.constant 0 : i32
    return %c0_i32, %c0_i32_0, %c0_i32_1 : i32, i32, i32
  }
  func.func @transform_2(%arg0: i32) -> (i32, i32) {
    %c0_i32 = arith.constant 0 : i32
    %c0_i32_0 = arith.constant 0 : i32
    %c0_i32_1 = arith.constant 0 : i32
    return %c0_i32, %c0_i32_0 : i32, i32
  }
  func.func @transform_3(%arg0: i32) -> (i32, i32) {
    %c0_i32 = arith.constant 0 : i32
    %c0_i32_0 = arith.constant 0 : i32
    %c0_i32_1 = arith.constant 0 : i32
    return %c0_i32, %c0_i32_0 : i32, i32
  }
  func.func @transform_4(%arg0: i32) -> (i32, i32) {
    %c0_i32 = arith.constant 0 : i32
    %c0_i32_0 = arith.constant 0 : i32
    %c0_i32_1 = arith.constant 0 : i32
    return %c0_i32, %c0_i32_0 : i32, i32
  }
  func.func @transform_5(%arg0: i32) -> (i32, i32, i32, i32) {
    %c0_i32 = arith.constant 0 : i32
    %c0_i32_0 = arith.constant 0 : i32
    %c0_i32_1 = arith.constant 0 : i32
    %c0_i32_2 = arith.constant 0 : i32
    return %arg0, %c0_i32, %c0_i32_0, %c0_i32_1 : i32, i32, i32, i32
  }
}

module attributes {stable_mosaic.version = 11 : i64} {
  func.func @_conv_direct_kernel(%arg0: i32, %arg1: memref<1x6x6x32xbf16, #tpu.memory_space<vmem>>, %arg2: memref<9x32x64xbf16, #tpu.memory_space<vmem>>, %arg3: memref<1x64xf32, #tpu.memory_space<vmem>>, %arg4: memref<64x8xbf16, #tpu.memory_space<vmem>>, %arg5: memref<1x8xf32, #tpu.memory_space<vmem>>, %arg6: memref<1x4x4x8xf32, #tpu.memory_space<vmem>>) attributes {dimension_semantics = [#tpu.dimension_semantics<parallel>], iteration_bounds = array<i64: 2>, scalar_prefetch = 0 : i64, scratch_operands = 0 : i64, tpu.core_type = #tpu.core_type<tc>, window_params = [{transform_indices = @transform_0, window_bounds = array<i64: 1, 6, 6, 32>}, {pipeline_mode = #tpu.pipeline_mode<synchronous>, transform_indices = @transform_1, window_bounds = array<i64: 9, 32, 64>}, {pipeline_mode = #tpu.pipeline_mode<synchronous>, transform_indices = @transform_2, window_bounds = array<i64: 1, 64>}, {pipeline_mode = #tpu.pipeline_mode<synchronous>, transform_indices = @transform_3, window_bounds = array<i64: 64, 8>}, {pipeline_mode = #tpu.pipeline_mode<synchronous>, transform_indices = @transform_4, window_bounds = array<i64: 1, 8>}, {transform_indices = @transform_5, window_bounds = array<i64: 1, 4, 4, 8>}]} {
    %c0 = arith.constant 0 : index
    %c0_0 = arith.constant 0 : index
    %0 = vector.load %arg3[%c0, %c0_0] : memref<1x64xf32, #tpu.memory_space<vmem>>, vector<1x64xf32>
    %cst = arith.constant 0.000000e+00 : f32
    %1 = vector.broadcast %cst : f32 to vector<16x64xf32>
    %c0_1 = arith.constant 0 : index
    %c0_2 = arith.constant 0 : index
    %c0_3 = arith.constant 0 : index
    %c0_4 = arith.constant 0 : index
    %2 = vector.load %arg1[%c0_1, %c0_2, %c0_3, %c0_4] : memref<1x6x6x32xbf16, #tpu.memory_space<vmem>>, vector<1x4x4x32xbf16>
    %3 = vector.shape_cast %2 : vector<1x4x4x32xbf16> to vector<4x4x32xbf16>
    %4 = vector.shape_cast %3 : vector<4x4x32xbf16> to vector<16x32xbf16>
    %c0_5 = arith.constant 0 : index
    %c0_6 = arith.constant 0 : index
    %c0_7 = arith.constant 0 : index
    %5 = vector.load %arg2[%c0_5, %c0_6, %c0_7] : memref<9x32x64xbf16, #tpu.memory_space<vmem>>, vector<1x32x64xbf16>
    %6 = vector.shape_cast %5 : vector<1x32x64xbf16> to vector<32x64xbf16>
    %cst_8 = arith.constant dense<0.000000e+00> : vector<16x64xf32>
    %7 = tpu.matmul %4, %6, %cst_8 {dimension_numbers = #tpu.dot_dimension_numbers<[1], [0], [0], [1], [0, 0, 1, 1], [], []>} : vector<16x32xbf16>, vector<32x64xbf16>, vector<16x64xf32> -> vector<16x64xf32>
    %8 = arith.addf %1, %7 : vector<16x64xf32>
    %c0_9 = arith.constant 0 : index
    %c0_10 = arith.constant 0 : index
    %c1 = arith.constant 1 : index
    %c0_11 = arith.constant 0 : index
    %9 = vector.load %arg1[%c0_9, %c0_10, %c1, %c0_11] : memref<1x6x6x32xbf16, #tpu.memory_space<vmem>>, vector<1x4x4x32xbf16>
    %10 = vector.shape_cast %9 : vector<1x4x4x32xbf16> to vector<4x4x32xbf16>
    %11 = vector.shape_cast %10 : vector<4x4x32xbf16> to vector<16x32xbf16>
    %c1_12 = arith.constant 1 : index
    %c0_13 = arith.constant 0 : index
    %c0_14 = arith.constant 0 : index
    %12 = vector.load %arg2[%c1_12, %c0_13, %c0_14] : memref<9x32x64xbf16, #tpu.memory_space<vmem>>, vector<1x32x64xbf16>
    %13 = vector.shape_cast %12 : vector<1x32x64xbf16> to vector<32x64xbf16>
    %cst_15 = arith.constant dense<0.000000e+00> : vector<16x64xf32>
    %14 = tpu.matmul %11, %13, %cst_15 {dimension_numbers = #tpu.dot_dimension_numbers<[1], [0], [0], [1], [0, 0, 1, 1], [], []>} : vector<16x32xbf16>, vector<32x64xbf16>, vector<16x64xf32> -> vector<16x64xf32>
    %15 = arith.addf %8, %14 : vector<16x64xf32>
    %c0_16 = arith.constant 0 : index
    %c0_17 = arith.constant 0 : index
    %c2 = arith.constant 2 : index
    %c0_18 = arith.constant 0 : index
    %16 = vector.load %arg1[%c0_16, %c0_17, %c2, %c0_18] : memref<1x6x6x32xbf16, #tpu.memory_space<vmem>>, vector<1x4x4x32xbf16>
    %17 = vector.shape_cast %16 : vector<1x4x4x32xbf16> to vector<4x4x32xbf16>
    %18 = vector.shape_cast %17 : vector<4x4x32xbf16> to vector<16x32xbf16>
    %c2_19 = arith.constant 2 : index
    %c0_20 = arith.constant 0 : index
    %c0_21 = arith.constant 0 : index
    %19 = vector.load %arg2[%c2_19, %c0_20, %c0_21] : memref<9x32x64xbf16, #tpu.memory_space<vmem>>, vector<1x32x64xbf16>
    %20 = vector.shape_cast %19 : vector<1x32x64xbf16> to vector<32x64xbf16>
    %cst_22 = arith.constant dense<0.000000e+00> : vector<16x64xf32>
    %21 = tpu.matmul %18, %20, %cst_22 {dimension_numbers = #tpu.dot_dimension_numbers<[1], [0], [0], [1], [0, 0, 1, 1], [], []>} : vector<16x32xbf16>, vector<32x64xbf16>, vector<16x64xf32> -> vector<16x64xf32>
    %22 = arith.addf %15, %21 : vector<16x64xf32>
    %c0_23 = arith.constant 0 : index
    %c1_24 = arith.constant 1 : index
    %c0_25 = arith.constant 0 : index
    %c0_26 = arith.constant 0 : index
    %23 = vector.load %arg1[%c0_23, %c1_24, %c0_25, %c0_26] : memref<1x6x6x32xbf16, #tpu.memory_space<vmem>>, vector<1x4x4x32xbf16>
    %24 = vector.shape_cast %23 : vector<1x4x4x32xbf16> to vector<4x4x32xbf16>
    %25 = vector.shape_cast %24 : vector<4x4x32xbf16> to vector<16x32xbf16>
    %c3 = arith.constant 3 : index
    %c0_27 = arith.constant 0 : index
    %c0_28 = arith.constant 0 : index
    %26 = vector.load %arg2[%c3, %c0_27, %c0_28] : memref<9x32x64xbf16, #tpu.memory_space<vmem>>, vector<1x32x64xbf16>
    %27 = vector.shape_cast %26 : vector<1x32x64xbf16> to vector<32x64xbf16>
    %cst_29 = arith.constant dense<0.000000e+00> : vector<16x64xf32>
    %28 = tpu.matmul %25, %27, %cst_29 {dimension_numbers = #tpu.dot_dimension_numbers<[1], [0], [0], [1], [0, 0, 1, 1], [], []>} : vector<16x32xbf16>, vector<32x64xbf16>, vector<16x64xf32> -> vector<16x64xf32>
    %29 = arith.addf %22, %28 : vector<16x64xf32>
    %c0_30 = arith.constant 0 : index
    %c1_31 = arith.constant 1 : index
    %c1_32 = arith.constant 1 : index
    %c0_33 = arith.constant 0 : index
    %30 = vector.load %arg1[%c0_30, %c1_31, %c1_32, %c0_33] : memref<1x6x6x32xbf16, #tpu.memory_space<vmem>>, vector<1x4x4x32xbf16>
    %31 = vector.shape_cast %30 : vector<1x4x4x32xbf16> to vector<4x4x32xbf16>
    %32 = vector.shape_cast %31 : vector<4x4x32xbf16> to vector<16x32xbf16>
    %c4 = arith.constant 4 : index
    %c0_34 = arith.constant 0 : index
    %c0_35 = arith.constant 0 : index
    %33 = vector.load %arg2[%c4, %c0_34, %c0_35] : memref<9x32x64xbf16, #tpu.memory_space<vmem>>, vector<1x32x64xbf16>
    %34 = vector.shape_cast %33 : vector<1x32x64xbf16> to vector<32x64xbf16>
    %cst_36 = arith.constant dense<0.000000e+00> : vector<16x64xf32>
    %35 = tpu.matmul %32, %34, %cst_36 {dimension_numbers = #tpu.dot_dimension_numbers<[1], [0], [0], [1], [0, 0, 1, 1], [], []>} : vector<16x32xbf16>, vector<32x64xbf16>, vector<16x64xf32> -> vector<16x64xf32>
    %36 = arith.addf %29, %35 : vector<16x64xf32>
    %c0_37 = arith.constant 0 : index
    %c1_38 = arith.constant 1 : index
    %c2_39 = arith.constant 2 : index
    %c0_40 = arith.constant 0 : index
    %37 = vector.load %arg1[%c0_37, %c1_38, %c2_39, %c0_40] : memref<1x6x6x32xbf16, #tpu.memory_space<vmem>>, vector<1x4x4x32xbf16>
    %38 = vector.shape_cast %37 : vector<1x4x4x32xbf16> to vector<4x4x32xbf16>
    %39 = vector.shape_cast %38 : vector<4x4x32xbf16> to vector<16x32xbf16>
    %c5 = arith.constant 5 : index
    %c0_41 = arith.constant 0 : index
    %c0_42 = arith.constant 0 : index
    %40 = vector.load %arg2[%c5, %c0_41, %c0_42] : memref<9x32x64xbf16, #tpu.memory_space<vmem>>, vector<1x32x64xbf16>
    %41 = vector.shape_cast %40 : vector<1x32x64xbf16> to vector<32x64xbf16>
    %cst_43 = arith.constant dense<0.000000e+00> : vector<16x64xf32>
    %42 = tpu.matmul %39, %41, %cst_43 {dimension_numbers = #tpu.dot_dimension_numbers<[1], [0], [0], [1], [0, 0, 1, 1], [], []>} : vector<16x32xbf16>, vector<32x64xbf16>, vector<16x64xf32> -> vector<16x64xf32>
    %43 = arith.addf %36, %42 : vector<16x64xf32>
    %c0_44 = arith.constant 0 : index
    %c2_45 = arith.constant 2 : index
    %c0_46 = arith.constant 0 : index
    %c0_47 = arith.constant 0 : index
    %44 = vector.load %arg1[%c0_44, %c2_45, %c0_46, %c0_47] : memref<1x6x6x32xbf16, #tpu.memory_space<vmem>>, vector<1x4x4x32xbf16>
    %45 = vector.shape_cast %44 : vector<1x4x4x32xbf16> to vector<4x4x32xbf16>
    %46 = vector.shape_cast %45 : vector<4x4x32xbf16> to vector<16x32xbf16>
    %c6 = arith.constant 6 : index
    %c0_48 = arith.constant 0 : index
    %c0_49 = arith.constant 0 : index
    %47 = vector.load %arg2[%c6, %c0_48, %c0_49] : memref<9x32x64xbf16, #tpu.memory_space<vmem>>, vector<1x32x64xbf16>
    %48 = vector.shape_cast %47 : vector<1x32x64xbf16> to vector<32x64xbf16>
    %cst_50 = arith.constant dense<0.000000e+00> : vector<16x64xf32>
    %49 = tpu.matmul %46, %48, %cst_50 {dimension_numbers = #tpu.dot_dimension_numbers<[1], [0], [0], [1], [0, 0, 1, 1], [], []>} : vector<16x32xbf16>, vector<32x64xbf16>, vector<16x64xf32> -> vector<16x64xf32>
    %50 = arith.addf %43, %49 : vector<16x64xf32>
    %c0_51 = arith.constant 0 : index
    %c2_52 = arith.constant 2 : index
    %c1_53 = arith.constant 1 : index
    %c0_54 = arith.constant 0 : index
    %51 = vector.load %arg1[%c0_51, %c2_52, %c1_53, %c0_54] : memref<1x6x6x32xbf16, #tpu.memory_space<vmem>>, vector<1x4x4x32xbf16>
    %52 = vector.shape_cast %51 : vector<1x4x4x32xbf16> to vector<4x4x32xbf16>
    %53 = vector.shape_cast %52 : vector<4x4x32xbf16> to vector<16x32xbf16>
    %c7 = arith.constant 7 : index
    %c0_55 = arith.constant 0 : index
    %c0_56 = arith.constant 0 : index
    %54 = vector.load %arg2[%c7, %c0_55, %c0_56] : memref<9x32x64xbf16, #tpu.memory_space<vmem>>, vector<1x32x64xbf16>
    %55 = vector.shape_cast %54 : vector<1x32x64xbf16> to vector<32x64xbf16>
    %cst_57 = arith.constant dense<0.000000e+00> : vector<16x64xf32>
    %56 = tpu.matmul %53, %55, %cst_57 {dimension_numbers = #tpu.dot_dimension_numbers<[1], [0], [0], [1], [0, 0, 1, 1], [], []>} : vector<16x32xbf16>, vector<32x64xbf16>, vector<16x64xf32> -> vector<16x64xf32>
    %57 = arith.addf %50, %56 : vector<16x64xf32>
    %c0_58 = arith.constant 0 : index
    %c2_59 = arith.constant 2 : index
    %c2_60 = arith.constant 2 : index
    %c0_61 = arith.constant 0 : index
    %58 = vector.load %arg1[%c0_58, %c2_59, %c2_60, %c0_61] : memref<1x6x6x32xbf16, #tpu.memory_space<vmem>>, vector<1x4x4x32xbf16>
    %59 = vector.shape_cast %58 : vector<1x4x4x32xbf16> to vector<4x4x32xbf16>
    %60 = vector.shape_cast %59 : vector<4x4x32xbf16> to vector<16x32xbf16>
    %c8 = arith.constant 8 : index
    %c0_62 = arith.constant 0 : index
    %c0_63 = arith.constant 0 : index
    %61 = vector.load %arg2[%c8, %c0_62, %c0_63] : memref<9x32x64xbf16, #tpu.memory_space<vmem>>, vector<1x32x64xbf16>
    %62 = vector.shape_cast %61 : vector<1x32x64xbf16> to vector<32x64xbf16>
    %cst_64 = arith.constant dense<0.000000e+00> : vector<16x64xf32>
    %63 = tpu.matmul %60, %62, %cst_64 {dimension_numbers = #tpu.dot_dimension_numbers<[1], [0], [0], [1], [0, 0, 1, 1], [], []>} : vector<16x32xbf16>, vector<32x64xbf16>, vector<16x64xf32> -> vector<16x64xf32>
    %64 = arith.addf %57, %63 : vector<16x64xf32>
    %65 = vector.broadcast %0 : vector<1x64xf32> to vector<16x64xf32>
    %66 = arith.addf %64, %65 : vector<16x64xf32>
    %cst_65 = arith.constant 3.000000e+00 : f32
    %67 = vector.broadcast %cst_65 : f32 to vector<16x64xf32>
    %68 = arith.addf %66, %67 : vector<16x64xf32>
    %cst_66 = arith.constant 0.000000e+00 : f32
    %cst_67 = arith.constant 6.000000e+00 : f32
    %69 = vector.broadcast %cst_66 : f32 to vector<16x64xf32>
    %70 = arith.maximumf %69, %68 : vector<16x64xf32>
    %71 = vector.broadcast %cst_67 : f32 to vector<16x64xf32>
    %72 = arith.minimumf %71, %70 : vector<16x64xf32>
    %73 = arith.mulf %66, %72 : vector<16x64xf32>
    %cst_68 = arith.constant 0.166666672 : f32
    %74 = vector.broadcast %cst_68 : f32 to vector<16x64xf32>
    %75 = arith.mulf %73, %74 : vector<16x64xf32>
    %76 = arith.truncf %75 : vector<16x64xf32> to vector<16x64xbf16>
    %c0_69 = arith.constant 0 : index
    %c0_70 = arith.constant 0 : index
    %77 = vector.load %arg4[%c0_69, %c0_70] : memref<64x8xbf16, #tpu.memory_space<vmem>>, vector<64x8xbf16>
    %cst_71 = arith.constant dense<0.000000e+00> : vector<16x8xf32>
    %78 = tpu.matmul %76, %77, %cst_71 {dimension_numbers = #tpu.dot_dimension_numbers<[1], [0], [0], [1], [0, 0, 1, 1], [], []>} : vector<16x64xbf16>, vector<64x8xbf16>, vector<16x8xf32> -> vector<16x8xf32>
    %c0_72 = arith.constant 0 : index
    %c0_73 = arith.constant 0 : index
    %79 = vector.load %arg5[%c0_72, %c0_73] : memref<1x8xf32, #tpu.memory_space<vmem>>, vector<1x8xf32>
    %80 = vector.broadcast %79 : vector<1x8xf32> to vector<16x8xf32>
    %81 = arith.addf %78, %80 : vector<16x8xf32>
    %82 = tpu.iota {dimensions = array<i32: 1>} : vector<16x8xi32>
    %c4_i32 = arith.constant 4 : i32
    %83 = vector.broadcast %c4_i32 : i32 to vector<16x8xi32>
    %84 = arith.cmpi slt, %82, %83 : vector<16x8xi32>
    %85 = arith.negf %81 : vector<16x8xf32>
    %86 = math.exp %85 : vector<16x8xf32>
    %cst_74 = arith.constant 1.000000e+00 : f32
    %87 = vector.broadcast %cst_74 : f32 to vector<16x8xf32>
    %88 = arith.addf %87, %86 : vector<16x8xf32>
    %89 = arith.divf %87, %88 : vector<16x8xf32>
    %90 = arith.select %84, %89, %81 : vector<16x8xi1>, vector<16x8xf32>
    %91 = vector.shape_cast %90 : vector<16x8xf32> to vector<4x4x8xf32>
    %c0_75 = arith.constant 0 : index
    %c0_76 = arith.constant 0 : index
    %c0_77 = arith.constant 0 : index
    %c0_78 = arith.constant 0 : index
    %92 = vector.load %arg6[%c0_75, %c0_76, %c0_77, %c0_78] : memref<1x4x4x8xf32, #tpu.memory_space<vmem>>, vector<1x4x4x8xf32>
    %93 = vector.shape_cast %92 : vector<1x4x4x8xf32> to vector<4x4x8xf32>
    %94 = vector.shape_cast %91 : vector<4x4x8xf32> to vector<1x4x4x8xf32>
    tpu.vector_store %arg6[%c0_75, %c0_76, %c0_77, %c0_78], %94 {strides = array<i32>} : memref<1x4x4x8xf32, #tpu.memory_space<vmem>>, vector<1x4x4x8xf32>,
    return
  }
  func.func @transform_0(%arg0: i32) -> (i32, i32, i32, i32) {
    %c0_i32 = arith.constant 0 : i32
    %c0_i32_0 = arith.constant 0 : i32
    %c0_i32_1 = arith.constant 0 : i32
    %c0_i32_2 = arith.constant 0 : i32
    return %arg0, %c0_i32, %c0_i32_0, %c0_i32_1 : i32, i32, i32, i32
  }
  func.func @transform_1(%arg0: i32) -> (i32, i32, i32) {
    %c0_i32 = arith.constant 0 : i32
    %c0_i32_0 = arith.constant 0 : i32
    %c0_i32_1 = arith.constant 0 : i32
    %c0_i32_2 = arith.constant 0 : i32
    return %c0_i32, %c0_i32_0, %c0_i32_1 : i32, i32, i32
  }
  func.func @transform_2(%arg0: i32) -> (i32, i32) {
    %c0_i32 = arith.constant 0 : i32
    %c0_i32_0 = arith.constant 0 : i32
    %c0_i32_1 = arith.constant 0 : i32
    return %c0_i32, %c0_i32_0 : i32, i32
  }
  func.func @transform_3(%arg0: i32) -> (i32, i32) {
    %c0_i32 = arith.constant 0 : i32
    %c0_i32_0 = arith.constant 0 : i32
    %c0_i32_1 = arith.constant 0 : i32
    return %c0_i32, %c0_i32_0 : i32, i32
  }
  func.func @transform_4(%arg0: i32) -> (i32, i32) {
    %c0_i32 = arith.constant 0 : i32
    %c0_i32_0 = arith.constant 0 : i32
    %c0_i32_1 = arith.constant 0 : i32
    return %c0_i32, %c0_i32_0 : i32, i32
  }
  func.func @transform_5(%arg0: i32) -> (i32, i32, i32, i32) {
    %c0_i32 = arith.constant 0 : i32
    %c0_i32_0 = arith.constant 0 : i32
    %c0_i32_1 = arith.constant 0 : i32
    %c0_i32_2 = arith.constant 0 : i32
    return %arg0, %c0_i32, %c0_i32_0, %c0_i32_1 : i32, i32, i32, i32
  }
}

</mosaic_0001>

<bundles_post_ra>
// kernel: model_forward.17
= control target key start
LH: loop header
LB: loop body
LE: loop exit
PB: predicated region body
PF: predicated region fallthrough
CT: control target
= control target key end

     0   :  { %s1745_s12 = smov 0   ;;  %s2077_s0 = inlined_call_operand.vmem [shape: bf16[8,9,9,16], index: 0, kind: input, shape index: {}]   ;;  %s2078_s1 = inlined_call_operand.vmem [shape: bf16[9,16,32], index: 1, kind: input, shape index: {}]   ;;  %s2079_s2 = inlined_call_operand.vmem [shape: f32[1,32], index: 2, kind: input, shape index: {}]   ;;  %s2080_s3 = inlined_call_operand.vmem [shape: bf16[2,8,8,32], index: 3, kind: output, shape index: {}]  }
   0x1 LB: > { %s1751_s13 = sadd.s32 4294967295, %s1723_s12   ;;  %p1407_p0 = scmp.ge.s32.totalorder %s1723_s12, 1  ;;  %s1723_s12 = sphi %s1745_s12, %s13_s12  }
   0x2   : > { %p139_p1 = scmp.lt.s32.totalorder %s1723_s12, 3 }
   0x4   : > { %p140_p2 = pnand %p1407_p0, %p139_p1 }
   0x5   : > { %s1408_s16 = sshll.u32 (!%p140_p2), %s1751_s13, 2  ;;  %p171_p4 = scmp.lt.s32.totalorder (!%p140_p2), %s1751_s13, 1 }
   0x6   : > { %143 = sbr.rel (%p140_p2) target bundleno = 308 (0x134), region = 32  ;;  %p165_p3 = scmp.lt.s32.totalorder (!%p140_p2), %s1408_s16, 7 }
   0xb   : > { %v1680_v0 = vld [vmem:[%s2078_s1 + $0x8] sm:$0xff]  ;;  %v1681_v1 = vld [vmem:[%s2078_s1 + $0x10] sm:$0xff]  ;;  %v1686_v2 = vld [vmem:[%s2078_s1 + $0x18] sm:$0xff]  ;;  %s2084_s16 = smov (!%p165_p3, %s1408_s16), 7  ;;  %vm226_vm0 = vcmask 130048   ;;  %s2086_s13 = smov (!%p171_p4, %s1751_s13), 1 }
   0xc   : > { %v1675_v3 = vld [vmem:[%s2078_s1] sm:$0xff]  ;;  %1704 = vmatpush.bf16.msra.mxu1 %v1680_v0  ;;  %1705 = vmatpush.bf16.msra.mxu2 %v1680_v0  ;;  %s1707_s25 = smul.u32 72, %s2084_s16  ;;  %v1697_v5 = vld [vmem:[%s2078_s1 + $0x30] sm:$0xff]  ;;  %v1702_v9 = vld [vmem:[%s2078_s1 + $0x38] sm:$0xff]  ;;  %vm351_vm1 = vsmask.f32 3328 }
   0xd   : > { %v1691_v4 = vld [vmem:[%s2078_s1 + $0x20] sm:$0xff]  ;;  %1706 = vmatpush.bf16.msra.mxu3 %v1680_v0  ;;  %246 = vmatpush.bf16.msra.mxu0 %v1680_v0  ;;  %v1692_v18 = vld [vmem:[%s2078_s1 + $0x28] sm:$0xff]  ;;  %vm352_vm2 = vsmask.f32 7440  ;;  %s1670_s14 = sshll.u32 %s2086_s13, 5  ;;  %vm1339_vm4 = vcmask 257024  }
   0xe   : > { %s1774_s28 = scalar_lea.vmem %s2077_s0, %s1707_s25  ;;  %v1703_v22 = vld [vmem:[%s2078_s1 + $0x40] sm:$0xff]  ;;  %vm1805_vm3 = vmor %vm351_vm1, %vm352_vm2  ;;  %s2029_s17 = scalar_lea.vmem %s2080_s3, %s1670_s14 }
   0xf   : > { %v1428_v6 = vld [vmem:[%s1774_s28 + $0x58] sm:$0xf]  ;;  %v1677_v7 = vld [vmem:[%s1774_s28 + $0x5c] sm:$0xf0]  ;;  %v1432_v8 = vld [vmem:[%s1774_s28 + $0x68] sm:$0xf] }
  0x10   : > { %506 = vmatpush.bf16.msrb.mxu2 %v1681_v1  ;;  %313 = vmatpush.bf16.msrb.mxu1 %v1675_v3  ;;  %v1429_v10 = vor.u32 %v1677_v7, %v1428_v6  ;;  %v1678_v11 = vld [vmem:[%s1774_s28 + $0x6c] sm:$0xf0]  ;;  %v1436_v12 = vld [vmem:[%s1774_s28 + $0x78] sm:$0xf]  ;;  %v1679_v13 = vld [vmem:[%s1774_s28 + $0x7c] sm:$0xf0] }
  0x11   : > { %593 = vmatpush.bf16.msrb.mxu3 %v1686_v2  ;;  %680 = vmatpush.bf16.msrb.mxu0 %v1691_v4  ;;  %v1433_v14 = vor.u32 %v1678_v11, %v1432_v8  ;;  %v1437_v15 = vor.u32 %v1679_v13, %v1436_v12  ;;  %v1424_v16 = vld [vmem:[%s1774_s28 + $0x48] sm:$0xf]  ;;  %v1676_v17 = vld [vmem:[%s1774_s28 + $0x4c] sm:$0xf0]  ;;  %v335_v20 = vld [vmem:[%s1774_s28] sm:$0xf] }
  0x12   : > { %1443 = vmatmul.msk.bf16.vlgmr.msra.gmra.mxu1 %vm226_vm0, %v1429_v10  ;;  %v1425_v19 = vor.u32 %v1676_v17, %v1424_v16  ;;  %v336_v21 = vld [vmem:[%s1774_s28 + $0x4] sm:$0x1]  ;;  %v337_v23 = vld [vmem:[%s1774_s28 + $0x8] sm:$0xf]  ;;  %v338_v24 = vld [vmem:[%s1774_s28 + $0xc] sm:$0x1] }
  0x13   : > { %1444 = vmatmul.msk.bf16.vlgmr.msra.gmra.mxu2 %vm226_vm0, %v1433_v14  ;;  %1445 = vmatmul.msk.bf16.vlgmr.msra.gmra.mxu3 %vm226_vm0, %v1437_v15  ;;  %v355_v25 = vshrl.u32 %v335_v20, 16  ;;  %v358_v26 = vshll.u32 %v335_v20, 16  ;;  %v364_v27 = vshll.u32 %v336_v21, 16  ;;  %v369_v28 = vshrl.u32 %v337_v23, 16  ;;  %v339_v37 = vld [vmem:[%s1774_s28 + $0x10] sm:$0xf] }
  0x14   : > { %1442 = vmatmul.msk.bf16.vlgmr.msra.gmra.mxu0 %vm226_vm0, %v1425_v19  ;;  %v372_v29 = vshll.u32 %v337_v23, 16  ;;  %v378_v30 = vshll.u32 %v338_v24, 16  ;;  %965 = vmatpush.bf16.msra.mxu2 %v1697_v5  ;;  %v341_v41 = vld [vmem:[%s1774_s28 + $0x18] sm:$0xf]  ;;  %v1448_v42 = vld [vmem:[%s1774_s28] sm:$0xf] }
  0x15   : > { %v357_v31 = vrot.slane %v355_v25, 4  ;;  %v360_v32 = vrot.slane %v358_v26, 5  ;;  %1052 = vmatpush.bf16.msra.mxu3 %v1702_v9  ;;  %878 = vmatpush.bf16.msra.mxu1 %v1692_v18  ;;  %v371_v33 = vrot.slane %v369_v28, 4  ;;  %v366_v36 = vrot.slane %v364_v27, 5  ;;  %v1671_v46 = vld [vmem:[%s1774_s28 + $0x4] sm:$0xf0] }
  0x16   : > { %v374_v34 = vrot.slane %v372_v29, 5  ;;  %1250 = vmatpush.bf16.msra.mxu0 %v1703_v22  ;;  %v380_v40 = vrot.slane %v378_v30, 5  ;;  %v383_v44 = vshrl.u32 %v339_v37, 16  ;;  %v386_v45 = vshll.u32 %v339_v37, 16  ;;  %v1492_v51 = vld [vmem:[%s1774_s28 + $0x90] sm:$0xf] }
  0x17   : > { %v361_v35 = vor.u32 %v360_v32, %v357_v31  ;;  %v397_v48 = vshrl.u32 %v341_v41, 16  ;;  %v400_v49 = vshll.u32 %v341_v41, 16  ;;  %v1682_v52 = vld [vmem:[%s1774_s28 + $0x94] sm:$0xf0]  ;;  %v1687_v58 = vld [vmem:[%s1774_s28 + $0xdc] sm:$0xf0]  ;;  %v1449_v0 = vor.u32 %v1671_v46, %v1448_v42 }
  0x18   : > { %v375_v39 = vor.u32 %v374_v34, %v371_v33  ;;  %v385_v53 = vrot.slane %v383_v44, 4  ;;  %v388_v54 = vrot.slane %v386_v45, 5  ;;  %v1526_v57 = vld [vmem:[%s1774_s28 + $0xd8] sm:$0xf]  ;;  %v340_v62 = vld [vmem:[%s1774_s28 + $0x14] sm:$0x1]  ;;  %v1493_v2 = vor.u32 %v1682_v52, %v1492_v51 }
  0x19   : > { %v362_v43 = vrot.slane %v361_v35, 4  ;;  %v399_v59 = vrot.slane %v397_v48, 4  ;;  %v402_v60 = vrot.slane %v400_v49, 5  ;;  %v342_v63 = vld [vmem:[%s1774_s28 + $0x1c] sm:$0x1]  ;;  %v1527_v3 = vor.u32 %v1687_v58, %v1526_v57 }
  0x1a   : > { %v376_v47 = vrot.slane %v375_v39, 4  ;;  %v389_v4 = vor.u32 %v388_v54, %v385_v53  ;;  %v392_v5 = vshll.u32 %v340_v62, 16  ;;  %v406_v7 = vshll.u32 %v342_v63, 16  ;;  %v343_v12 = vld [vmem:[%s1774_s28 + $0x20] sm:$0xf] }
  0x1b   : > { %v367_v50 = vsel %vm1805_vm3, %v362_v43, %v366_v36  ;;  %v403_v6 = vor.u32 %v402_v60, %v399_v59  ;;  %v345_v13 = vld [vmem:[%s1774_s28 + $0x28] sm:$0xf]  ;;  %v411_v14 = vshrl.u32 %v343_v12, 16  ;;  %v414_v15 = vshll.u32 %v343_v12, 16  ;;  %v1452_v20 = vld [vmem:[%s1774_s28 + $0x10] sm:$0xf] }
  0x1c   : > { %v381_v55 = vsel %vm1805_vm3, %v376_v47, %v380_v40  ;;  %v469_v56 = vunpack.c.l.b16 %v367_v50  ;;  %v390_v8 = vrot.slane %v389_v4, 4  ;;  %v394_v9 = vrot.slane %v392_v5, 5  ;;  %v1672_v21 = vld [vmem:[%s1774_s28 + $0x14] sm:$0xf0]  ;;  %v1496_v24 = vld [vmem:[%s1774_s28 + $0xa0] sm:$0xf] }
  0x1d   : > { %v470_v61 = vunpack.c.l.b16 %v381_v55  ;;  %v404_v10 = vrot.slane %v403_v6, 4  ;;  %v408_v11 = vrot.slane %v406_v7, 5  ;;  %v425_v18 = vshrl.u32 %v345_v13, 16  ;;  %v1683_v25 = vld [vmem:[%s1774_s28 + $0xa4] sm:$0xf0] }
  0x1e   : > { %v395_v16 = vsel %vm1805_vm3, %v390_v8, %v394_v9  ;;  %v428_v19 = vshll.u32 %v345_v13, 16  ;;  %v1530_v26 = vld [vmem:[%s1774_s28 + $0xe8] sm:$0xf]  ;;  %v1688_v27 = vld [vmem:[%s1774_s28 + $0xec] sm:$0xf0]  ;;  %v413_v28 = vrot.slane %v411_v14, 4  ;;  %v1453_v34 = vor.u32 %v1672_v21, %v1452_v20 }
  0x1f   : > { %v477_v1 = vpack.c.b16 %v470_v61, %v469_v56  ;;  %v409_v17 = vsel %vm1805_vm3, %v404_v10, %v408_v11  ;;  %v471_v22 = vunpack.c.l.b16 %v395_v16  ;;  %v416_v29 = vrot.slane %v414_v15, 5  ;;  %v344_v32 = vld [vmem:[%s1774_s28 + $0x24] sm:$0x1]  ;;  %v346_v33 = vld [vmem:[%s1774_s28 + $0x2c] sm:$0x1] }
  0x20   : > { %v472_v23 = vunpack.c.l.b16 %v409_v17  ;;  %v427_v30 = vrot.slane %v425_v18, 4  ;;  %v430_v31 = vrot.slane %v428_v19, 5  ;;  %v1497_v36 = vor.u32 %v1683_v25, %v1496_v24  ;;  %v347_v43 = vld [vmem:[%s1774_s28 + $0x30] sm:$0xf]  ;;  %v349_v44 = vld [vmem:[%s1774_s28 + $0x38] sm:$0xf] }
  0x21   : > { %v1531_v37 = vor.u32 %v1688_v27, %v1530_v26  ;;  %v417_v39 = vor.u32 %v416_v29, %v413_v28  ;;  %v420_v40 = vshll.u32 %v344_v32, 16  ;;  %v434_v42 = vshll.u32 %v346_v33, 16  ;;  %v348_v59 = vld [vmem:[%s1774_s28 + $0x34] sm:$0x1]  ;;  %v350_v60 = vld [vmem:[%s1774_s28 + $0x3c] sm:$0x1] }
  0x22   : > { %1466 = vmatmul.msk.bf16.vlgmr.msrb.gmra.mxu1 %vm226_vm0, %v1449_v0  ;;  %v478_v35 = vpack.c.b16 %v472_v23, %v471_v22  ;;  %v431_v41 = vor.u32 %v430_v31, %v427_v30  ;;  %v439_v49 = vshrl.u32 %v347_v43, 16  ;;  %v442_v50 = vshll.u32 %v347_v43, 16  ;;  %v1456_v61 = vld [vmem:[%s1774_s28 + $0x20] sm:$0xf]  ;;  %v1673_v62 = vld [vmem:[%s1774_s28 + $0x24] sm:$0xf0] }
  0x23   : > { %1476 = vmatmul.msk.bf16.vlgmr.msrb.gmra.mxu2 %vm226_vm0, %v477_v1  ;;  %1510 = vmatmul.msk.bf16.vlgmr.msrb.gmra.mxu3 %vm226_vm0, %v1493_v2  ;;  %v418_v45 = vrot.slane %v417_v39, 4  ;;  %v422_v46 = vrot.slane %v420_v40, 5  ;;  %v436_v48 = vrot.slane %v434_v42, 5  ;;  %v453_v51 = vshrl.u32 %v349_v44, 16  ;;  %v1500_v1 = vld [vmem:[%s1774_s28 + $0xb0] sm:$0xf] }
  0x24   : > { %1544 = vmatmul.msk.bf16.vlgmr.msrb.gmra.mxu0 %vm226_vm0, %v1527_v3  ;;  %v432_v47 = vrot.slane %v431_v41, 4  ;;  %v456_v52 = vshll.u32 %v349_v44, 16  ;;  %v441_v55 = vrot.slane %v439_v49, 4  ;;  %v444_v56 = vrot.slane %v442_v50, 5  ;;  %v1684_v2 = vld [vmem:[%s1774_s28 + $0xb4] sm:$0xf0] }
  0x25   : > { %v423_v53 = vsel %vm1805_vm3, %v418_v45, %v422_v46  ;;  %v455_v57 = vrot.slane %v453_v51, 4  ;;  %v1534_v3 = vld [vmem:[%s1774_s28 + $0xf8] sm:$0xf]  ;;  %v1689_v4 = vld [vmem:[%s1774_s28 + $0xfc] sm:$0xf0]  ;;  %v448_v6 = vshll.u32 %v348_v59, 16  ;;  %v1457_v9 = vor.u32 %v1673_v62, %v1456_v61 }
  0x26   : > { %v437_v54 = vsel %vm1805_vm3, %v432_v47, %v436_v48  ;;  %v458_v58 = vrot.slane %v456_v52, 5  ;;  %v473_v63 = vunpack.c.l.b16 %v423_v53  ;;  %v445_v5 = vor.u32 %v444_v56, %v441_v55  ;;  %v1548_v17 = vld [vmem:[%s1774_s28 + $0x90] sm:$0xf]  ;;  %v1550_v18 = vld [vmem:[%s1774_s28 + $0x98] sm:$0xf] }
  0x27   : > { %v474_v0 = vunpack.c.l.b16 %v437_v54  ;;  %v462_v8 = vshll.u32 %v350_v60, 16  ;;  %v1501_v11 = vor.u32 %v1684_v2, %v1500_v1  ;;  %v1535_v12 = vor.u32 %v1689_v4, %v1534_v3  ;;  %v1642_v19 = vld [vmem:[%s1774_s28 + $0x8] sm:$0xf]  ;;  %v1644_v20 = vld [vmem:[%s1774_s28 + $0x10] sm:$0xf] }
  0x28   : > { %v459_v7 = vor.u32 %v458_v58, %v455_v57  ;;  %v446_v13 = vrot.slane %v445_v5, 4  ;;  %v450_v14 = vrot.slane %v448_v6, 5  ;;  %v727_v23 = vshrl.u32 %v1548_v17, 16  ;;  %v1460_v31 = vld [vmem:[%s1774_s28 + $0x30] sm:$0xf] }
  0x29   : > { %v479_v10 = vpack.c.b16 %v474_v0, %v473_v63  ;;  %v464_v16 = vrot.slane %v462_v8, 5  ;;  %v730_v24 = vshll.u32 %v1548_v17, 16  ;;  %v741_v25 = vshrl.u32 %v1550_v18, 16  ;;  %v1674_v32 = vld [vmem:[%s1774_s28 + $0x34] sm:$0xf0] }
  0x2a   : > { %v460_v15 = vrot.slane %v459_v7, 4  ;;  %v451_v21 = vsel %vm1805_vm3, %v446_v13, %v450_v14  ;;  %v744_v26 = vshll.u32 %v1550_v18, 16  ;;  %v1099_v27 = vshrl.u32 %v1642_v19, 16  ;;  %v1551_v43 = vld [vmem:[%s1774_s28 + $0x9c] sm:$0x1] }
  0x2b   : > { %v1102_v28 = vshll.u32 %v1642_v19, 16  ;;  %v1113_v29 = vshrl.u32 %v1644_v20, 16  ;;  %v1116_v30 = vshll.u32 %v1644_v20, 16  ;;  %v475_v33 = vunpack.c.l.b16 %v451_v21  ;;  %v1643_v48 = vld [vmem:[%s1774_s28 + $0xc] sm:$0x1] }
  0x2c   : > { %v465_v22 = vsel %vm1805_vm3, %v460_v15, %v464_v16  ;;  %v729_v39 = vrot.slane %v727_v23, 4  ;;  %v732_v40 = vrot.slane %v730_v24, 5  ;;  %v743_v41 = vrot.slane %v741_v25, 4  ;;  %v1645_v49 = vld [vmem:[%s1774_s28 + $0x14] sm:$0x1] }
  0x2d   : > { %v746_v42 = vrot.slane %v744_v26, 5  ;;  %v1101_v44 = vrot.slane %v1099_v27, 4  ;;  %v1104_v45 = vrot.slane %v1102_v28, 5  ;;  %v1115_v46 = vrot.slane %v1113_v29, 4  ;;  %v1538_v53 = vld [vmem:[%s1774_s28 + $0x108] sm:$0xf] }
  0x2e   : > { %v1118_v47 = vrot.slane %v1116_v30, 5  ;;  %v1461_v50 = vor.u32 %v1674_v32, %v1460_v31  ;;  %v1690_v54 = vld [vmem:[%s1774_s28 + $0x10c] sm:$0xf0]  ;;  %v733_v55 = vor.u32 %v732_v40, %v729_v39  ;;  %v750_v58 = vshll.u32 %v1551_v43, 16  ;;  %v1552_v0 = vld [vmem:[%s1774_s28 + $0xa0] sm:$0xf] }
  0x2f   : > { %v747_v57 = vor.u32 %v746_v42, %v743_v41  ;;  %v1105_v59 = vor.u32 %v1104_v45, %v1101_v44  ;;  %v1108_v60 = vshll.u32 %v1643_v48, 16  ;;  %v1122_v62 = vshll.u32 %v1645_v49, 16  ;;  %v1554_v1 = vld [vmem:[%s1774_s28 + $0xa8] sm:$0xf]  ;;  %v1646_v14 = vld [vmem:[%s1774_s28 + $0x18] sm:$0xf] }
  0x30   : > { %v1119_v61 = vor.u32 %v1118_v47, %v1115_v46  ;;  %v1539_v63 = vor.u32 %v1690_v54, %v1538_v53  ;;  %v734_v2 = vrot.slane %v733_v55, 4  ;;  %v752_v5 = vrot.slane %v750_v58, 5  ;;  %v1648_v15 = vld [vmem:[%s1774_s28 + $0x20] sm:$0xf]  ;;  %v1553_v20 = vld [vmem:[%s1774_s28 + $0xa4] sm:$0x1] }
  0x31   : > { %v748_v4 = vrot.slane %v747_v57, 4  ;;  %v1106_v6 = vrot.slane %v1105_v59, 4  ;;  %v1110_v7 = vrot.slane %v1108_v60, 5  ;;  %v772_v13 = vshll.u32 %v1554_v1, 16  ;;  %v1555_v25 = vld [vmem:[%s1774_s28 + $0xac] sm:$0x1] }
  0x32   : > { %1467 = vmatmul.msk.bf16.gmra.mxu1 %vm226_vm0, %v1453_v34  ;;  %v476_v34 = vunpack.c.l.b16 %v465_v22  ;;  %v1120_v8 = vrot.slane %v1119_v61, 4  ;;  %v1127_v26 = vshrl.u32 %v1646_v14, 16  ;;  %v1130_v27 = vshll.u32 %v1646_v14, 16  ;;  %v1586_v32 = vld [vmem:[%s1774_s28 + $0x8] sm:$0xf] }
  0x33   : > { %1477 = vmatmul.msk.bf16.gmra.mxu2 %vm226_vm0, %v478_v35  ;;  %1511 = vmatmul.msk.bf16.gmra.mxu3 %vm226_vm0, %v1497_v36  ;;  %v1504_v35 = vld [vmem:[%s1774_s28 + $0xc0] sm:$0xf]  ;;  %v1685_v36 = vld [vmem:[%s1774_s28 + $0xc4] sm:$0xf0]  ;;  %v753_v17 = vsel %vm1805_vm3, %v748_v4, %v752_v5  ;;  %v1111_v18 = vsel %vm1805_vm3, %v1106_v6, %v1110_v7  ;;  %v774_v24 = vrot.slane %v772_v13, 5  ;;  %v1141_v28 = vshrl.u32 %v1648_v15, 16 }
  0x34   : > { %1545 = vmatmul.msk.bf16.gmra.mxu0 %vm226_vm0, %v1531_v37  ;;  %v1549_v37 = vld [vmem:[%s1774_s28 + $0x94] sm:$0x1]  ;;  %v480_v51 = vpack.c.b16 %v476_v34, %v475_v33  ;;  %v1505_v52 = vor.u32 %v1685_v36, %v1504_v35  ;;  %v1144_v29 = vshll.u32 %v1648_v15, 16  ;;  %v842_v31 = vunpack.c.l.b16 %v753_v17  ;;  %v1693_v33 = vld [vmem:[%s1774_s28 + $0xc] sm:$0xf0] }
  0x35   : > { %v736_v56 = vshll.u32 %v1549_v37, 16  ;;  %v1213_v34 = vunpack.c.l.b16 %v1111_v18  ;;  %v1620_v36 = vld [vmem:[%s1774_s28 + $0x50] sm:$0xf]  ;;  %v1698_v37 = vld [vmem:[%s1774_s28 + $0x54] sm:$0xf0]  ;;  %v764_v40 = vshll.u32 %v1553_v20, 16 }
  0x36   : > { %v778_v42 = vshll.u32 %v1555_v25, 16  ;;  %v1129_v43 = vrot.slane %v1127_v26, 4  ;;  %v1132_v44 = vrot.slane %v1130_v27, 5  ;;  %v1143_v45 = vrot.slane %v1141_v28, 4  ;;  %v1647_v48 = vld [vmem:[%s1774_s28 + $0x1c] sm:$0x1] }
  0x37   : > { %v738_v3 = vrot.slane %v736_v56, 5  ;;  %v1146_v46 = vrot.slane %v1144_v29, 5  ;;  %v1649_v49 = vld [vmem:[%s1774_s28 + $0x24] sm:$0x1]  ;;  %v766_v54 = vrot.slane %v764_v40, 5  ;;  %v1136_v58 = vshll.u32 %v1647_v48, 16 }
  0x38   : > { %v780_v56 = vrot.slane %v778_v42, 5  ;;  %v1133_v57 = vor.u32 %v1132_v44, %v1129_v43  ;;  %v1150_v60 = vshll.u32 %v1649_v49, 16  ;;  %v1556_v61 = vld [vmem:[%s1774_s28 + $0xb0] sm:$0xf]  ;;  %v1694_v20 = vld [vmem:[%s1774_s28 + $0x1c] sm:$0xf0] }
  0x39   : > { %v739_v16 = vsel %vm1805_vm3, %v734_v2, %v738_v3  ;;  %v1147_v59 = vor.u32 %v1146_v46, %v1143_v45  ;;  %v1138_v3 = vrot.slane %v1136_v58, 5  ;;  %v1652_v6 = vld [vmem:[%s1774_s28 + $0x30] sm:$0xf]  ;;  %v783_v7 = vshrl.u32 %v1556_v61, 16  ;;  %v1557_v26 = vld [vmem:[%s1774_s28 + $0xb4] sm:$0x1] }
  0x3a   : > { %v841_v30 = vunpack.c.l.b16 %v739_v16  ;;  %v1134_v2 = vrot.slane %v1133_v57, 4  ;;  %v1152_v5 = vrot.slane %v1150_v60, 5  ;;  %v1169_v13 = vshrl.u32 %v1652_v6, 16  ;;  %v1559_v27 = vld [vmem:[%s1774_s28 + $0xbc] sm:$0x1] }
  0x3b   : > { %v1148_v4 = vrot.slane %v1147_v59, 4  ;;  %v1172_v14 = vshll.u32 %v1652_v6, 16  ;;  %v792_v40 = vshll.u32 %v1557_v26, 16  ;;  %v806_v42 = vshll.u32 %v1559_v27, 16  ;;  %v1560_v58 = vld [vmem:[%s1774_s28 + $0xc0] sm:$0xf] }
  0x3c   : > { %v849_v47 = vpack.c.b16 %v842_v31, %v841_v30  ;;  %v1139_v17 = vsel %vm1805_vm3, %v1134_v2, %v1138_v3  ;;  %v1699_v30 = vld [vmem:[%s1774_s28 + $0x64] sm:$0xf0] }
  0x3d   : > { %v1153_v18 = vsel %vm1805_vm3, %v1148_v4, %v1152_v5  ;;  %v1215_v31 = vunpack.c.l.b16 %v1139_v17  ;;  %v1562_v59 = vld [vmem:[%s1774_s28 + $0xc8] sm:$0xf] }
  0x3e   : > { %v825_v2 = vshrl.u32 %v1562_v59, 16  ;;  %v828_v3 = vshll.u32 %v1562_v59, 16  ;;  %v1632_v59 = vld [vmem:[%s1774_s28 + $0x80] sm:$0xf] }
  0x42   : > { %1468 = vmatmul.msk.bf16.gmra.mxu1 %vm226_vm0, %v1457_v9  ;;  %v1124_v9 = vrot.slane %v1122_v62, 5  ;;  %v1558_v62 = vld [vmem:[%s1774_s28 + $0xb8] sm:$0xf] }
  0x43   : > { %1478 = vmatmul.msk.bf16.gmra.mxu2 %vm226_vm0, %v479_v10  ;;  %1512 = vmatmul.msk.bf16.gmra.mxu3 %vm226_vm0, %v1501_v11  ;;  %v755_v10 = vshrl.u32 %v1552_v0, 16  ;;  %v758_v11 = vshll.u32 %v1552_v0, 16 }
  0x44   : > { %1546 = vmatmul.msk.bf16.gmra.mxu0 %vm226_vm0, %v1535_v12  ;;  %v769_v12 = vshrl.u32 %v1554_v1, 16  ;;  %v1125_v19 = vsel %vm1805_vm3, %v1120_v8, %v1124_v9  ;;  %v1650_v1 = vld [vmem:[%s1774_s28 + $0x28] sm:$0xf]  ;;  %v786_v8 = vshll.u32 %v1556_v61, 16  ;;  %v797_v9 = vshrl.u32 %v1558_v62, 16 }
  0x45   : > { %v757_v21 = vrot.slane %v755_v10, 4  ;;  %v760_v22 = vrot.slane %v758_v11, 5  ;;  %v1214_v35 = vunpack.c.l.b16 %v1125_v19  ;;  %v800_v10 = vshll.u32 %v1558_v62, 16  ;;  %v1590_v19 = vld [vmem:[%s1774_s28 + $0x18] sm:$0xf] }
  0x46   : > { %v771_v23 = vrot.slane %v769_v12, 4  ;;  %v1155_v11 = vshrl.u32 %v1650_v1, 16  ;;  %v1158_v12 = vshll.u32 %v1650_v1, 16  ;;  %v1591_v43 = vor.u32 %v1694_v20, %v1590_v19  ;;  %v1654_v62 = vld [vmem:[%s1774_s28 + $0x38] sm:$0xf] }
  0x47   : > { %v761_v39 = vor.u32 %v760_v22, %v757_v21  ;;  %v1624_v21 = vld [vmem:[%s1774_s28 + $0x60] sm:$0xf]  ;;  %v785_v22 = vrot.slane %v783_v7, 4  ;;  %v802_v25 = vrot.slane %v800_v10, 5  ;;  %v814_v1 = vshll.u32 %v1560_v58, 16 }
  0x48   : > { %v775_v41 = vor.u32 %v774_v24, %v771_v23  ;;  %v788_v23 = vrot.slane %v786_v8, 5  ;;  %v799_v24 = vrot.slane %v797_v9, 4  ;;  %v1157_v28 = vrot.slane %v1155_v11, 4 }
  0x49   : > { %v762_v53 = vrot.slane %v761_v39, 4  ;;  %v1160_v29 = vrot.slane %v1158_v12, 5  ;;  %v1625_v44 = vor.u32 %v1699_v30, %v1624_v21  ;;  %v1183_v6 = vshrl.u32 %v1654_v62, 16  ;;  %v1594_v12 = vld [vmem:[%s1774_s28 + $0x28] sm:$0xf] }
  0x4a   : > { %v776_v55 = vrot.slane %v775_v41, 4  ;;  %v789_v39 = vor.u32 %v788_v23, %v785_v22  ;;  %v803_v41 = vor.u32 %v802_v25, %v799_v24  ;;  %v1186_v7 = vshll.u32 %v1654_v62, 16  ;;  %v1561_v22 = vld [vmem:[%s1774_s28 + $0xc4] sm:$0x1]  ;;  %v1563_v23 = vld [vmem:[%s1774_s28 + $0xcc] sm:$0x1] }
  0x4b   : > { %v1161_v45 = vor.u32 %v1160_v29, %v1157_v28  ;;  %v816_v17 = vrot.slane %v814_v1, 5  ;;  %v830_v19 = vrot.slane %v828_v3, 5  ;;  %v1185_v24 = vrot.slane %v1183_v6, 4 }
  0x4c   : > { %v781_v0 = vsel %vm1805_vm3, %v776_v55, %v780_v56  ;;  %v1188_v25 = vrot.slane %v1186_v7, 5 }
  0x4d   : > { %v844_v16 = vunpack.c.l.b16 %v781_v0  ;;  %v811_v0 = vshrl.u32 %v1560_v58, 16  ;;  %v1696_v58 = vld [vmem:[%s1774_s28 + $0x3c] sm:$0xf0] }
  0x52   : > { %1469 = vmatmul.msk.bf16.gmra.mxu1 %vm226_vm0, %v1461_v50  ;;  %v1587_v50 = vor.u32 %v1693_v33, %v1586_v32  ;;  %v1216_v32 = vunpack.c.l.b16 %v1153_v18  ;;  %v1651_v33 = vld [vmem:[%s1774_s28 + $0x2c] sm:$0x1]  ;;  %v827_v18 = vrot.slane %v825_v2, 4 }
  0x53   : > { %1479 = vmatmul.msk.bf16.gmra.mxu2 %vm226_vm0, %v480_v51  ;;  %1513 = vmatmul.msk.bf16.gmra.mxu3 %vm226_vm0, %v1505_v52  ;;  %v1621_v51 = vor.u32 %v1698_v37, %v1620_v36  ;;  %v1221_v52 = vpack.c.b16 %v1214_v35, %v1213_v34  ;;  %v1171_v34 = vrot.slane %v1169_v13, 4  ;;  %v1174_v35 = vrot.slane %v1172_v14, 5  ;;  %v1653_v37 = vld [vmem:[%s1774_s28 + $0x34] sm:$0x1]  ;;  %v1695_v13 = vld [vmem:[%s1774_s28 + $0x2c] sm:$0xf0] }
  0x54   : > { %1547 = vmatmul.msk.bf16.gmra.mxu0 %vm226_vm0, %v1539_v63  ;;  %v767_v63 = vsel %vm1805_vm3, %v762_v53, %v766_v54  ;;  %v1164_v46 = vshll.u32 %v1651_v33, 16  ;;  %v1178_v49 = vshll.u32 %v1653_v37, 16  ;;  %v808_v53 = vrot.slane %v806_v42, 5  ;;  %v1628_v14 = vld [vmem:[%s1774_s28 + $0x70] sm:$0xf] }
  0x55   : > { %v843_v15 = vunpack.c.l.b16 %v767_v63  ;;  %v1175_v48 = vor.u32 %v1174_v35, %v1171_v34  ;;  %v1162_v54 = vrot.slane %v1161_v45, 4  ;;  %v1656_v63 = vld [vmem:[%s1774_s28 + $0x40] sm:$0xf]  ;;  %v1595_v29 = vor.u32 %v1695_v13, %v1594_v12 }
  0x56   : > { %v1166_v55 = vrot.slane %v1164_v46, 5  ;;  %v1180_v57 = vrot.slane %v1178_v49, 5  ;;  %v1197_v8 = vshrl.u32 %v1656_v63, 16  ;;  %v1200_v9 = vshll.u32 %v1656_v63, 16 }
  0x57   : > { %v850_v36 = vpack.c.b16 %v844_v16, %v843_v15  ;;  %v1176_v56 = vrot.slane %v1175_v48, 4  ;;  %v1700_v15 = vld [vmem:[%s1774_s28 + $0x74] sm:$0xf0]  ;;  %v813_v16 = vrot.slane %v811_v0, 4  ;;  %v820_v34 = vshll.u32 %v1561_v22, 16 }
  0x58   : > { %v1167_v4 = vsel %vm1805_vm3, %v1162_v54, %v1166_v55  ;;  %v1199_v26 = vrot.slane %v1197_v8, 4  ;;  %v1202_v27 = vrot.slane %v1200_v9, 5  ;;  %v1629_v30 = vor.u32 %v1700_v15, %v1628_v14 }
  0x59   : > { %v1181_v5 = vsel %vm1805_vm3, %v1176_v56, %v1180_v57  ;;  %v1217_v20 = vunpack.c.l.b16 %v1167_v4  ;;  %v817_v33 = vor.u32 %v816_v17, %v813_v16  ;;  %v831_v35 = vor.u32 %v830_v19, %v827_v18  ;;  %v1598_v57 = vld [vmem:[%s1774_s28 + $0x38] sm:$0xf] }
  0x5a   : > { %v1218_v21 = vunpack.c.l.b16 %v1181_v5  ;;  %v1599_v1 = vor.u32 %v1696_v58, %v1598_v57 }
  0x5b   : > { %v832_v45 = vrot.slane %v831_v35, 4 }
  0x5c   : > { %v1223_v37 = vpack.c.b16 %v1218_v21, %v1217_v20 }
  0x62   : > { %1570 = vmatmul.msk.bf16.vlgmr.msra.gmra.mxu1 %vm226_vm0, %v849_v47  ;;  %v1222_v47 = vpack.c.b16 %v1216_v32, %v1215_v31  ;;  %v1655_v31 = vld [vmem:[%s1774_s28 + $0x3c] sm:$0x1]  ;;  %v1657_v32 = vld [vmem:[%s1774_s28 + $0x44] sm:$0x1] }
  0x63   : > { %1604 = vmatmul.msk.bf16.vlgmr.msra.gmra.mxu2 %vm226_vm0, %v1587_v50  ;;  %1638 = vmatmul.msk.bf16.vlgmr.msra.gmra.mxu3 %vm226_vm0, %v1621_v51  ;;  %v790_v50 = vrot.slane %v789_v39, 4  ;;  %v794_v51 = vrot.slane %v792_v40, 5  ;;  %v1189_v39 = vor.u32 %v1188_v25, %v1185_v24  ;;  %v1192_v40 = vshll.u32 %v1655_v31, 16 }
  0x64   : > { %1664 = vmatmul.msk.bf16.vlgmr.msra.gmra.mxu0 %vm226_vm0, %v1221_v52  ;;  %v804_v52 = vrot.slane %v803_v41, 4  ;;  %v1203_v41 = vor.u32 %v1202_v27, %v1199_v26  ;;  %v1206_v42 = vshll.u32 %v1657_v32, 16 }
  0x65   : > { %v795_v60 = vsel %vm1805_vm3, %v790_v50, %v794_v51  ;;  %v1194_v48 = vrot.slane %v1192_v40, 5 }
  0x66   : > { %v809_v61 = vsel %vm1805_vm3, %v804_v52, %v808_v53  ;;  %v845_v10 = vunpack.c.l.b16 %v795_v60  ;;  %v1204_v49 = vrot.slane %v1203_v41, 4  ;;  %v1208_v50 = vrot.slane %v1206_v42, 5  ;;  %v1701_v60 = vld [vmem:[%s1774_s28 + $0x84] sm:$0xf0] }
  0x67   : > { %v846_v11 = vunpack.c.l.b16 %v809_v61  ;;  %v1633_v2 = vor.u32 %v1701_v60, %v1632_v59  ;;  %v2019_v59 = vld [vmem:[%s2079_s2] ss:$0 sm:$0xff] }
  0x68   : > { %v1209_v54 = vsel %vm1805_vm3, %v1204_v49, %v1208_v50 }
  0x69   : > { %v851_v28 = vpack.c.b16 %v846_v11, %v845_v10  ;;  %v1220_v62 = vunpack.c.l.b16 %v1209_v54 }
  0x72   : > { %1571 = vmatmul.msk.bf16.gmra.mxu1 %vm226_vm0, %v850_v36  ;;  %v834_v36 = vshll.u32 %v1563_v23, 16 }
  0x73   : > { %1605 = vmatmul.msk.bf16.gmra.mxu2 %vm226_vm0, %v1591_v43  ;;  %1639 = vmatmul.msk.bf16.gmra.mxu3 %vm226_vm0, %v1625_v44  ;;  %v818_v43 = vrot.slane %v817_v33, 4  ;;  %v822_v44 = vrot.slane %v820_v34, 5 }
  0x74   : > { %1665 = vmatmul.msk.bf16.gmra.mxu0 %vm226_vm0, %v1222_v47  ;;  %v836_v46 = vrot.slane %v834_v36, 5  ;;  %v1190_v47 = vrot.slane %v1189_v39, 4 }
  0x75   : > { %v823_v51 = vsel %vm1805_vm3, %v818_v43, %v822_v44 }
  0x76   : > { %v837_v52 = vsel %vm1805_vm3, %v832_v45, %v836_v46  ;;  %v1195_v53 = vsel %vm1805_vm3, %v1190_v47, %v1194_v48  ;;  %v847_v55 = vunpack.c.l.b16 %v823_v51 }
  0x77   : > { %v848_v56 = vunpack.c.l.b16 %v837_v52  ;;  %v1219_v61 = vunpack.c.l.b16 %v1195_v53 }
  0x79   : > { %v852_v63 = vpack.c.b16 %v848_v56, %v847_v55  ;;  %v1224_v3 = vpack.c.b16 %v1220_v62, %v1219_v61 }
  0x82   : > { %1572 = vmatmul.msk.bf16.gmra.mxu1 %vm226_vm0, %v851_v28 }
  0x83   : > { %1606 = vmatmul.msk.bf16.gmra.mxu2 %vm226_vm0, %v1595_v29  ;;  %1640 = vmatmul.msk.bf16.gmra.mxu3 %vm226_vm0, %v1629_v30 }
  0x84   : > { %1666 = vmatmul.msk.bf16.gmra.mxu0 %vm226_vm0, %v1223_v37 }
  0x8f   : > { %v253_v0 = vpop.f32.mrf.mxu1 }
  0x91   : > { %v248_v4 = vpop.f32.mrf.mxu0 }
  0x92   : > { %1573 = vmatmul.msk.bf16.gmra.mxu1 %vm226_vm0, %v852_v63 }
  0x93   : > { %1607 = vmatmul.msk.bf16.gmra.mxu2 %vm226_vm0, %v1599_v1  ;;  %1641 = vmatmul.msk.bf16.gmra.mxu3 %vm226_vm0, %v1633_v2 }
  0x94   : > { %1667 = vmatmul.msk.bf16.gmra.mxu0 %vm226_vm0, %v1224_v3 }
  0x96   : > { %v1972_v38 = vpop.f32.mrf.mxu2  ;;  %v1974_v5 = vpop.f32.mrf.mxu3 }
  0x97   : > { %v1976_v6 = vpop.f32.mrf.mxu1 }
  0x99   : > { %v250_v7 = vpop.f32.mrf.mxu0 }
  0x9e   : > { %v1978_v8 = vpop.f32.mrf.mxu2  ;;  %v1980_v9 = vpop.f32.mrf.mxu3 }
  0x9f   : > { %v315_v10 = vpop.f32.mrf.mxu1 }
  0xa0   : > { %v316_v40 = vadd.f32 %v315_v10, %v248_v4 }
  0xa1   : > { %v682_v11 = vpop.f32.mrf.mxu0 }
  0xa6   : > { %v508_v12 = vpop.f32.mrf.mxu2  ;;  %v595_v13 = vpop.f32.mrf.mxu3 }
  0xa7   : > { %v317_v14 = vpop.f32.mrf.mxu1  ;;  %v528_v42 = vadd.f32 %v508_v12, %v316_v40 }
  0xa8   : > { %v318_v47 = vadd.f32 %v317_v14, %v250_v7 }
  0xa9   : > { %v684_v15 = vpop.f32.mrf.mxu0  ;;  %v615_v45 = vadd.f32 %v595_v13, %v528_v42 }
  0xab   : > { %v702_v50 = vadd.f32 %v682_v11, %v615_v45 }
  0xae   : > { %v510_v16 = vpop.f32.mrf.mxu2  ;;  %v597_v17 = vpop.f32.mrf.mxu3 }
  0xaf   : > { %v320_v18 = vpop.f32.mrf.mxu1  ;;  %v529_v49 = vadd.f32 %v510_v16, %v318_v47 }
  0xb0   : > { %v321_v57 = vadd.f32 %v320_v18, %v253_v0 }
  0xb1   : > { %v687_v19 = vpop.f32.mrf.mxu0  ;;  %v616_v54 = vadd.f32 %v597_v17, %v529_v49 }
  0xb3   : > { %v703_v63 = vadd.f32 %v684_v15, %v616_v54 }
  0xb6   : > { %v513_v20 = vpop.f32.mrf.mxu2  ;;  %v600_v21 = vpop.f32.mrf.mxu3 }
  0xb7   : > { %v322_v22 = vpop.f32.mrf.mxu1  ;;  %v530_v61 = vadd.f32 %v513_v20, %v321_v57 }
  0xb8   : > { %v323_v12 = vadd.f32 %v322_v22, %v1976_v6 }
  0xb9   : > { %v1982_v23 = vpop.f32.mrf.mxu0  ;;  %v617_v7 = vadd.f32 %v600_v21, %v530_v61 }
  0xbb   : > { %v704_v15 = vadd.f32 %v687_v19, %v617_v7 }
  0xbe   : > { %v515_v24 = vpop.f32.mrf.mxu2  ;;  %v602_v25 = vpop.f32.mrf.mxu3 }
  0xbf   : > { %v1984_v26 = vpop.f32.mrf.mxu1  ;;  %v531_v17 = vadd.f32 %v515_v24, %v323_v12 }
  0xc0   : > { %v326_v19 = vadd.f32 %v1984_v26, %v1972_v38 }
  0xc1   : > { %v1986_v27 = vpop.f32.mrf.mxu0  ;;  %v618_v47 = vadd.f32 %v602_v25, %v531_v17 }
  0xc6   : > { %v1988_v28 = vpop.f32.mrf.mxu2  ;;  %v1990_v29 = vpop.f32.mrf.mxu3 }
  0xc7   : > { %v1992_v30 = vpop.f32.mrf.mxu1  ;;  %v532_v25 = vadd.f32 %v1988_v28, %v326_v19 }
  0xc8   : > { %v328_v28 = vadd.f32 %v1992_v30, %v1978_v8 }
  0xc9   : > { %v1994_v31 = vpop.f32.mrf.mxu0  ;;  %v619_v38 = vadd.f32 %v1990_v29, %v532_v25 }
  0xce   : > { %v1996_v32 = vpop.f32.mrf.mxu2  ;;  %v1998_v33 = vpop.f32.mrf.mxu3 }
  0xcf   : > { %v2000_v34 = vpop.f32.mrf.mxu1 }
  0xd1   : > { %v2002_v35 = vpop.f32.mrf.mxu0 }
  0xd6   : > { %v2004_v36 = vpop.f32.mrf.mxu2  ;;  %v2006_v37 = vpop.f32.mrf.mxu3 }
  0xd7   : > { %v2008_v39 = vpop.f32.mrf.mxu1 }
  0xd9   : > { %v2010_v41 = vpop.f32.mrf.mxu0 }
  0xde   : > { %v2012_v43 = vpop.f32.mrf.mxu2  ;;  %v2014_v44 = vpop.f32.mrf.mxu3 }
  0xdf   : > { %v880_v46 = vpop.f32.mrf.mxu1 }
  0xe0   : > { %v900_v51 = vadd.f32 %v880_v46, %v702_v50 }
  0xe1   : > { %v1252_v48 = vpop.f32.mrf.mxu0 }
  0xe6   : > { %v967_v52 = vpop.f32.mrf.mxu2  ;;  %v1054_v53 = vpop.f32.mrf.mxu3 }
  0xe7   : > { %v987_v55 = vadd.f32 %v967_v52, %v900_v51  ;;  %v882_v56 = vpop.f32.mrf.mxu1 }
  0xe8   : > { %v901_v2 = vadd.f32 %v882_v56, %v703_v63 }
  0xe9   : > { %v1074_v58 = vadd.f32 %v1054_v53, %v987_v55  ;;  %v1254_v60 = vpop.f32.mrf.mxu0  ;;  %v705_v55 = vadd.f32 %v1982_v23, %v618_v47  ;;  %v533_v23 = vadd.f32 %v1996_v32, %v328_v28 }
  0xeb   : > { %v1272_v62 = vadd.f32 %v1252_v48, %v1074_v58  ;;  %v620_v8 = vadd.f32 %v1998_v33, %v533_v23 }
  0xed   : > { %v1283_v1 = vadd.f32 %v2019_v59, %v1272_v62 }
  0xee   : > { %v969_v3 = vpop.f32.mrf.mxu2  ;;  %v1056_v4 = vpop.f32.mrf.mxu3 }
  0xef   : > { %v1291_v10 = vadd.f32 3.0, %v1283_v1  ;;  %v988_v0 = vadd.f32 %v969_v3, %v901_v2  ;;  %v885_v11 = vpop.f32.mrf.mxu1 }
  0xf0   : > { %v902_v45 = vadd.f32 %v885_v11, %v704_v15 }
  0xf1   : > { %v1299_v13 = vmax.f32 %v1291_v10, 0.0  ;;  %v1075_v14 = vadd.f32 %v1056_v4, %v988_v0  ;;  %v1257_v16 = vpop.f32.mrf.mxu0  ;;  %v706_v0 = vadd.f32 %v1986_v27, %v619_v38 }
  0xf3   : > { %v1307_v18 = vmin.f32 %v1299_v13, 6.0  ;;  %v1273_v20 = vadd.f32 %v1254_v60, %v1075_v14 }
  0xf5   : > { %v1315_v40 = vmul.f32 %v1307_v18, %v1283_v1  ;;  %v1284_v42 = vadd.f32 %v2019_v59, %v1273_v20  ;;  %v331_v20 = vadd.f32 %v2000_v34, %v1974_v5 }
  0xf6   : > { %v972_v46 = vpop.f32.mrf.mxu2  ;;  %v1059_v21 = vpop.f32.mrf.mxu3 }
  0xf7   : > { %v1323_v48 = vmul.f32 0.16666667, %v1315_v40  ;;  %v1292_v49 = vadd.f32 3.0, %v1284_v42  ;;  %v989_v50 = vadd.f32 %v972_v46, %v902_v45  ;;  %v887_v6 = vpop.f32.mrf.mxu1 }
  0xf8   : > { %v903_v58 = vadd.f32 %v887_v6, %v705_v55 }
  0xf9   : > { %v1331_v22 = vpack.c.bf16 %v1323_v48, %v1323_v48  ;;  %v1300_v24 = vmax.f32 %v1292_v49, 0.0  ;;  %v1076_v51 = vadd.f32 %v1059_v21, %v989_v50  ;;  %v1259_v52 = vpop.f32.mrf.mxu0  ;;  %v707_v21 = vadd.f32 %v1994_v31, %v620_v8 }
  0xfb   : > { %1340 = vst.msk [vmem:[%s2029_s17] sm:$0xf] %vm1339_vm4, %v1331_v22  ;;  %v1308_v53 = vmin.f32 %v1300_v24, 6.0  ;;  %v1274_v54 = vadd.f32 %v1257_v16, %v1076_v51  ;;  %v333_v24 = vadd.f32 %v2008_v39, %v1980_v9 }
  0xfd   : > { %v1316_v56 = vmul.f32 %v1308_v53, %v1284_v42  ;;  %v1285_v57 = vadd.f32 %v2019_v59, %v1274_v54  ;;  %v534_v42 = vadd.f32 %v2004_v36, %v331_v20  ;;  %v535_v25 = vadd.f32 %v2012_v43, %v333_v24 }
  0xfe   : > { %v974_v60 = vpop.f32.mrf.mxu2  ;;  %v1061_v61 = vpop.f32.mrf.mxu3 }
  0xff   : > { %v1324_v26 = vmul.f32 0.16666667, %v1316_v56  ;;  %v1293_v62 = vadd.f32 3.0, %v1285_v57  ;;  %v990_v63 = vadd.f32 %v974_v60, %v903_v58  ;;  %v890_v1 = vpop.f32.mrf.mxu1  ;;  %v621_v5 = vadd.f32 %v2006_v37, %v534_v42 }
 0x100   : > { %v904_v13 = vadd.f32 %v890_v1, %v706_v0  ;;  %v622_v9 = vadd.f32 %v2014_v44, %v535_v25 }
 0x101   : > { %v1332_v2 = vpack.c.bf16 %v1324_v26, %v1324_v26  ;;  %v1301_v3 = vmax.f32 %v1293_v62, 0.0  ;;  %v1077_v4 = vadd.f32 %v1061_v61, %v990_v63  ;;  %v1262_v11 = vpop.f32.mrf.mxu0  ;;  %v708_v55 = vadd.f32 %v2002_v35, %v621_v5 }
 0x103   : > { %1341 = vst.msk [vmem:[%s2029_s17 + $0x4] sm:$0xf] %vm1339_vm4, %v1332_v2  ;;  %v1309_v7 = vmin.f32 %v1301_v3, 6.0  ;;  %v1275_v10 = vadd.f32 %v1259_v52, %v1077_v4  ;;  %v709_v2 = vadd.f32 %v2010_v41, %v622_v9 }
 0x105   : > { %v1317_v29 = vmul.f32 %v1309_v7, %v1285_v57  ;;  %v1286_v12 = vadd.f32 %v2019_v59, %v1275_v10 }
 0x106   : > { %v977_v14 = vpop.f32.mrf.mxu2  ;;  %v1064_v16 = vpop.f32.mrf.mxu3 }
 0x107   : > { %v1325_v30 = vmul.f32 0.16666667, %v1317_v29  ;;  %v1294_v17 = vadd.f32 3.0, %v1286_v12  ;;  %v991_v18 = vadd.f32 %v977_v14, %v904_v13  ;;  %v892_v32 = vpop.f32.mrf.mxu1 }
 0x108   : > { %v905_v48 = vadd.f32 %v892_v32, %v707_v21 }
 0x109   : > { %v1333_v15 = vpack.c.bf16 %v1325_v30, %v1325_v30  ;;  %v1302_v40 = vmax.f32 %v1294_v17, 0.0  ;;  %v1078_v27 = vadd.f32 %v1064_v16, %v991_v18  ;;  %v1264_v49 = vpop.f32.mrf.mxu0 }
 0x10b   : > { %1342 = vst.msk [vmem:[%s2029_s17 + $0x8] sm:$0xf] %vm1339_vm4, %v1333_v15  ;;  %v1310_v45 = vmin.f32 %v1302_v40, 6.0  ;;  %v1276_v46 = vadd.f32 %v1262_v11, %v1078_v27 }
 0x10d   : > { %v1318_v47 = vmul.f32 %v1310_v45, %v1286_v12  ;;  %v1287_v33 = vadd.f32 %v2019_v59, %v1276_v46 }
 0x10e   : > { %v979_v50 = vpop.f32.mrf.mxu2  ;;  %v1066_v6 = vpop.f32.mrf.mxu3 }
 0x10f   : > { %v1326_v34 = vmul.f32 0.16666667, %v1318_v47  ;;  %v1295_v19 = vadd.f32 3.0, %v1287_v33  ;;  %v992_v22 = vadd.f32 %v979_v50, %v905_v48  ;;  %v895_v36 = vpop.f32.mrf.mxu1 }
 0x110   : > { %v906_v57 = vadd.f32 %v895_v36, %v708_v55 }
 0x111   : > { %v1334_v51 = vpack.c.bf16 %v1326_v34, %v1326_v34  ;;  %v1303_v52 = vmax.f32 %v1295_v19, 0.0  ;;  %v1079_v31 = vadd.f32 %v1066_v6, %v992_v22  ;;  %v1267_v26 = vpop.f32.mrf.mxu0 }
 0x113   : > { %1343 = vst.msk [vmem:[%s2029_s17 + $0xc] sm:$0xf] %vm1339_vm4, %v1334_v51  ;;  %v1311_v53 = vmin.f32 %v1303_v52, 6.0  ;;  %v1277_v54 = vadd.f32 %v1264_v49, %v1079_v31 }
 0x115   : > { %v1319_v37 = vmul.f32 %v1311_v53, %v1287_v33  ;;  %v1288_v56 = vadd.f32 %v2019_v59, %v1277_v54 }
 0x116   : > { %v982_v58 = vpop.f32.mrf.mxu2  ;;  %v1069_v60 = vpop.f32.mrf.mxu3 }
 0x117   : > { %v1327_v39 = vmul.f32 0.16666667, %v1319_v37  ;;  %v1296_v61 = vadd.f32 3.0, %v1288_v56  ;;  %v993_v38 = vadd.f32 %v982_v58, %v906_v57  ;;  %v897_v1 = vpop.f32.mrf.mxu1 }
 0x118   : > { %v907_v23 = vadd.f32 %v897_v1, %v709_v2 }
 0x119   : > { %v1335_v43 = vpack.c.bf16 %v1327_v39, %v1327_v39  ;;  %v1304_v62 = vmax.f32 %v1296_v61, 0.0  ;;  %v1080_v63 = vadd.f32 %v1069_v60, %v993_v38  ;;  %v1269_v14 = vpop.f32.mrf.mxu0 }
 0x11b   : > { %1344 = vst.msk [vmem:[%s2029_s17 + $0x10] sm:$0xf] %vm1339_vm4, %v1335_v43  ;;  %v1312_v35 = vmin.f32 %v1304_v62, 6.0  ;;  %v1278_v28 = vadd.f32 %v1267_v26, %v1080_v63 }
 0x11d   : > { %v1320_v3 = vmul.f32 %v1312_v35, %v1288_v56  ;;  %v1289_v4 = vadd.f32 %v2019_v59, %v1278_v28 }
 0x11e   : > { %v984_v44 = vpop.f32.mrf.mxu2  ;;  %v1071_v11 = vpop.f32.mrf.mxu3 }
 0x11f   : > { %v1328_v7 = vmul.f32 0.16666667, %v1320_v3  ;;  %v1297_v10 = vadd.f32 3.0, %v1289_v4  ;;  %v994_v0 = vadd.f32 %v984_v44, %v907_v23 }
 0x121   : > { %v1336_v29 = vpack.c.bf16 %v1328_v7, %v1328_v7  ;;  %v1305_v12 = vmax.f32 %v1297_v10, 0.0  ;;  %v1081_v13 = vadd.f32 %v1071_v11, %v994_v0 }
 0x123   : > { %1345 = vst.msk [vmem:[%s2029_s17 + $0x14] sm:$0xf] %vm1339_vm4, %v1336_v29  ;;  %v1313_v16 = vmin.f32 %v1305_v12, 6.0  ;;  %v1279_v8 = vadd.f32 %v1269_v14, %v1081_v13 }
 0x125   : > { %v1321_v41 = vmul.f32 %v1313_v16, %v1289_v4  ;;  %v1290_v30 = vadd.f32 %v2019_v59, %v1279_v8 }
 0x127   : > { %v1329_v17 = vmul.f32 0.16666667, %v1321_v41  ;;  %v1298_v18 = vadd.f32 3.0, %v1290_v30 }
 0x129   : > { %v1337_v32 = vpack.c.bf16 %v1329_v17, %v1329_v17  ;;  %v1306_v20 = vmax.f32 %v1298_v18, 0.0 }
 0x12b   : > { %1346 = vst.msk [vmem:[%s2029_s17 + $0x18] sm:$0xf] %vm1339_vm4, %v1337_v32  ;;  %v1314_v15 = vmin.f32 %v1306_v20, 6.0 }
 0x12d   : > { %v1322_v40 = vmul.f32 %v1314_v15, %v1290_v30 }
 0x12f   : > { %v1330_v27 = vmul.f32 0.16666667, %v1322_v40 }
 0x131   : > { %v1338_v42 = vpack.c.bf16 %v1330_v27, %v1330_v27 }
 0x133   : > { %1347 = vst.msk [vmem:[%s2029_s17 + $0x1c] sm:$0xf] %vm1339_vm4, %v1338_v42 }
 0x134 PF: > { %s13_s12 = sadd.s32 1, %s1723_s12  }
 0x135   : > { %p10_p5 = scmp.ge.s32.totalorder %s13_s12, 4  }
 0x137   :  { %12 = sbr.rel (!%p10_p5) target bundleno = 1 (0x1), region = 75 }

// kernel: model_forward.23
= control target key start
LH: loop header
LB: loop body
LE: loop exit
PB: predicated region body
PF: predicated region fallthrough
CT: control target
= control target key end

     0   :  { %s355_s12 = smov 0   ;;  %s381_s0 = inlined_call_operand.vmem [shape: bf16[32,32], index: 0, kind: input, shape index: {}]   ;;  %s382_s1 = inlined_call_operand.vmem [shape: bf16[32,32], index: 1, kind: input, shape index: {}]   ;;  %s383_s2 = inlined_call_operand.vmem [shape: f32[1,32], index: 2, kind: input, shape index: {}]   ;;  %s384_s3 = inlined_call_operand.vmem [shape: bf16[32,32], index: 3, kind: output, shape index: {}]  }
   0x1 LB: > { %s291_s13 = sadd.s32 4294967295, %s333_s12   ;;  %p295_p0 = scmp.ge.s32.totalorder %s333_s12, 1  ;;  %s333_s12 = sphi %s355_s12, %s13_s12  }
   0x2   : > { %p138_p1 = scmp.lt.s32.totalorder %s333_s12, 3 }
   0x4   : > { %p139_p2 = pnand %p295_p0, %p138_p1 }
   0x5   : > { %s296_s16 = sshll.u32 (!%p139_p2), %s291_s13, 1 }
   0x6   : > { %142 = sbr.rel (%p139_p2) target bundleno = 168 (0xa8), region = 32  ;;  %p163_p3 = scmp.lt.s32.totalorder (!%p139_p2), %s296_s16, 3 }
   0xb   : > { %v317_v0 = vld [vmem:[%s382_s1 + $0x8] sm:$0xff]  ;;  %v316_v1 = vld [vmem:[%s382_s1] sm:$0xff]  ;;  %s386_s16 = smov (!%p163_p3, %s296_s16), 3  ;;  %vm202_vm0 = vcmask 261120   ;;  %vm232_vm1 = vcmask 257024  }
   0xc   : > { %212 = vmatpush.bf16.msra.mxu0 %v317_v0  ;;  %s297_s19 = sshll.u32 %s386_s16, 2  ;;  %v326_v3 = vld [vmem:[%s383_s2] ss:$0 sm:$0xff] }
   0xd   : > { %s166_s22 = scalar_lea.vmem %s381_s0, %s297_s19  ;;  %s172_s27 = scalar_lea.vmem %s384_s3, %s297_s19 }
   0xe   : > { %v315_v2 = vld [vmem:[%s166_s22] sm:$0xff] }
  0x10   : > { %213 = vmatpush.bf16.msra.mxu0 %v316_v1 }
  0x13   : > { %312 = vmatmul.msk.bf16.vlgmr.msra.gmra.mxu0 %vm202_vm0, %v315_v2 }
  0x90   : > { %v215_v4 = vpop.f32.mrf.mxu0 }
  0x91   : > { %v216_v5 = vadd.f32 %v326_v3, %v215_v4 }
  0x93   : > { %v220_v6 = vadd.f32 3.0, %v216_v5 }
  0x95   : > { %v222_v7 = vmax.f32 %v220_v6, 0.0 }
  0x97   : > { %v224_v8 = vmin.f32 %v222_v7, 6.0 }
  0x98   : > { %v217_v9 = vpop.f32.mrf.mxu0 }
  0x99   : > { %v226_v10 = vmul.f32 %v224_v8, %v216_v5  ;;  %v218_v11 = vadd.f32 %v326_v3, %v217_v9 }
  0x9b   : > { %v228_v12 = vmul.f32 0.16666667, %v226_v10  ;;  %v221_v13 = vadd.f32 3.0, %v218_v11 }
  0x9d   : > { %v230_v14 = vpack.c.bf16 %v228_v12, %v228_v12  ;;  %v223_v15 = vmax.f32 %v221_v13, 0.0 }
  0x9f   : > { %233 = vst.msk [vmem:[%s172_s27] sm:$0xf] %vm232_vm1, %v230_v14  ;;  %v225_v16 = vmin.f32 %v223_v15, 6.0 }
  0xa1   : > { %v227_v17 = vmul.f32 %v225_v16, %v218_v11 }
  0xa3   : > { %v229_v18 = vmul.f32 0.16666667, %v227_v17 }
  0xa5   : > { %v231_v19 = vpack.c.bf16 %v229_v18, %v229_v18 }
  0xa7   : > { %234 = vst.msk [vmem:[%s172_s27 + $0x4] sm:$0xf] %vm232_vm1, %v231_v19 }
  0xa8 PF: > { %s13_s12 = sadd.s32 1, %s333_s12  }
  0xa9   : > { %p10_p4 = scmp.ge.s32.totalorder %s13_s12, 4  }
  0xab   :  { %12 = sbr.rel (!%p10_p4) target bundleno = 1 (0x1), region = 62 }

// kernel: model_forward.18
= control target key start
LH: loop header
LB: loop body
LE: loop exit
PB: predicated region body
PF: predicated region fallthrough
CT: control target
= control target key end

     0   :  { %s1193_s12 = smov 0   ;;  %s1387_s0 = inlined_call_operand.vmem [shape: bf16[8,5,5,32], index: 0, kind: input, shape index: {}]   ;;  %s1388_s1 = inlined_call_operand.vmem [shape: bf16[9,32,32], index: 1, kind: input, shape index: {}]   ;;  %s1389_s2 = inlined_call_operand.vmem [shape: f32[1,32], index: 2, kind: input, shape index: {}]   ;;  %s1390_s3 = inlined_call_operand.vmem [shape: bf16[2,4,4,32], index: 3, kind: output, shape index: {}]  }
   0x1 LB: > { %s1199_s13 = sadd.s32 4294967295, %s1171_s12   ;;  %p988_p0 = scmp.ge.s32.totalorder %s1171_s12, 1  ;;  %s1171_s12 = sphi %s1193_s12, %s13_s12  }
   0x2   : > { %p139_p1 = scmp.lt.s32.totalorder %s1171_s12, 3 }
   0x4   : > { %p140_p2 = pnand %p988_p0, %p139_p1 }
   0x5   : > { %s989_s18 = sshll.u32 (!%p140_p2), %s1199_s13, 2  ;;  %p171_p4 = scmp.lt.s32.totalorder (!%p140_p2), %s1199_s13, 1 }
   0x6   : > { %143 = sbr.rel (%p140_p2) target bundleno = 268 (0x10c), region = 32  ;;  %p165_p3 = scmp.lt.s32.totalorder (!%p140_p2), %s989_s18, 7 }
   0xb   : > { %v1140_v0 = vld [vmem:[%s1388_s1 + $0x18] sm:$0xff]  ;;  %v1142_v1 = vld [vmem:[%s1388_s1 + $0x28] sm:$0xff]  ;;  %v1139_v4 = vld [vmem:[%s1388_s1 + $0x10] sm:$0xff]  ;;  %s1398_s18 = smov (!%p165_p3, %s989_s18), 7  ;;  %vm220_vm0 = vcmask 261120   ;;  %vm289_vm1 = vcmask 1041408  }
   0xc   : > { %v1138_v2 = vld [vmem:[%s1388_s1 + $0x8] sm:$0xff]  ;;  %v1144_v3 = vld [vmem:[%s1388_s1 + $0x38] sm:$0xff]  ;;  %229 = vmatpush.bf16.msra.mxu0 %v1140_v0  ;;  %411 = vmatpush.bf16.msra.mxu2 %v1142_v1  ;;  %v1141_v5 = vld [vmem:[%s1388_s1 + $0x20] sm:$0xff]  ;;  %s1155_s27 = smul.u32 20, %s1398_s18  ;;  %vm293_vm2 = vcmask 1043458   ;;  %s1400_s13 = smov (!%p171_p4, %s1199_s13), 1 }
   0xd   : > { %269 = vmatpush.bf16.msra.mxu1 %v1138_v2  ;;  %463 = vmatpush.bf16.msra.mxu3 %v1144_v3  ;;  %vm315_vm3 = vsmask.f32 1280  ;;  %v1137_v17 = vld [vmem:[%s1388_s1] sm:$0xff]  ;;  %vm316_vm4 = vsmask.f32 3336  ;;  %v1143_v19 = vld [vmem:[%s1388_s1 + $0x30] sm:$0xff] }
   0xe   : > { %s1225_s30 = scalar_lea.vmem %s1387_s0, %s1155_s27  ;;  %vm318_vm5 = vsmask.f32 5392  ;;  %vm320_vm6 = vsmask.f32 7448  ;;  %vm1255_vm7 = vmor %vm315_vm3, %vm316_vm4  ;;  %v1146_v56 = vld [vmem:[%s1388_s1 + $0x48] sm:$0xff]  ;;  %v1145_v0 = vld [vmem:[%s1388_s1 + $0x40] sm:$0xff] }
   0xf   : > { %v993_v6 = vld [vmem:[%s1225_s30 + $0x14] sm:$0x3]  ;;  %v994_v7 = vld [vmem:[%s1225_s30 + $0x18] sm:$0x3]  ;;  %v995_v8 = vld [vmem:[%s1225_s30 + $0x1c] sm:$0x3] }
  0x10   : > { %230 = vmatpush.bf16.msra.mxu0 %v1139_v4  ;;  %412 = vmatpush.bf16.msra.mxu2 %v1141_v5  ;;  %v996_v9 = vld [vmem:[%s1225_s30 + $0x20] sm:$0x3]  ;;  %197 = vst [vmem:[#allocation1] ss:$4 sm:$0xff] %v993_v6  ;;  %v278_v11 = vld [vmem:[%s1225_s30 + $0x4] sm:$0x7]  ;;  %vm1263_vm8 = vmor %vm1255_vm7, %vm318_vm5 }
  0x11   : > { %200 = vst [vmem:[#allocation1 + $0x1] ss:$4 sm:$0xff] %v994_v7  ;;  %v277_v10 = vld [vmem:[%s1225_s30] sm:$0x7]  ;;  %v279_v12 = vld [vmem:[%s1225_s30 + $0x8] sm:$0x7]  ;;  %270 = vmatpush.bf16.msra.mxu1 %v1137_v17  ;;  %464 = vmatpush.bf16.msra.mxu3 %v1143_v19  ;;  %vm1276_vm9 = vmor %vm1263_vm8, %vm320_vm6 }
  0x12   : > { %203 = vst [vmem:[#allocation1 + $0x2] ss:$4 sm:$0xff] %v995_v8  ;;  %v280_v13 = vld [vmem:[%s1225_s30 + $0xc] sm:$0x7]  ;;  %v285_v14 = vrot.slane %v277_v10, 2  ;;  %v286_v15 = vrot.slane %v278_v11, 2 }
  0x13   : > { %206 = vst [vmem:[#allocation1 + $0x3] ss:$4 sm:$0xff] %v996_v9  ;;  %v287_v16 = vrot.slane %v279_v12, 2  ;;  %v288_v18 = vrot.slane %v280_v13, 2  ;;  %v178_v27 = vld [vmem:[%s1225_s30] sm:$0x3] }
  0x14   : > { %v292_v20 = vsel %vm289_vm1, %v277_v10, %v285_v14  ;;  %v294_v21 = vsel %vm293_vm2, %v277_v10, %v285_v14  ;;  %v299_v22 = vsel %vm289_vm1, %v278_v11, %v286_v15  ;;  %v300_v23 = vsel %vm293_vm2, %v278_v11, %v286_v15  ;;  %v179_v28 = vld [vmem:[%s1225_s30 + $0x4] sm:$0x3]  ;;  %v180_v33 = vld [vmem:[%s1225_s30 + $0x8] sm:$0x3]  ;;  %v181_v34 = vld [vmem:[%s1225_s30 + $0xc] sm:$0x3]  ;;  %515 = vmatpush.bf16.msrb.mxu0 %v1146_v56 }
  0x15   : > { %v296_v24 = vrot.slane %v294_v21, 2  ;;  %v302_v25 = vrot.slane %v300_v23, 2  ;;  %v306_v26 = vsel %vm293_vm2, %v279_v12, %v287_v16  ;;  %v305_v29 = vsel %vm289_vm1, %v279_v12, %v287_v16  ;;  %v1066_v14 = vld [vmem:[%s1225_s30 + $0x28] sm:$0x7]  ;;  %v1148_v16 = vld [vmem:[%s1388_s1 + $0x58] sm:$0xff]  ;;  %v1147_v19 = vld [vmem:[%s1388_s1 + $0x50] sm:$0xff] }
  0x16   : > { %v308_v30 = vrot.slane %v306_v26, 2  ;;  %v312_v31 = vsel %vm293_vm2, %v280_v13, %v288_v18  ;;  %v322_v32 = vshrl.u32 %v292_v20, 16  ;;  %v325_v35 = vshll.u32 %v292_v20, 16  ;;  %v1067_v17 = vld [vmem:[%s1225_s30 + $0x2c] sm:$0x7]  ;;  %650 = vmatpush.bf16.msrb.mxu1 %v1148_v16  ;;  %s1136_s5 = sshll.u32 %s1400_s13, 3 }
  0x17   : > { %v335_v36 = vshrl.u32 %v299_v22, 16  ;;  %v311_v38 = vsel %vm289_vm1, %v280_v13, %v288_v18  ;;  %v314_v39 = vrot.slane %v312_v31, 2  ;;  %v338_v42 = vshll.u32 %v299_v22, 16  ;;  %v1150_v18 = vld [vmem:[%s1388_s1 + $0x68] sm:$0xff]  ;;  %v1068_v22 = vld [vmem:[%s1225_s30 + $0x30] sm:$0x7]  ;;  %s175_s8 = scalar_lea.vmem %s1390_s3, %s1136_s5 }
  0x18   : > { %v324_v41 = vrot.slane %v322_v32, 6  ;;  %v327_v43 = vrot.slane %v325_v35, 7  ;;  %v331_v44 = vshll.u32 %v296_v24, 16  ;;  %v348_v46 = vshrl.u32 %v305_v29, 16  ;;  %516 = vmatpush.bf16.msrb.mxu0 %v1145_v0  ;;  %702 = vmatpush.bf16.msrb.mxu2 %v1150_v18  ;;  %v1069_v23 = vld [vmem:[%s1225_s30 + $0x34] sm:$0x7] }
  0x19   : > { %v337_v45 = vrot.slane %v335_v36, 6  ;;  %v340_v47 = vrot.slane %v338_v42, 7  ;;  %v344_v48 = vshll.u32 %v302_v25, 16  ;;  %v351_v49 = vshll.u32 %v305_v29, 16  ;;  %v1032_v26 = vld [vmem:[%s1225_s30 + $0x28] sm:$0x3] }
  0x1a   : > { %v207_v37 = vld.sshfl [vmem:[#allocation1] sm:$0xff pattern:$0x73625140]  ;;  %v357_v50 = vshll.u32 %v308_v30, 16  ;;  %v328_v52 = vor.u32 %v327_v43, %v324_v41  ;;  %v350_v53 = vrot.slane %v348_v46, 6  ;;  %v361_v54 = vshrl.u32 %v311_v38, 16  ;;  %651 = vmatpush.bf16.msrb.mxu1 %v1147_v19 }
  0x1b   : > { %1009 = vmatmul.msk.bf16.vlgmr.msra.gmra.mxu0 %vm220_vm0, %v207_v37  ;;  %238 = vst [vmem:[#allocation1] ss:$4 sm:$0xff] %v178_v27  ;;  %v364_v55 = vshll.u32 %v311_v38, 16  ;;  %v341_v57 = vor.u32 %v340_v47, %v337_v45  ;;  %v353_v58 = vrot.slane %v351_v49, 7  ;;  %v370_v59 = vshll.u32 %v314_v39, 16  ;;  %v1152_v41 = vld [vmem:[%s1388_s1 + $0x78] sm:$0xff] }
  0x1c   : > { %241 = vst [vmem:[#allocation1 + $0x1] ss:$4 sm:$0xff] %v179_v28  ;;  %v329_v60 = vrot.slane %v328_v52, 2  ;;  %v333_v61 = vrot.slane %v331_v44, 7  ;;  %v363_v62 = vrot.slane %v361_v54, 6  ;;  %v346_v3 = vrot.slane %v344_v48, 7  ;;  %754 = vmatpush.bf16.msrb.mxu3 %v1152_v41 }
  0x1d   : > { %244 = vst [vmem:[#allocation1 + $0x2] ss:$4 sm:$0xff] %v180_v33  ;;  %v366_v63 = vrot.slane %v364_v55, 7  ;;  %v342_v2 = vrot.slane %v341_v57, 2  ;;  %v354_v4 = vor.u32 %v353_v58, %v350_v53  ;;  %v359_v5 = vrot.slane %v357_v50, 7  ;;  %v1149_v42 = vld [vmem:[%s1388_s1 + $0x60] sm:$0xff] }
  0x1e   : > { %247 = vst [vmem:[#allocation1 + $0x3] ss:$4 sm:$0xff] %v181_v34  ;;  %v372_v8 = vrot.slane %v370_v59, 7  ;;  %v334_v9 = vsel %vm1276_vm9, %v329_v60, %v333_v61  ;;  %v533_v20 = vrot.slane %v1066_v14, 2  ;;  %v534_v21 = vrot.slane %v1067_v17, 2  ;;  %703 = vmatpush.bf16.msrb.mxu2 %v1149_v42  ;;  %v1154_v16 = vld [vmem:[%s1388_s1 + $0x88] sm:$0xff] }
  0x1f   : > { %v367_v6 = vor.u32 %v366_v63, %v363_v62  ;;  %v355_v7 = vrot.slane %v354_v4, 2  ;;  %v347_v11 = vsel %vm1276_vm9, %v342_v2, %v346_v3  ;;  %v535_v27 = vrot.slane %v1068_v22, 2  ;;  %v1033_v29 = vld [vmem:[%s1225_s30 + $0x2c] sm:$0x3]  ;;  %v1034_v30 = vld [vmem:[%s1225_s30 + $0x30] sm:$0x3]  ;;  %889 = vmatpush.bf16.msra.mxu0 %v1154_v16 }
  0x20   : > { %v539_v24 = vsel %vm289_vm1, %v1066_v14, %v533_v20  ;;  %v545_v25 = vsel %vm289_vm1, %v1067_v17, %v534_v21  ;;  %v536_v28 = vrot.slane %v1069_v23, 2  ;;  %v540_v31 = vsel %vm293_vm2, %v1066_v14, %v533_v20  ;;  %v1035_v38 = vld [vmem:[%s1225_s30 + $0x34] sm:$0x3]  ;;  %v1049_v61 = vld [vmem:[%s1225_s30 + $0x3c] sm:$0x3] }
  0x21   : > { %v368_v10 = vrot.slane %v367_v6, 2  ;;  %v360_v13 = vsel %vm1276_vm9, %v355_v7, %v359_v5  ;;  %v561_v32 = vshrl.u32 %v539_v24, 16  ;;  %v546_v34 = vsel %vm293_vm2, %v1067_v17, %v534_v21  ;;  %v1050_v3 = vld [vmem:[%s1225_s30 + $0x40] sm:$0x3]  ;;  %v1051_v4 = vld [vmem:[%s1225_s30 + $0x44] sm:$0x3] }
  0x22   : > { %v564_v35 = vshll.u32 %v539_v24, 16  ;;  %v574_v36 = vshrl.u32 %v545_v25, 16  ;;  %v577_v37 = vshll.u32 %v545_v25, 16  ;;  %v551_v39 = vsel %vm289_vm1, %v1068_v22, %v535_v27  ;;  %v1117_v17 = vld [vmem:[%s1225_s30 + $0x4] sm:$0x7] }
  0x23   : > { %v373_v15 = vsel %vm1276_vm9, %v368_v10, %v372_v8  ;;  %v557_v40 = vsel %vm289_vm1, %v1069_v23, %v536_v28  ;;  %v542_v43 = vrot.slane %v540_v31, 2  ;;  %v548_v44 = vrot.slane %v546_v34, 2  ;;  %v1052_v8 = vld [vmem:[%s1225_s30 + $0x48] sm:$0x3]  ;;  %v1119_v21 = vld [vmem:[%s1225_s30 + $0xc] sm:$0x7] }
  0x24   : > { %v552_v45 = vsel %vm293_vm2, %v1068_v22, %v535_v27  ;;  %v558_v46 = vsel %vm293_vm2, %v1069_v23, %v536_v28  ;;  %v563_v47 = vrot.slane %v561_v32, 6  ;;  %v566_v48 = vrot.slane %v564_v35, 7  ;;  %v1118_v20 = vld [vmem:[%s1225_s30 + $0x8] sm:$0x7]  ;;  %v1120_v22 = vld [vmem:[%s1225_s30 + $0x10] sm:$0x7] }
  0x25   : > { %v248_v12 = vld.sshfl [vmem:[#allocation1] sm:$0xff pattern:$0x73625140]  ;;  %v576_v49 = vrot.slane %v574_v36, 6  ;;  %v579_v50 = vrot.slane %v577_v37, 7  ;;  %v587_v51 = vshrl.u32 %v551_v39, 16 }
  0x26   : > { %380 = vst [vmem:[#allocation1] ss:$4 sm:$0xff] %v334_v9  ;;  %1018 = vmatmul.msk.bf16.vlgmr.msra.gmra.mxu1 %vm220_vm0, %v248_v12  ;;  %v590_v52 = vshll.u32 %v551_v39, 16  ;;  %v600_v53 = vshrl.u32 %v557_v40, 16  ;;  %v603_v54 = vshll.u32 %v557_v40, 16  ;;  %v554_v55 = vrot.slane %v552_v45, 2 }
  0x27   : > { %383 = vst [vmem:[#allocation1 + $0x1] ss:$4 sm:$0xff] %v347_v11  ;;  %v560_v56 = vrot.slane %v558_v46, 2  ;;  %v567_v57 = vor.u32 %v566_v48, %v563_v47  ;;  %v570_v58 = vshll.u32 %v542_v43, 16  ;;  %v580_v59 = vor.u32 %v579_v50, %v576_v49 }
  0x28   : > { %386 = vst [vmem:[#allocation1 + $0x2] ss:$4 sm:$0xff] %v360_v13  ;;  %v583_v60 = vshll.u32 %v548_v44, 16  ;;  %v589_v62 = vrot.slane %v587_v51, 6  ;;  %v592_v63 = vrot.slane %v590_v52, 7  ;;  %v602_v0 = vrot.slane %v600_v53, 6 }
  0x29   : > { %389 = vst [vmem:[#allocation1 + $0x3] ss:$4 sm:$0xff] %v373_v15  ;;  %v605_v2 = vrot.slane %v603_v54, 7  ;;  %v596_v5 = vshll.u32 %v554_v55, 16  ;;  %v609_v6 = vshll.u32 %v560_v56, 16  ;;  %v568_v9 = vrot.slane %v567_v57, 2 }
  0x2a   : > { %v572_v10 = vrot.slane %v570_v58, 7  ;;  %v581_v11 = vrot.slane %v580_v59, 2  ;;  %v585_v12 = vrot.slane %v583_v60, 7  ;;  %v593_v13 = vor.u32 %v592_v63, %v589_v62  ;;  %v1151_v15 = vld [vmem:[%s1388_s1 + $0x70] sm:$0xff] }
  0x2b   : > { %v606_v14 = vor.u32 %v605_v2, %v602_v0  ;;  %v598_v18 = vrot.slane %v596_v5, 7  ;;  %v611_v19 = vrot.slane %v609_v6, 7  ;;  %755 = vmatpush.bf16.msrb.mxu3 %v1151_v15  ;;  %v772_v23 = vrot.slane %v1117_v17, 2 }
  0x2c   : > { %v773_v24 = vrot.slane %v1118_v20, 2  ;;  %v774_v25 = vrot.slane %v1119_v21, 2  ;;  %v573_v27 = vsel %vm1276_vm9, %v568_v9, %v572_v10  ;;  %v586_v28 = vsel %vm1276_vm9, %v581_v11, %v585_v12 }
  0x2d   : > { %v778_v31 = vsel %vm289_vm1, %v1117_v17, %v772_v23  ;;  %v779_v32 = vsel %vm293_vm2, %v1117_v17, %v772_v23  ;;  %v1083_v17 = vld [vmem:[%s1225_s30 + $0x4] sm:$0x3]  ;;  %vm924_vm10 = vcmask 254976  }
  0x2e   : > { %v785_v34 = vsel %vm293_vm2, %v1118_v20, %v773_v24  ;;  %v781_v35 = vrot.slane %v779_v32, 2  ;;  %v790_v37 = vsel %vm289_vm1, %v1119_v21, %v774_v25  ;;  %v800_v42 = vshrl.u32 %v778_v31, 16 }
  0x2f   : > { %v787_v36 = vrot.slane %v785_v34, 2  ;;  %v803_v44 = vshll.u32 %v778_v31, 16  ;;  %v826_v55 = vshrl.u32 %v790_v37, 16  ;;  %v829_v58 = vshll.u32 %v790_v37, 16 }
  0x30   : > { %v390_v33 = vld.sshfl [vmem:[#allocation1] sm:$0xff pattern:$0x73625140]  ;;  %v809_v45 = vshll.u32 %v781_v35, 16  ;;  %v802_v49 = vrot.slane %v800_v42, 6 }
  0x31   : > { %1031 = vmatmul.msk.bf16.vlgmr.msra.gmra.mxu2 %vm220_vm0, %v390_v33  ;;  %432 = vst [vmem:[#allocation1] ss:$4 sm:$0xff] %v1032_v26  ;;  %v775_v26 = vrot.slane %v1120_v22, 2  ;;  %v784_v33 = vsel %vm289_vm1, %v1118_v20, %v773_v24  ;;  %v822_v51 = vshll.u32 %v787_v36, 16  ;;  %v805_v53 = vrot.slane %v803_v44, 7 }
  0x32   : > { %435 = vst [vmem:[#allocation1 + $0x1] ss:$4 sm:$0xff] %v1033_v29  ;;  %v594_v29 = vrot.slane %v593_v13, 2  ;;  %v813_v46 = vshrl.u32 %v784_v33, 16  ;;  %v816_v50 = vshll.u32 %v784_v33, 16  ;;  %v811_v56 = vrot.slane %v809_v45, 7 }
  0x33   : > { %438 = vst [vmem:[#allocation1 + $0x2] ss:$4 sm:$0xff] %v1034_v30  ;;  %v607_v30 = vrot.slane %v606_v14, 2  ;;  %v796_v40 = vsel %vm289_vm1, %v1120_v22, %v775_v26  ;;  %v797_v41 = vsel %vm293_vm2, %v1120_v22, %v775_v26  ;;  %v806_v60 = vor.u32 %v805_v53, %v802_v49  ;;  %v1085_v22 = vld [vmem:[%s1225_s30 + $0xc] sm:$0x3] }
  0x34   : > { %441 = vst [vmem:[#allocation1 + $0x3] ss:$4 sm:$0xff] %v1035_v38  ;;  %v791_v38 = vsel %vm293_vm2, %v1119_v21, %v774_v25  ;;  %v799_v43 = vrot.slane %v797_v41, 2  ;;  %v599_v48 = vsel %vm1276_vm9, %v594_v29, %v598_v18  ;;  %v815_v54 = vrot.slane %v813_v46, 6  ;;  %v1086_v24 = vld [vmem:[%s1225_s30 + $0x10] sm:$0x3] }
  0x35   : > { %v793_v39 = vrot.slane %v791_v38, 2  ;;  %v612_v52 = vsel %vm1276_vm9, %v607_v30, %v611_v19  ;;  %v818_v57 = vrot.slane %v816_v50, 7  ;;  %v839_v62 = vshrl.u32 %v796_v40, 16  ;;  %v1084_v19 = vld [vmem:[%s1225_s30 + $0x8] sm:$0x3] }
  0x36   : > { %v842_v63 = vshll.u32 %v796_v40, 16  ;;  %v824_v2 = vrot.slane %v822_v51, 7  ;;  %v807_v5 = vrot.slane %v806_v60, 2  ;;  %v1100_v25 = vld [vmem:[%s1225_s30 + $0x18] sm:$0x3] }
  0x37   : > { %v835_v59 = vshll.u32 %v793_v39, 16  ;;  %v819_v0 = vor.u32 %v818_v57, %v815_v54  ;;  %v841_v6 = vrot.slane %v839_v62, 6  ;;  %v1101_v26 = vld [vmem:[%s1225_s30 + $0x1c] sm:$0x3]  ;;  %v1103_v29 = vld [vmem:[%s1225_s30 + $0x24] sm:$0x3] }
  0x38   : > { %v812_v12 = vsel %vm1276_vm9, %v807_v5, %v811_v56  ;;  %v1164_v56 = vld [vmem:[%s1389_s2] ss:$0 sm:$0xff] }
  0x39   : > { %v820_v9 = vrot.slane %v819_v0, 2  ;;  %v837_v11 = vrot.slane %v835_v59, 7 }
  0x3b   : > { %v442_v7 = vld.sshfl [vmem:[#allocation1] sm:$0xff pattern:$0x73625140]  ;;  %v825_v15 = vsel %vm1276_vm9, %v820_v9, %v824_v2 }
  0x3c   : > { %1048 = vmatmul.msk.bf16.vlgmr.msra.gmra.mxu3 %vm220_vm0, %v442_v7  ;;  %484 = vst [vmem:[#allocation1] ss:$4 sm:$0xff] %v1049_v61  ;;  %v828_v61 = vrot.slane %v826_v55, 6  ;;  %v844_v7 = vrot.slane %v842_v63, 7 }
  0x3d   : > { %487 = vst [vmem:[#allocation1 + $0x1] ss:$4 sm:$0xff] %v1050_v3  ;;  %v831_v3 = vrot.slane %v829_v58, 7 }
  0x3e   : > { %490 = vst [vmem:[#allocation1 + $0x2] ss:$4 sm:$0xff] %v1051_v4  ;;  %v848_v4 = vshll.u32 %v799_v43, 16  ;;  %v845_v13 = vor.u32 %v844_v7, %v841_v6 }
  0x3f   : > { %493 = vst [vmem:[#allocation1 + $0x3] ss:$4 sm:$0xff] %v1052_v8  ;;  %v1153_v8 = vld [vmem:[%s1388_s1 + $0x80] sm:$0xff]  ;;  %v832_v10 = vor.u32 %v831_v3, %v828_v61 }
  0x40   : > { %v850_v14 = vrot.slane %v848_v4, 7  ;;  %890 = vmatpush.bf16.msra.mxu0 %v1153_v8  ;;  %v846_v18 = vrot.slane %v845_v13, 2 }
  0x41   : > { %v833_v16 = vrot.slane %v832_v10, 2 }
  0x42   : > { %v851_v23 = vsel %vm1276_vm9, %v846_v18, %v850_v14 }
  0x43   : > { %v838_v20 = vsel %vm1276_vm9, %v833_v16, %v837_v11 }
  0x46   : > { %v494_v47 = vld.sshfl [vmem:[#allocation1] sm:$0xff pattern:$0x73625140] }
  0x47   : > { %1065 = vmatmul.msk.bf16.vlgmr.msrb.gmra.mxu0 %vm220_vm0, %v494_v47  ;;  %619 = vst [vmem:[#allocation1] ss:$4 sm:$0xff] %v573_v27 }
  0x48   : > { %622 = vst [vmem:[#allocation1 + $0x1] ss:$4 sm:$0xff] %v586_v28  ;;  %v1102_v28 = vld [vmem:[%s1225_s30 + $0x20] sm:$0x3] }
  0x49   : > { %625 = vst [vmem:[#allocation1 + $0x2] ss:$4 sm:$0xff] %v599_v48 }
  0x4a   : > { %628 = vst [vmem:[#allocation1 + $0x3] ss:$4 sm:$0xff] %v612_v52 }
  0x51   : > { %v629_v21 = vld.sshfl [vmem:[#allocation1] sm:$0xff pattern:$0x73625140] }
  0x52   : > { %1082 = vmatmul.msk.bf16.vlgmr.msrb.gmra.mxu1 %vm220_vm0, %v629_v21  ;;  %671 = vst [vmem:[#allocation1] ss:$4 sm:$0xff] %v1083_v17 }
  0x53   : > { %674 = vst [vmem:[#allocation1 + $0x1] ss:$4 sm:$0xff] %v1084_v19 }
  0x54   : > { %677 = vst [vmem:[#allocation1 + $0x2] ss:$4 sm:$0xff] %v1085_v22 }
  0x55   : > { %680 = vst [vmem:[#allocation1 + $0x3] ss:$4 sm:$0xff] %v1086_v24 }
  0x5c   : > { %v681_v27 = vld.sshfl [vmem:[#allocation1] sm:$0xff pattern:$0x73625140] }
  0x5d   : > { %1099 = vmatmul.msk.bf16.vlgmr.msrb.gmra.mxu2 %vm220_vm0, %v681_v27  ;;  %723 = vst [vmem:[#allocation1] ss:$4 sm:$0xff] %v1100_v25 }
  0x5e   : > { %726 = vst [vmem:[#allocation1 + $0x1] ss:$4 sm:$0xff] %v1101_v26 }
  0x5f   : > { %729 = vst [vmem:[#allocation1 + $0x2] ss:$4 sm:$0xff] %v1102_v28 }
  0x60   : > { %732 = vst [vmem:[#allocation1 + $0x3] ss:$4 sm:$0xff] %v1103_v29 }
  0x67   : > { %v733_v1 = vld.sshfl [vmem:[#allocation1] sm:$0xff pattern:$0x73625140] }
  0x68   : > { %1116 = vmatmul.msk.bf16.vlgmr.msrb.gmra.mxu3 %vm220_vm0, %v733_v1  ;;  %858 = vst [vmem:[#allocation1] ss:$4 sm:$0xff] %v812_v12 }
  0x69   : > { %861 = vst [vmem:[#allocation1 + $0x1] ss:$4 sm:$0xff] %v825_v15 }
  0x6a   : > { %864 = vst [vmem:[#allocation1 + $0x2] ss:$4 sm:$0xff] %v838_v20 }
  0x6b   : > { %867 = vst [vmem:[#allocation1 + $0x3] ss:$4 sm:$0xff] %v851_v23 }
  0x72   : > { %v868_v30 = vld.sshfl [vmem:[#allocation1] sm:$0xff pattern:$0x73625140] }
  0x73   : > { %1133 = vmatmul.msk.bf16.vlgmr.msra.gmra.mxu0 %vm220_vm0, %v868_v30 }
  0x98   : > { %v232_v31 = vpop.f32.mrf.mxu0 }
  0xa0   : > { %v234_v33 = vpop.f32.mrf.mxu0 }
  0xa3   : > { %v272_v32 = vpop.f32.mrf.mxu1 }
  0xa4   : > { %v273_v35 = vadd.f32 %v272_v32, %v232_v31 }
  0xab   : > { %v274_v37 = vpop.f32.mrf.mxu1 }
  0xac   : > { %v275_v44 = vadd.f32 %v274_v37, %v234_v33 }
  0xb4   : > { %v414_v34 = vpop.f32.mrf.mxu2 }
  0xb5   : > { %v419_v38 = vadd.f32 %v414_v34, %v273_v35 }
  0xbc   : > { %v416_v40 = vpop.f32.mrf.mxu2 }
  0xbd   : > { %v420_v48 = vadd.f32 %v416_v40, %v275_v44 }
  0xbf   : > { %v466_v36 = vpop.f32.mrf.mxu3 }
  0xc0   : > { %v471_v41 = vadd.f32 %v466_v36, %v419_v38 }
  0xc4   : > { %v518_v39 = vpop.f32.mrf.mxu0 }
  0xc5   : > { %v523_v45 = vadd.f32 %v518_v39, %v471_v41 }
  0xc7   : > { %v468_v42 = vpop.f32.mrf.mxu3 }
  0xc8   : > { %v472_v50 = vadd.f32 %v468_v42, %v420_v48 }
  0xcc   : > { %v520_v47 = vpop.f32.mrf.mxu0 }
  0xcd   : > { %v524_v55 = vadd.f32 %v520_v47, %v472_v50 }
  0xcf   : > { %v653_v43 = vpop.f32.mrf.mxu1 }
  0xd0   : > { %v658_v49 = vadd.f32 %v653_v43, %v523_v45 }
  0xd7   : > { %v655_v54 = vpop.f32.mrf.mxu1 }
  0xd8   : > { %v659_v59 = vadd.f32 %v655_v54, %v524_v55 }
  0xe0   : > { %v705_v46 = vpop.f32.mrf.mxu2 }
  0xe1   : > { %v710_v51 = vadd.f32 %v705_v46, %v658_v49 }
  0xe8   : > { %v707_v57 = vpop.f32.mrf.mxu2 }
  0xe9   : > { %v711_v61 = vadd.f32 %v707_v57, %v659_v59 }
  0xeb   : > { %v757_v52 = vpop.f32.mrf.mxu3 }
  0xec   : > { %v762_v53 = vadd.f32 %v757_v52, %v710_v51 }
  0xf0   : > { %v892_v58 = vpop.f32.mrf.mxu0 }
  0xf1   : > { %v897_v60 = vadd.f32 %v892_v58, %v762_v53 }
  0xf3   : > { %v902_v62 = vadd.f32 %v1164_v56, %v897_v60  ;;  %v759_v63 = vpop.f32.mrf.mxu3 }
  0xf4   : > { %v763_v2 = vadd.f32 %v759_v63, %v711_v61 }
  0xf5   : > { %v904_v0 = vadd.f32 3.0, %v902_v62 }
  0xf7   : > { %v906_v3 = vmax.f32 %v904_v0, 0.0 }
  0xf8   : > { %v894_v4 = vpop.f32.mrf.mxu0 }
  0xf9   : > { %v908_v5 = vmin.f32 %v906_v3, 6.0  ;;  %v898_v6 = vadd.f32 %v894_v4, %v763_v2 }
  0xfb   : > { %v910_v7 = vmul.f32 %v908_v5, %v902_v62  ;;  %v903_v8 = vadd.f32 %v1164_v56, %v898_v6 }
  0xfd   : > { %v912_v9 = vmul.f32 0.16666667, %v910_v7  ;;  %v905_v10 = vadd.f32 3.0, %v903_v8 }
  0xff   : > { %v916_v11 = vrot.slane %v912_v9, 4  ;;  %v920_v12 = vpack.c.bf16 %v912_v9, %v912_v9  ;;  %v907_v13 = vmax.f32 %v905_v10, 0.0 }
 0x101   : > { %v921_v14 = vpack.c.bf16 %v916_v11, %v916_v11  ;;  %925 = vst.msk [vmem:[%s175_s8] sm:$0x3] %vm924_vm10, %v920_v12  ;;  %v909_v15 = vmin.f32 %v907_v13, 6.0 }
 0x103   : > { %926 = vst.msk [vmem:[%s175_s8 + $0x2] sm:$0x3] %vm924_vm10, %v921_v14  ;;  %v911_v16 = vmul.f32 %v909_v15, %v903_v8 }
 0x105   : > { %v913_v17 = vmul.f32 0.16666667, %v911_v16 }
 0x107   : > { %v917_v18 = vrot.slane %v913_v17, 4  ;;  %v922_v19 = vpack.c.bf16 %v913_v17, %v913_v17 }
 0x109   : > { %v923_v20 = vpack.c.bf16 %v917_v18, %v917_v18  ;;  %927 = vst.msk [vmem:[%s175_s8 + $0x4] sm:$0x3] %vm924_vm10, %v922_v19 }
 0x10b   : > { %928 = vst.msk [vmem:[%s175_s8 + $0x6] sm:$0x3] %vm924_vm10, %v923_v20 }
 0x10c PF: > { %s13_s12 = sadd.s32 1, %s1171_s12  }
 0x10d   : > { %p10_p5 = scmp.ge.s32.totalorder %s13_s12, 4  }
 0x10f   :  { %12 = sbr.rel (!%p10_p5) target bundleno = 1 (0x1), region = 102 }

// kernel: model_forward.16
= control target key start
LH: loop header
LB: loop body
LE: loop exit
PB: predicated region body
PF: predicated region fallthrough
CT: control target
= control target key end

     0   :  { %s5058_s12 = smov 0   ;;  %s6095_s0 = inlined_call_operand.vmem [shape: bf16[8,17,17,8], index: 0, kind: input, shape index: {}]   ;;  %s6096_s1 = inlined_call_operand.vmem [shape: bf16[9,8,16], index: 1, kind: input, shape index: {}]   ;;  %s6097_s2 = inlined_call_operand.vmem [shape: f32[1,16], index: 2, kind: input, shape index: {}]   ;;  %s6098_s3 = inlined_call_operand.vmem [shape: bf16[2,16,16,16], index: 3, kind: output, shape index: {}]  }
   0x1 LB: > { %s5064_s13 = sadd.s32 4294967295, %s5036_s12   ;;  %p4120_p0 = scmp.ge.s32.totalorder %s5036_s12, 1  ;;  %s5036_s12 = sphi %s5058_s12, %s13_s12  }
   0x2   : > { %p139_p1 = scmp.lt.s32.totalorder %s5036_s12, 3 }
   0x4   : > { %p140_p2 = pnand %p4120_p0, %p139_p1 }
   0x6   : > { %143 = sbr.rel (%p140_p2) target bundleno = 740 (0x2e4), region = 32 }
   0xb   : > { %v4157_v0 = vld [vmem:[%s6096_s1 + $0x4] sm:$0xf]  ;;  %vm375_vm0 = vcmask 1043456   ;;  %s4121_s16 = sshll.u32 %s5064_s13, 2  ;;  %v4318_v2 = vld [vmem:[%s6096_s1 + $0x8] sm:$0xf] }
   0xc   : > { %v377_v1 = vsel %vm375_vm0, %v4157_v0, 0  ;;  %p165_p3 = scmp.lt.s32.totalorder %s4121_s16, 7  ;;  %v4367_v3 = vld [vmem:[%s6096_s1 + $0xc] sm:$0xf]  ;;  %v1222_v4 = vsel %vm375_vm0, %v4318_v2, 0  ;;  %vm326_vm1 = vcmask 64512  }
   0xd   : > { %5016 = vmatpush.bf16.msra.mxu1 %v377_v1  ;;  %5017 = vmatpush.bf16.msra.mxu2 %v377_v1  ;;  %v1509_v5 = vsel %vm375_vm0, %v4367_v3, 0  ;;  %v210_v6 = vld [vmem:[%s6096_s1] sm:$0xf]  ;;  %v4480_v7 = vld [vmem:[%s6096_s1 + $0x10] sm:$0xf]  ;;  %p171_p4 = scmp.lt.s32.totalorder %s5064_s13, 1 }
   0xe   : > { %5018 = vmatpush.bf16.msra.mxu3 %v377_v1  ;;  %386 = vmatpush.bf16.msra.mxu0 %v377_v1  ;;  %s6108_s16 = smov (!%p165_p3, %s4121_s16), 7  ;;  %v597_v8 = vsel %vm375_vm0, %v210_v6, 0  ;;  %v1796_v9 = vsel %vm375_vm0, %v4480_v7, 0  ;;  %v4658_v26 = vld [vmem:[%s6096_s1 + $0x18] sm:$0xf]  ;;  %vm4028_vm5 = vcmask 125952  }
   0xf   : > { %s5019_s25 = smul.u32 204, %s6108_s16  ;;  %v4771_v27 = vld [vmem:[%s6096_s1 + $0x1c] sm:$0xf]  ;;  %v2737_v28 = vsel %vm375_vm0, %v4658_v26, 0  ;;  %v4609_v30 = vld [vmem:[%s6096_s1 + $0x14] sm:$0xf] }
  0x10   : > { %v3024_v29 = vsel %vm375_vm0, %v4771_v27, 0  ;;  %v4900_v31 = vld [vmem:[%s6096_s1 + $0x20] sm:$0xf]  ;;  %v2450_v34 = vsel %vm375_vm0, %v4609_v30, 0  ;;  %vm736_vm2 = vsmask.f32 3328 }
  0x11   : > { %1231 = vmatpush.bf16.msrb.mxu2 %v1222_v4  ;;  %606 = vmatpush.bf16.msrb.mxu1 %v597_v8  ;;  %s5092_s28 = scalar_lea.vmem %s6095_s0, %s5019_s25  ;;  %v3678_v35 = vsel %vm375_vm0, %v4900_v31, 0  ;;  %vm737_vm3 = vsmask.f32 7440  ;;  %s6110_s13 = smov (!%p171_p4, %s5064_s13), 1 }
  0x12   : > { %1518 = vmatpush.bf16.msrb.mxu3 %v1509_v5  ;;  %1805 = vmatpush.bf16.msrb.mxu0 %v1796_v9  ;;  %v4940_v10 = vld [vmem:[%s5092_s28 + $0xfc] sm:$0xff]  ;;  %v4944_v11 = vld [vmem:[%s5092_s28 + $0x12c] sm:$0xff]  ;;  %v4942_v18 = vld [vmem:[%s5092_s28 + $0x114] sm:$0xff]  ;;  %s4919_s14 = sshll.u32 %s6110_s13, 7 }
  0x13   : > { %v4948_v12 = vld [vmem:[%s5092_s28 + $0x15c] sm:$0xff]  ;;  %v4936_v13 = vld [vmem:[%s5092_s28 + $0xcc] sm:$0xff]  ;;  %4226 = vmatmul.msk.bf16.vlgmr.msra.gmra.mxu1 %vm326_vm1, %v4940_v10  ;;  %4230 = vmatmul.msk.bf16.vlgmr.msra.gmra.mxu2 %vm326_vm1, %v4944_v11  ;;  %v4946_v19 = vld [vmem:[%s5092_s28 + $0x144] sm:$0xff]  ;;  %s5818_s16 = scalar_lea.vmem %s6098_s3, %s4919_s14 }
  0x14   : > { %4234 = vmatmul.msk.bf16.vlgmr.msra.gmra.mxu3 %vm326_vm1, %v4948_v12  ;;  %4222 = vmatmul.msk.bf16.vlgmr.msra.gmra.mxu0 %vm326_vm1, %v4936_v13  ;;  %v4941_v14 = vld [vmem:[%s5092_s28 + $0x108] sm:$0xff]  ;;  %v4945_v15 = vld [vmem:[%s5092_s28 + $0x138] sm:$0xff]  ;;  %v688_v22 = vld [vmem:[%s5092_s28] sm:$0xf] }
  0x15   : > { %v4949_v16 = vld [vmem:[%s5092_s28 + $0x168] sm:$0xff]  ;;  %v4937_v17 = vld [vmem:[%s5092_s28 + $0xd8] sm:$0xff]  ;;  %v689_v23 = vld [vmem:[%s5092_s28 + $0x4] sm:$0xf]  ;;  %v740_v24 = vshrl.u32 %v688_v22, 16  ;;  %v743_v25 = vshll.u32 %v688_v22, 16  ;;  %2746 = vmatpush.bf16.msra.mxu2 %v2737_v28  ;;  %2459 = vmatpush.bf16.msra.mxu1 %v2450_v34 }
  0x16   : > { %v4950_v20 = vld [vmem:[%s5092_s28 + $0x174] sm:$0xff]  ;;  %v4938_v21 = vld [vmem:[%s5092_s28 + $0xe4] sm:$0xff]  ;;  %v749_v32 = vshll.u32 %v689_v23, 16  ;;  %v753_v33 = vshrl.u32 %v689_v23, 16  ;;  %3033 = vmatpush.bf16.msra.mxu3 %v3024_v29  ;;  %3687 = vmatpush.bf16.msra.mxu0 %v3678_v35  ;;  %vm5143_vm4 = vmor %vm736_vm2, %vm737_vm3 }
  0x17   : > { %v742_v36 = vrot.slane %v740_v24, 4  ;;  %v745_v37 = vrot.slane %v743_v25, 5  ;;  %v690_v40 = vld [vmem:[%s5092_s28 + $0x8] sm:$0x1]  ;;  %v4943_v44 = vld [vmem:[%s5092_s28 + $0x120] sm:$0xff]  ;;  %v4947_v45 = vld [vmem:[%s5092_s28 + $0x150] sm:$0xff] }
  0x18   : > { %v751_v38 = vrot.slane %v749_v32, 5  ;;  %v755_v39 = vrot.slane %v753_v33, 4  ;;  %v759_v43 = vshll.u32 %v690_v40, 16  ;;  %v4951_v46 = vld [vmem:[%s5092_s28 + $0x180] sm:$0xff]  ;;  %v4939_v47 = vld [vmem:[%s5092_s28 + $0xf0] sm:$0xff]  ;;  %v4952_v8 = vld [vmem:[%s5092_s28 + $0x198] sm:$0xff] }
  0x19   : > { %v746_v41 = vor.u32 %v745_v37, %v742_v36  ;;  %v691_v52 = vld [vmem:[%s5092_s28 + $0xc] sm:$0xf]  ;;  %v692_v53 = vld [vmem:[%s5092_s28 + $0x10] sm:$0xf]  ;;  %v693_v2 = vld [vmem:[%s5092_s28 + $0x14] sm:$0x1] }
  0x1a   : > { %v756_v42 = vor.u32 %v755_v39, %v751_v38  ;;  %v761_v50 = vrot.slane %v759_v43, 5  ;;  %v764_v56 = vshrl.u32 %v691_v52, 16  ;;  %v767_v57 = vshll.u32 %v691_v52, 16  ;;  %v4920_v3 = vld [vmem:[%s5092_s28] sm:$0xff]  ;;  %v694_v13 = vld [vmem:[%s5092_s28 + $0x18] sm:$0xf] }
  0x1b   : > { %v747_v48 = vrot.slane %v746_v41, 4  ;;  %v773_v58 = vshll.u32 %v692_v53, 16  ;;  %v777_v59 = vshrl.u32 %v692_v53, 16  ;;  %v783_v7 = vshll.u32 %v693_v2, 16  ;;  %v4968_v9 = vld [vmem:[%s5092_s28 + $0x264] sm:$0xff]  ;;  %v4921_v28 = vld [vmem:[%s5092_s28 + $0xc] sm:$0xff] }
  0x1c   : > { %v757_v49 = vrot.slane %v756_v42, 4  ;;  %v766_v62 = vrot.slane %v764_v56, 4  ;;  %v769_v63 = vrot.slane %v767_v57, 5  ;;  %v696_v27 = vld [vmem:[%s5092_s28 + $0x20] sm:$0x1]  ;;  %v4953_v30 = vld [vmem:[%s5092_s28 + $0x1a4] sm:$0xff] }
  0x1d   : > { %v752_v54 = vsel %vm5143_vm4, %v747_v48, %v751_v38  ;;  %v775_v0 = vrot.slane %v773_v58, 5  ;;  %v779_v1 = vrot.slane %v777_v59, 4  ;;  %v785_v12 = vrot.slane %v783_v7, 5  ;;  %v4969_v31 = vld [vmem:[%s5092_s28 + $0x270] sm:$0xff]  ;;  %v697_v35 = vld [vmem:[%s5092_s28 + $0x24] sm:$0xf] }
  0x1e   : > { %v762_v55 = vsel %vm5143_vm4, %v757_v49, %v761_v50  ;;  %v1125_v60 = vunpack.c.l.b16 %v752_v54  ;;  %v770_v5 = vor.u32 %v769_v63, %v766_v62  ;;  %v807_v34 = vshll.u32 %v696_v27, 16  ;;  %v698_v36 = vld [vmem:[%s5092_s28 + $0x28] sm:$0xf]  ;;  %v699_v53 = vld [vmem:[%s5092_s28 + $0x2c] sm:$0x1]  ;;  %v4922_v57 = vld [vmem:[%s5092_s28 + $0x18] sm:$0xff] }
  0x1f   : > { %v1126_v61 = vunpack.c.l.b16 %v762_v55  ;;  %v780_v6 = vor.u32 %v779_v1, %v775_v0  ;;  %v812_v40 = vshrl.u32 %v697_v35, 16  ;;  %v815_v41 = vshll.u32 %v697_v35, 16  ;;  %v4954_v59 = vld [vmem:[%s5092_s28 + $0x1b0] sm:$0xff] }
  0x20   : > { %v771_v10 = vrot.slane %v770_v5, 4  ;;  %v809_v39 = vrot.slane %v807_v34, 5  ;;  %v821_v42 = vshll.u32 %v698_v36, 16  ;;  %v825_v43 = vshrl.u32 %v698_v36, 16  ;;  %v701_v1 = vld [vmem:[%s5092_s28 + $0x34] sm:$0xf] }
  0x21   : > { %v1157_v4 = vpack.c.b16 %v1126_v61, %v1125_v60  ;;  %v781_v11 = vrot.slane %v780_v6, 4  ;;  %v831_v56 = vshll.u32 %v699_v53, 16  ;;  %v4970_v60 = vld [vmem:[%s5092_s28 + $0x27c] sm:$0xff]  ;;  %v845_v6 = vshll.u32 %v701_v1, 16 }
  0x22   : > { %v823_v48 = vrot.slane %v821_v42, 5  ;;  %v827_v49 = vrot.slane %v825_v43, 4  ;;  %v849_v7 = vshrl.u32 %v701_v1, 16  ;;  %v4956_v43 = vld [vmem:[%s5092_s28 + $0x1c8] sm:$0xff] }
  0x23   : > { %4227 = vmatmul.msk.bf16.gmra.mxu1 %vm326_vm1, %v4941_v14  ;;  %4231 = vmatmul.msk.bf16.gmra.mxu2 %vm326_vm1, %v4945_v15  ;;  %v695_v14 = vld [vmem:[%s5092_s28 + $0x1c] sm:$0xf]  ;;  %v776_v15 = vsel %vm5143_vm4, %v771_v10, %v775_v0  ;;  %v833_v63 = vrot.slane %v831_v56, 5  ;;  %v700_v0 = vld [vmem:[%s5092_s28 + $0x30] sm:$0xf] }
  0x24   : > { %4235 = vmatmul.msk.bf16.gmra.mxu3 %vm326_vm1, %v4949_v16  ;;  %4223 = vmatmul.msk.bf16.gmra.mxu0 %vm326_vm1, %v4937_v17  ;;  %v786_v16 = vsel %vm5143_vm4, %v781_v11, %v785_v12  ;;  %v788_v17 = vshrl.u32 %v694_v13, 16  ;;  %v828_v55 = vor.u32 %v827_v49, %v823_v48  ;;  %v839_v5 = vshll.u32 %v700_v0, 16  ;;  %v706_v49 = vld [vmem:[%s5092_s28 + $0x48] sm:$0xf] }
  0x25   : > { %v1128_v22 = vunpack.c.l.b16 %v786_v16  ;;  %v847_v12 = vrot.slane %v845_v6, 5  ;;  %v884_v56 = vshrl.u32 %v706_v49, 16 }
  0x26   : > { %v790_v23 = vrot.slane %v788_v17, 4  ;;  %v829_v62 = vrot.slane %v828_v55, 4  ;;  %v841_v11 = vrot.slane %v839_v5, 5 }
  0x27   : > { %v886_v1 = vrot.slane %v884_v56, 4 }
  0x33   : > { %4228 = vmatmul.msk.bf16.gmra.mxu1 %vm326_vm1, %v4942_v18  ;;  %4232 = vmatmul.msk.bf16.gmra.mxu2 %vm326_vm1, %v4946_v19  ;;  %v791_v18 = vshll.u32 %v694_v13, 16  ;;  %v797_v19 = vshll.u32 %v695_v14, 16  ;;  %v851_v13 = vrot.slane %v849_v7, 4  ;;  %v708_v7 = vld [vmem:[%s5092_s28 + $0x50] sm:$0x1] }
  0x34   : > { %4236 = vmatmul.msk.bf16.gmra.mxu3 %vm326_vm1, %v4950_v20  ;;  %4224 = vmatmul.msk.bf16.gmra.mxu0 %vm326_vm1, %v4938_v21  ;;  %v801_v20 = vshrl.u32 %v695_v14, 16  ;;  %v1127_v21 = vunpack.c.l.b16 %v776_v15  ;;  %v702_v14 = vld [vmem:[%s5092_s28 + $0x38] sm:$0x1]  ;;  %v4923_v15 = vld [vmem:[%s5092_s28 + $0x24] sm:$0xff] }
  0x35   : > { %v793_v24 = vrot.slane %v791_v18, 5  ;;  %v799_v25 = vrot.slane %v797_v19, 5  ;;  %v852_v18 = vor.u32 %v851_v13, %v847_v12  ;;  %v855_v19 = vshll.u32 %v702_v14, 16  ;;  %v4925_v13 = vld [vmem:[%s5092_s28 + $0x3c] sm:$0xff] }
  0x36   : > { %v803_v26 = vrot.slane %v801_v20, 4  ;;  %v1158_v29 = vpack.c.b16 %v1128_v22, %v1127_v21  ;;  %v4955_v20 = vld [vmem:[%s5092_s28 + $0x1bc] sm:$0xff]  ;;  %v4971_v21 = vld [vmem:[%s5092_s28 + $0x288] sm:$0xff] }
  0x37   : > { %v794_v32 = vor.u32 %v793_v24, %v790_v23  ;;  %v853_v23 = vrot.slane %v852_v18, 4  ;;  %v857_v24 = vrot.slane %v855_v19, 5 }
  0x38   : > { %v804_v33 = vor.u32 %v803_v26, %v799_v25  ;;  %v704_v26 = vld [vmem:[%s5092_s28 + $0x40] sm:$0xf] }
  0x39   : > { %v795_v37 = vrot.slane %v794_v32, 4  ;;  %v873_v32 = vshrl.u32 %v704_v26, 16 }
  0x3a   : > { %v805_v38 = vrot.slane %v804_v33, 4 }
  0x43   : > { %4229 = vmatmul.msk.bf16.gmra.mxu1 %vm326_vm1, %v4943_v44  ;;  %4233 = vmatmul.msk.bf16.gmra.mxu2 %vm326_vm1, %v4947_v45  ;;  %v800_v44 = vsel %vm5143_vm4, %v795_v37, %v799_v25  ;;  %v810_v45 = vsel %vm5143_vm4, %v805_v38, %v809_v39  ;;  %v703_v25 = vld [vmem:[%s5092_s28 + $0x3c] sm:$0xf]  ;;  %v875_v38 = vrot.slane %v873_v32, 4  ;;  %v705_v39 = vld [vmem:[%s5092_s28 + $0x44] sm:$0x1] }
  0x44   : > { %4237 = vmatmul.msk.bf16.gmra.mxu3 %vm326_vm1, %v4951_v46  ;;  %4225 = vmatmul.msk.bf16.gmra.mxu0 %vm326_vm1, %v4939_v47  ;;  %v814_v46 = vrot.slane %v812_v40, 4  ;;  %v817_v47 = vrot.slane %v815_v41, 5  ;;  %v1129_v50 = vunpack.c.l.b16 %v800_v44  ;;  %v1130_v52 = vunpack.c.l.b16 %v810_v45  ;;  %v4924_v40 = vld [vmem:[%s5092_s28 + $0x30] sm:$0xff] }
  0x45   : > { %v4972_v44 = vld [vmem:[%s5092_s28 + $0x294] sm:$0xff] }
  0x46   : > { %v818_v54 = vor.u32 %v817_v47, %v814_v46  ;;  %v1159_v58 = vpack.c.b16 %v1130_v52, %v1129_v50  ;;  %v879_v47 = vshll.u32 %v705_v39, 16  ;;  %v707_v50 = vld [vmem:[%s5092_s28 + $0x4c] sm:$0xf] }
  0x48   : > { %v819_v61 = vrot.slane %v818_v54, 4  ;;  %v881_v54 = vrot.slane %v879_v47, 5 }
  0x4a   : > { %v824_v2 = vsel %vm5143_vm4, %v819_v61, %v823_v48 }
  0x53   : > { %4302 = vmatmul.msk.bf16.vlgmr.msrb.gmra.mxu1 %vm326_vm1, %v4920_v3  ;;  %4319 = vmatmul.msk.bf16.vlgmr.msrb.gmra.mxu2 %vm326_vm1, %v1157_v4  ;;  %v834_v3 = vsel %vm5143_vm4, %v829_v62, %v833_v63  ;;  %v836_v4 = vshrl.u32 %v700_v0, 16 }
  0x54   : > { %4432 = vmatmul.msk.bf16.vlgmr.msrb.gmra.mxu3 %vm326_vm1, %v4952_v8  ;;  %4545 = vmatmul.msk.bf16.vlgmr.msrb.gmra.mxu0 %vm326_vm1, %v4968_v9  ;;  %v1131_v8 = vunpack.c.l.b16 %v824_v2  ;;  %v1132_v9 = vunpack.c.l.b16 %v834_v3 }
  0x55   : > { %v838_v10 = vrot.slane %v836_v4, 4 }
  0x56   : > { %v1160_v16 = vpack.c.b16 %v1132_v9, %v1131_v8 }
  0x57   : > { %v842_v17 = vor.u32 %v841_v11, %v838_v10  ;;  %v903_v11 = vshll.u32 %v708_v7, 16 }
  0x59   : > { %v843_v22 = vrot.slane %v842_v17, 4  ;;  %v4973_v17 = vld [vmem:[%s5092_s28 + $0x2a0] sm:$0xff] }
  0x5b   : > { %v848_v27 = vsel %vm5143_vm4, %v843_v22, %v847_v12  ;;  %v709_v22 = vld [vmem:[%s5092_s28 + $0x54] sm:$0xf] }
  0x5c   : > { %v1133_v33 = vunpack.c.l.b16 %v848_v27 }
  0x63   : > { %4303 = vmatmul.msk.bf16.gmra.mxu1 %vm326_vm1, %v4921_v28  ;;  %4320 = vmatmul.msk.bf16.gmra.mxu2 %vm326_vm1, %v1158_v29  ;;  %v858_v28 = vsel %vm5143_vm4, %v853_v23, %v857_v24  ;;  %v860_v29 = vshrl.u32 %v703_v25, 16  ;;  %v710_v23 = vld [vmem:[%s5092_s28 + $0x58] sm:$0xf] }
  0x64   : > { %4433 = vmatmul.msk.bf16.gmra.mxu3 %vm326_vm1, %v4953_v30  ;;  %4546 = vmatmul.msk.bf16.gmra.mxu0 %vm326_vm1, %v4969_v31  ;;  %v863_v30 = vshll.u32 %v703_v25, 16  ;;  %v869_v31 = vshll.u32 %v704_v26, 16  ;;  %v1134_v34 = vunpack.c.l.b16 %v858_v28  ;;  %v908_v28 = vshrl.u32 %v709_v22, 16 }
  0x65   : > { %v862_v35 = vrot.slane %v860_v29, 4  ;;  %v911_v29 = vshll.u32 %v709_v22, 16 }
  0x66   : > { %v865_v36 = vrot.slane %v863_v30, 5  ;;  %v871_v37 = vrot.slane %v869_v31, 5  ;;  %v1161_v41 = vpack.c.b16 %v1134_v34, %v1133_v33  ;;  %v917_v30 = vshll.u32 %v710_v23, 16 }
  0x67   : > { %v921_v31 = vshrl.u32 %v710_v23, 16  ;;  %v4927_v23 = vld [vmem:[%s5092_s28 + $0x54] sm:$0xff] }
  0x68   : > { %v866_v45 = vor.u32 %v865_v36, %v862_v35  ;;  %v876_v46 = vor.u32 %v875_v38, %v871_v37  ;;  %v910_v36 = vrot.slane %v908_v28, 4  ;;  %v919_v38 = vrot.slane %v917_v30, 5  ;;  %v4959_v28 = vld [vmem:[%s5092_s28 + $0x1ec] sm:$0xff] }
  0x69   : > { %v923_v39 = vrot.slane %v921_v31, 4 }
  0x6a   : > { %v867_v52 = vrot.slane %v866_v45, 4  ;;  %v877_v53 = vrot.slane %v876_v46, 4 }
  0x6b   : > { %v924_v47 = vor.u32 %v923_v39, %v919_v38  ;;  %v715_v39 = vld [vmem:[%s5092_s28 + $0x6c] sm:$0xf] }
  0x6c   : > { %v872_v62 = vsel %vm5143_vm4, %v867_v52, %v871_v37  ;;  %v882_v63 = vsel %vm5143_vm4, %v877_v53, %v881_v54  ;;  %v913_v37 = vrot.slane %v911_v29, 5  ;;  %v4958_v52 = vld [vmem:[%s5092_s28 + $0x1e0] sm:$0xff]  ;;  %v4974_v53 = vld [vmem:[%s5092_s28 + $0x2ac] sm:$0xff]  ;;  %v4975_v29 = vld [vmem:[%s5092_s28 + $0x2b8] sm:$0xff] }
  0x6d   : > { %v1135_v5 = vunpack.c.l.b16 %v872_v62  ;;  %v1136_v6 = vunpack.c.l.b16 %v882_v63  ;;  %v713_v62 = vld [vmem:[%s5092_s28 + $0x64] sm:$0xf] }
  0x6e   : > { %v914_v46 = vor.u32 %v913_v37, %v910_v36  ;;  %v941_v7 = vshll.u32 %v713_v62, 16 }
  0x6f   : > { %v1162_v14 = vpack.c.b16 %v1136_v6, %v1135_v5 }
  0x70   : > { %v915_v56 = vrot.slane %v914_v46, 4  ;;  %v956_v46 = vshrl.u32 %v715_v39, 16 }
  0x73   : > { %4304 = vmatmul.msk.bf16.gmra.mxu1 %vm326_vm1, %v4922_v57  ;;  %4321 = vmatmul.msk.bf16.gmra.mxu2 %vm326_vm1, %v1159_v58  ;;  %v887_v57 = vshll.u32 %v706_v49, 16  ;;  %v893_v58 = vshll.u32 %v707_v50, 16 }
  0x74   : > { %4434 = vmatmul.msk.bf16.gmra.mxu3 %vm326_vm1, %v4954_v59  ;;  %4547 = vmatmul.msk.bf16.gmra.mxu0 %vm326_vm1, %v4970_v60  ;;  %v897_v59 = vshrl.u32 %v707_v50, 16 }
  0x75   : > { %v889_v2 = vrot.slane %v887_v57, 5  ;;  %v895_v3 = vrot.slane %v893_v58, 5  ;;  %v925_v57 = vrot.slane %v924_v47, 4  ;;  %v959_v47 = vshll.u32 %v715_v39, 16 }
  0x76   : > { %v899_v4 = vrot.slane %v897_v59, 4  ;;  %v712_v59 = vld [vmem:[%s5092_s28 + $0x60] sm:$0xf] }
  0x77   : > { %v890_v9 = vor.u32 %v889_v2, %v886_v1  ;;  %v920_v2 = vsel %vm5143_vm4, %v915_v56, %v919_v38  ;;  %v932_v5 = vshrl.u32 %v712_v59, 16  ;;  %v935_v6 = vshll.u32 %v712_v59, 16 }
  0x78   : > { %v900_v10 = vor.u32 %v899_v4, %v895_v3 }
  0x79   : > { %v891_v19 = vrot.slane %v890_v9, 4  ;;  %v945_v9 = vshrl.u32 %v713_v62, 16 }
  0x7b   : > { %v896_v25 = vsel %vm5143_vm4, %v891_v19, %v895_v3  ;;  %v947_v19 = vrot.slane %v945_v9, 4 }
  0x7c   : > { %v1137_v34 = vunpack.c.l.b16 %v896_v25 }
  0x83   : > { %4305 = vmatmul.msk.bf16.gmra.mxu1 %vm326_vm1, %v4923_v15  ;;  %4322 = vmatmul.msk.bf16.gmra.mxu2 %vm326_vm1, %v1160_v16  ;;  %v4957_v16 = vld [vmem:[%s5092_s28 + $0x1d4] sm:$0xff] }
  0x84   : > { %4435 = vmatmul.msk.bf16.gmra.mxu3 %vm326_vm1, %v4955_v20  ;;  %4548 = vmatmul.msk.bf16.gmra.mxu0 %vm326_vm1, %v4971_v21  ;;  %v901_v20 = vrot.slane %v900_v10, 4  ;;  %v905_v21 = vrot.slane %v903_v11, 5  ;;  %v1139_v11 = vunpack.c.l.b16 %v920_v2  ;;  %v958_v2 = vrot.slane %v956_v46, 4 }
  0x86   : > { %v906_v26 = vsel %vm5143_vm4, %v901_v20, %v905_v21  ;;  %v714_v20 = vld [vmem:[%s5092_s28 + $0x68] sm:$0x1] }
  0x87   : > { %v1138_v35 = vunpack.c.l.b16 %v906_v26 }
  0x89   : > { %v1163_v45 = vpack.c.b16 %v1138_v35, %v1137_v34  ;;  %v951_v34 = vshll.u32 %v714_v20, 16  ;;  %v4976_v20 = vld [vmem:[%s5092_s28 + $0x2c4] sm:$0xff] }
  0x8b   : > { %v953_v38 = vrot.slane %v951_v34, 5 }
  0x90   : > { %v5213_v42 = vpop.f32.mrf.mxu1 }
  0x91   : > { %v5217_v48 = vpop.f32.mrf.mxu0 }
  0x93   : > { %4306 = vmatmul.msk.bf16.gmra.mxu1 %vm326_vm1, %v4924_v40  ;;  %4323 = vmatmul.msk.bf16.gmra.mxu2 %vm326_vm1, %v1161_v41  ;;  %v711_v40 = vld [vmem:[%s5092_s28 + $0x5c] sm:$0x1] }
  0x94   : > { %4436 = vmatmul.msk.bf16.gmra.mxu3 %vm326_vm1, %v4956_v43  ;;  %4549 = vmatmul.msk.bf16.gmra.mxu0 %vm326_vm1, %v4972_v44  ;;  %v4926_v44 = vld [vmem:[%s5092_s28 + $0x48] sm:$0xff]  ;;  %v927_v49 = vshll.u32 %v711_v40, 16  ;;  %v716_v40 = vld [vmem:[%s5092_s28 + $0x70] sm:$0xf] }
  0x95   : > { %v965_v56 = vshll.u32 %v716_v40, 16 }
  0x96   : > { %v5225_v55 = vpop.f32.mrf.mxu2  ;;  %v929_v58 = vrot.slane %v927_v49, 5 }
  0x97   : > { %v5227_v60 = vpop.f32.mrf.mxu3 }
  0x98   : > { %v5229_v61 = vpop.f32.mrf.mxu1  ;;  %v930_v3 = vsel %vm5143_vm4, %v925_v57, %v929_v58  ;;  %v969_v57 = vshrl.u32 %v716_v40, 16 }
  0x99   : > { %v5235_v0 = vpop.f32.mrf.mxu0 }
  0x9e   : > { %v5238_v8 = vpop.f32.mrf.mxu2 }
  0x9f   : > { %v5240_v12 = vpop.f32.mrf.mxu3 }
  0xa0   : > { %v5243_v15 = vpop.f32.mrf.mxu1 }
  0xa1   : > { %v5247_v18 = vpop.f32.mrf.mxu0 }
  0xa3   : > { %4307 = vmatmul.msk.bf16.gmra.mxu1 %vm326_vm1, %v4925_v13  ;;  %4324 = vmatmul.msk.bf16.gmra.mxu2 %vm326_vm1, %v1162_v14  ;;  %v1140_v13 = vunpack.c.l.b16 %v930_v3  ;;  %v934_v14 = vrot.slane %v932_v5, 4  ;;  %v961_v3 = vrot.slane %v959_v47, 5  ;;  %v967_v5 = vrot.slane %v965_v56, 5 }
  0xa4   : > { %4437 = vmatmul.msk.bf16.gmra.mxu3 %vm326_vm1, %v4957_v16  ;;  %4550 = vmatmul.msk.bf16.gmra.mxu0 %vm326_vm1, %v4973_v17  ;;  %v937_v16 = vrot.slane %v935_v6, 5  ;;  %v943_v17 = vrot.slane %v941_v7, 5  ;;  %v971_v6 = vrot.slane %v969_v57, 4  ;;  %v717_v7 = vld [vmem:[%s5092_s28 + $0x74] sm:$0x1] }
  0xa5   : > { %v1164_v25 = vpack.c.b16 %v1140_v13, %v1139_v11  ;;  %v4928_v13 = vld [vmem:[%s5092_s28 + $0x60] sm:$0xff] }
  0xa6   : > { %v5255_v24 = vpop.f32.mrf.mxu2  ;;  %v938_v30 = vor.u32 %v937_v16, %v934_v14  ;;  %v948_v31 = vor.u32 %v947_v19, %v943_v17  ;;  %v962_v16 = vor.u32 %v961_v3, %v958_v2  ;;  %v4960_v19 = vld [vmem:[%s5092_s28 + $0x1f8] sm:$0xff] }
  0xa7   : > { %v5261_v27 = vpop.f32.mrf.mxu3 }
  0xa8   : > { %v5263_v32 = vpop.f32.mrf.mxu1  ;;  %v939_v36 = vrot.slane %v938_v30, 4  ;;  %v949_v37 = vrot.slane %v948_v31, 4  ;;  %v963_v30 = vrot.slane %v962_v16, 4 }
  0xa9   : > { %v5265_v33 = vpop.f32.mrf.mxu0 }
  0xae   : > { %v5268_v41 = vpop.f32.mrf.mxu2 }
  0xaf   : > { %v5270_v43 = vpop.f32.mrf.mxu3 }
  0xb0   : > { %v5273_v50 = vpop.f32.mrf.mxu1 }
  0xb1   : > { %v5277_v54 = vpop.f32.mrf.mxu0 }
  0xb3   : > { %4308 = vmatmul.msk.bf16.gmra.mxu1 %vm326_vm1, %v4926_v44  ;;  %4325 = vmatmul.msk.bf16.gmra.mxu2 %vm326_vm1, %v1163_v45 }
  0xb4   : > { %4438 = vmatmul.msk.bf16.gmra.mxu3 %vm326_vm1, %v4958_v52  ;;  %4551 = vmatmul.msk.bf16.gmra.mxu0 %vm326_vm1, %v4974_v53  ;;  %v944_v52 = vsel %vm5143_vm4, %v939_v36, %v943_v17  ;;  %v954_v53 = vsel %vm5143_vm4, %v949_v37, %v953_v38  ;;  %v718_v36 = vld [vmem:[%s5092_s28 + $0x78] sm:$0xf]  ;;  %v719_v37 = vld [vmem:[%s5092_s28 + $0x7c] sm:$0xf] }
  0xb5   : > { %v1141_v59 = vunpack.c.l.b16 %v944_v52  ;;  %v1142_v62 = vunpack.c.l.b16 %v954_v53  ;;  %v980_v46 = vshrl.u32 %v718_v36, 16  ;;  %v983_v47 = vshll.u32 %v718_v36, 16 }
  0xb6   : > { %v5285_v63 = vpop.f32.mrf.mxu2  ;;  %v989_v56 = vshll.u32 %v719_v37, 16  ;;  %v993_v57 = vshrl.u32 %v719_v37, 16 }
  0xb7   : > { %v5287_v1 = vpop.f32.mrf.mxu3  ;;  %v1165_v14 = vpack.c.b16 %v1142_v62, %v1141_v59 }
  0xb8   : > { %v5293_v4 = vpop.f32.mrf.mxu1  ;;  %v995_v16 = vrot.slane %v993_v57, 4 }
  0xb9   : > { %v5295_v10 = vpop.f32.mrf.mxu0 }
  0xbe   : > { %v5298_v21 = vpop.f32.mrf.mxu2 }
  0xbf   : > { %v5300_v22 = vpop.f32.mrf.mxu3 }
  0xc0   : > { %v5303_v26 = vpop.f32.mrf.mxu1 }
  0xc1   : > { %v5307_v35 = vpop.f32.mrf.mxu0 }
  0xc3   : > { %4309 = vmatmul.msk.bf16.gmra.mxu1 %vm326_vm1, %v4927_v23  ;;  %4326 = vmatmul.msk.bf16.gmra.mxu2 %vm326_vm1, %v1164_v25  ;;  %v972_v23 = vor.u32 %v971_v6, %v967_v5  ;;  %v975_v25 = vshll.u32 %v717_v7, 16  ;;  %v982_v7 = vrot.slane %v980_v46, 4 }
  0xc4   : > { %4439 = vmatmul.msk.bf16.gmra.mxu3 %vm326_vm1, %v4959_v28  ;;  %4552 = vmatmul.msk.bf16.gmra.mxu0 %vm326_vm1, %v4975_v29 }
  0xc5   : > { %v973_v31 = vrot.slane %v972_v23, 4  ;;  %v977_v34 = vrot.slane %v975_v25, 5  ;;  %v4929_v25 = vld [vmem:[%s5092_s28 + $0x6c] sm:$0xff] }
  0xc6   : > { %v5315_v44 = vpop.f32.mrf.mxu2 }
  0xc7   : > { %v5317_v45 = vpop.f32.mrf.mxu3  ;;  %v978_v53 = vsel %vm5143_vm4, %v973_v31, %v977_v34  ;;  %v4977_v34 = vld [vmem:[%s5092_s28 + $0x2d0] sm:$0xff] }
  0xc8   : > { %v5319_v49 = vpop.f32.mrf.mxu1  ;;  %v1144_v6 = vunpack.c.l.b16 %v978_v53  ;;  %v722_v53 = vld [vmem:[%s5092_s28 + $0x88] sm:$0xf] }
  0xc9   : > { %v5325_v58 = vpop.f32.mrf.mxu0 }
  0xce   : > { %v5328_v9 = vpop.f32.mrf.mxu2 }
  0xcf   : > { %v5330_v11 = vpop.f32.mrf.mxu3 }
  0xd0   : > { %v608_v17 = vpop.f32.mrf.mxu1 }
  0xd1   : > { %v609_v28 = vadd.f32 %v608_v17, %v5217_v48  ;;  %v1807_v29 = vpop.f32.mrf.mxu0  ;;  %v968_v48 = vsel %vm5143_vm4, %v963_v30, %v967_v5  ;;  %v985_v5 = vrot.slane %v983_v47, 5  ;;  %v720_v17 = vld [vmem:[%s5092_s28 + $0x80] sm:$0x1] }
  0xd2   : > { %v1143_v3 = vunpack.c.l.b16 %v968_v48  ;;  %v999_v37 = vshll.u32 %v720_v17, 16 }
  0xd3   : > { %4310 = vmatmul.msk.bf16.gmra.mxu1 %vm326_vm1, %v4928_v13  ;;  %4327 = vmatmul.msk.bf16.gmra.mxu2 %vm326_vm1, %v1165_v14  ;;  %v991_v14 = vrot.slane %v989_v56, 5  ;;  %v986_v30 = vor.u32 %v985_v5, %v982_v7  ;;  %v1013_v7 = vshll.u32 %v722_v53, 16  ;;  %v1017_v5 = vshrl.u32 %v722_v53, 16 }
  0xd4   : > { %4440 = vmatmul.msk.bf16.gmra.mxu3 %vm326_vm1, %v4960_v19  ;;  %4553 = vmatmul.msk.bf16.gmra.mxu0 %vm326_vm1, %v4976_v20  ;;  %v1001_v47 = vrot.slane %v999_v37, 5 }
  0xd5   : > { %v996_v36 = vor.u32 %v995_v16, %v991_v14 }
  0xd6   : > { %v1233_v38 = vpop.f32.mrf.mxu2 }
  0xd7   : > { %v1313_v39 = vadd.f32 %v1233_v38, %v609_v28  ;;  %v1520_v40 = vpop.f32.mrf.mxu3  ;;  %v1166_v28 = vpack.c.b16 %v1144_v6, %v1143_v3  ;;  %v997_v46 = vrot.slane %v996_v36, 4 }
  0xd8   : > { %v610_v52 = vpop.f32.mrf.mxu1 }
  0xd9   : > { %v1600_v59 = vadd.f32 %v1520_v40, %v1313_v39  ;;  %v611_v62 = vadd.f32 %v610_v52, %v5235_v0  ;;  %v1809_v2 = vpop.f32.mrf.mxu0  ;;  %v4961_v0 = vld [vmem:[%s5092_s28 + $0x204] sm:$0xff]  ;;  %v987_v40 = vrot.slane %v986_v30, 4  ;;  %v1015_v30 = vrot.slane %v1013_v7, 5 }
  0xda   : > { %v721_v52 = vld [vmem:[%s5092_s28 + $0x84] sm:$0xf] }
  0xdb   : > { %v5347_v13 = vadd.f32 %v1807_v29, %v1600_v59  ;;  %v1007_v3 = vshll.u32 %v721_v52, 16 }
  0xde   : > { %v1235_v19 = vpop.f32.mrf.mxu2 }
  0xdf   : > { %v1314_v20 = vadd.f32 %v1235_v19, %v611_v62  ;;  %v1522_v23 = vpop.f32.mrf.mxu3  ;;  %v1004_v62 = vshrl.u32 %v721_v52, 16 }
  0xe0   : > { %v613_v31 = vpop.f32.mrf.mxu1 }
  0xe1   : > { %v1601_v38 = vadd.f32 %v1522_v23, %v1314_v20  ;;  %v614_v29 = vadd.f32 %v613_v31, %v5247_v18  ;;  %v1812_v39 = vpop.f32.mrf.mxu0  ;;  %v992_v18 = vsel %vm5143_vm4, %v987_v40, %v991_v14  ;;  %v1009_v14 = vrot.slane %v1007_v3, 5 }
  0xe2   : > { %v1145_v20 = vunpack.c.l.b16 %v992_v18  ;;  %v1019_v31 = vrot.slane %v1017_v5, 4 }
  0xe3   : > { %4311 = vmatmul.msk.bf16.gmra.mxu1 %vm326_vm1, %v4929_v25  ;;  %4328 = vmatmul.msk.bf16.gmra.mxu2 %vm326_vm1, %v1166_v28  ;;  %v5356_v48 = vadd.f32 %v1809_v2, %v1601_v38  ;;  %v1002_v2 = vsel %vm5143_vm4, %v997_v46, %v1001_v47  ;;  %v1006_v25 = vrot.slane %v1004_v62, 4  ;;  %v4930_v38 = vld [vmem:[%s5092_s28 + $0x78] sm:$0xff] }
  0xe4   : > { %4441 = vmatmul.msk.bf16.gmra.mxu3 %vm326_vm1, %v4961_v0  ;;  %4554 = vmatmul.msk.bf16.gmra.mxu0 %vm326_vm1, %v4977_v34  ;;  %v1146_v23 = vunpack.c.l.b16 %v1002_v2  ;;  %v723_v0 = vld [vmem:[%s5092_s28 + $0x8c] sm:$0x1]  ;;  %v4978_v47 = vld [vmem:[%s5092_s28 + $0x2dc] sm:$0xff]  ;;  %v1020_v52 = vor.u32 %v1019_v31, %v1015_v30  ;;  %v725_v2 = vld [vmem:[%s5092_s28 + $0x94] sm:$0xf] }
  0xe5   : > { %v1010_v40 = vor.u32 %v1009_v14, %v1006_v25  ;;  %v1023_v53 = vshll.u32 %v723_v0, 16  ;;  %v1037_v25 = vshll.u32 %v725_v2, 16  ;;  %v1041_v14 = vshrl.u32 %v725_v2, 16 }
  0xe6   : > { %v1238_v56 = vpop.f32.mrf.mxu2  ;;  %v1021_v62 = vrot.slane %v1020_v52, 4 }
  0xe7   : > { %v1315_v57 = vadd.f32 %v1238_v56, %v614_v29  ;;  %v1525_v59 = vpop.f32.mrf.mxu3  ;;  %v1167_v29 = vpack.c.b16 %v1146_v23, %v1145_v20  ;;  %v1025_v3 = vrot.slane %v1023_v53, 5 }
  0xe8   : > { %v615_v6 = vpop.f32.mrf.mxu1 }
  0xe9   : > { %v1602_v16 = vadd.f32 %v1525_v59, %v1315_v57  ;;  %v616_v17 = vadd.f32 %v615_v6, %v5265_v33  ;;  %v1814_v19 = vpop.f32.mrf.mxu0  ;;  %v4962_v33 = vld [vmem:[%s5092_s28 + $0x210] sm:$0xff]  ;;  %v1011_v59 = vrot.slane %v1010_v40, 4  ;;  %v1039_v40 = vrot.slane %v1037_v25, 5 }
  0xea   : > { %v724_v6 = vld [vmem:[%s5092_s28 + $0x90] sm:$0xf] }
  0xeb   : > { %v5367_v28 = vadd.f32 %v1812_v39, %v1602_v16  ;;  %v1031_v20 = vshll.u32 %v724_v6, 16 }
  0xee   : > { %v1240_v34 = vpop.f32.mrf.mxu2 }
  0xef   : > { %v1316_v36 = vadd.f32 %v1240_v34, %v616_v17  ;;  %v1527_v37 = vpop.f32.mrf.mxu3  ;;  %v1028_v17 = vshrl.u32 %v724_v6, 16 }
  0xf0   : > { %v618_v46 = vpop.f32.mrf.mxu1 }
  0xf1   : > { %v1603_v56 = vadd.f32 %v1527_v37, %v1316_v36  ;;  %v619_v39 = vadd.f32 %v618_v46, %v5277_v54  ;;  %v1817_v57 = vpop.f32.mrf.mxu0  ;;  %v1016_v54 = vsel %vm5143_vm4, %v1011_v59, %v1015_v30  ;;  %v1033_v30 = vrot.slane %v1031_v20, 5 }
  0xf2   : > { %v1147_v36 = vunpack.c.l.b16 %v1016_v54  ;;  %v1043_v46 = vrot.slane %v1041_v14, 4 }
  0xf3   : > { %4312 = vmatmul.msk.bf16.gmra.mxu1 %vm326_vm1, %v4930_v38  ;;  %4329 = vmatmul.msk.bf16.gmra.mxu2 %vm326_vm1, %v1167_v29  ;;  %v5376_v18 = vadd.f32 %v1814_v19, %v1603_v56  ;;  %v1026_v19 = vsel %vm5143_vm4, %v1021_v62, %v1025_v3  ;;  %v1030_v38 = vrot.slane %v1028_v17, 4  ;;  %v4931_v56 = vld [vmem:[%s5092_s28 + $0x84] sm:$0xff] }
  0xf4   : > { %4442 = vmatmul.msk.bf16.gmra.mxu3 %vm326_vm1, %v4962_v33  ;;  %4555 = vmatmul.msk.bf16.gmra.mxu0 %vm326_vm1, %v4978_v47  ;;  %v1148_v37 = vunpack.c.l.b16 %v1026_v19  ;;  %v726_v33 = vld [vmem:[%s5092_s28 + $0x98] sm:$0x1]  ;;  %v4979_v3 = vld [vmem:[%s5092_s28 + $0x2e8] sm:$0xff]  ;;  %v1044_v6 = vor.u32 %v1043_v46, %v1039_v40  ;;  %v728_v19 = vld [vmem:[%s5092_s28 + $0xa0] sm:$0xf] }
  0xf5   : > { %v1034_v59 = vor.u32 %v1033_v30, %v1030_v38  ;;  %v1047_v2 = vshll.u32 %v726_v33, 16  ;;  %v1061_v38 = vshll.u32 %v728_v19, 16  ;;  %v1065_v30 = vshrl.u32 %v728_v19, 16 }
  0xf6   : > { %v1243_v7 = vpop.f32.mrf.mxu2  ;;  %v1045_v17 = vrot.slane %v1044_v6, 4 }
  0xf7   : > { %v1317_v5 = vadd.f32 %v1243_v7, %v619_v39  ;;  %v1530_v16 = vpop.f32.mrf.mxu3  ;;  %v1168_v39 = vpack.c.b16 %v1148_v37, %v1147_v36  ;;  %v1049_v20 = vrot.slane %v1047_v2, 5 }
  0xf8   : > { %v620_v23 = vpop.f32.mrf.mxu1 }
  0xf9   : > { %v1604_v31 = vadd.f32 %v1530_v16, %v1317_v5  ;;  %v621_v0 = vadd.f32 %v620_v23, %v5295_v10  ;;  %v1819_v34 = vpop.f32.mrf.mxu0  ;;  %v4963_v10 = vld [vmem:[%s5092_s28 + $0x21c] sm:$0xff]  ;;  %v1035_v16 = vrot.slane %v1034_v59, 4  ;;  %v1063_v59 = vrot.slane %v1061_v38, 5 }
  0xfa   : > { %v727_v23 = vld [vmem:[%s5092_s28 + $0x9c] sm:$0xf] }
  0xfb   : > { %v5387_v29 = vadd.f32 %v1817_v57, %v1604_v31  ;;  %v1055_v36 = vshll.u32 %v727_v23, 16 }
  0xfe   : > { %v1245_v47 = vpop.f32.mrf.mxu2 }
  0xff   : > { %v1318_v52 = vadd.f32 %v1245_v47, %v621_v0  ;;  %v1532_v53 = vpop.f32.mrf.mxu3  ;;  %v1052_v0 = vshrl.u32 %v727_v23, 16 }
 0x100   : > { %v623_v62 = vpop.f32.mrf.mxu1 }
 0x101   : > { %v1605_v7 = vadd.f32 %v1532_v53, %v1318_v52  ;;  %v624_v57 = vadd.f32 %v623_v62, %v5307_v35  ;;  %v1822_v5 = vpop.f32.mrf.mxu0  ;;  %v1040_v35 = vsel %vm5143_vm4, %v1035_v16, %v1039_v40  ;;  %v1057_v40 = vrot.slane %v1055_v36, 5  ;;  %v730_v36 = vld [vmem:[%s5092_s28 + $0xa8] sm:$0xf] }
 0x102   : > { %v1149_v52 = vunpack.c.l.b16 %v1040_v35  ;;  %v1067_v62 = vrot.slane %v1065_v30, 4 }
 0x103   : > { %4313 = vmatmul.msk.bf16.gmra.mxu1 %vm326_vm1, %v4931_v56  ;;  %4330 = vmatmul.msk.bf16.gmra.mxu2 %vm326_vm1, %v1168_v39  ;;  %v5396_v54 = vadd.f32 %v1819_v34, %v1605_v7  ;;  %v1050_v34 = vsel %vm5143_vm4, %v1045_v17, %v1049_v20  ;;  %v1054_v56 = vrot.slane %v1052_v0, 4  ;;  %v4932_v7 = vld [vmem:[%s5092_s28 + $0x90] sm:$0xff]  ;;  %v4964_v17 = vld [vmem:[%s5092_s28 + $0x228] sm:$0xff] }
 0x104   : > { %4443 = vmatmul.msk.bf16.gmra.mxu3 %vm326_vm1, %v4963_v10  ;;  %4556 = vmatmul.msk.bf16.gmra.mxu0 %vm326_vm1, %v4979_v3  ;;  %v1150_v53 = vunpack.c.l.b16 %v1050_v34  ;;  %v729_v10 = vld [vmem:[%s5092_s28 + $0xa4] sm:$0x1]  ;;  %v4980_v20 = vld [vmem:[%s5092_s28 + $0x2f4] sm:$0xff]  ;;  %v1068_v23 = vor.u32 %v1067_v62, %v1063_v59  ;;  %v731_v34 = vld [vmem:[%s5092_s28 + $0xac] sm:$0xf] }
 0x105   : > { %v1058_v16 = vor.u32 %v1057_v40, %v1054_v56  ;;  %v1071_v19 = vshll.u32 %v729_v10, 16  ;;  %v1085_v40 = vshll.u32 %v731_v34, 16  ;;  %v1089_v62 = vshrl.u32 %v731_v34, 16 }
 0x106   : > { %v1248_v25 = vpop.f32.mrf.mxu2  ;;  %v1069_v35 = vrot.slane %v1068_v23, 4 }
 0x107   : > { %v1319_v14 = vadd.f32 %v1248_v25, %v624_v57  ;;  %v1535_v31 = vpop.f32.mrf.mxu3  ;;  %v1169_v57 = vpack.c.b16 %v1150_v53, %v1149_v52  ;;  %v1073_v0 = vrot.slane %v1071_v19, 5  ;;  %v1076_v52 = vshrl.u32 %v730_v36, 16 }
 0x108   : > { %v625_v37 = vpop.f32.mrf.mxu1 }
 0x109   : > { %v1606_v46 = vadd.f32 %v1535_v31, %v1319_v14  ;;  %v626_v33 = vadd.f32 %v625_v37, %v5325_v58  ;;  %v1824_v47 = vpop.f32.mrf.mxu0  ;;  %v1074_v56 = vsel %vm5143_vm4, %v1069_v35, %v1073_v0 }
 0x10b   : > { %v5407_v39 = vadd.f32 %v1822_v5, %v1606_v46  ;;  %v1059_v5 = vrot.slane %v1058_v16, 4  ;;  %v1091_v16 = vrot.slane %v1089_v62, 4 }
 0x10e   : > { %v1250_v3 = vpop.f32.mrf.mxu2 }
 0x10f   : > { %v1320_v6 = vadd.f32 %v1250_v3, %v626_v33  ;;  %v1537_v2 = vpop.f32.mrf.mxu3  ;;  %v1064_v33 = vsel %vm5143_vm4, %v1059_v5, %v1063_v59  ;;  %v1087_v59 = vrot.slane %v1085_v40, 5 }
 0x110   : > { %v628_v58 = vpop.f32.mrf.mxu1 }
 0x111   : > { %v1607_v25 = vadd.f32 %v1537_v2, %v1320_v6  ;;  %v1827_v14 = vpop.f32.mrf.mxu0  ;;  %v629_v37 = vadd.f32 %v628_v58, %v5213_v42  ;;  %v1151_v42 = vunpack.c.l.b16 %v1064_v33  ;;  %v1152_v6 = vunpack.c.l.b16 %v1074_v56  ;;  %v734_v56 = vld [vmem:[%s5092_s28 + $0xb8] sm:$0xf] }
 0x112   : > { %v1078_v2 = vrot.slane %v1076_v52, 4  ;;  %v1092_v34 = vor.u32 %v1091_v16, %v1087_v59  ;;  %v1109_v16 = vshll.u32 %v734_v56, 16 }
 0x113   : > { %4314 = vmatmul.msk.bf16.gmra.mxu1 %vm326_vm1, %v4932_v7  ;;  %4331 = vmatmul.msk.bf16.gmra.mxu2 %vm326_vm1, %v1169_v57  ;;  %v5415_v31 = vadd.f32 %v1824_v47, %v1607_v25  ;;  %v1079_v47 = vshll.u32 %v730_v36, 16  ;;  %v4933_v25 = vld [vmem:[%s5092_s28 + $0x9c] sm:$0xff]  ;;  %v1170_v5 = vpack.c.b16 %v1152_v6, %v1151_v42  ;;  %v4965_v36 = vld [vmem:[%s5092_s28 + $0x234] sm:$0xff] }
 0x114   : > { %4444 = vmatmul.msk.bf16.gmra.mxu3 %vm326_vm1, %v4964_v17  ;;  %4557 = vmatmul.msk.bf16.gmra.mxu0 %vm326_vm1, %v4980_v20  ;;  %v732_v17 = vld [vmem:[%s5092_s28 + $0xb0] sm:$0x1]  ;;  %v1093_v33 = vrot.slane %v1092_v34, 4 }
 0x115   : > { %v1081_v7 = vrot.slane %v1079_v47, 5  ;;  %v733_v47 = vld [vmem:[%s5092_s28 + $0xb4] sm:$0xf] }
 0x116   : > { %v1253_v38 = vpop.f32.mrf.mxu2  ;;  %v1100_v6 = vshrl.u32 %v733_v47, 16 }
 0x117   : > { %v1321_v30 = vadd.f32 %v1253_v38, %v629_v37  ;;  %v1540_v46 = vpop.f32.mrf.mxu3  ;;  %v1082_v35 = vor.u32 %v1081_v7, %v1078_v2  ;;  %v4981_v37 = vld [vmem:[%s5092_s28 + $0x300] sm:$0xff]  ;;  %v1095_v38 = vshll.u32 %v732_v17, 16  ;;  %v1103_v7 = vshll.u32 %v733_v47, 16  ;;  %v4982_v47 = vld [vmem:[%s5092_s28 + $0x30c] sm:$0xff] }
 0x118   : > { %v630_v53 = vpop.f32.mrf.mxu1 }
 0x119   : > { %v1608_v10 = vadd.f32 %v1540_v46, %v1321_v30  ;;  %v1829_v3 = vpop.f32.mrf.mxu0  ;;  %v631_v58 = vadd.f32 %v630_v53, %v5229_v61  ;;  %v1083_v61 = vrot.slane %v1082_v35, 4  ;;  %v1097_v52 = vrot.slane %v1095_v38, 5 }
 0x11b   : > { %v5426_v57 = vadd.f32 %v1827_v14, %v1608_v10  ;;  %v1088_v42 = vsel %vm5143_vm4, %v1083_v61, %v1087_v59  ;;  %v1098_v2 = vsel %vm5143_vm4, %v1093_v33, %v1097_v52  ;;  %v4966_v52 = vld [vmem:[%s5092_s28 + $0x240] sm:$0xff] }
 0x11e   : > { %v1255_v20 = vpop.f32.mrf.mxu2 }
 0x11f   : > { %v1322_v23 = vadd.f32 %v1255_v20, %v631_v58  ;;  %v1542_v19 = vpop.f32.mrf.mxu3  ;;  %v1113_v58 = vshrl.u32 %v734_v56, 16 }
 0x120   : > { %v633_v0 = vpop.f32.mrf.mxu1 }
 0x121   : > { %v1609_v14 = vadd.f32 %v1542_v19, %v1322_v23  ;;  %v1832_v30 = vpop.f32.mrf.mxu0  ;;  %v634_v53 = vadd.f32 %v633_v0, %v5243_v15  ;;  %v1153_v15 = vunpack.c.l.b16 %v1088_v42  ;;  %v1154_v23 = vunpack.c.l.b16 %v1098_v2  ;;  %v4852_v42 = vld [vmem:[%s5092_s28 + $0xc] sm:$0xf] }
 0x122   : > { %v1102_v19 = vrot.slane %v1100_v6, 4  ;;  %v1115_v59 = vrot.slane %v1113_v58, 4 }
 0x123   : > { %4315 = vmatmul.msk.bf16.gmra.mxu1 %vm326_vm1, %v4933_v25  ;;  %4332 = vmatmul.msk.bf16.gmra.mxu2 %vm326_vm1, %v1170_v5  ;;  %v5435_v46 = vadd.f32 %v1829_v3, %v1609_v14  ;;  %v1105_v25 = vrot.slane %v1103_v7, 5  ;;  %v1111_v5 = vrot.slane %v1109_v16, 5  ;;  %v4934_v14 = vld [vmem:[%s5092_s28 + $0xa8] sm:$0xff]  ;;  %v1171_v61 = vpack.c.b16 %v1154_v23, %v1153_v15  ;;  %v4853_v15 = vld [vmem:[%s5092_s28 + $0x10] sm:$0xf] }
 0x124   : > { %4445 = vmatmul.msk.bf16.gmra.mxu3 %vm326_vm1, %v4965_v36  ;;  %4558 = vmatmul.msk.bf16.gmra.mxu0 %vm326_vm1, %v4981_v37  ;;  %v735_v36 = vld [vmem:[%s5092_s28 + $0xbc] sm:$0x1] }
 0x125   : > { %v1116_v56 = vor.u32 %v1115_v59, %v1111_v5  ;;  %v3196_v59 = vshrl.u32 %v4852_v42, 16 }
 0x126   : > { %v1258_v40 = vpop.f32.mrf.mxu2 }
 0x127   : > { %v1323_v62 = vadd.f32 %v1258_v40, %v634_v53  ;;  %v1545_v10 = vpop.f32.mrf.mxu3  ;;  %v1106_v53 = vor.u32 %v1105_v25, %v1102_v19  ;;  %v1119_v40 = vshll.u32 %v735_v36, 16  ;;  %v1117_v2 = vrot.slane %v1116_v56, 4 }
 0x128   : > { %v635_v3 = vpop.f32.mrf.mxu1 }
 0x129   : > { %v1610_v17 = vadd.f32 %v1545_v10, %v1323_v62  ;;  %v1834_v20 = vpop.f32.mrf.mxu0  ;;  %v636_v0 = vadd.f32 %v635_v3, %v5263_v32  ;;  %v4561_v10 = vld [vmem:[%s5092_s28 + $0x198] sm:$0xf]  ;;  %v4562_v32 = vld [vmem:[%s5092_s28 + $0x19c] sm:$0xf]  ;;  %v1107_v3 = vrot.slane %v1106_v53, 4  ;;  %v1121_v7 = vrot.slane %v1119_v40, 5 }
 0x12a   : > { %v1968_v58 = vshrl.u32 %v4561_v10, 16  ;;  %v1977_v19 = vshll.u32 %v4562_v32, 16  ;;  %v1981_v25 = vshrl.u32 %v4562_v32, 16  ;;  %v3198_v40 = vrot.slane %v3196_v59, 4 }
 0x12b   : > { %v5446_v35 = vadd.f32 %v1832_v30, %v1610_v17  ;;  %v1971_v17 = vshll.u32 %v4561_v10, 16 }
 0x12c   : > { %v1979_v53 = vrot.slane %v1977_v19, 5  ;;  %v1983_v56 = vrot.slane %v1981_v25, 4 }
 0x12e   : > { %v1260_v37 = vpop.f32.mrf.mxu2 }
 0x12f   : > { %v1324_v34 = vadd.f32 %v1260_v37, %v636_v0  ;;  %v1547_v38 = vpop.f32.mrf.mxu3  ;;  %v3199_v0 = vshll.u32 %v4852_v42, 16  ;;  %v4563_v42 = vld [vmem:[%s5092_s28 + $0x1a0] sm:$0x1] }
 0x130   : > { %v638_v33 = vpop.f32.mrf.mxu1 }
 0x131   : > { %v1611_v62 = vadd.f32 %v1547_v38, %v1324_v34  ;;  %v1837_v30 = vpop.f32.mrf.mxu0  ;;  %v639_v16 = vadd.f32 %v638_v33, %v5273_v50  ;;  %v1112_v34 = vsel %vm5143_vm4, %v1107_v3, %v1111_v5  ;;  %v1122_v38 = vsel %vm5143_vm4, %v1117_v2, %v1121_v7 }
 0x132   : > { %v3209_v50 = vshrl.u32 %v4853_v15, 16  ;;  %v1155_v10 = vunpack.c.l.b16 %v1112_v34  ;;  %v1156_v32 = vunpack.c.l.b16 %v1122_v38  ;;  %v4967_v34 = vld [vmem:[%s5092_s28 + $0x24c] sm:$0xff]  ;;  %v4983_v38 = vld [vmem:[%s5092_s28 + $0x318] sm:$0xff] }
 0x133   : > { %4316 = vmatmul.msk.bf16.gmra.mxu1 %vm326_vm1, %v4934_v14  ;;  %4333 = vmatmul.msk.bf16.gmra.mxu2 %vm326_vm1, %v1171_v61  ;;  %v5458_v6 = vadd.f32 %v1834_v20, %v1611_v62  ;;  %v3205_v14 = vshll.u32 %v4853_v15, 16  ;;  %v3201_v62 = vrot.slane %v3199_v0, 5  ;;  %v4935_v0 = vld [vmem:[%s5092_s28 + $0xb4] sm:$0xff] }
 0x134   : > { %4446 = vmatmul.msk.bf16.gmra.mxu3 %vm326_vm1, %v4966_v52  ;;  %4559 = vmatmul.msk.bf16.gmra.mxu0 %vm326_vm1, %v4982_v47  ;;  %v1970_v52 = vrot.slane %v1968_v58, 4  ;;  %v1973_v47 = vrot.slane %v1971_v17, 5  ;;  %v3211_v3 = vrot.slane %v3209_v50, 4  ;;  %v1984_v17 = vor.u32 %v1983_v56, %v1979_v53 }
 0x135   : > { %v3207_v5 = vrot.slane %v3205_v14, 5  ;;  %v3202_v19 = vor.u32 %v3201_v62, %v3198_v40 }
 0x136   : > { %v1263_v23 = vpop.f32.mrf.mxu2  ;;  %v1974_v58 = vor.u32 %v1973_v47, %v1970_v52 }
 0x137   : > { %v1325_v36 = vadd.f32 %v1263_v23, %v639_v16  ;;  %v1550_v20 = vpop.f32.mrf.mxu3  ;;  %v4854_v16 = vld [vmem:[%s5092_s28 + $0x14] sm:$0x1]  ;;  %v1987_v23 = vshll.u32 %v4563_v42, 16  ;;  %v3212_v14 = vor.u32 %v3211_v3, %v3207_v5  ;;  %v3203_v47 = vrot.slane %v3202_v19, 4  ;;  %v4855_v3 = vld [vmem:[%s5092_s28 + $0x18] sm:$0xf] }
 0x138   : > { %v640_v37 = vpop.f32.mrf.mxu1 }
 0x139   : > { %v1612_v61 = vadd.f32 %v1550_v20, %v1325_v36  ;;  %v1839_v33 = vpop.f32.mrf.mxu0  ;;  %v641_v7 = vadd.f32 %v640_v37, %v5293_v4  ;;  %v1172_v36 = vpack.c.b16 %v1156_v32, %v1155_v10  ;;  %v1975_v37 = vrot.slane %v1974_v58, 4  ;;  %v4564_v10 = vld [vmem:[%s5092_s28 + $0x1a4] sm:$0xf]  ;;  %v4565_v32 = vld [vmem:[%s5092_s28 + $0x1a8] sm:$0xf] }
 0x13a   : > { %v1989_v52 = vrot.slane %v1987_v23, 5  ;;  %v3213_v40 = vrot.slane %v3212_v14, 4  ;;  %v4856_v58 = vld [vmem:[%s5092_s28 + $0x1c] sm:$0xf]  ;;  %v1992_v19 = vshrl.u32 %v4564_v10, 16 }
 0x13b   : > { %v5469_v2 = vadd.f32 %v1837_v30, %v1612_v61  ;;  %v3215_v30 = vshll.u32 %v4854_v16, 16  ;;  %v1985_v61 = vrot.slane %v1984_v17, 4  ;;  %v1980_v16 = vsel %vm5143_vm4, %v1975_v37, %v1979_v53 }
 0x13c   : > { %v3229_v14 = vshll.u32 %v4856_v58, 16 }
 0x13d   : > { %v3217_v62 = vrot.slane %v3215_v30, 5  ;;  %v3233_v30 = vshrl.u32 %v4856_v58, 16 }
 0x13e   : > { %v1265_v15 = vpop.f32.mrf.mxu2  ;;  %v3231_v58 = vrot.slane %v3229_v14, 5 }
 0x13f   : > { %v1326_v25 = vadd.f32 %v1265_v15, %v641_v7  ;;  %v1552_v59 = vpop.f32.mrf.mxu3  ;;  %v1990_v15 = vsel %vm5143_vm4, %v1985_v61, %v1989_v52  ;;  %v1994_v52 = vrot.slane %v1992_v19, 4 }
 0x140   : > { %v643_v20 = vpop.f32.mrf.mxu1 }
 0x141   : > { %v1613_v50 = vadd.f32 %v1552_v59, %v1326_v25  ;;  %v1842_v4 = vpop.f32.mrf.mxu0  ;;  %v644_v42 = vadd.f32 %v643_v20, %v5303_v26  ;;  %v1995_v25 = vshll.u32 %v4564_v10, 16  ;;  %v2001_v59 = vshll.u32 %v4565_v32, 16 }
 0x142   : > { %v3218_v26 = vsel %vm5143_vm4, %v3213_v40, %v3217_v62  ;;  %v3220_v20 = vshrl.u32 %v4855_v3, 16 }
 0x143   : > { %4317 = vmatmul.msk.bf16.gmra.mxu1 %vm326_vm1, %v4935_v0  ;;  %4334 = vmatmul.msk.bf16.gmra.mxu2 %vm326_vm1, %v1172_v36  ;;  %v5478_v56 = vadd.f32 %v1839_v33, %v1613_v50  ;;  %v3208_v33 = vsel %vm5143_vm4, %v3203_v47, %v3207_v5  ;;  %v2005_v36 = vshrl.u32 %v4565_v32, 16  ;;  %v2353_v5 = vunpack.c.l.b16 %v1980_v16 }
 0x144   : > { %4447 = vmatmul.msk.bf16.gmra.mxu3 %vm326_vm1, %v4967_v34  ;;  %4560 = vmatmul.msk.bf16.gmra.mxu0 %vm326_vm1, %v4983_v38  ;;  %v3223_v34 = vshll.u32 %v4855_v3, 16  ;;  %v2354_v50 = vunpack.c.l.b16 %v1990_v15  ;;  %v3581_v37 = vunpack.c.l.b16 %v3208_v33  ;;  %v3582_v61 = vunpack.c.l.b16 %v3218_v26 }
 0x145   : > { %v1997_v47 = vrot.slane %v1995_v25, 5  ;;  %v5495_v10 = vrot.slane %v2001_v59, 5  ;;  %v3222_v40 = vrot.slane %v3220_v20, 4  ;;  %v3235_v16 = vrot.slane %v3233_v30, 4  ;;  %v4984_v25 = vld [vmem:[%s5092_s28 + $0xc] sm:$0xff]  ;;  %v5000_v20 = vld [vmem:[%s5092_s28 + $0xd8] sm:$0xff] }
 0x146   : > { %v1268_v7 = vpop.f32.mrf.mxu2  ;;  %v3225_v62 = vrot.slane %v3223_v34, 5  ;;  %v2385_v19 = vpack.c.b16 %v2354_v50, %v2353_v5  ;;  %v3613_v59 = vpack.c.b16 %v3582_v61, %v3581_v37  ;;  %v4568_v50 = vld [vmem:[%s5092_s28 + $0x1b4] sm:$0xf]  ;;  %v4858_v37 = vld [vmem:[%s5092_s28 + $0x24] sm:$0xf] }
 0x147   : > { %v1327_v17 = vadd.f32 %v1268_v7, %v644_v42  ;;  %v1555_v23 = vpop.f32.mrf.mxu3  ;;  %v2007_v42 = vrot.slane %v2005_v36, 4  ;;  %v4566_v7 = vld [vmem:[%s5092_s28 + $0x1ac] sm:$0x1]  ;;  %v1998_v26 = vor.u32 %v1997_v47, %v1994_v52  ;;  %v3236_v30 = vor.u32 %v3235_v16, %v3231_v58  ;;  %v4859_v16 = vld [vmem:[%s5092_s28 + $0x28] sm:$0xf] }
 0x148   : > { %v645_v0 = vpop.f32.mrf.mxu1  ;;  %v2011_v34 = vshll.u32 %v4566_v7, 16 }
 0x149   : > { %v1614_v53 = vadd.f32 %v1555_v23, %v1327_v17  ;;  %v1844_v38 = vpop.f32.mrf.mxu0  ;;  %v646_v3 = vadd.f32 %v645_v0, %v5319_v49  ;;  %v4857_v17 = vld [vmem:[%s5092_s28 + $0x20] sm:$0x1]  ;;  %v3226_v49 = vor.u32 %v3225_v62, %v3222_v40  ;;  %v1999_v5 = vrot.slane %v1998_v26, 4 }
 0x14a   : > { %v3239_v0 = vshll.u32 %v4857_v17, 16  ;;  %v2013_v47 = vrot.slane %v2011_v34, 5 }
 0x14b   : > { %v5497_v32 = vadd.f32 %v1842_v4, %v1614_v53  ;;  %v2008_v4 = vor.u32 %v2007_v42, %v5495_v10  ;;  %v3227_v42 = vrot.slane %v3226_v49, 4 }
 0x14c   : > { %v3241_v40 = vrot.slane %v3239_v0, 5 }
 0x14d   : > { %6101 = vst [vmem:[#allocation2_spill] sm:$0xff] %v5497_v32  ;;  %v4567_v32 = vld [vmem:[%s5092_s28 + $0x1b0] sm:$0xf]  ;;  %v2009_v52 = vrot.slane %v2008_v4, 4 }
 0x14e   : > { %v1270_v15 = vpop.f32.mrf.mxu2  ;;  %v2016_v7 = vshrl.u32 %v4567_v32, 16  ;;  %v2019_v17 = vshll.u32 %v4567_v32, 16  ;;  %v3253_v32 = vshll.u32 %v4859_v16, 16 }
 0x14f   : > { %v1328_v33 = vadd.f32 %v1270_v15, %v646_v3  ;;  %v1557_v23 = vpop.f32.mrf.mxu3  ;;  %v3237_v3 = vrot.slane %v3236_v30, 4  ;;  %v2014_v4 = vsel %vm5143_vm4, %v2009_v52, %v2013_v47 }
 0x150   : > { %v648_v36 = vpop.f32.mrf.mxu1  ;;  %v2021_v30 = vrot.slane %v2019_v17, 5  ;;  %v2356_v47 = vunpack.c.l.b16 %v2014_v4  ;;  %v4985_v4 = vld [vmem:[%s5092_s28 + $0x18] sm:$0xff] }
 0x151   : > { %v1615_v53 = vadd.f32 %v1557_v23, %v1328_v33  ;;  %v1847_v14 = vpop.f32.mrf.mxu0  ;;  %v649_v62 = vadd.f32 %v648_v36, %v5225_v55  ;;  %v2025_v33 = vshll.u32 %v4568_v50, 16  ;;  %v2029_v23 = vshrl.u32 %v4568_v50, 16 }
 0x152   : > { %v3232_v55 = vsel %vm5143_vm4, %v3227_v42, %v3231_v58  ;;  %v3257_v36 = vshrl.u32 %v4859_v16, 16  ;;  %v3242_v0 = vsel %vm5143_vm4, %v3237_v3, %v3241_v40  ;;  %v4569_v58 = vld [vmem:[%s5092_s28 + $0x1b8] sm:$0x1]  ;;  %v3255_v16 = vrot.slane %v3253_v32, 5  ;;  %v4860_v3 = vld [vmem:[%s5092_s28 + $0x2c] sm:$0x1] }
 0x153   : > { %4610 = vmatmul.msk.bf16.vlgmr.msra.gmra.mxu1 %vm326_vm1, %v2385_v19  ;;  %4723 = vmatmul.msk.bf16.vlgmr.msra.gmra.mxu2 %vm326_vm1, %v4984_v25  ;;  %v5510_v61 = vadd.f32 %v1844_v38, %v1615_v53  ;;  %v3244_v19 = vshrl.u32 %v4858_v37, 16  ;;  %v3247_v38 = vshll.u32 %v4858_v37, 16  ;;  %v2018_v53 = vrot.slane %v2016_v7, 4 }
 0x154   : > { %4836 = vmatmul.msk.bf16.vlgmr.msra.gmra.mxu3 %vm326_vm1, %v5000_v20  ;;  %4901 = vmatmul.msk.bf16.vlgmr.msra.gmra.mxu0 %vm326_vm1, %v3613_v59  ;;  %v2004_v59 = vsel %vm5143_vm4, %v1999_v5, %v5495_v10  ;;  %v5525_v50 = vrot.slane %v2025_v33, 5  ;;  %v2031_v10 = vrot.slane %v2029_v23, 4  ;;  %v3584_v42 = vunpack.c.l.b16 %v3242_v0  ;;  %v5001_v0 = vld [vmem:[%s5092_s28 + $0xe4] sm:$0xff] }
 0x155   : > { %6102 = vst [vmem:[#allocation3_spill] sm:$0xff] %v5510_v61  ;;  %v3246_v5 = vrot.slane %v3244_v19, 4  ;;  %v3249_v37 = vrot.slane %v3247_v38, 5  ;;  %v2355_v52 = vunpack.c.l.b16 %v2004_v59  ;;  %v2022_v17 = vor.u32 %v2021_v30, %v2018_v53 }
 0x156   : > { %v1273_v15 = vpop.f32.mrf.mxu2  ;;  %v2032_v33 = vor.u32 %v2031_v10, %v5525_v50  ;;  %v2035_v23 = vshll.u32 %v4569_v58, 16  ;;  %v4861_v58 = vld [vmem:[%s5092_s28 + $0x30] sm:$0xf] }
 0x157   : > { %v1329_v25 = vadd.f32 %v1273_v15, %v649_v62  ;;  %v1560_v26 = vpop.f32.mrf.mxu3  ;;  %v3583_v62 = vunpack.c.l.b16 %v3232_v55  ;;  %v3259_v15 = vrot.slane %v3257_v36, 4  ;;  %v3250_v19 = vor.u32 %v3249_v37, %v3246_v5 }
 0x158   : > { %v650_v20 = vpop.f32.mrf.mxu1  ;;  %v2386_v59 = vpack.c.b16 %v2356_v47, %v2355_v52  ;;  %v2037_v53 = vrot.slane %v2035_v23, 5  ;;  %v4570_v52 = vld [vmem:[%s5092_s28 + $0x1bc] sm:$0xf]  ;;  %v4571_v47 = vld [vmem:[%s5092_s28 + $0x1c0] sm:$0xf] }
 0x159   : > { %v1616_v34 = vadd.f32 %v1560_v26, %v1329_v25  ;;  %v1849_v49 = vpop.f32.mrf.mxu0  ;;  %v651_v40 = vadd.f32 %v650_v20, %v5238_v8  ;;  %v3614_v61 = vpack.c.b16 %v3584_v42, %v3583_v62  ;;  %v3260_v32 = vor.u32 %v3259_v15, %v3255_v16 }
 0x15a   : > { %v2023_v20 = vrot.slane %v2022_v17, 4  ;;  %v3251_v30 = vrot.slane %v3250_v19, 4  ;;  %v2040_v17 = vshrl.u32 %v4570_v52, 16  ;;  %v2049_v23 = vshll.u32 %v4571_v47, 16 }
 0x15b   : > { %v5528_v25 = vadd.f32 %v1847_v14, %v1616_v34  ;;  %v3263_v14 = vshll.u32 %v4860_v3, 16  ;;  %v2033_v34 = vrot.slane %v2032_v33, 4  ;;  %v3261_v5 = vrot.slane %v3260_v32, 4  ;;  %v4862_v3 = vld [vmem:[%s5092_s28 + $0x34] sm:$0xf] }
 0x15c   : > { %v2028_v15 = vsel %vm5143_vm4, %v2023_v20, %v5525_v50  ;;  %v2043_v33 = vshll.u32 %v4570_v52, 16  ;;  %v2042_v20 = vrot.slane %v2040_v17, 4 }
 0x15d   : > { %v3265_v37 = vrot.slane %v3263_v14, 5 }
 0x15e   : > { %v1275_v7 = vpop.f32.mrf.mxu2 }
 0x15f   : > { %v1330_v38 = vadd.f32 %v1275_v7, %v651_v40  ;;  %v1562_v26 = vpop.f32.mrf.mxu3  ;;  %v3256_v40 = vsel %vm5143_vm4, %v3251_v30, %v3255_v16  ;;  %v2357_v16 = vunpack.c.l.b16 %v2028_v15 }
 0x160   : > { %v653_v55 = vpop.f32.mrf.mxu1  ;;  %v3585_v14 = vunpack.c.l.b16 %v3256_v40 }
 0x161   : > { %v1617_v36 = vadd.f32 %v1562_v26, %v1330_v38  ;;  %v1852_v8 = vpop.f32.mrf.mxu0  ;;  %v654_v62 = vadd.f32 %v653_v55, %v5255_v24  ;;  %v3266_v24 = vsel %vm5143_vm4, %v3261_v5, %v3265_v37  ;;  %v2053_v38 = vshrl.u32 %v4571_v47, 16 }
 0x162   : > { %v3268_v26 = vshrl.u32 %v4861_v58, 16  ;;  %v3277_v55 = vshll.u32 %v4862_v3, 16 }
 0x163   : > { %4611 = vmatmul.msk.bf16.gmra.mxu1 %vm326_vm1, %v2386_v59  ;;  %4724 = vmatmul.msk.bf16.gmra.mxu2 %vm326_vm1, %v4985_v4  ;;  %v5537_v10 = vadd.f32 %v1849_v49, %v1617_v36  ;;  %v2038_v49 = vsel %vm5143_vm4, %v2033_v34, %v2037_v53  ;;  %v3271_v59 = vshll.u32 %v4861_v58, 16  ;;  %v3586_v36 = vunpack.c.l.b16 %v3266_v24  ;;  %v4863_v58 = vld [vmem:[%s5092_s28 + $0x38] sm:$0x1]  ;;  %v5002_v24 = vld [vmem:[%s5092_s28 + $0xf0] sm:$0xff] }
 0x164   : > { %4837 = vmatmul.msk.bf16.gmra.mxu3 %vm326_vm1, %v5001_v0  ;;  %4902 = vmatmul.msk.bf16.gmra.mxu0 %vm326_vm1, %v3614_v61  ;;  %v3281_v0 = vshrl.u32 %v4862_v3, 16  ;;  %v2358_v32 = vunpack.c.l.b16 %v2038_v49  ;;  %v2045_v34 = vrot.slane %v2043_v33, 5  ;;  %v5555_v53 = vrot.slane %v2049_v23, 5 }
 0x165   : > { %v2055_v30 = vrot.slane %v2053_v38, 4  ;;  %v3270_v5 = vrot.slane %v3268_v26, 4  ;;  %v3273_v37 = vrot.slane %v3271_v59, 5  ;;  %v3615_v17 = vpack.c.b16 %v3586_v36, %v3585_v14 }
 0x166   : > { %v1278_v42 = vpop.f32.mrf.mxu2  ;;  %v3283_v15 = vrot.slane %v3281_v0, 4  ;;  %v2046_v33 = vor.u32 %v2045_v34, %v2042_v20 }
 0x167   : > { %v1331_v61 = vadd.f32 %v1278_v42, %v654_v62  ;;  %v1565_v7 = vpop.f32.mrf.mxu3  ;;  %v4572_v62 = vld [vmem:[%s5092_s28 + $0x1c4] sm:$0x1]  ;;  %v3279_v42 = vrot.slane %v3277_v55, 5  ;;  %v4573_v55 = vld [vmem:[%s5092_s28 + $0x1c8] sm:$0xf] }
 0x168   : > { %v655_v19 = vpop.f32.mrf.mxu1  ;;  %v2059_v38 = vshll.u32 %v4572_v62, 16  ;;  %v2047_v0 = vrot.slane %v2046_v33, 4  ;;  %v2067_v62 = vshll.u32 %v4573_v55, 16 }
 0x169   : > { %v1618_v50 = vadd.f32 %v1565_v7, %v1331_v61  ;;  %v1854_v4 = vpop.f32.mrf.mxu0  ;;  %v656_v47 = vadd.f32 %v655_v19, %v5268_v41  ;;  %v2387_v61 = vpack.c.b16 %v2358_v32, %v2357_v16  ;;  %v4986_v7 = vld [vmem:[%s5092_s28 + $0x24] sm:$0xff]  ;;  %v3274_v41 = vor.u32 %v3273_v37, %v3270_v5  ;;  %v4574_v16 = vld [vmem:[%s5092_s28 + $0x1cc] sm:$0xf]  ;;  %v4864_v32 = vld [vmem:[%s5092_s28 + $0x3c] sm:$0xf] }
 0x16a   : > { %v3287_v19 = vshll.u32 %v4863_v58, 16  ;;  %v2061_v20 = vrot.slane %v2059_v38, 5  ;;  %v4865_v58 = vld [vmem:[%s5092_s28 + $0x40] sm:$0xf] }
 0x16b   : > { %v5557_v52 = vadd.f32 %v1852_v8, %v1618_v50  ;;  %v2056_v8 = vor.u32 %v2055_v30, %v5555_v53  ;;  %v3284_v50 = vor.u32 %v3283_v15, %v3279_v42  ;;  %v3275_v34 = vrot.slane %v3274_v41, 4 }
 0x16c   : > { %v3289_v30 = vrot.slane %v3287_v19, 5 }
 0x16d   : > { %v2057_v36 = vrot.slane %v2056_v8, 4  ;;  %v3285_v37 = vrot.slane %v3284_v50, 4  ;;  %v3305_v8 = vshrl.u32 %v4865_v58, 16  ;;  %v2069_v50 = vrot.slane %v2067_v62, 5 }
 0x16e   : > { %v1280_v49 = vpop.f32.mrf.mxu2 }
 0x16f   : > { %v1332_v40 = vadd.f32 %v1280_v49, %v656_v47  ;;  %v1567_v3 = vpop.f32.mrf.mxu3  ;;  %v2064_v47 = vshrl.u32 %v4573_v55, 16  ;;  %v2073_v49 = vshll.u32 %v4574_v16, 16  ;;  %v3290_v19 = vsel %vm5143_vm4, %v3285_v37, %v3289_v30 }
 0x170   : > { %v658_v23 = vpop.f32.mrf.mxu1 }
 0x171   : > { %v1619_v26 = vadd.f32 %v1567_v3, %v1332_v40  ;;  %v1857_v59 = vpop.f32.mrf.mxu0  ;;  %v659_v5 = vadd.f32 %v658_v23, %v5285_v63  ;;  %v2077_v40 = vshrl.u32 %v4574_v16, 16  ;;  %v3292_v3 = vshrl.u32 %v4864_v32, 16 }
 0x172   : > { %v3280_v63 = vsel %vm5143_vm4, %v3275_v34, %v3279_v42  ;;  %v3301_v23 = vshll.u32 %v4865_v58, 16  ;;  %v5585_v55 = vrot.slane %v2073_v49, 5  ;;  %v4575_v42 = vld [vmem:[%s5092_s28 + $0x1d0] sm:$0x1]  ;;  %v3588_v34 = vunpack.c.l.b16 %v3290_v19 }
 0x173   : > { %4612 = vmatmul.msk.bf16.gmra.mxu1 %vm326_vm1, %v2387_v61  ;;  %4725 = vmatmul.msk.bf16.gmra.mxu2 %vm326_vm1, %v4986_v7  ;;  %v5570_v14 = vadd.f32 %v1854_v4, %v1619_v26  ;;  %v3295_v4 = vshll.u32 %v4864_v32, 16  ;;  %v2066_v26 = vrot.slane %v2064_v47, 4  ;;  %v3307_v58 = vrot.slane %v3305_v8, 4  ;;  %v4866_v47 = vld [vmem:[%s5092_s28 + $0x44] sm:$0x1] }
 0x174   : > { %4838 = vmatmul.msk.bf16.gmra.mxu3 %vm326_vm1, %v5002_v24  ;;  %4903 = vmatmul.msk.bf16.gmra.mxu0 %vm326_vm1, %v3615_v17  ;;  %v2052_v17 = vsel %vm5143_vm4, %v2047_v0, %v5555_v53  ;;  %v2062_v24 = vsel %vm5143_vm4, %v2057_v36, %v2061_v20  ;;  %v2079_v53 = vrot.slane %v2077_v40, 4  ;;  %v3294_v0 = vrot.slane %v3292_v3, 4 }
 0x175   : > { %v3297_v16 = vrot.slane %v3295_v4, 5  ;;  %v2359_v32 = vunpack.c.l.b16 %v2052_v17  ;;  %v2360_v36 = vunpack.c.l.b16 %v2062_v24  ;;  %v3587_v20 = vunpack.c.l.b16 %v3280_v63  ;;  %v4987_v17 = vld [vmem:[%s5092_s28 + $0x30] sm:$0xff]  ;;  %v5003_v63 = vld [vmem:[%s5092_s28 + $0xfc] sm:$0xff] }
 0x176   : > { %v1283_v15 = vpop.f32.mrf.mxu2  ;;  %v2070_v37 = vor.u32 %v2069_v50, %v2066_v26  ;;  %v2080_v49 = vor.u32 %v2079_v53, %v5585_v55  ;;  %v2083_v40 = vshll.u32 %v4575_v42, 16  ;;  %v4576_v53 = vld [vmem:[%s5092_s28 + $0x1d4] sm:$0xf] }
 0x177   : > { %v1333_v61 = vadd.f32 %v1283_v15, %v659_v5  ;;  %v1570_v7 = vpop.f32.mrf.mxu3  ;;  %v3303_v5 = vrot.slane %v3301_v23, 5  ;;  %v3298_v3 = vor.u32 %v3297_v16, %v3294_v0  ;;  %v3616_v23 = vpack.c.b16 %v3588_v34, %v3587_v20  ;;  %v4867_v20 = vld [vmem:[%s5092_s28 + $0x48] sm:$0xf] }
 0x178   : > { %v660_v33 = vpop.f32.mrf.mxu1  ;;  %v2081_v19 = vrot.slane %v2080_v49, 4  ;;  %v2085_v26 = vrot.slane %v2083_v40, 5 }
 0x179   : > { %v1620_v38 = vadd.f32 %v1570_v7, %v1333_v61  ;;  %v1859_v41 = vpop.f32.mrf.mxu0  ;;  %v661_v30 = vadd.f32 %v660_v33, %v5298_v21  ;;  %v2388_v7 = vpack.c.b16 %v2360_v36, %v2359_v32  ;;  %v3308_v8 = vor.u32 %v3307_v58, %v3303_v5  ;;  %v4577_v36 = vld [vmem:[%s5092_s28 + $0x1d8] sm:$0xf]  ;;  %v4868_v58 = vld [vmem:[%s5092_s28 + $0x4c] sm:$0xf] }
 0x17a   : > { %v3299_v50 = vrot.slane %v3298_v3, 4  ;;  %v2097_v3 = vshll.u32 %v4577_v36, 16 }
 0x17b   : > { %v5588_v15 = vadd.f32 %v1857_v59, %v1620_v38  ;;  %v3311_v59 = vshll.u32 %v4866_v47, 16  ;;  %v2071_v38 = vrot.slane %v2070_v37, 4  ;;  %v3309_v16 = vrot.slane %v3308_v8, 4 }
 0x17c   : > { %v3304_v37 = vsel %vm5143_vm4, %v3299_v50, %v3303_v5  ;;  %v2088_v47 = vshrl.u32 %v4576_v53, 16 }
 0x17d   : > { %v3313_v32 = vrot.slane %v3311_v59, 5  ;;  %v2076_v34 = vsel %vm5143_vm4, %v2071_v38, %v5585_v55  ;;  %v3589_v59 = vunpack.c.l.b16 %v3304_v37 }
 0x17e   : > { %v1285_v62 = vpop.f32.mrf.mxu2  ;;  %v2361_v8 = vunpack.c.l.b16 %v2076_v34 }
 0x17f   : > { %v1334_v4 = vadd.f32 %v1285_v62, %v661_v30  ;;  %v1572_v61 = vpop.f32.mrf.mxu3  ;;  %v2091_v62 = vshll.u32 %v4576_v53, 16  ;;  %v3314_v55 = vsel %vm5143_vm4, %v3309_v16, %v3313_v32 }
 0x180   : > { %v663_v24 = vpop.f32.mrf.mxu1 }
 0x181   : > { %v1621_v21 = vadd.f32 %v1572_v61, %v1334_v4  ;;  %v1862_v33 = vpop.f32.mrf.mxu0  ;;  %v664_v42 = vadd.f32 %v663_v24, %v5315_v44  ;;  %v2101_v4 = vshrl.u32 %v4577_v36, 16  ;;  %v3316_v61 = vshrl.u32 %v4867_v20, 16  ;;  %v4578_v36 = vld [vmem:[%s5092_s28 + $0x1dc] sm:$0x1] }
 0x182   : > { %v3329_v24 = vshrl.u32 %v4868_v58, 16  ;;  %v2093_v38 = vrot.slane %v2091_v62, 5 }
 0x183   : > { %4613 = vmatmul.msk.bf16.gmra.mxu1 %vm326_vm1, %v2388_v7  ;;  %4726 = vmatmul.msk.bf16.gmra.mxu2 %vm326_vm1, %v4987_v17  ;;  %v5598_v0 = vadd.f32 %v1859_v41, %v1621_v21  ;;  %v2086_v41 = vsel %vm5143_vm4, %v2081_v19, %v2085_v26  ;;  %v3319_v7 = vshll.u32 %v4867_v20, 16  ;;  %v3325_v17 = vshll.u32 %v4868_v58, 16  ;;  %v4869_v58 = vld [vmem:[%s5092_s28 + $0x50] sm:$0x1] }
 0x184   : > { %4839 = vmatmul.msk.bf16.gmra.mxu3 %vm326_vm1, %v5003_v63  ;;  %4904 = vmatmul.msk.bf16.gmra.mxu0 %vm326_vm1, %v3616_v23  ;;  %v2362_v5 = vunpack.c.l.b16 %v2086_v41  ;;  %v2090_v21 = vrot.slane %v2088_v47, 4  ;;  %v3590_v19 = vunpack.c.l.b16 %v3314_v55  ;;  %v5615_v26 = vrot.slane %v2097_v3, 5 }
 0x185   : > { %v2103_v50 = vrot.slane %v2101_v4, 4  ;;  %v3318_v53 = vrot.slane %v3316_v61, 4  ;;  %v3321_v16 = vrot.slane %v3319_v7, 5  ;;  %v5618_v32 = vrot.slane %v3325_v17, 5  ;;  %v5004_v61 = vld [vmem:[%s5092_s28 + $0x108] sm:$0xff] }
 0x186   : > { %v1288_v30 = vpop.f32.mrf.mxu2  ;;  %v3331_v20 = vrot.slane %v3329_v24, 4  ;;  %v2094_v41 = vor.u32 %v2093_v38, %v2090_v21  ;;  %v2389_v62 = vpack.c.b16 %v2362_v5, %v2361_v8  ;;  %v2107_v3 = vshll.u32 %v4578_v36, 16  ;;  %v4579_v24 = vld [vmem:[%s5092_s28 + $0x1e0] sm:$0xf]  ;;  %v4580_v21 = vld [vmem:[%s5092_s28 + $0x1e4] sm:$0xf] }
 0x187   : > { %v1335_v49 = vadd.f32 %v1288_v30, %v664_v42  ;;  %v1575_v40 = vpop.f32.mrf.mxu3  ;;  %v3617_v55 = vpack.c.b16 %v3590_v19, %v3589_v59  ;;  %v4870_v38 = vld [vmem:[%s5092_s28 + $0x54] sm:$0xf]  ;;  %v2112_v36 = vshrl.u32 %v4579_v24, 16 }
 0x188   : > { %v665_v44 = vpop.f32.mrf.mxu1  ;;  %v3332_v7 = vor.u32 %v3331_v20, %v5618_v32  ;;  %v2109_v5 = vrot.slane %v2107_v3, 5  ;;  %v2115_v20 = vshll.u32 %v4579_v24, 16 }
 0x189   : > { %v1622_v63 = vadd.f32 %v1575_v40, %v1335_v49  ;;  %v1864_v23 = vpop.f32.mrf.mxu0  ;;  %v666_v34 = vadd.f32 %v665_v44, %v5328_v9  ;;  %v4988_v49 = vld [vmem:[%s5092_s28 + $0x3c] sm:$0xff]  ;;  %v2104_v40 = vor.u32 %v2103_v50, %v5615_v26  ;;  %v3335_v9 = vshll.u32 %v4869_v58, 16 }
 0x18a   : > { %v3333_v19 = vrot.slane %v3332_v7, 4  ;;  %v2121_v58 = vshll.u32 %v4580_v21, 16  ;;  %v2117_v7 = vrot.slane %v2115_v20, 5 }
 0x18b   : > { %v5620_v42 = vadd.f32 %v1862_v33, %v1622_v63  ;;  %v3322_v33 = vor.u32 %v3321_v16, %v3318_v53  ;;  %v2095_v63 = vrot.slane %v2094_v41, 4  ;;  %v2105_v8 = vrot.slane %v2104_v40, 4  ;;  %v4871_v41 = vld [vmem:[%s5092_s28 + $0x58] sm:$0xf] }
 0x18c   : > { %v3337_v53 = vrot.slane %v3335_v9, 5  ;;  %v3349_v9 = vshll.u32 %v4871_v41, 16 }
 0x18d   : > { %v3323_v59 = vrot.slane %v3322_v33, 4  ;;  %v2110_v3 = vsel %vm5143_vm4, %v2105_v8, %v2109_v5 }
 0x18e   : > { %v1290_v30 = vpop.f32.mrf.mxu2  ;;  %v2364_v5 = vunpack.c.l.b16 %v2110_v3 }
 0x18f   : > { %v1336_v37 = vadd.f32 %v1290_v30, %v666_v34  ;;  %v1577_v47 = vpop.f32.mrf.mxu3  ;;  %v2125_v30 = vshrl.u32 %v4580_v21, 16 }
 0x190   : > { %v668_v4 = vpop.f32.mrf.mxu1 }
 0x191   : > { %v1623_v44 = vadd.f32 %v1577_v47, %v1336_v37  ;;  %v1867_v17 = vpop.f32.mrf.mxu0  ;;  %v669_v16 = vadd.f32 %v668_v4, %v5227_v60  ;;  %v3340_v37 = vshrl.u32 %v4870_v38, 16  ;;  %v3343_v47 = vshll.u32 %v4870_v38, 16  ;;  %v4581_v38 = vld [vmem:[%s5092_s28 + $0x1e8] sm:$0x1] }
 0x192   : > { %v3328_v60 = vsel %vm5143_vm4, %v3323_v59, %v5618_v32  ;;  %v3338_v4 = vsel %vm5143_vm4, %v3333_v19, %v3337_v53  ;;  %v2127_v24 = vrot.slane %v2125_v30, 4 }
 0x193   : > { %4614 = vmatmul.msk.bf16.gmra.mxu1 %vm326_vm1, %v2389_v62  ;;  %4727 = vmatmul.msk.bf16.gmra.mxu2 %vm326_vm1, %v4988_v49  ;;  %v5633_v50 = vadd.f32 %v1864_v23, %v1623_v44  ;;  %v2100_v49 = vsel %vm5143_vm4, %v2095_v63, %v5615_v26  ;;  %v3353_v44 = vshrl.u32 %v4871_v41, 16  ;;  %v5649_v26 = vrot.slane %v2121_v58, 5 }
 0x194   : > { %4840 = vmatmul.msk.bf16.gmra.mxu3 %vm326_vm1, %v5004_v61  ;;  %4905 = vmatmul.msk.bf16.gmra.mxu0 %vm326_vm1, %v3617_v55  ;;  %v2114_v61 = vrot.slane %v2112_v36, 4  ;;  %v3342_v63 = vrot.slane %v3340_v37, 4  ;;  %v3345_v21 = vrot.slane %v3343_v47, 5  ;;  %v2363_v8 = vunpack.c.l.b16 %v2100_v49  ;;  %v4872_v36 = vld [vmem:[%s5092_s28 + $0x5c] sm:$0x1]  ;;  %v4989_v49 = vld [vmem:[%s5092_s28 + $0x48] sm:$0xff] }
 0x195   : > { %v3591_v32 = vunpack.c.l.b16 %v3328_v60  ;;  %v3592_v59 = vunpack.c.l.b16 %v3338_v4  ;;  %v3355_v20 = vrot.slane %v3353_v44, 4  ;;  %v2128_v30 = vor.u32 %v2127_v24, %v5649_v26  ;;  %v4582_v24 = vld [vmem:[%s5092_s28 + $0x1ec] sm:$0xf] }
 0x196   : > { %v1293_v34 = vpop.f32.mrf.mxu2  ;;  %v2118_v58 = vor.u32 %v2117_v7, %v2114_v61  ;;  %v2131_v41 = vshll.u32 %v4581_v38, 16  ;;  %v3346_v37 = vor.u32 %v3345_v21, %v3342_v63  ;;  %v3359_v4 = vshll.u32 %v4872_v36, 16  ;;  %v4583_v63 = vld [vmem:[%s5092_s28 + $0x1f0] sm:$0xf]  ;;  %v4874_v36 = vld [vmem:[%s5092_s28 + $0x64] sm:$0xf] }
 0x197   : > { %v1337_v62 = vadd.f32 %v1293_v34, %v669_v16  ;;  %v1580_v23 = vpop.f32.mrf.mxu3  ;;  %v3351_v16 = vrot.slane %v3349_v9, 5  ;;  %v3618_v60 = vpack.c.b16 %v3592_v59, %v3591_v32  ;;  %v2129_v61 = vrot.slane %v2128_v30, 4 }
 0x198   : > { %v670_v40 = vpop.f32.mrf.mxu1  ;;  %v2119_v9 = vrot.slane %v2118_v58, 4  ;;  %v2133_v7 = vrot.slane %v2131_v41, 5  ;;  %v3347_v44 = vrot.slane %v3346_v37, 4  ;;  %v2136_v59 = vshrl.u32 %v4582_v24, 16 }
 0x199   : > { %v1624_v55 = vadd.f32 %v1580_v23, %v1337_v62  ;;  %v1869_v33 = vpop.f32.mrf.mxu0  ;;  %v671_v53 = vadd.f32 %v670_v40, %v5240_v12  ;;  %v2390_v23 = vpack.c.b16 %v2364_v5, %v2363_v8  ;;  %v3361_v8 = vrot.slane %v3359_v4, 5  ;;  %v4873_v5 = vld [vmem:[%s5092_s28 + $0x60] sm:$0xf] }
 0x19a   : > { %v3352_v58 = vsel %vm5143_vm4, %v3347_v44, %v3351_v16  ;;  %v2145_v30 = vshll.u32 %v4583_v63, 16  ;;  %v2138_v4 = vrot.slane %v2136_v59, 4  ;;  %v4875_v59 = vld [vmem:[%s5092_s28 + $0x68] sm:$0x1] }
 0x19b   : > { %v5652_v19 = vadd.f32 %v1867_v17, %v1624_v55  ;;  %v5005_v17 = vld [vmem:[%s5092_s28 + $0x114] sm:$0xff]  ;;  %v3356_v55 = vor.u32 %v3355_v20, %v3351_v16 }
 0x19d   : > { %v3357_v32 = vrot.slane %v3356_v55, 4 }
 0x19e   : > { %v1295_v34 = vpop.f32.mrf.mxu2 }
 0x19f   : > { %v1338_v47 = vadd.f32 %v1295_v34, %v671_v53  ;;  %v1582_v62 = vpop.f32.mrf.mxu3  ;;  %v2139_v53 = vshll.u32 %v4582_v24, 16  ;;  %v2124_v34 = vsel %vm5143_vm4, %v2119_v9, %v5649_v26  ;;  %v3362_v26 = vsel %vm5143_vm4, %v3357_v32, %v3361_v8 }
 0x1a0   : > { %v673_v3 = vpop.f32.mrf.mxu1  ;;  %v2365_v55 = vunpack.c.l.b16 %v2124_v34  ;;  %v3593_v9 = vunpack.c.l.b16 %v3352_v58 }
 0x1a1   : > { %v1625_v12 = vadd.f32 %v1582_v62, %v1338_v47  ;;  %v1872_v40 = vpop.f32.mrf.mxu0  ;;  %v674_v38 = vadd.f32 %v673_v3, %v5261_v27  ;;  %v2149_v27 = vshrl.u32 %v4583_v63, 16  ;;  %v3364_v47 = vshrl.u32 %v4873_v5, 16 }
 0x1a2   : > { %v3367_v62 = vshll.u32 %v4873_v5, 16  ;;  %v3377_v3 = vshrl.u32 %v4874_v36, 16  ;;  %v3594_v5 = vunpack.c.l.b16 %v3362_v26 }
 0x1a3   : > { %4615 = vmatmul.msk.bf16.gmra.mxu1 %vm326_vm1, %v2390_v23  ;;  %4728 = vmatmul.msk.bf16.gmra.mxu2 %vm326_vm1, %v4989_v49  ;;  %v5663_v21 = vadd.f32 %v1869_v33, %v1625_v12  ;;  %v2134_v33 = vsel %vm5143_vm4, %v2129_v61, %v2133_v7  ;;  %v3373_v49 = vshll.u32 %v4874_v36, 16  ;;  %v2141_v12 = vrot.slane %v2139_v53, 5  ;;  %v4584_v61 = vld [vmem:[%s5092_s28 + $0x1f4] sm:$0x1] }
 0x1a4   : > { %4841 = vmatmul.msk.bf16.gmra.mxu3 %vm326_vm1, %v5005_v17  ;;  %4906 = vmatmul.msk.bf16.gmra.mxu0 %vm326_vm1, %v3618_v60  ;;  %v2366_v16 = vunpack.c.l.b16 %v2134_v33  ;;  %v2147_v7 = vrot.slane %v2145_v30, 5  ;;  %v2151_v44 = vrot.slane %v2149_v27, 4  ;;  %v3366_v24 = vrot.slane %v3364_v47, 4  ;;  %v4990_v30 = vld [vmem:[%s5092_s28 + $0x54] sm:$0xff] }
 0x1a5   : > { %v3369_v63 = vrot.slane %v3367_v62, 5  ;;  %v3379_v36 = vrot.slane %v3377_v3, 4  ;;  %v2142_v32 = vor.u32 %v2141_v12, %v2138_v4  ;;  %v2155_v34 = vshll.u32 %v4584_v61, 16  ;;  %v5006_v62 = vld [vmem:[%s5092_s28 + $0x120] sm:$0xff] }
 0x1a6   : > { %v1298_v20 = vpop.f32.mrf.mxu2 }
 0x1a7   : > { %v1339_v41 = vadd.f32 %v1298_v20, %v674_v38  ;;  %v1585_v37 = vpop.f32.mrf.mxu3  ;;  %v3375_v38 = vrot.slane %v3373_v49, 5  ;;  %v3370_v27 = vor.u32 %v3369_v63, %v3366_v24  ;;  %v3619_v49 = vpack.c.b16 %v3594_v5, %v3593_v9  ;;  %v4876_v24 = vld [vmem:[%s5092_s28 + $0x6c] sm:$0xf] }
 0x1a8   : > { %v675_v23 = vpop.f32.mrf.mxu1  ;;  %v2157_v26 = vrot.slane %v2155_v34, 5 }
 0x1a9   : > { %v1626_v17 = vadd.f32 %v1585_v37, %v1339_v41  ;;  %v1874_v60 = vpop.f32.mrf.mxu0  ;;  %v676_v8 = vadd.f32 %v675_v23, %v5270_v43  ;;  %v2391_v41 = vpack.c.b16 %v2366_v16, %v2365_v55  ;;  %v2152_v37 = vor.u32 %v2151_v44, %v2147_v7  ;;  %v4585_v55 = vld [vmem:[%s5092_s28 + $0x1f8] sm:$0xf]  ;;  %v4586_v16 = vld [vmem:[%s5092_s28 + $0x1fc] sm:$0xf] }
 0x1aa   : > { %v3380_v3 = vor.u32 %v3379_v36, %v3375_v38  ;;  %v2143_v23 = vrot.slane %v2142_v32, 4  ;;  %v3371_v12 = vrot.slane %v3370_v27, 4  ;;  %v4877_v36 = vld [vmem:[%s5092_s28 + $0x70] sm:$0xf]  ;;  %v2160_v32 = vshrl.u32 %v4585_v55, 16 }
 0x1ab   : > { %v5680_v20 = vadd.f32 %v1872_v40, %v1626_v17  ;;  %v3383_v40 = vshll.u32 %v4875_v59, 16  ;;  %v2153_v4 = vrot.slane %v2152_v37, 4  ;;  %v2163_v59 = vshll.u32 %v4585_v55, 16  ;;  %v4587_v55 = vld [vmem:[%s5092_s28 + $0x200] sm:$0x1] }
 0x1ac   : > { %v3381_v9 = vrot.slane %v3380_v3, 4  ;;  %v2148_v5 = vsel %vm5143_vm4, %v2143_v23, %v2147_v7  ;;  %v2173_v34 = vshrl.u32 %v4586_v16, 16  ;;  %v3391_v37 = vshll.u32 %v4876_v24, 16 }
 0x1ad   : > { %v3385_v44 = vrot.slane %v3383_v40, 5  ;;  %v3397_v27 = vshll.u32 %v4877_v36, 16  ;;  %v2367_v3 = vunpack.c.l.b16 %v2148_v5  ;;  %v2162_v40 = vrot.slane %v2160_v32, 4  ;;  %v4878_v5 = vld [vmem:[%s5092_s28 + $0x74] sm:$0x1] }
 0x1ae   : > { %v1300_v53 = vpop.f32.mrf.mxu2 }
 0x1af   : > { %v1340_v33 = vadd.f32 %v1300_v53, %v676_v8  ;;  %v1587_v58 = vpop.f32.mrf.mxu3  ;;  %v2169_v53 = vshll.u32 %v4586_v16, 16  ;;  %v3386_v7 = vsel %vm5143_vm4, %v3381_v9, %v3385_v44  ;;  %v3393_v9 = vrot.slane %v3391_v37, 5 }
 0x1b0   : > { %v678_v47 = vpop.f32.mrf.mxu1  ;;  %v3399_v44 = vrot.slane %v3397_v27, 5 }
 0x1b1   : > { %v1627_v17 = vadd.f32 %v1587_v58, %v1340_v33  ;;  %v1877_v43 = vpop.f32.mrf.mxu0  ;;  %v679_v63 = vadd.f32 %v678_v47, %v5287_v1  ;;  %v2158_v58 = vsel %vm5143_vm4, %v2153_v4, %v2157_v26  ;;  %v3401_v47 = vshrl.u32 %v4877_v36, 16 }
 0x1b2   : > { %v5705_v23 = vrot.slane %v2169_v53, 5  ;;  %v2175_v26 = vrot.slane %v2173_v34, 4  ;;  %v2368_v4 = vunpack.c.l.b16 %v2158_v58  ;;  %v2179_v53 = vshll.u32 %v4587_v55, 16  ;;  %v4991_v58 = vld [vmem:[%s5092_s28 + $0x60] sm:$0xff] }
 0x1b3   : > { %4616 = vmatmul.msk.bf16.gmra.mxu1 %vm326_vm1, %v2391_v41  ;;  %4729 = vmatmul.msk.bf16.gmra.mxu2 %vm326_vm1, %v4990_v30  ;;  %v5690_v61 = vadd.f32 %v1874_v60, %v1627_v17  ;;  %v3376_v41 = vsel %vm5143_vm4, %v3371_v12, %v3375_v38  ;;  %v3388_v30 = vshrl.u32 %v4876_v24, 16  ;;  %v2165_v17 = vrot.slane %v2163_v59, 5 }
 0x1b4   : > { %4842 = vmatmul.msk.bf16.gmra.mxu3 %vm326_vm1, %v5006_v62  ;;  %4907 = vmatmul.msk.bf16.gmra.mxu0 %vm326_vm1, %v3619_v49  ;;  %v3595_v38 = vunpack.c.l.b16 %v3376_v41  ;;  %v3596_v12 = vunpack.c.l.b16 %v3386_v7  ;;  %v3403_v24 = vrot.slane %v3401_v47, 4  ;;  %v2176_v59 = vor.u32 %v2175_v26, %v5705_v23 }
 0x1b5   : > { %v3390_v16 = vrot.slane %v3388_v30, 4  ;;  %v2166_v32 = vor.u32 %v2165_v17, %v2162_v40  ;;  %v5007_v30 = vld [vmem:[%s5092_s28 + $0x12c] sm:$0xff]  ;;  %v2181_v40 = vrot.slane %v2179_v53, 5 }
 0x1b6   : > { %v1303_v8 = vpop.f32.mrf.mxu2  ;;  %v3620_v7 = vpack.c.b16 %v3596_v12, %v3595_v38  ;;  %v3404_v27 = vor.u32 %v3403_v24, %v3399_v44  ;;  %v4589_v12 = vld [vmem:[%s5092_s28 + $0x208] sm:$0xf] }
 0x1b7   : > { %v1341_v60 = vadd.f32 %v1303_v8, %v679_v63  ;;  %v1590_v33 = vpop.f32.mrf.mxu3  ;;  %v3394_v37 = vor.u32 %v3393_v9, %v3390_v16  ;;  %v4879_v16 = vld [vmem:[%s5092_s28 + $0x78] sm:$0xf]  ;;  %v2193_v53 = vshll.u32 %v4589_v12, 16 }
 0x1b8   : > { %v680_v1 = vpop.f32.mrf.mxu1 }
 0x1b9   : > { %v1628_v62 = vadd.f32 %v1590_v33, %v1341_v60  ;;  %v1879_v49 = vpop.f32.mrf.mxu0  ;;  %v681_v36 = vadd.f32 %v680_v1, %v5300_v22  ;;  %v2392_v33 = vpack.c.b16 %v2368_v4, %v2367_v3  ;;  %v2167_v1 = vrot.slane %v2166_v32, 4  ;;  %v4588_v3 = vld [vmem:[%s5092_s28 + $0x204] sm:$0xf] }
 0x1ba   : > { %v3395_v26 = vrot.slane %v3394_v37, 4  ;;  %v3405_v4 = vrot.slane %v3404_v27, 4 }
 0x1bb   : > { %v5708_v63 = vadd.f32 %v1877_v43, %v1628_v62  ;;  %v3407_v43 = vshll.u32 %v4878_v5, 16  ;;  %v2177_v62 = vrot.slane %v2176_v59, 4  ;;  %v2172_v24 = vsel %vm5143_vm4, %v2167_v1, %v5705_v23  ;;  %v4880_v5 = vld [vmem:[%s5092_s28 + $0x7c] sm:$0xf] }
 0x1bc   : > { %v2187_v59 = vshll.u32 %v4588_v3, 16  ;;  %v3425_v37 = vshrl.u32 %v4880_v5, 16  ;;  %v2369_v27 = vunpack.c.l.b16 %v2172_v24  ;;  %v4591_v24 = vld [vmem:[%s5092_s28 + $0x210] sm:$0xf] }
 0x1bd   : > { %v3409_v38 = vrot.slane %v3407_v43, 5 }
 0x1be   : > { %v1305_v8 = vpop.f32.mrf.mxu2  ;;  %v2189_v1 = vrot.slane %v2187_v59, 5  ;;  %v4992_v59 = vld [vmem:[%s5092_s28 + $0x6c] sm:$0xff] }
 0x1bf   : > { %v1342_v34 = vadd.f32 %v1305_v8, %v681_v36  ;;  %v1592_v60 = vpop.f32.mrf.mxu3  ;;  %v2184_v36 = vshrl.u32 %v4588_v3, 16 }
 0x1c0   : > { %v683_v41 = vpop.f32.mrf.mxu1 }
 0x1c1   : > { %v1629_v47 = vadd.f32 %v1592_v60, %v1342_v34  ;;  %v1882_v22 = vpop.f32.mrf.mxu0  ;;  %v684_v55 = vadd.f32 %v683_v41, %v5317_v45  ;;  %v2197_v34 = vshrl.u32 %v4589_v12, 16  ;;  %v3400_v45 = vsel %vm5143_vm4, %v3395_v26, %v3399_v44  ;;  %v4590_v26 = vld [vmem:[%s5092_s28 + $0x20c] sm:$0x1] }
 0x1c2   : > { %v3597_v44 = vunpack.c.l.b16 %v3400_v45  ;;  %v4592_v45 = vld [vmem:[%s5092_s28 + $0x214] sm:$0xf] }
 0x1c3   : > { %4617 = vmatmul.msk.bf16.gmra.mxu1 %vm326_vm1, %v2392_v33  ;;  %4730 = vmatmul.msk.bf16.gmra.mxu2 %vm326_vm1, %v4991_v58  ;;  %v5718_v17 = vadd.f32 %v1879_v49, %v1629_v47  ;;  %v2182_v49 = vsel %vm5143_vm4, %v2177_v62, %v2181_v40  ;;  %v3410_v33 = vsel %vm5143_vm4, %v3405_v4, %v3409_v38  ;;  %v3412_v58 = vshrl.u32 %v4879_v16, 16 }
 0x1c4   : > { %4843 = vmatmul.msk.bf16.gmra.mxu3 %vm326_vm1, %v5007_v30  ;;  %4908 = vmatmul.msk.bf16.gmra.mxu0 %vm326_vm1, %v3620_v7  ;;  %v3415_v30 = vshll.u32 %v4879_v16, 16  ;;  %v3421_v7 = vshll.u32 %v4880_v5, 16  ;;  %v2370_v43 = vunpack.c.l.b16 %v2182_v49  ;;  %v2186_v47 = vrot.slane %v2184_v36, 4  ;;  %v4881_v5 = vld [vmem:[%s5092_s28 + $0x80] sm:$0x1] }
 0x1c5   : > { %v5735_v62 = vrot.slane %v2193_v53, 5  ;;  %v2199_v40 = vrot.slane %v2197_v34, 4  ;;  %v3598_v3 = vunpack.c.l.b16 %v3410_v33  ;;  %v3414_v4 = vrot.slane %v3412_v58, 4 }
 0x1c6   : > { %v1308_v9 = vpop.f32.mrf.mxu2  ;;  %v5741_v16 = vrot.slane %v3421_v7, 5  ;;  %v2393_v36 = vpack.c.b16 %v2370_v43, %v2369_v27  ;;  %v2190_v53 = vor.u32 %v2189_v1, %v2186_v47  ;;  %v2208_v58 = vshrl.u32 %v4591_v24, 16 }
 0x1c7   : > { %v1343_v8 = vadd.f32 %v1308_v9, %v684_v55  ;;  %v1595_v32 = vpop.f32.mrf.mxu3  ;;  %v3417_v55 = vrot.slane %v3415_v30, 5  ;;  %v3427_v9 = vrot.slane %v3425_v37, 4  ;;  %v2200_v34 = vor.u32 %v2199_v40, %v5735_v62 }
 0x1c8   : > { %v685_v60 = vpop.f32.mrf.mxu1  ;;  %v3431_v43 = vshll.u32 %v4881_v5, 16  ;;  %v2191_v47 = vrot.slane %v2190_v53, 4 }
 0x1c9   : > { %v1630_v23 = vadd.f32 %v1595_v32, %v1343_v8  ;;  %v1884_v41 = vpop.f32.mrf.mxu0  ;;  %v686_v12 = vadd.f32 %v685_v60, %v5330_v11  ;;  %v5008_v11 = vld [vmem:[%s5092_s28 + $0x138] sm:$0xff]  ;;  %v3621_v60 = vpack.c.b16 %v3598_v3, %v3597_v44  ;;  %v3418_v37 = vor.u32 %v3417_v55, %v3414_v4  ;;  %v4883_v44 = vld [vmem:[%s5092_s28 + $0x88] sm:$0xf] }
 0x1ca   : > { %v3428_v27 = vor.u32 %v3427_v9, %v5741_v16  ;;  %v2201_v1 = vrot.slane %v2200_v34, 4  ;;  %v3449_v34 = vshrl.u32 %v4883_v44, 16 }
 0x1cb   : > { %v5738_v38 = vadd.f32 %v1882_v22, %v1630_v23  ;;  %v2203_v22 = vshll.u32 %v4590_v26, 16  ;;  %v2211_v23 = vshll.u32 %v4591_v24, 16  ;;  %v2210_v26 = vrot.slane %v2208_v58, 4 }
 0x1cc   : > { %v3429_v5 = vrot.slane %v3428_v27, 4 }
 0x1cd   : > { %6103 = vst [vmem:[#allocation4_spill] sm:$0xff] %v5738_v38  ;;  %v2221_v38 = vshrl.u32 %v4592_v45, 16  ;;  %v2205_v40 = vrot.slane %v2203_v22, 5  ;;  %v2213_v4 = vrot.slane %v2211_v23, 5 }
 0x1ce   : > { %v1310_v49 = vpop.f32.mrf.mxu2 }
 0x1cf   : > { %v1344_v8 = vadd.f32 %v1310_v49, %v686_v12  ;;  %v1597_v32 = vpop.f32.mrf.mxu3  ;;  %v4882_v12 = vld [vmem:[%s5092_s28 + $0x84] sm:$0xf]  ;;  %v2217_v49 = vshll.u32 %v4592_v45, 16  ;;  %v2223_v53 = vrot.slane %v2221_v38, 4  ;;  %v5770_v38 = vld [vmem:[%s6097_s2] ss:$0 sm:$0xff] }
 0x1d0   : > { %v2461_v33 = vpop.f32.mrf.mxu1  ;;  %v3436_v55 = vshrl.u32 %v4882_v12, 16  ;;  %v3439_v9 = vshll.u32 %v4882_v12, 16 }
 0x1d1   : > { %v1631_v30 = vadd.f32 %v1597_v32, %v1344_v8  ;;  %v3689_v7 = vpop.f32.mrf.mxu0  ;;  %v2541_v24 = vadd.f32 %v2461_v33, %v5347_v13  ;;  %v3433_v8 = vrot.slane %v3431_v43, 5  ;;  %v2206_v13 = vsel %vm5143_vm4, %v2201_v1, %v2205_v40 }
 0x1d2   : > { %v2214_v33 = vor.u32 %v2213_v4, %v2210_v26  ;;  %v3438_v23 = vrot.slane %v3436_v55, 4  ;;  %v3451_v1 = vrot.slane %v3449_v34, 4  ;;  %v2372_v26 = vunpack.c.l.b16 %v2206_v13  ;;  %v4884_v4 = vld [vmem:[%s5092_s28 + $0x8c] sm:$0x1]  ;;  %v4594_v13 = vld [vmem:[%s5092_s28 + $0x21c] sm:$0xf] }
 0x1d3   : > { %4618 = vmatmul.msk.bf16.gmra.mxu1 %vm326_vm1, %v2393_v36  ;;  %4731 = vmatmul.msk.bf16.gmra.mxu2 %vm326_vm1, %v4992_v59  ;;  %v5754_v3 = vadd.f32 %v1884_v41, %v1631_v30  ;;  %v3419_v36 = vrot.slane %v3418_v37, 4  ;;  %v5759_v59 = vrot.slane %v2217_v49, 5  ;;  %v3445_v41 = vshll.u32 %v4883_v44, 16 }
 0x1d4   : > { %4844 = vmatmul.msk.bf16.gmra.mxu3 %vm326_vm1, %v5008_v11  ;;  %4909 = vmatmul.msk.bf16.gmra.mxu0 %vm326_vm1, %v3621_v60  ;;  %v2196_v11 = vsel %vm5143_vm4, %v2191_v47, %v5735_v62  ;;  %v4593_v60 = vld [vmem:[%s5092_s28 + $0x218] sm:$0x1]  ;;  %v3441_v30 = vrot.slane %v3439_v9, 5  ;;  %v3434_v43 = vsel %vm5143_vm4, %v3429_v5, %v3433_v8 }
 0x1d5   : > { %v3424_v62 = vsel %vm5143_vm4, %v3419_v36, %v5741_v16  ;;  %v2224_v12 = vor.u32 %v2223_v53, %v5759_v59  ;;  %v2227_v49 = vshll.u32 %v4593_v60, 16  ;;  %v5778_v47 = vrot.slane %v3445_v41, 5  ;;  %v4993_v60 = vld [vmem:[%s5092_s28 + $0x78] sm:$0xff] }
 0x1d6   : > { %v2748_v32 = vpop.f32.mrf.mxu2  ;;  %v2371_v44 = vunpack.c.l.b16 %v2196_v11  ;;  %v3599_v55 = vunpack.c.l.b16 %v3424_v62  ;;  %v3600_v9 = vunpack.c.l.b16 %v3434_v43  ;;  %v2215_v16 = vrot.slane %v2214_v33, 4 }
 0x1d7   : > { %v2828_v22 = vadd.f32 %v2748_v32, %v2541_v24  ;;  %v3035_v45 = vpop.f32.mrf.mxu3  ;;  %v3442_v24 = vor.u32 %v3441_v30, %v3438_v23  ;;  %v2225_v32 = vrot.slane %v2224_v12, 4  ;;  %v3452_v53 = vor.u32 %v3451_v1, %v5778_v47  ;;  %v5009_v23 = vld [vmem:[%s5092_s28 + $0x144] sm:$0xff]  ;;  %v4595_v12 = vld [vmem:[%s5092_s28 + $0x220] sm:$0xf] }
 0x1d8   : > { %v2463_v58 = vpop.f32.mrf.mxu1  ;;  %v3455_v41 = vshll.u32 %v4884_v4, 16  ;;  %v2394_v11 = vpack.c.b16 %v2372_v26, %v2371_v44  ;;  %v2232_v26 = vshrl.u32 %v4594_v13, 16 }
 0x1d9   : > { %v3115_v37 = vadd.f32 %v3035_v45, %v2828_v22  ;;  %v3691_v27 = vpop.f32.mrf.mxu0  ;;  %v2542_v5 = vadd.f32 %v2463_v58, %v5356_v48  ;;  %v3622_v48 = vpack.c.b16 %v3600_v9, %v3599_v55  ;;  %v2220_v58 = vsel %vm5143_vm4, %v2215_v16, %v5759_v59  ;;  %v4886_v16 = vld [vmem:[%s5092_s28 + $0x94] sm:$0xf] }
 0x1da   : > { %v3443_v30 = vrot.slane %v3442_v24, 4  ;;  %v3457_v44 = vrot.slane %v3455_v41, 5  ;;  %v5802_v59 = vunpack.c.l.b16 %v2220_v58  ;;  %v2235_v9 = vshll.u32 %v4594_v13, 16 }
 0x1db   : > { %v3769_v40 = vadd.f32 %v3689_v7, %v3115_v37  ;;  %v2229_v7 = vrot.slane %v2227_v49, 5  ;;  %v4885_v49 = vld [vmem:[%s5092_s28 + $0x90] sm:$0xf] }
 0x1dc   : > { %v3448_v24 = vsel %vm5143_vm4, %v3443_v30, %v5778_v47  ;;  %v3463_v41 = vshll.u32 %v4885_v49, 16  ;;  %v2237_v58 = vrot.slane %v2235_v9, 5 }
 0x1dd   : > { %v3804_v36 = vadd.f32 %v5770_v38, %v3769_v40  ;;  %v2230_v1 = vsel %vm5143_vm4, %v2225_v32, %v2229_v7  ;;  %v3453_v40 = vrot.slane %v3452_v53, 4  ;;  %v3460_v32 = vshrl.u32 %v4885_v49, 16 }
 0x1de   : > { %v2750_v8 = vpop.f32.mrf.mxu2 }
 0x1df   : > { %v3836_v34 = vadd.f32 3.0, %v3804_v36  ;;  %v2829_v22 = vadd.f32 %v2750_v8, %v2542_v5  ;;  %v3037_v45 = vpop.f32.mrf.mxu3  ;;  %v2241_v5 = vshll.u32 %v4595_v12, 16  ;;  %v2245_v8 = vshrl.u32 %v4595_v12, 16 }
 0x1e0   : > { %v2466_v33 = vpop.f32.mrf.mxu1 }
 0x1e1   : > { %v3868_v37 = vmax.f32 %v3836_v34, 0.0  ;;  %v3116_v62 = vadd.f32 %v3037_v45, %v2829_v22  ;;  %v3694_v43 = vpop.f32.mrf.mxu0  ;;  %v2543_v53 = vadd.f32 %v2466_v33, %v5367_v28  ;;  %v3458_v22 = vsel %vm5143_vm4, %v3453_v40, %v3457_v44  ;;  %v4596_v44 = vld [vmem:[%s5092_s28 + $0x224] sm:$0x1] }
 0x1e2   : > { %v2234_v45 = vrot.slane %v2232_v26, 4  ;;  %v5820_v33 = vrot.slane %v2241_v5, 5  ;;  %v2247_v30 = vrot.slane %v2245_v8, 4  ;;  %v3465_v26 = vrot.slane %v3463_v41, 5 }
 0x1e3   : > { %v3900_v4 = vmin.f32 %v3868_v37, 6.0  ;;  %v3770_v55 = vadd.f32 %v3691_v27, %v3116_v62  ;;  %4619 = vmatmul.msk.bf16.gmra.mxu1 %vm326_vm1, %v2394_v11  ;;  %4732 = vmatmul.msk.bf16.gmra.mxu2 %vm326_vm1, %v4993_v60  ;;  %v3469_v11 = vshll.u32 %v4886_v16, 16  ;;  %v3473_v60 = vshrl.u32 %v4886_v16, 16 }
 0x1e4   : > { %4845 = vmatmul.msk.bf16.gmra.mxu3 %vm326_vm1, %v5009_v23  ;;  %4910 = vmatmul.msk.bf16.gmra.mxu0 %vm326_vm1, %v3622_v48  ;;  %v3462_v37 = vrot.slane %v3460_v32, 4  ;;  %v2238_v8 = vor.u32 %v2237_v58, %v2234_v45  ;;  %v2248_v32 = vor.u32 %v2247_v30, %v5820_v33 }
 0x1e5   : > { %v3932_v27 = vmul.f32 %v3900_v4, %v3804_v36  ;;  %v3805_v7 = vadd.f32 %v5770_v38, %v3770_v55  ;;  %v2374_v36 = vunpack.c.l.b16 %v2230_v1  ;;  %v3601_v4 = vunpack.c.l.b16 %v3448_v24 }
 0x1e6   : > { %v2753_v34 = vpop.f32.mrf.mxu2  ;;  %v3602_v55 = vunpack.c.l.b16 %v3458_v22  ;;  %v5823_v9 = vrot.slane %v3469_v11, 5  ;;  %v3475_v16 = vrot.slane %v3473_v60, 4  ;;  %v3466_v22 = vor.u32 %v3465_v26, %v3462_v37  ;;  %v4597_v11 = vld [vmem:[%s5092_s28 + $0x228] sm:$0xf] }
 0x1e7   : > { %v3964_v13 = vmul.f32 0.16666667, %v3932_v27  ;;  %v3837_v47 = vadd.f32 3.0, %v3805_v7  ;;  %v2830_v23 = vadd.f32 %v2753_v34, %v2543_v53  ;;  %v3040_v48 = vpop.f32.mrf.mxu3  ;;  %v4887_v27 = vld [vmem:[%s5092_s28 + $0x98] sm:$0x1]  ;;  %v2251_v53 = vshll.u32 %v4596_v44, 16 }
 0x1e8   : > { %v2468_v28 = vpop.f32.mrf.mxu1  ;;  %v2395_v60 = vpack.c.b16 %v2374_v36, %v5802_v59  ;;  %v3479_v45 = vshll.u32 %v4887_v27, 16  ;;  %v2256_v44 = vshrl.u32 %v4597_v11, 16  ;;  %v2259_v26 = vshll.u32 %v4597_v11, 16  ;;  %v4888_v11 = vld [vmem:[%s5092_s28 + $0x9c] sm:$0xf] }
 0x1e9   : > { %v3996_v62 = vpack.c.bf16 %v3964_v13, %v3964_v13  ;;  %v3869_v12 = vmax.f32 %v3837_v47, 0.0  ;;  %v3117_v49 = vadd.f32 %v3040_v48, %v2830_v23  ;;  %v3696_v40 = vpop.f32.mrf.mxu0  ;;  %v2544_v24 = vadd.f32 %v2468_v28, %v5376_v18  ;;  %v4994_v47 = vld [vmem:[%s5092_s28 + $0x84] sm:$0xff]  ;;  %v5010_v18 = vld [vmem:[%s5092_s28 + $0x150] sm:$0xff] }
 0x1ea   : > { %v3623_v23 = vpack.c.b16 %v3602_v55, %v3601_v4  ;;  %v2249_v28 = vrot.slane %v2248_v32, 4  ;;  %v2253_v37 = vrot.slane %v2251_v53, 5  ;;  %v3467_v55 = vrot.slane %v3466_v22, 4 }
 0x1eb   : > { %4029 = vst.msk [vmem:[%s5818_s16] sm:$0xf] %vm4028_vm5, %v3996_v62  ;;  %v3901_v1 = vmin.f32 %v3869_v12, 6.0  ;;  %v3771_v5 = vadd.f32 %v3694_v43, %v3117_v49  ;;  %v3476_v43 = vor.u32 %v3475_v16, %v5823_v9  ;;  %v2239_v62 = vrot.slane %v2238_v8, 4  ;;  %v4598_v12 = vld [vmem:[%s5092_s28 + $0x22c] sm:$0xf] }
 0x1ec   : > { %v2265_v27 = vshll.u32 %v4598_v12, 16  ;;  %v2258_v53 = vrot.slane %v2256_v44, 4  ;;  %v2261_v22 = vrot.slane %v2259_v26, 5 }
 0x1ed   : > { %v3933_v34 = vmul.f32 %v3901_v1, %v3805_v7  ;;  %v3806_v41 = vadd.f32 %v5770_v38, %v3771_v5  ;;  %v3477_v16 = vrot.slane %v3476_v43, 4  ;;  %v3481_v5 = vrot.slane %v3479_v45, 5 }
 0x1ee   : > { %v2755_v13 = vpop.f32.mrf.mxu2  ;;  %v2244_v32 = vsel %vm5143_vm4, %v2239_v62, %v5820_v33 }
 0x1ef   : > { %v3965_v48 = vmul.f32 0.16666667, %v3933_v34  ;;  %v3838_v58 = vadd.f32 3.0, %v3806_v41  ;;  %v2831_v30 = vadd.f32 %v2755_v13, %v2544_v24  ;;  %v3042_v7 = vpop.f32.mrf.mxu3  ;;  %v2269_v34 = vshrl.u32 %v4598_v12, 16 }
 0x1f0   : > { %v2471_v49 = vpop.f32.mrf.mxu1  ;;  %v3482_v33 = vsel %vm5143_vm4, %v3477_v16, %v3481_v5  ;;  %v3484_v12 = vshrl.u32 %v4888_v11, 16 }
 0x1f1   : > { %v3997_v1 = vpack.c.bf16 %v3965_v48, %v3965_v48  ;;  %v3870_v59 = vmax.f32 %v3838_v58, 0.0  ;;  %v3118_v36 = vadd.f32 %v3042_v7, %v2831_v30  ;;  %v3699_v4 = vpop.f32.mrf.mxu0  ;;  %v5857_v48 = vrot.slane %v2265_v27, 5 }
 0x1f2   : > { %v2271_v58 = vrot.slane %v2269_v34, 4  ;;  %v3604_v5 = vunpack.c.l.b16 %v3482_v33 }
 0x1f3   : > { %4030 = vst.msk [vmem:[%s5818_s16 + $0x4] sm:$0xf] %vm4028_vm5, %v3997_v1  ;;  %v3902_v8 = vmin.f32 %v3870_v59, 6.0  ;;  %v3772_v24 = vadd.f32 %v3696_v40, %v3118_v36  ;;  %4620 = vmatmul.msk.bf16.gmra.mxu1 %vm326_vm1, %v2395_v60  ;;  %4733 = vmatmul.msk.bf16.gmra.mxu2 %vm326_vm1, %v4994_v47  ;;  %v2545_v40 = vadd.f32 %v2471_v49, %v5387_v29  ;;  %v4889_v47 = vld [vmem:[%s5092_s28 + $0xa0] sm:$0xf]  ;;  %v2375_v36 = vunpack.c.l.b16 %v2244_v32 }
 0x1f4   : > { %4846 = vmatmul.msk.bf16.gmra.mxu3 %vm326_vm1, %v5010_v18  ;;  %4911 = vmatmul.msk.bf16.gmra.mxu0 %vm326_vm1, %v3623_v23  ;;  %v2254_v60 = vsel %vm5143_vm4, %v2249_v28, %v2253_v37  ;;  %v3472_v23 = vsel %vm5143_vm4, %v3467_v55, %v5823_v9  ;;  %v4599_v29 = vld [vmem:[%s5092_s28 + $0x230] sm:$0x1]  ;;  %v2262_v18 = vor.u32 %v2261_v22, %v2258_v53  ;;  %v3487_v28 = vshll.u32 %v4888_v11, 16 }
 0x1f5   : > { %v3934_v13 = vmul.f32 %v3902_v8, %v3806_v41  ;;  %v3807_v43 = vadd.f32 %v5770_v38, %v3772_v24  ;;  %v3493_v37 = vshll.u32 %v4889_v47, 16  ;;  %v3497_v44 = vshrl.u32 %v4889_v47, 16 }
 0x1f6   : > { %v2758_v45 = vpop.f32.mrf.mxu2  ;;  %v2376_v55 = vunpack.c.l.b16 %v2254_v60  ;;  %v3603_v16 = vunpack.c.l.b16 %v3472_v23  ;;  %v2275_v27 = vshll.u32 %v4599_v29, 16  ;;  %v2272_v24 = vor.u32 %v2271_v58, %v5857_v48 }
 0x1f7   : > { %v3966_v41 = vmul.f32 0.16666667, %v3934_v13  ;;  %v3839_v30 = vadd.f32 3.0, %v3807_v43  ;;  %v2832_v7 = vadd.f32 %v2758_v45, %v2545_v40  ;;  %v3045_v62 = vpop.f32.mrf.mxu3  ;;  %v3486_v53 = vrot.slane %v3484_v12, 4  ;;  %v4890_v45 = vld [vmem:[%s5092_s28 + $0xa4] sm:$0x1] }
 0x1f8   : > { %v2473_v49 = vpop.f32.mrf.mxu1  ;;  %v2263_v22 = vrot.slane %v2262_v18, 4  ;;  %v3489_v11 = vrot.slane %v3487_v28, 5  ;;  %v5863_v13 = vrot.slane %v3493_v37, 5  ;;  %v3499_v40 = vrot.slane %v3497_v44, 4  ;;  %v4600_v18 = vld [vmem:[%s5092_s28 + $0x234] sm:$0xf] }
 0x1f9   : > { %v3998_v26 = vpack.c.bf16 %v3966_v41, %v3966_v41  ;;  %v3871_v9 = vmax.f32 %v3839_v30, 0.0  ;;  %v3119_v1 = vadd.f32 %v3045_v62, %v2832_v7  ;;  %v3701_v59 = vpop.f32.mrf.mxu0  ;;  %v2546_v47 = vadd.f32 %v2473_v49, %v5396_v54  ;;  %v4995_v41 = vld [vmem:[%s5092_s28 + $0x90] sm:$0xff]  ;;  %v5011_v28 = vld [vmem:[%s5092_s28 + $0x15c] sm:$0xff] }
 0x1fa   : > { %v2396_v33 = vpack.c.b16 %v2376_v55, %v2375_v36  ;;  %v2277_v30 = vrot.slane %v2275_v27, 5  ;;  %v2273_v12 = vrot.slane %v2272_v24, 4  ;;  %v2268_v54 = vsel %vm5143_vm4, %v2263_v22, %v5857_v48  ;;  %v4601_v55 = vld [vmem:[%s5092_s28 + $0x238] sm:$0xf]  ;;  %v4891_v24 = vld [vmem:[%s5092_s28 + $0xa8] sm:$0xf] }
 0x1fb   : > { %4031 = vst.msk [vmem:[%s5818_s16 + $0x8] sm:$0xf] %vm4028_vm5, %v3998_v26  ;;  %v3903_v34 = vmin.f32 %v3871_v9, 6.0  ;;  %v3773_v8 = vadd.f32 %v3699_v4, %v3119_v1  ;;  %v3624_v4 = vpack.c.b16 %v3604_v5, %v3603_v16  ;;  %v3490_v49 = vor.u32 %v3489_v11, %v3486_v53 }
 0x1fc   : > { %v3500_v37 = vor.u32 %v3499_v40, %v5863_v13  ;;  %v3503_v44 = vshll.u32 %v4890_v45, 16  ;;  %v2280_v16 = vshrl.u32 %v4600_v18, 16  ;;  %v2283_v5 = vshll.u32 %v4600_v18, 16 }
 0x1fd   : > { %v3935_v32 = vmul.f32 %v3903_v34, %v3807_v43  ;;  %v3808_v60 = vadd.f32 %v5770_v38, %v3773_v8  ;;  %v2278_v48 = vsel %vm5143_vm4, %v2273_v12, %v2277_v30  ;;  %v5882_v8 = vunpack.c.l.b16 %v2268_v54 }
 0x1fe   : > { %v2760_v23 = vpop.f32.mrf.mxu2  ;;  %v3491_v53 = vrot.slane %v3490_v49, 4  ;;  %v3501_v22 = vrot.slane %v3500_v37, 4  ;;  %v3505_v11 = vrot.slane %v3503_v44, 5  ;;  %v2289_v40 = vshll.u32 %v4601_v55, 16 }
 0x1ff   : > { %v3967_v58 = vmul.f32 0.16666667, %v3935_v32  ;;  %v3840_v7 = vadd.f32 3.0, %v3808_v60  ;;  %v2833_v62 = vadd.f32 %v2760_v23, %v2546_v47  ;;  %v3047_v29 = vpop.f32.mrf.mxu3  ;;  %v2293_v45 = vshrl.u32 %v4601_v55, 16  ;;  %v4892_v23 = vld [vmem:[%s5092_s28 + $0xac] sm:$0xf] }
 0x200   : > { %v2476_v43 = vpop.f32.mrf.mxu1  ;;  %v2285_v30 = vrot.slane %v2283_v5, 5  ;;  %v2378_v18 = vunpack.c.l.b16 %v2278_v48  ;;  %v3521_v54 = vshrl.u32 %v4892_v23, 16 }
 0x201   : > { %v3999_v26 = vpack.c.bf16 %v3967_v58, %v3967_v58  ;;  %v3872_v9 = vmax.f32 %v3840_v7, 0.0  ;;  %v3120_v1 = vadd.f32 %v3047_v29, %v2833_v62  ;;  %v3704_v36 = vpop.f32.mrf.mxu0  ;;  %v2547_v47 = vadd.f32 %v2476_v43, %v5407_v39 }
 0x202   : > { %v3508_v58 = vshrl.u32 %v4891_v24, 16  ;;  %v3511_v7 = vshll.u32 %v4891_v24, 16  ;;  %v3506_v39 = vsel %vm5143_vm4, %v3501_v22, %v3505_v11  ;;  %v3517_v43 = vshll.u32 %v4892_v23, 16  ;;  %v4603_v23 = vld [vmem:[%s5092_s28 + $0x240] sm:$0xf] }
 0x203   : > { %4032 = vst.msk [vmem:[%s5818_s16 + $0xc] sm:$0xf] %vm4028_vm5, %v3999_v26  ;;  %v3904_v27 = vmin.f32 %v3872_v9, 6.0  ;;  %v3774_v34 = vadd.f32 %v3701_v59, %v3120_v1  ;;  %4621 = vmatmul.msk.bf16.gmra.mxu1 %vm326_vm1, %v2396_v33  ;;  %4734 = vmatmul.msk.bf16.gmra.mxu2 %vm326_vm1, %v4995_v41  ;;  %v2282_v41 = vrot.slane %v2280_v16, 4  ;;  %v5895_v9 = vrot.slane %v2289_v40, 5 }
 0x204   : > { %4847 = vmatmul.msk.bf16.gmra.mxu3 %vm326_vm1, %v5011_v28  ;;  %4912 = vmatmul.msk.bf16.gmra.mxu0 %vm326_vm1, %v3624_v4  ;;  %v2295_v55 = vrot.slane %v2293_v45, 4  ;;  %v3510_v16 = vrot.slane %v3508_v58, 4  ;;  %v3513_v5 = vrot.slane %v3511_v7, 5  ;;  %v3606_v24 = vunpack.c.l.b16 %v3506_v39 }
 0x205   : > { %v3936_v59 = vmul.f32 %v3904_v27, %v3808_v60  ;;  %v3809_v32 = vadd.f32 %v5770_v38, %v3774_v34  ;;  %v3496_v60 = vsel %vm5143_vm4, %v3491_v53, %v5863_v13  ;;  %v2286_v1 = vor.u32 %v2285_v30, %v2282_v41  ;;  %v4602_v34 = vld [vmem:[%s5092_s28 + $0x23c] sm:$0x1]  ;;  %v4893_v53 = vld [vmem:[%s5092_s28 + $0xb0] sm:$0x1] }
 0x206   : > { %v2763_v33 = vpop.f32.mrf.mxu2  ;;  %v3605_v48 = vunpack.c.l.b16 %v3496_v60  ;;  %v5901_v22 = vrot.slane %v3517_v43, 5  ;;  %v3523_v11 = vrot.slane %v3521_v54, 4  ;;  %v2397_v45 = vpack.c.b16 %v2378_v18, %v5882_v8 }
 0x207   : > { %v3968_v62 = vmul.f32 0.16666667, %v3936_v59  ;;  %v3841_v29 = vadd.f32 3.0, %v3809_v32  ;;  %v2834_v12 = vadd.f32 %v2763_v33, %v2547_v47  ;;  %v3050_v4 = vpop.f32.mrf.mxu3  ;;  %v5907_v41 = vrot.slane %v2286_v1, 4 }
 0x208   : > { %v2478_v28 = vpop.f32.mrf.mxu1  ;;  %v2299_v30 = vshll.u32 %v4602_v34, 16  ;;  %v3514_v58 = vor.u32 %v3513_v5, %v3510_v16  ;;  %v3625_v8 = vpack.c.b16 %v3606_v24, %v3605_v48  ;;  %v3524_v18 = vor.u32 %v3523_v11, %v5901_v22  ;;  %v4894_v5 = vld [vmem:[%s5092_s28 + $0xb4] sm:$0xf]  ;;  %v4895_v24 = vld [vmem:[%s5092_s28 + $0xb8] sm:$0xf] }
 0x209   : > { %v4000_v49 = vpack.c.bf16 %v3968_v62, %v3968_v62  ;;  %v3873_v37 = vmax.f32 %v3841_v29, 0.0  ;;  %v3121_v44 = vadd.f32 %v3050_v4, %v2834_v12  ;;  %v3706_v26 = vpop.f32.mrf.mxu0  ;;  %v2548_v47 = vadd.f32 %v2478_v28, %v5415_v31  ;;  %v4996_v12 = vld [vmem:[%s5092_s28 + $0x9c] sm:$0xff]  ;;  %v5012_v28 = vld [vmem:[%s5092_s28 + $0x168] sm:$0xff] }
 0x20a   : > { %v3527_v4 = vshll.u32 %v4893_v53, 16  ;;  %v2304_v60 = vshrl.u32 %v4603_v23, 16  ;;  %v3515_v16 = vrot.slane %v3514_v58, 4  ;;  %v2292_v34 = vsel %vm5143_vm4, %v5907_v41, %v5895_v9 }
 0x20b   : > { %4033 = vst.msk [vmem:[%s5818_s16 + $0x10] sm:$0xf] %vm4028_vm5, %v4000_v49  ;;  %v3905_v13 = vmin.f32 %v3873_v37, 6.0  ;;  %v3775_v27 = vadd.f32 %v3704_v36, %v3121_v44  ;;  %v2296_v36 = vor.u32 %v2295_v55, %v5895_v9  ;;  %v4604_v37 = vld [vmem:[%s5092_s28 + $0x244] sm:$0xf]  ;;  %v2307_v44 = vshll.u32 %v4603_v23, 16 }
 0x20c   : > { %v2301_v55 = vrot.slane %v2299_v30, 5  ;;  %v3529_v48 = vrot.slane %v3527_v4, 5  ;;  %v3525_v53 = vrot.slane %v3524_v18, 4  ;;  %v2306_v11 = vrot.slane %v2304_v60, 4 }
 0x20d   : > { %v3937_v59 = vmul.f32 %v3905_v13, %v3809_v32  ;;  %v3810_v40 = vadd.f32 %v5770_v38, %v3775_v27  ;;  %v2297_v1 = vrot.slane %v2296_v36, 4  ;;  %v3532_v30 = vshrl.u32 %v4894_v5, 16 }
 0x20e   : > { %v2765_v33 = vpop.f32.mrf.mxu2  ;;  %v3535_v58 = vshll.u32 %v4894_v5, 16  ;;  %v3541_v9 = vshll.u32 %v4895_v24, 16  ;;  %v3545_v41 = vshrl.u32 %v4895_v24, 16  ;;  %v3530_v4 = vsel %vm5143_vm4, %v3525_v53, %v3529_v48 }
 0x20f   : > { %v3969_v7 = vmul.f32 0.16666667, %v3937_v59  ;;  %v3842_v62 = vadd.f32 3.0, %v3810_v40  ;;  %v2835_v29 = vadd.f32 %v2765_v33, %v2548_v47  ;;  %v3052_v32 = vpop.f32.mrf.mxu3  ;;  %v2313_v59 = vshll.u32 %v4604_v37, 16 }
 0x210   : > { %v2481_v31 = vpop.f32.mrf.mxu1  ;;  %v2317_v47 = vshrl.u32 %v4604_v37, 16  ;;  %v2309_v33 = vrot.slane %v2307_v44, 5  ;;  %v3534_v37 = vrot.slane %v3532_v30, 4  ;;  %v3537_v44 = vrot.slane %v3535_v58, 5 }
 0x211   : > { %v4001_v39 = vpack.c.bf16 %v3969_v7, %v3969_v7  ;;  %v3874_v43 = vmax.f32 %v3842_v62, 0.0  ;;  %v3122_v54 = vadd.f32 %v3052_v32, %v2835_v29  ;;  %v3709_v49 = vpop.f32.mrf.mxu0  ;;  %v2549_v23 = vadd.f32 %v2481_v31, %v5426_v57 }
 0x212   : > { %v3520_v57 = vsel %vm5143_vm4, %v3515_v16, %v5901_v22  ;;  %v2315_v31 = vrot.slane %v2313_v59, 5  ;;  %v2379_v5 = vunpack.c.l.b16 %v2292_v34  ;;  %v3608_v24 = vunpack.c.l.b16 %v3530_v4 }
 0x213   : > { %4034 = vst.msk [vmem:[%s5818_s16 + $0x14] sm:$0xf] %vm4028_vm5, %v4001_v39  ;;  %v3906_v13 = vmin.f32 %v3874_v43, 6.0  ;;  %v3776_v27 = vadd.f32 %v3706_v26, %v3122_v54  ;;  %4622 = vmatmul.msk.bf16.gmra.mxu1 %vm326_vm1, %v2397_v45  ;;  %4735 = vmatmul.msk.bf16.gmra.mxu2 %vm326_vm1, %v4996_v12  ;;  %v2302_v12 = vsel %vm5143_vm4, %v2297_v1, %v2301_v55  ;;  %v4605_v43 = vld [vmem:[%s5092_s28 + $0x248] sm:$0x1]  ;;  %v5936_v1 = vrot.slane %v3541_v9, 5 }
 0x214   : > { %4848 = vmatmul.msk.bf16.gmra.mxu3 %vm326_vm1, %v5012_v28  ;;  %4913 = vmatmul.msk.bf16.gmra.mxu0 %vm326_vm1, %v3625_v8  ;;  %v2319_v28 = vrot.slane %v2317_v47, 4  ;;  %v2310_v54 = vor.u32 %v2309_v33, %v2306_v11  ;;  %v3547_v55 = vrot.slane %v3545_v41, 4  ;;  %v3607_v48 = vunpack.c.l.b16 %v3520_v57 }
 0x215   : > { %v3938_v26 = vmul.f32 %v3906_v13, %v3810_v40  ;;  %v3811_v45 = vadd.f32 %v5770_v38, %v3776_v27  ;;  %v2380_v13 = vunpack.c.l.b16 %v2302_v12  ;;  %v4896_v27 = vld [vmem:[%s5092_s28 + $0xbc] sm:$0x1]  ;;  %v2323_v59 = vshll.u32 %v4605_v43, 16 }
 0x216   : > { %v2768_v36 = vpop.f32.mrf.mxu2  ;;  %v2320_v53 = vor.u32 %v2319_v28, %v2315_v31  ;;  %v2311_v33 = vrot.slane %v2310_v54, 4  ;;  %v3548_v30 = vor.u32 %v3547_v55, %v5936_v1  ;;  %v4607_v55 = vld [vmem:[%s5092_s28 + $0x250] sm:$0xf] }
 0x217   : > { %v3970_v7 = vmul.f32 0.16666667, %v3938_v26  ;;  %v3843_v62 = vadd.f32 3.0, %v3811_v45  ;;  %v2836_v29 = vadd.f32 %v2768_v36, %v2549_v23  ;;  %v3055_v32 = vpop.f32.mrf.mxu3  ;;  %v3538_v36 = vor.u32 %v3537_v44, %v3534_v37  ;;  %v4606_v44 = vld [vmem:[%s5092_s28 + $0x24c] sm:$0xf] }
 0x218   : > { %v2483_v40 = vpop.f32.mrf.mxu1  ;;  %v2321_v12 = vrot.slane %v2320_v53, 4  ;;  %v2325_v57 = vrot.slane %v2323_v59, 5  ;;  %v2328_v59 = vshrl.u32 %v4606_v44, 16 }
 0x219   : > { %v4002_v8 = vpack.c.bf16 %v3970_v7, %v3970_v7  ;;  %v3875_v18 = vmax.f32 %v3843_v62, 0.0  ;;  %v3123_v60 = vadd.f32 %v3055_v32, %v2836_v29  ;;  %v3711_v39 = vpop.f32.mrf.mxu0  ;;  %v2550_v26 = vadd.f32 %v2483_v40, %v5435_v46  ;;  %v4997_v62 = vld [vmem:[%s5092_s28 + $0xa8] sm:$0xff]  ;;  %v5013_v32 = vld [vmem:[%s5092_s28 + $0x174] sm:$0xff] }
 0x21a   : > { %v2398_v7 = vpack.c.b16 %v2380_v13, %v2379_v5 }
 0x21b   : > { %4035 = vst.msk [vmem:[%s5818_s16 + $0x18] sm:$0xf] %vm4028_vm5, %v4002_v8  ;;  %v3907_v22 = vmin.f32 %v3875_v18, 6.0  ;;  %v3777_v16 = vadd.f32 %v3709_v49, %v3123_v60  ;;  %v3551_v49 = vshll.u32 %v4896_v27, 16  ;;  %v2316_v8 = vsel %vm5143_vm4, %v2311_v33, %v2315_v31  ;;  %v4898_v27 = vld [vmem:[%s5092_s28 + $0xc4] sm:$0xf] }
 0x21c   : > { %v3539_v18 = vrot.slane %v3538_v36, 4  ;;  %v3549_v60 = vrot.slane %v3548_v30, 4  ;;  %v2326_v31 = vsel %vm5143_vm4, %v2321_v12, %v2325_v57  ;;  %v5960_v13 = vunpack.c.l.b16 %v2316_v8  ;;  %v4608_v12 = vld [vmem:[%s5092_s28 + $0x254] sm:$0x1] }
 0x21d   : > { %v3939_v47 = vmul.f32 %v3907_v22, %v3811_v45  ;;  %v3812_v11 = vadd.f32 %v5770_v38, %v3777_v16  ;;  %v3626_v45 = vpack.c.b16 %v3608_v24, %v3607_v48  ;;  %v3553_v43 = vrot.slane %v3551_v49, 5 }
 0x21e   : > { %v2770_v23 = vpop.f32.mrf.mxu2  ;;  %v3544_v24 = vsel %vm5143_vm4, %v3539_v18, %v5936_v1  ;;  %v2341_v30 = vshrl.u32 %v4607_v55, 16  ;;  %v2330_v57 = vrot.slane %v2328_v59, 4  ;;  %v4998_v59 = vld [vmem:[%s5092_s28 + $0xb4] sm:$0xff] }
 0x21f   : > { %v3971_v34 = vmul.f32 0.16666667, %v3939_v47  ;;  %v3844_v58 = vadd.f32 3.0, %v3812_v11  ;;  %v2837_v9 = vadd.f32 %v2770_v23, %v2550_v26  ;;  %v3057_v41 = vpop.f32.mrf.mxu3  ;;  %v3554_v53 = vsel %vm5143_vm4, %v3549_v60, %v3553_v43 }
 0x220   : > { %v2486_v29 = vpop.f32.mrf.mxu1  ;;  %v2331_v47 = vshll.u32 %v4606_v44, 16  ;;  %v2343_v18 = vrot.slane %v2341_v30, 4 }
 0x221   : > { %v4003_v46 = vpack.c.bf16 %v3971_v34, %v3971_v34  ;;  %v3876_v40 = vmax.f32 %v3844_v58, 0.0  ;;  %v3124_v4 = vadd.f32 %v3057_v41, %v2837_v9  ;;  %v3714_v28 = vpop.f32.mrf.mxu0  ;;  %v2551_v5 = vadd.f32 %v2486_v29, %v5446_v35 }
 0x222   : > { %v2337_v35 = vshll.u32 %v4607_v55, 16  ;;  %v3565_v58 = vshll.u32 %v4898_v27, 16  ;;  %v2382_v29 = vunpack.c.l.b16 %v2326_v31  ;;  %v4899_v55 = vld [vmem:[%s5092_s28 + $0xc8] sm:$0x1] }
 0x223   : > { %4036 = vst.msk [vmem:[%s5818_s16 + $0x1c] sm:$0xf] %vm4028_vm5, %v4003_v46  ;;  %v3908_v54 = vmin.f32 %v3876_v40, 6.0  ;;  %v3778_v37 = vadd.f32 %v3711_v39, %v3124_v4  ;;  %4623 = vmatmul.msk.bf16.gmra.mxu1 %vm326_vm1, %v2398_v7  ;;  %4736 = vmatmul.msk.bf16.gmra.mxu2 %vm326_vm1, %v4997_v62  ;;  %v4897_v39 = vld [vmem:[%s5092_s28 + $0xc0] sm:$0xf]  ;;  %v3569_v62 = vshrl.u32 %v4898_v27, 16 }
 0x224   : > { %4849 = vmatmul.msk.bf16.gmra.mxu3 %vm326_vm1, %v5013_v32  ;;  %4914 = vmatmul.msk.bf16.gmra.mxu0 %vm326_vm1, %v3626_v45  ;;  %v3556_v49 = vshrl.u32 %v4897_v39, 16  ;;  %v3559_v34 = vshll.u32 %v4897_v39, 16  ;;  %v3609_v32 = vunpack.c.l.b16 %v3544_v24  ;;  %v3610_v45 = vunpack.c.l.b16 %v3554_v53 }
 0x225   : > { %v3940_v22 = vmul.f32 %v3908_v54, %v3812_v11  ;;  %v3813_v16 = vadd.f32 %v5770_v38, %v3778_v37  ;;  %v2333_v4 = vrot.slane %v2331_v47, 5  ;;  %v5972_v8 = vrot.slane %v2337_v35, 5 }
 0x226   : > { %v2773_v48 = vpop.f32.mrf.mxu2  ;;  %v3558_v60 = vrot.slane %v3556_v49, 4  ;;  %v3561_v43 = vrot.slane %v3559_v34, 5  ;;  %v3567_v54 = vrot.slane %v3565_v58, 5  ;;  %v2399_v39 = vpack.c.b16 %v2382_v29, %v5960_v13 }
 0x227   : > { %v3972_v26 = vmul.f32 0.16666667, %v3940_v22  ;;  %v3845_v11 = vadd.f32 3.0, %v3813_v16  ;;  %v2838_v23 = vadd.f32 %v2773_v48, %v2551_v5  ;;  %v3060_v33 = vpop.f32.mrf.mxu3  ;;  %v3571_v22 = vrot.slane %v3569_v62, 4 }
 0x228   : > { %v2488_v36 = vpop.f32.mrf.mxu1  ;;  %v3627_v47 = vpack.c.b16 %v3610_v45, %v3609_v32 }
 0x229   : > { %v4004_v9 = vpack.c.bf16 %v3972_v26, %v3972_v26  ;;  %v3877_v41 = vmax.f32 %v3845_v11, 0.0  ;;  %v3125_v1 = vadd.f32 %v3060_v33, %v2838_v23  ;;  %v3716_v7 = vpop.f32.mrf.mxu0  ;;  %v2552_v31 = vadd.f32 %v2488_v36, %v5458_v6  ;;  %v5014_v11 = vld [vmem:[%s5092_s28 + $0x180] sm:$0xff] }
 0x22a   : > { %v2344_v23 = vor.u32 %v2343_v18, %v5972_v8  ;;  %v3562_v33 = vor.u32 %v3561_v43, %v3558_v60  ;;  %v3575_v6 = vshll.u32 %v4899_v55, 16  ;;  %v3572_v13 = vor.u32 %v3571_v22, %v3567_v54 }
 0x22b   : > { %4037 = vst.msk [vmem:[%s5818_s16 + $0x20] sm:$0xf] %vm4028_vm5, %v4004_v9  ;;  %v3909_v46 = vmin.f32 %v3877_v41, 6.0  ;;  %v3779_v40 = vadd.f32 %v3714_v28, %v3125_v1  ;;  %v2347_v28 = vshll.u32 %v4608_v12, 16 }
 0x22c   : > { %v2345_v1 = vrot.slane %v2344_v23, 4  ;;  %v3563_v62 = vrot.slane %v3562_v33, 4  ;;  %v3577_v29 = vrot.slane %v3575_v6, 5  ;;  %v4999_v33 = vld [vmem:[%s5092_s28 + $0xc0] sm:$0xff] }
 0x22d   : > { %v3941_v37 = vmul.f32 %v3909_v46, %v3813_v16  ;;  %v3814_v44 = vadd.f32 %v5770_v38, %v3779_v40  ;;  %v2334_v16 = vor.u32 %v2333_v4, %v2330_v57  ;;  %v2349_v9 = vrot.slane %v2347_v28, 5 }
 0x22e   : > { %v2775_v5 = vpop.f32.mrf.mxu2 }
 0x22f   : > { %v3973_v27 = vmul.f32 0.16666667, %v3941_v37  ;;  %v3846_v48 = vadd.f32 3.0, %v3814_v44  ;;  %v2839_v24 = vadd.f32 %v2775_v5, %v2552_v31  ;;  %v3062_v53 = vpop.f32.mrf.mxu3  ;;  %v2335_v41 = vrot.slane %v2334_v16, 4 }
 0x230   : > { %v2491_v26 = vpop.f32.mrf.mxu1  ;;  %v2350_v37 = vsel %vm5143_vm4, %v2345_v1, %v2349_v9  ;;  %v6104_v1 = vld [vmem:[#allocation2_spill] sm:$0xff] }
 0x231   : > { %v4005_v35 = vpack.c.bf16 %v3973_v27, %v3973_v27  ;;  %v3878_v36 = vmax.f32 %v3846_v48, 0.0  ;;  %v3126_v30 = vadd.f32 %v3062_v53, %v2839_v24  ;;  %v3719_v49 = vpop.f32.mrf.mxu0  ;;  %v2553_v12 = vadd.f32 %v2491_v26, %v5469_v2 }
 0x232   : > { %v2340_v43 = vsel %vm5143_vm4, %v2335_v41, %v5972_v8  ;;  %v2384_v27 = vunpack.c.l.b16 %v2350_v37 }
 0x233   : > { %4038 = vst.msk [vmem:[%s5818_s16 + $0x24] sm:$0xf] %vm4028_vm5, %v4005_v35  ;;  %v3910_v34 = vmin.f32 %v3878_v36, 6.0  ;;  %v3780_v58 = vadd.f32 %v3716_v7, %v3126_v30  ;;  %4624 = vmatmul.msk.bf16.gmra.mxu1 %vm326_vm1, %v2399_v39  ;;  %4737 = vmatmul.msk.bf16.gmra.mxu2 %vm326_vm1, %v4998_v59  ;;  %v3573_v7 = vrot.slane %v3572_v13, 4  ;;  %v2383_v8 = vunpack.c.l.b16 %v2340_v43  ;;  %v5015_v35 = vld [vmem:[%s5092_s28 + $0x18c] sm:$0xff] }
 0x234   : > { %4850 = vmatmul.msk.bf16.gmra.mxu3 %vm326_vm1, %v5014_v11  ;;  %4915 = vmatmul.msk.bf16.gmra.mxu0 %vm326_vm1, %v3627_v47 }
 0x235   : > { %v3942_v32 = vmul.f32 %v3910_v34, %v3814_v44  ;;  %v3815_v45 = vadd.f32 %v5770_v38, %v3780_v58  ;;  %v3568_v44 = vsel %vm5143_vm4, %v3563_v62, %v3567_v54  ;;  %v3578_v5 = vsel %vm5143_vm4, %v3573_v7, %v3577_v29 }
 0x236   : > { %v2778_v57 = vpop.f32.mrf.mxu2  ;;  %v3611_v48 = vunpack.c.l.b16 %v3568_v44  ;;  %v3612_v24 = vunpack.c.l.b16 %v3578_v5  ;;  %v2400_v23 = vpack.c.b16 %v2384_v27, %v2383_v8 }
 0x237   : > { %v3974_v46 = vmul.f32 0.16666667, %v3942_v32  ;;  %v3847_v40 = vadd.f32 3.0, %v3815_v45  ;;  %v2840_v4 = vadd.f32 %v2778_v57, %v2553_v12  ;;  %v3065_v18 = vpop.f32.mrf.mxu3 }
 0x238   : > { %v2493_v60 = vpop.f32.mrf.mxu1  ;;  %v3628_v36 = vpack.c.b16 %v3612_v24, %v3611_v48 }
 0x239   : > { %v4006_v31 = vpack.c.bf16 %v3974_v46, %v3974_v46  ;;  %v3879_v2 = vmax.f32 %v3847_v40, 0.0  ;;  %v3127_v55 = vadd.f32 %v3065_v18, %v2840_v4  ;;  %v3721_v22 = vpop.f32.mrf.mxu0  ;;  %v2554_v59 = vadd.f32 %v2493_v60, %v5478_v56 }
 0x23b   : > { %4039 = vst.msk [vmem:[%s5818_s16 + $0x28] sm:$0xf] %vm4028_vm5, %v4006_v31  ;;  %v3911_v39 = vmin.f32 %v3879_v2, 6.0  ;;  %v3781_v28 = vadd.f32 %v3719_v49, %v3127_v55  ;;  %v6105_v31 = vld [vmem:[#allocation3_spill] sm:$0xff] }
 0x23d   : > { %v3943_v53 = vmul.f32 %v3911_v39, %v3815_v45  ;;  %v3816_v54 = vadd.f32 %v5770_v38, %v3781_v28 }
 0x23e   : > { %v2780_v47 = vpop.f32.mrf.mxu2 }
 0x23f   : > { %v3975_v26 = vmul.f32 0.16666667, %v3943_v53  ;;  %v3848_v51 = vadd.f32 3.0, %v3816_v54  ;;  %v2841_v11 = vadd.f32 %v2780_v47, %v2554_v59  ;;  %v3067_v16 = vpop.f32.mrf.mxu3 }
 0x240   : > { %v2496_v6 = vpop.f32.mrf.mxu1 }
 0x241   : > { %v4007_v30 = vpack.c.bf16 %v3975_v26, %v3975_v26  ;;  %v3880_v49 = vmax.f32 %v3848_v51, 0.0  ;;  %v3128_v13 = vadd.f32 %v3067_v16, %v2841_v11  ;;  %v3724_v34 = vpop.f32.mrf.mxu0  ;;  %v2555_v62 = vadd.f32 %v2496_v6, %v6104_v1 }
 0x243   : > { %4040 = vst.msk [vmem:[%s5818_s16 + $0x2c] sm:$0xf] %vm4028_vm5, %v4007_v30  ;;  %v3912_v58 = vmin.f32 %v3880_v49, 6.0  ;;  %v3782_v9 = vadd.f32 %v3721_v22, %v3128_v13  ;;  %4625 = vmatmul.msk.bf16.gmra.mxu1 %vm326_vm1, %v2400_v23  ;;  %4738 = vmatmul.msk.bf16.gmra.mxu2 %vm326_vm1, %v4999_v33 }
 0x244   : > { %4851 = vmatmul.msk.bf16.gmra.mxu3 %vm326_vm1, %v5015_v35  ;;  %4916 = vmatmul.msk.bf16.gmra.mxu0 %vm326_vm1, %v3628_v36 }
 0x245   : > { %v3944_v56 = vmul.f32 %v3912_v58, %v3816_v54  ;;  %v3817_v41 = vadd.f32 %v5770_v38, %v3782_v9  ;;  %v6017_v38 = vld [vmem:[%s6097_s2] ss:$0 sm:$0xff] }
 0x246   : > { %v2783_v29 = vpop.f32.mrf.mxu2 }
 0x247   : > { %v3976_v32 = vmul.f32 0.16666667, %v3944_v56  ;;  %v3849_v45 = vadd.f32 3.0, %v3817_v41  ;;  %v2842_v12 = vadd.f32 %v2783_v29, %v2555_v62  ;;  %v3070_v7 = vpop.f32.mrf.mxu3 }
 0x248   : > { %v2498_v57 = vpop.f32.mrf.mxu1 }
 0x249   : > { %v4008_v46 = vpack.c.bf16 %v3976_v32, %v3976_v32  ;;  %v3881_v40 = vmax.f32 %v3849_v45, 0.0  ;;  %v3129_v4 = vadd.f32 %v3070_v7, %v2842_v12  ;;  %v3726_v18 = vpop.f32.mrf.mxu0  ;;  %v2556_v2 = vadd.f32 %v2498_v57, %v6105_v31 }
 0x24b   : > { %4041 = vst.msk [vmem:[%s5818_s16 + $0x30] sm:$0xf] %vm4028_vm5, %v4008_v46  ;;  %v3913_v60 = vmin.f32 %v3881_v40, 6.0  ;;  %v3783_v43 = vadd.f32 %v3724_v34, %v3129_v4 }
 0x24d   : > { %v3945_v37 = vmul.f32 %v3913_v60, %v3817_v41  ;;  %v3818_v44 = vadd.f32 %v6017_v38, %v3783_v43 }
 0x24e   : > { %v2785_v55 = vpop.f32.mrf.mxu2 }
 0x24f   : > { %v3977_v22 = vmul.f32 0.16666667, %v3945_v37  ;;  %v3850_v5 = vadd.f32 3.0, %v3818_v44  ;;  %v2843_v39 = vadd.f32 %v2785_v55, %v2556_v2  ;;  %v3072_v28 = vpop.f32.mrf.mxu3 }
 0x250   : > { %v2501_v8 = vpop.f32.mrf.mxu1 }
 0x251   : > { %v4009_v27 = vpack.c.bf16 %v3977_v22, %v3977_v22  ;;  %v3882_v48 = vmax.f32 %v3850_v5, 0.0  ;;  %v3130_v24 = vadd.f32 %v3072_v28, %v2843_v39  ;;  %v3729_v53 = vpop.f32.mrf.mxu0  ;;  %v2557_v51 = vadd.f32 %v2501_v8, %v5528_v25 }
 0x253   : > { %4042 = vst.msk [vmem:[%s5818_s16 + $0x34] sm:$0xf] %vm4028_vm5, %v4009_v27  ;;  %v3914_v54 = vmin.f32 %v3882_v48, 6.0  ;;  %v3784_v59 = vadd.f32 %v3726_v18, %v3130_v24 }
 0x255   : > { %v3946_v47 = vmul.f32 %v3914_v54, %v3818_v44  ;;  %v3819_v26 = vadd.f32 %v6017_v38, %v3784_v59 }
 0x256   : > { %v2788_v11 = vpop.f32.mrf.mxu2 }
 0x257   : > { %v3978_v16 = vmul.f32 0.16666667, %v3946_v47  ;;  %v3851_v23 = vadd.f32 3.0, %v3819_v26  ;;  %v2844_v33 = vadd.f32 %v2788_v11, %v2557_v51  ;;  %v3075_v6 = vpop.f32.mrf.mxu3 }
 0x258   : > { %v2503_v35 = vpop.f32.mrf.mxu1 }
 0x259   : > { %v4010_v36 = vpack.c.bf16 %v3978_v16, %v3978_v16  ;;  %v3883_v30 = vmax.f32 %v3851_v23, 0.0  ;;  %v3131_v49 = vadd.f32 %v3075_v6, %v2844_v33  ;;  %v3731_v13 = vpop.f32.mrf.mxu0  ;;  %v2558_v25 = vadd.f32 %v2503_v35, %v5537_v10 }
 0x25b   : > { %4043 = vst.msk [vmem:[%s5818_s16 + $0x38] sm:$0xf] %vm4028_vm5, %v4010_v36  ;;  %v3915_v34 = vmin.f32 %v3883_v30, 6.0  ;;  %v3785_v58 = vadd.f32 %v3729_v53, %v3131_v49 }
 0x25d   : > { %v3947_v9 = vmul.f32 %v3915_v34, %v3819_v26  ;;  %v3820_v56 = vadd.f32 %v6017_v38, %v3785_v58 }
 0x25e   : > { %v2790_v41 = vpop.f32.mrf.mxu2 }
 0x25f   : > { %v3979_v1 = vmul.f32 0.16666667, %v3947_v9  ;;  %v3852_v62 = vadd.f32 3.0, %v3820_v56  ;;  %v2845_v29 = vadd.f32 %v2790_v41, %v2558_v25  ;;  %v3077_v32 = vpop.f32.mrf.mxu3 }
 0x260   : > { %v2506_v45 = vpop.f32.mrf.mxu1 }
 0x261   : > { %v4011_v12 = vpack.c.bf16 %v3979_v1, %v3979_v1  ;;  %v3884_v7 = vmax.f32 %v3852_v62, 0.0  ;;  %v3132_v57 = vadd.f32 %v3077_v32, %v2845_v29  ;;  %v3734_v46 = vpop.f32.mrf.mxu0  ;;  %v2559_v10 = vadd.f32 %v2506_v45, %v5557_v52 }
 0x263   : > { %4044 = vst.msk [vmem:[%s5818_s16 + $0x3c] sm:$0xf] %vm4028_vm5, %v4011_v12  ;;  %v3916_v40 = vmin.f32 %v3884_v7, 6.0  ;;  %v3786_v4 = vadd.f32 %v3731_v13, %v3132_v57 }
 0x265   : > { %v3948_v18 = vmul.f32 %v3916_v40, %v3820_v56  ;;  %v3821_v60 = vadd.f32 %v6017_v38, %v3786_v4 }
 0x266   : > { %v2793_v43 = vpop.f32.mrf.mxu2 }
 0x267   : > { %v3980_v37 = vmul.f32 0.16666667, %v3948_v18  ;;  %v3853_v44 = vadd.f32 3.0, %v3821_v60  ;;  %v2846_v31 = vadd.f32 %v2793_v43, %v2559_v10  ;;  %v3080_v2 = vpop.f32.mrf.mxu3 }
 0x268   : > { %v2508_v55 = vpop.f32.mrf.mxu1 }
 0x269   : > { %v4012_v22 = vpack.c.bf16 %v3980_v37, %v3980_v37  ;;  %v3885_v5 = vmax.f32 %v3853_v44, 0.0  ;;  %v3133_v39 = vadd.f32 %v3080_v2, %v2846_v31  ;;  %v3736_v28 = vpop.f32.mrf.mxu0  ;;  %v2560_v52 = vadd.f32 %v2508_v55, %v5570_v14 }
 0x26b   : > { %4045 = vst.msk [vmem:[%s5818_s16 + $0x40] sm:$0xf] %vm4028_vm5, %v4012_v22  ;;  %v3917_v8 = vmin.f32 %v3885_v5, 6.0  ;;  %v3787_v27 = vadd.f32 %v3734_v46, %v3133_v39 }
 0x26d   : > { %v3949_v48 = vmul.f32 %v3917_v8, %v3821_v60  ;;  %v3822_v24 = vadd.f32 %v6017_v38, %v3787_v27 }
 0x26e   : > { %v2795_v53 = vpop.f32.mrf.mxu2 }
 0x26f   : > { %v3981_v54 = vmul.f32 0.16666667, %v3949_v48  ;;  %v3854_v59 = vadd.f32 3.0, %v3822_v24  ;;  %v2847_v47 = vadd.f32 %v2795_v53, %v2560_v52  ;;  %v3082_v26 = vpop.f32.mrf.mxu3 }
 0x270   : > { %v2511_v51 = vpop.f32.mrf.mxu1 }
 0x271   : > { %v4013_v11 = vpack.c.bf16 %v3981_v54, %v3981_v54  ;;  %v3886_v16 = vmax.f32 %v3854_v59, 0.0  ;;  %v3134_v23 = vadd.f32 %v3082_v26, %v2847_v47  ;;  %v3739_v33 = vpop.f32.mrf.mxu0  ;;  %v2561_v14 = vadd.f32 %v2511_v51, %v5588_v15 }
 0x273   : > { %4046 = vst.msk [vmem:[%s5818_s16 + $0x44] sm:$0xf] %vm4028_vm5, %v4013_v11  ;;  %v3918_v6 = vmin.f32 %v3886_v16, 6.0  ;;  %v3788_v35 = vadd.f32 %v3736_v28, %v3134_v23 }
 0x275   : > { %v3950_v36 = vmul.f32 %v3918_v6, %v3822_v24  ;;  %v3823_v30 = vadd.f32 %v6017_v38, %v3788_v35 }
 0x276   : > { %v2798_v49 = vpop.f32.mrf.mxu2 }
 0x277   : > { %v3982_v13 = vmul.f32 0.16666667, %v3950_v36  ;;  %v3855_v34 = vadd.f32 3.0, %v3823_v30  ;;  %v2848_v58 = vadd.f32 %v2798_v49, %v2561_v14  ;;  %v3085_v9 = vpop.f32.mrf.mxu3 }
 0x278   : > { %v2513_v56 = vpop.f32.mrf.mxu1 }
 0x279   : > { %v4014_v25 = vpack.c.bf16 %v3982_v13, %v3982_v13  ;;  %v3887_v41 = vmax.f32 %v3855_v34, 0.0  ;;  %v3135_v1 = vadd.f32 %v3085_v9, %v2848_v58  ;;  %v3741_v62 = vpop.f32.mrf.mxu0  ;;  %v2562_v15 = vadd.f32 %v2513_v56, %v5598_v0 }
 0x27b   : > { %4047 = vst.msk [vmem:[%s5818_s16 + $0x48] sm:$0xf] %vm4028_vm5, %v4014_v25  ;;  %v3919_v29 = vmin.f32 %v3887_v41, 6.0  ;;  %v3789_v32 = vadd.f32 %v3739_v33, %v3135_v1 }
 0x27d   : > { %v3951_v45 = vmul.f32 %v3919_v29, %v3823_v30  ;;  %v3824_v12 = vadd.f32 %v6017_v38, %v3789_v32 }
 0x27e   : > { %v2800_v7 = vpop.f32.mrf.mxu2 }
 0x27f   : > { %v3983_v57 = vmul.f32 0.16666667, %v3951_v45  ;;  %v3856_v46 = vadd.f32 3.0, %v3824_v12  ;;  %v2849_v40 = vadd.f32 %v2800_v7, %v2562_v15  ;;  %v3087_v4 = vpop.f32.mrf.mxu3 }
 0x280   : > { %v2516_v18 = vpop.f32.mrf.mxu1 }
 0x281   : > { %v4015_v60 = vpack.c.bf16 %v3983_v57, %v3983_v57  ;;  %v3888_v10 = vmax.f32 %v3856_v46, 0.0  ;;  %v3136_v43 = vadd.f32 %v3087_v4, %v2849_v40  ;;  %v3744_v37 = vpop.f32.mrf.mxu0  ;;  %v2563_v0 = vadd.f32 %v2516_v18, %v5620_v42 }
 0x283   : > { %4048 = vst.msk [vmem:[%s5818_s16 + $0x4c] sm:$0xf] %vm4028_vm5, %v4015_v60  ;;  %v3920_v44 = vmin.f32 %v3888_v10, 6.0  ;;  %v3790_v31 = vadd.f32 %v3741_v62, %v3136_v43 }
 0x285   : > { %v3952_v2 = vmul.f32 %v3920_v44, %v3824_v12  ;;  %v3825_v55 = vadd.f32 %v6017_v38, %v3790_v31 }
 0x286   : > { %v2803_v22 = vpop.f32.mrf.mxu2 }
 0x287   : > { %v3984_v5 = vmul.f32 0.16666667, %v3952_v2  ;;  %v3857_v39 = vadd.f32 3.0, %v3825_v55  ;;  %v2850_v28 = vadd.f32 %v2803_v22, %v2563_v0  ;;  %v3090_v8 = vpop.f32.mrf.mxu3 }
 0x288   : > { %v2518_v27 = vpop.f32.mrf.mxu1 }
 0x289   : > { %v4016_v48 = vpack.c.bf16 %v3984_v5, %v3984_v5  ;;  %v3889_v24 = vmax.f32 %v3857_v39, 0.0  ;;  %v3137_v52 = vadd.f32 %v3090_v8, %v2850_v28  ;;  %v3746_v53 = vpop.f32.mrf.mxu0  ;;  %v2564_v42 = vadd.f32 %v2518_v27, %v5633_v50 }
 0x28b   : > { %4049 = vst.msk [vmem:[%s5818_s16 + $0x50] sm:$0xf] %vm4028_vm5, %v4016_v48  ;;  %v3921_v54 = vmin.f32 %v3889_v24, 6.0  ;;  %v3791_v59 = vadd.f32 %v3744_v37, %v3137_v52 }
 0x28d   : > { %v3953_v47 = vmul.f32 %v3921_v54, %v3825_v55  ;;  %v3826_v26 = vadd.f32 %v6017_v38, %v3791_v59 }
 0x28e   : > { %v2805_v51 = vpop.f32.mrf.mxu2 }
 0x28f   : > { %v3985_v11 = vmul.f32 0.16666667, %v3953_v47  ;;  %v3858_v16 = vadd.f32 3.0, %v3826_v26  ;;  %v2851_v23 = vadd.f32 %v2805_v51, %v2564_v42  ;;  %v3092_v33 = vpop.f32.mrf.mxu3 }
 0x290   : > { %v2521_v6 = vpop.f32.mrf.mxu1 }
 0x291   : > { %v4017_v35 = vpack.c.bf16 %v3985_v11, %v3985_v11  ;;  %v3890_v36 = vmax.f32 %v3858_v16, 0.0  ;;  %v3138_v30 = vadd.f32 %v3092_v33, %v2851_v23  ;;  %v3749_v14 = vpop.f32.mrf.mxu0  ;;  %v2565_v50 = vadd.f32 %v2521_v6, %v5652_v19 }
 0x293   : > { %4050 = vst.msk [vmem:[%s5818_s16 + $0x54] sm:$0xf] %vm4028_vm5, %v4017_v35  ;;  %v3922_v49 = vmin.f32 %v3890_v36, 6.0  ;;  %v3792_v13 = vadd.f32 %v3746_v53, %v3138_v30 }
 0x295   : > { %v3954_v34 = vmul.f32 %v3922_v49, %v3826_v26  ;;  %v3827_v58 = vadd.f32 %v6017_v38, %v3792_v13 }
 0x296   : > { %v2808_v9 = vpop.f32.mrf.mxu2 }
 0x297   : > { %v3986_v56 = vmul.f32 0.16666667, %v3954_v34  ;;  %v3859_v25 = vadd.f32 3.0, %v3827_v58  ;;  %v2852_v41 = vadd.f32 %v2808_v9, %v2565_v50  ;;  %v3095_v1 = vpop.f32.mrf.mxu3 }
 0x298   : > { %v2523_v62 = vpop.f32.mrf.mxu1 }
 0x299   : > { %v4018_v29 = vpack.c.bf16 %v3986_v56, %v3986_v56  ;;  %v3891_v32 = vmax.f32 %v3859_v25, 0.0  ;;  %v3139_v45 = vadd.f32 %v3095_v1, %v2852_v41  ;;  %v3751_v12 = vpop.f32.mrf.mxu0  ;;  %v2566_v19 = vadd.f32 %v2523_v62, %v5663_v21 }
 0x29b   : > { %4051 = vst.msk [vmem:[%s5818_s16 + $0x58] sm:$0xf] %vm4028_vm5, %v4018_v29  ;;  %v3923_v15 = vmin.f32 %v3891_v32, 6.0  ;;  %v3793_v7 = vadd.f32 %v3749_v14, %v3139_v45 }
 0x29d   : > { %v3955_v57 = vmul.f32 %v3923_v15, %v3827_v58  ;;  %v3828_v46 = vadd.f32 %v6017_v38, %v3793_v7 }
 0x29e   : > { %v2810_v40 = vpop.f32.mrf.mxu2 }
 0x29f   : > { %v3987_v4 = vmul.f32 0.16666667, %v3955_v57  ;;  %v3860_v18 = vadd.f32 3.0, %v3828_v46  ;;  %v2853_v60 = vadd.f32 %v2810_v40, %v2566_v19  ;;  %v3097_v10 = vpop.f32.mrf.mxu3 }
 0x2a0   : > { %v2526_v43 = vpop.f32.mrf.mxu1 }
 0x2a1   : > { %v4019_v37 = vpack.c.bf16 %v3987_v4, %v3987_v4  ;;  %v3892_v44 = vmax.f32 %v3860_v18, 0.0  ;;  %v3140_v31 = vadd.f32 %v3097_v10, %v2853_v60  ;;  %v3754_v2 = vpop.f32.mrf.mxu0  ;;  %v2567_v21 = vadd.f32 %v2526_v43, %v5680_v20 }
 0x2a3   : > { %4052 = vst.msk [vmem:[%s5818_s16 + $0x5c] sm:$0xf] %vm4028_vm5, %v4019_v37  ;;  %v3924_v55 = vmin.f32 %v3892_v44, 6.0  ;;  %v3794_v0 = vadd.f32 %v3751_v12, %v3140_v31 }
 0x2a5   : > { %v3956_v22 = vmul.f32 %v3924_v55, %v3828_v46  ;;  %v3829_v5 = vadd.f32 %v6017_v38, %v3794_v0 }
 0x2a6   : > { %v2813_v39 = vpop.f32.mrf.mxu2 }
 0x2a7   : > { %v3988_v28 = vmul.f32 0.16666667, %v3956_v22  ;;  %v3861_v8 = vadd.f32 3.0, %v3829_v5  ;;  %v2854_v27 = vadd.f32 %v2813_v39, %v2567_v21  ;;  %v3100_v48 = vpop.f32.mrf.mxu3  ;;  %v6106_v22 = vld [vmem:[#allocation4_spill] sm:$0xff] }
 0x2a8   : > { %v2528_v24 = vpop.f32.mrf.mxu1 }
 0x2a9   : > { %v4020_v52 = vpack.c.bf16 %v3988_v28, %v3988_v28  ;;  %v3893_v53 = vmax.f32 %v3861_v8, 0.0  ;;  %v3141_v54 = vadd.f32 %v3100_v48, %v2854_v27  ;;  %v3756_v59 = vpop.f32.mrf.mxu0  ;;  %v2568_v20 = vadd.f32 %v2528_v24, %v5690_v61 }
 0x2ab   : > { %4053 = vst.msk [vmem:[%s5818_s16 + $0x60] sm:$0xf] %vm4028_vm5, %v4020_v52  ;;  %v3925_v47 = vmin.f32 %v3893_v53, 6.0  ;;  %v3795_v26 = vadd.f32 %v3754_v2, %v3141_v54 }
 0x2ad   : > { %v3957_v42 = vmul.f32 %v3925_v47, %v3829_v5  ;;  %v3830_v51 = vadd.f32 %v6017_v38, %v3795_v26 }
 0x2ae   : > { %v2815_v11 = vpop.f32.mrf.mxu2 }
 0x2af   : > { %v3989_v16 = vmul.f32 0.16666667, %v3957_v42  ;;  %v3862_v23 = vadd.f32 3.0, %v3830_v51  ;;  %v2855_v33 = vadd.f32 %v2815_v11, %v2568_v20  ;;  %v3102_v6 = vpop.f32.mrf.mxu3 }
 0x2b0   : > { %v2531_v35 = vpop.f32.mrf.mxu1 }
 0x2b1   : > { %v4021_v36 = vpack.c.bf16 %v3989_v16, %v3989_v16  ;;  %v3894_v30 = vmax.f32 %v3862_v23, 0.0  ;;  %v3142_v14 = vadd.f32 %v3102_v6, %v2855_v33  ;;  %v3759_v34 = vpop.f32.mrf.mxu0  ;;  %v2569_v61 = vadd.f32 %v2531_v35, %v5708_v63 }
 0x2b3   : > { %4054 = vst.msk [vmem:[%s5818_s16 + $0x64] sm:$0xf] %vm4028_vm5, %v4021_v36  ;;  %v3926_v49 = vmin.f32 %v3894_v30, 6.0  ;;  %v3796_v13 = vadd.f32 %v3756_v59, %v3142_v14 }
 0x2b5   : > { %v3958_v58 = vmul.f32 %v3926_v49, %v3830_v51  ;;  %v3831_v50 = vadd.f32 %v6017_v38, %v3796_v13 }
 0x2b6   : > { %v2818_v9 = vpop.f32.mrf.mxu2 }
 0x2b7   : > { %v3990_v56 = vmul.f32 0.16666667, %v3958_v58  ;;  %v3863_v25 = vadd.f32 3.0, %v3831_v50  ;;  %v2856_v41 = vadd.f32 %v2818_v9, %v2569_v61  ;;  %v3105_v1 = vpop.f32.mrf.mxu3 }
 0x2b8   : > { %v2533_v62 = vpop.f32.mrf.mxu1 }
 0x2b9   : > { %v4022_v29 = vpack.c.bf16 %v3990_v56, %v3990_v56  ;;  %v3895_v32 = vmax.f32 %v3863_v25, 0.0  ;;  %v3143_v45 = vadd.f32 %v3105_v1, %v2856_v41  ;;  %v2570_v46 = vadd.f32 %v2533_v62, %v5718_v17  ;;  %v3761_v63 = vpop.f32.mrf.mxu0 }
 0x2bb   : > { %4055 = vst.msk [vmem:[%s5818_s16 + $0x68] sm:$0xf] %vm4028_vm5, %v4022_v29  ;;  %v3927_v12 = vmin.f32 %v3895_v32, 6.0  ;;  %v3797_v15 = vadd.f32 %v3759_v34, %v3143_v45 }
 0x2bd   : > { %v3959_v7 = vmul.f32 %v3927_v12, %v3831_v50  ;;  %v3832_v57 = vadd.f32 %v6017_v38, %v3797_v15 }
 0x2be   : > { %v2820_v19 = vpop.f32.mrf.mxu2 }
 0x2bf   : > { %v3991_v40 = vmul.f32 0.16666667, %v3959_v7  ;;  %v3864_v4 = vadd.f32 3.0, %v3832_v57  ;;  %v2857_v18 = vadd.f32 %v2820_v19, %v2570_v46  ;;  %v3107_v60 = vpop.f32.mrf.mxu3 }
 0x2c0   : > { %v2536_v10 = vpop.f32.mrf.mxu1 }
 0x2c1   : > { %v4023_v43 = vpack.c.bf16 %v3991_v40, %v3991_v40  ;;  %v3896_v37 = vmax.f32 %v3864_v4, 0.0  ;;  %v3144_v44 = vadd.f32 %v3107_v60, %v2857_v18  ;;  %v2571_v17 = vadd.f32 %v2536_v10, %v6106_v22  ;;  %v3764_v27 = vpop.f32.mrf.mxu0 }
 0x2c3   : > { %4056 = vst.msk [vmem:[%s5818_s16 + $0x6c] sm:$0xf] %vm4028_vm5, %v4023_v43  ;;  %v3928_v31 = vmin.f32 %v3896_v37, 6.0  ;;  %v3798_v2 = vadd.f32 %v3761_v63, %v3144_v44 }
 0x2c5   : > { %v3960_v55 = vmul.f32 %v3928_v31, %v3832_v57  ;;  %v3833_v0 = vadd.f32 %v6017_v38, %v3798_v2 }
 0x2c6   : > { %v2823_v5 = vpop.f32.mrf.mxu2 }
 0x2c7   : > { %v3992_v21 = vmul.f32 0.16666667, %v3960_v55  ;;  %v3865_v39 = vadd.f32 3.0, %v3833_v0  ;;  %v2858_v28 = vadd.f32 %v2823_v5, %v2571_v17  ;;  %v3110_v8 = vpop.f32.mrf.mxu3 }
 0x2c8   : > { %v2538_v53 = vpop.f32.mrf.mxu1 }
 0x2c9   : > { %v4024_v48 = vpack.c.bf16 %v3992_v21, %v3992_v21  ;;  %v3897_v24 = vmax.f32 %v3865_v39, 0.0  ;;  %v3145_v52 = vadd.f32 %v3110_v8, %v2858_v28  ;;  %v2572_v42 = vadd.f32 %v2538_v53, %v5754_v3  ;;  %v3766_v36 = vpop.f32.mrf.mxu0 }
 0x2cb   : > { %4057 = vst.msk [vmem:[%s5818_s16 + $0x70] sm:$0xf] %vm4028_vm5, %v4024_v48  ;;  %v3929_v54 = vmin.f32 %v3897_v24, 6.0  ;;  %v3799_v59 = vadd.f32 %v3764_v27, %v3145_v52 }
 0x2cd   : > { %v3961_v47 = vmul.f32 %v3929_v54, %v3833_v0  ;;  %v3834_v26 = vadd.f32 %v6017_v38, %v3799_v59 }
 0x2ce   : > { %v2825_v51 = vpop.f32.mrf.mxu2 }
 0x2cf   : > { %v3993_v20 = vmul.f32 0.16666667, %v3961_v47  ;;  %v3866_v11 = vadd.f32 3.0, %v3834_v26  ;;  %v2859_v16 = vadd.f32 %v2825_v51, %v2572_v42  ;;  %v3112_v23 = vpop.f32.mrf.mxu3 }
 0x2d1   : > { %v4025_v33 = vpack.c.bf16 %v3993_v20, %v3993_v20  ;;  %v3898_v6 = vmax.f32 %v3866_v11, 0.0  ;;  %v3146_v35 = vadd.f32 %v3112_v23, %v2859_v16 }
 0x2d3   : > { %4058 = vst.msk [vmem:[%s5818_s16 + $0x74] sm:$0xf] %vm4028_vm5, %v4025_v33  ;;  %v3930_v30 = vmin.f32 %v3898_v6, 6.0  ;;  %v3800_v14 = vadd.f32 %v3766_v36, %v3146_v35 }
 0x2d5   : > { %v3962_v49 = vmul.f32 %v3930_v30, %v3834_v26  ;;  %v3835_v13 = vadd.f32 %v6017_v38, %v3800_v14 }
 0x2d7   : > { %v3994_v34 = vmul.f32 0.16666667, %v3962_v49  ;;  %v3867_v3 = vadd.f32 3.0, %v3835_v13 }
 0x2d9   : > { %v4026_v58 = vpack.c.bf16 %v3994_v34, %v3994_v34  ;;  %v3899_v50 = vmax.f32 %v3867_v3, 0.0 }
 0x2db   : > { %4059 = vst.msk [vmem:[%s5818_s16 + $0x78] sm:$0xf] %vm4028_vm5, %v4026_v58  ;;  %v3931_v61 = vmin.f32 %v3899_v50, 6.0 }
 0x2dd   : > { %v3963_v9 = vmul.f32 %v3931_v61, %v3835_v13 }
 0x2df   : > { %v3995_v56 = vmul.f32 0.16666667, %v3963_v9 }
 0x2e1   : > { %v4027_v25 = vpack.c.bf16 %v3995_v56, %v3995_v56 }
 0x2e3   : > { %4060 = vst.msk [vmem:[%s5818_s16 + $0x7c] sm:$0xf] %vm4028_vm5, %v4027_v25 }
 0x2e4 PF: > { %s13_s12 = sadd.s32 1, %s5036_s12  }
 0x2e5   : > { %p10_p5 = scmp.ge.s32.totalorder %s13_s12, 4  }
 0x2e7   :  { %12 = sbr.rel (!%p10_p5) target bundleno = 1 (0x1), region = 75 }

// kernel: model_forward.22
= control target key start
LH: loop header
LB: loop body
LE: loop exit
PB: predicated region body
PF: predicated region fallthrough
CT: control target
= control target key end

     0   :  { %vm52_vm0 = vcmask 523264   ;;  %vm75_vm1 = vcmask 257024   ;;  %s144_s1 = inlined_call_operand.vmem [shape: bf16[64,32], index: 1, kind: input, shape index: {}]   ;;  %s145_s2 = inlined_call_operand.vmem [shape: f32[1,32], index: 2, kind: input, shape index: {}]   ;;  %s146_s0 = inlined_call_operand.vmem [shape: bf16[8,64], index: 0, kind: input, shape index: {}]   ;;  %s147_s3 = inlined_call_operand.vmem [shape: bf16[8,32], index: 3, kind: output, shape index: {}]  }
   0x1   :  { %v101_v0 = vld [vmem:[%s144_s1 + $0x18] sm:$0xff]  ;;  %v100_v1 = vld [vmem:[%s144_s1 + $0x10] sm:$0xff]  ;;  %v99_v2 = vld [vmem:[%s144_s1 + $0x8] sm:$0xff] }
   0x2   :  { %60 = vmatpush.bf16.msra.mxu0 %v101_v0  ;;  %v98_v3 = vld [vmem:[%s144_s1] sm:$0xff] }
   0x3   :  { %v15_v4 = vld [vmem:[%s146_s0] sm:$0xf] }
   0x4   :  { %v102_v5 = vld [vmem:[%s145_s2] ss:$0 sm:$0xff] }
   0x6   :  { %61 = vmatpush.bf16.msra.mxu0 %v100_v1 }
   0xa   :  { %62 = vmatpush.bf16.msra.mxu0 %v99_v2 }
   0xe   :  { %63 = vmatpush.bf16.msra.mxu0 %v98_v3 }
  0x11   :  { %97 = vmatmul.msk.bf16.vlgmr.msra.gmra.mxu0 %vm52_vm0, %v15_v4 }
  0x8e   :  { %v65_v6 = vpop.f32.mrf.mxu0 }
  0x8f   :  { %v66_v7 = vadd.f32 %v102_v5, %v65_v6 }
  0x91   :  { %v69_v8 = vadd.f32 3.0, %v66_v7 }
  0x93   :  { %v70_v9 = vmax.f32 %v69_v8, 0.0 }
  0x95   :  { %v71_v10 = vmin.f32 %v70_v9, 6.0 }
  0x96   :  { %v67_v11 = vpop.f32.mrf.mxu0 }
  0x97   :  { %v72_v12 = vmul.f32 %v71_v10, %v66_v7 }
  0x99   :  { %v73_v13 = vmul.f32 0.16666667, %v72_v12 }
  0x9b   :  { %v74_v14 = vpack.c.bf16 %v73_v13, %v73_v13 }
  0x9d   :  { %76 = vst.msk [vmem:[%s147_s3] sm:$0xf] %vm75_vm1, %v74_v14 }

// kernel: model_forward.19
= control target key start
LH: loop header
LB: loop body
LE: loop exit
PB: predicated region body
PF: predicated region fallthrough
CT: control target
= control target key end

     0   :  { %s982_s12 = smov 0   ;;  %s1154_s0 = inlined_call_operand.vmem [shape: bf16[8,3,3,32], index: 0, kind: input, shape index: {}]   ;;  %s1155_s1 = inlined_call_operand.vmem [shape: bf16[9,32,64], index: 1, kind: input, shape index: {}]   ;;  %s1156_s2 = inlined_call_operand.vmem [shape: f32[1,64], index: 2, kind: input, shape index: {}]   ;;  %s1157_s3 = inlined_call_operand.vmem [shape: bf16[2,2,2,64], index: 3, kind: output, shape index: {}]  }
   0x1 LB: > { %s988_s13 = sadd.s32 4294967295, %s960_s12   ;;  %p787_p0 = scmp.ge.s32.totalorder %s960_s12, 1  ;;  %s960_s12 = sphi %s982_s12, %s13_s12  }
   0x2   : > { %p139_p1 = scmp.lt.s32.totalorder %s960_s12, 3 }
   0x4   : > { %p140_p2 = pnand %p787_p0, %p139_p1 }
   0x5   : > { %s788_s18 = sshll.u32 (!%p140_p2), %s988_s13, 2  ;;  %p170_p4 = scmp.lt.s32.totalorder (!%p140_p2), %s988_s13, 1 }
   0x6   : > { %143 = sbr.rel (%p140_p2) target bundleno = 242 (0xf2), region = 32  ;;  %p164_p3 = scmp.lt.s32.totalorder (!%p140_p2), %s788_s18, 7 }
   0xb   : > { %v929_v0 = vld [vmem:[%s1155_s1 + $0x18] sm:$0xff]  ;;  %v927_v1 = vld [vmem:[%s1155_s1 + $0x8] sm:$0xff]  ;;  %v928_v4 = vld [vmem:[%s1155_s1 + $0x10] sm:$0xff]  ;;  %s1165_s18 = smov (!%p164_p3, %s788_s18), 7  ;;  %vm297_vm0 = vsmask.f32 256 }
   0xc   : > { %v931_v2 = vld [vmem:[%s1155_s1 + $0x28] sm:$0xff]  ;;  %v933_v3 = vld [vmem:[%s1155_s1 + $0x38] sm:$0xff]  ;;  %217 = vmatpush.bf16.msra.mxu0 %v929_v0  ;;  %250 = vmatpush.bf16.msra.mxu1 %v927_v1  ;;  %v926_v5 = vld [vmem:[%s1155_s1] sm:$0xff]  ;;  %vm298_vm1 = vsmask.f32 1284  ;;  %s944_s4 = smul.u32 6, %s1165_s18 }
   0xd   : > { %v930_v6 = vld [vmem:[%s1155_s1 + $0x20] sm:$0xff]  ;;  %359 = vmatpush.bf16.msra.mxu2 %v931_v2  ;;  %401 = vmatpush.bf16.msra.mxu3 %v933_v3  ;;  %v932_v7 = vld [vmem:[%s1155_s1 + $0x30] sm:$0xff]  ;;  %vm299_vm2 = vmor %vm297_vm0, %vm298_vm1  ;;  %vm300_vm3 = vsmask.f32 2312  ;;  %vm302_vm5 = vsmask.f32 3340 }
   0xe   : > { %vm301_vm4 = vmor %vm299_vm2, %vm300_vm3  ;;  %s1020_s7 = scalar_lea.vmem %s1154_s0, %s944_s4  ;;  %vm267_vm6 = vcmask 1040384   ;;  %vm271_vm7 = vcmask 1042434   ;;  %vm277_vm8 = vcmask 1041409   ;;  %vm279_vm9 = vcmask 1043459   ;;  %v935_v21 = vld [vmem:[%s1155_s1 + $0x48] sm:$0xff]  ;;  %v937_v22 = vld [vmem:[%s1155_s1 + $0x58] sm:$0xff] }
   0xf   : > { %v791_v8 = vld [vmem:[%s1020_s7 + $0x6] sm:$0x1]  ;;  %v792_v9 = vld [vmem:[%s1020_s7 + $0x8] sm:$0x1]  ;;  %vm281_vm10 = vcmask 1042433   ;;  %vm303_vm11 = vmor %vm301_vm4, %vm302_vm5  ;;  %vm208_vm15 = vcmask 261120  }
  0x10   : > { %218 = vmatpush.bf16.msra.mxu0 %v928_v4  ;;  %251 = vmatpush.bf16.msra.mxu1 %v926_v5  ;;  %191 = vst [vmem:[#allocation1] ss:$9 sm:$0xff] %v791_v8  ;;  %v257_v10 = vld [vmem:[%s1020_s7] sm:$0x3]  ;;  %vm304_vm12 = vsmask.f32 4368 }
  0x11   : > { %360 = vmatpush.bf16.msra.mxu2 %v930_v6  ;;  %402 = vmatpush.bf16.msra.mxu3 %v932_v7  ;;  %194 = vst [vmem:[#allocation1 + $0x1] ss:$9 sm:$0xff] %v792_v9  ;;  %v258_v11 = vld [vmem:[%s1020_s7 + $0x2] sm:$0x3]  ;;  %v261_v12 = vrot.slane %v257_v10, 1  ;;  %v262_v13 = vrot.slane %v257_v10, 2  ;;  %vm1027_vm13 = vmor %vm303_vm11, %vm304_vm12 }
  0x12   : > { %v263_v14 = vrot.slane %v257_v10, 3  ;;  %v264_v15 = vrot.slane %v258_v11, 1  ;;  %v265_v16 = vrot.slane %v258_v11, 2  ;;  %v266_v17 = vrot.slane %v258_v11, 3  ;;  %v176_v23 = vld [vmem:[%s1020_s7] sm:$0x1] }
  0x13   : > { %v278_v18 = vsel %vm277_vm8, %v257_v10, %v261_v12  ;;  %vm306_vm14 = vsmask.f32 5396  ;;  %vm275_vm0 = vcmask 1041408   ;;  %v270_v24 = vsel %vm267_vm6, %v257_v10, %v261_v12  ;;  %v934_v32 = vld [vmem:[%s1155_s1 + $0x40] sm:$0xff]  ;;  %v936_v33 = vld [vmem:[%s1155_s1 + $0x50] sm:$0xff]  ;;  %v939_v46 = vld [vmem:[%s1155_s1 + $0x68] sm:$0xff] }
  0x14   : > { %v280_v20 = vsel %vm279_vm9, %v262_v13, %v263_v14  ;;  %v274_v25 = vsel %vm271_vm7, %v262_v13, %v263_v14  ;;  %v292_v27 = vsel %vm277_vm8, %v258_v11, %v264_v15  ;;  %v287_v28 = vsel %vm267_vm6, %v258_v11, %v264_v15  ;;  %vm1048_vm1 = vmor %vm1027_vm13, %vm306_vm14  ;;  %443 = vmatpush.bf16.msrb.mxu0 %v935_v21  ;;  %v177_v34 = vld [vmem:[%s1020_s7 + $0x2] sm:$0x1]  ;;  %v860_v50 = vld [vmem:[%s1020_s7 + $0xc] sm:$0x3]  ;;  %s1167_s13 = smov (!%p170_p4, %s988_s13), 1 }
  0x15   : > { %v282_v26 = vsel %vm281_vm10, %v278_v18, %v280_v20  ;;  %v290_v29 = vsel %vm271_vm7, %v265_v16, %v266_v17  ;;  %v293_v30 = vsel %vm279_vm9, %v265_v16, %v266_v17  ;;  %vm308_vm2 = vsmask.f32 6424  ;;  %532 = vmatpush.bf16.msrb.mxu1 %v937_v22  ;;  %574 = vmatpush.bf16.msrb.mxu2 %v939_v46  ;;  %v861_v51 = vld [vmem:[%s1020_s7 + $0xe] sm:$0x3]  ;;  %v941_v52 = vld [vmem:[%s1155_s1 + $0x78] sm:$0xff]  ;;  %v938_v53 = vld [vmem:[%s1155_s1 + $0x60] sm:$0xff] }
  0x16   : > { %v284_v35 = vrot.slane %v282_v26, 1  ;;  %v294_v36 = vsel %vm281_vm10, %v292_v27, %v293_v30  ;;  %v276_v38 = vsel %vm275_vm0, %v270_v24, %v274_v25  ;;  %v291_v40 = vsel %vm275_vm0, %v287_v28, %v290_v29  ;;  %vm309_vm3 = vmor %vm1048_vm1, %vm308_vm2  ;;  %v830_v54 = vld [vmem:[%s1020_s7 + $0xc] sm:$0x1]  ;;  %v831_v58 = vld [vmem:[%s1020_s7 + $0xe] sm:$0x1]  ;;  %616 = vmatpush.bf16.msrb.mxu3 %v941_v52  ;;  %s790_s5 = sshll.u32 %s1167_s13, 1 }
  0x17   : > { %v296_v39 = vrot.slane %v294_v36, 1  ;;  %vm310_vm4 = vsmask.f32 7452  ;;  %v312_v41 = vshrl.u32 %v276_v38, 16  ;;  %v320_v44 = vshrl.u32 %v291_v40, 16  ;;  %v940_v7 = vld [vmem:[%s1155_s1 + $0x70] sm:$0xff]  ;;  %s173_s8 = scalar_lea.vmem %s1157_s3, %s790_s5 }
  0x18   : > { %v195_v37 = vld [vmem:[#allocation1] sm:$0xff]  ;;  %444 = vmatpush.bf16.msrb.mxu0 %v934_v32  ;;  %v317_v42 = vshll.u32 %v284_v35, 16  ;;  %vm1065_vm5 = vmor %vm309_vm3, %vm310_vm4  ;;  %v455_v55 = vrot.slane %v860_v50, 1  ;;  %v456_v56 = vrot.slane %v860_v50, 2  ;;  %v457_v57 = vrot.slane %v860_v50, 3  ;;  %v943_v8 = vld [vmem:[%s1155_s1 + $0x88] sm:$0xff] }
  0x19   : > { %805 = vmatmul.msk.bf16.vlgmr.msra.gmra.mxu0 %vm208_vm15, %v195_v37  ;;  %225 = vst [vmem:[#allocation1] ss:$9 sm:$0xff] %v176_v23  ;;  %533 = vmatpush.bf16.msrb.mxu1 %v936_v33  ;;  %v325_v45 = vshll.u32 %v296_v39, 16  ;;  %v458_v59 = vrot.slane %v861_v51, 1  ;;  %v459_v60 = vrot.slane %v861_v51, 2  ;;  %v460_v61 = vrot.slane %v861_v51, 3 }
  0x1a   : > { %228 = vst [vmem:[#allocation1 + $0x1] ss:$9 sm:$0xff] %v177_v34  ;;  %v319_v47 = vsel %vm1065_vm5, %v312_v41, %v317_v42  ;;  %575 = vmatpush.bf16.msrb.mxu2 %v938_v53  ;;  %v468_v63 = vsel %vm277_vm8, %v860_v50, %v455_v55  ;;  %v469_v0 = vsel %vm279_vm9, %v456_v56, %v457_v57  ;;  %v845_v9 = vld [vmem:[%s1020_s7 + $0x12] sm:$0x1]  ;;  %v846_v12 = vld [vmem:[%s1020_s7 + $0x14] sm:$0x1] }
  0x1b   : > { %v327_v48 = vsel %vm1065_vm5, %v320_v44, %v325_v45  ;;  %v480_v1 = vsel %vm277_vm8, %v861_v51, %v458_v59  ;;  %v481_v2 = vsel %vm279_vm9, %v459_v60, %v460_v61  ;;  %v470_v3 = vsel %vm281_vm10, %v468_v63, %v469_v0  ;;  %617 = vmatpush.bf16.msrb.mxu3 %v940_v7  ;;  %v942_v22 = vld [vmem:[%s1155_s1 + $0x80] sm:$0xff]  ;;  %v892_v46 = vld [vmem:[%s1020_s7 + $0x8] sm:$0x1] }
  0x1c   : > { %v463_v4 = vsel %vm267_vm6, %v860_v50, %v455_v55  ;;  %v466_v5 = vsel %vm271_vm7, %v456_v56, %v457_v57  ;;  %v482_v6 = vsel %vm281_vm10, %v480_v1, %v481_v2  ;;  %v475_v10 = vsel %vm267_vm6, %v861_v51, %v458_v59  ;;  %705 = vmatpush.bf16.msra.mxu0 %v943_v8  ;;  %v907_v26 = vld [vmem:[%s1020_s7 + $0x2] sm:$0x3]  ;;  %v908_v27 = vld [vmem:[%s1020_s7 + $0x4] sm:$0x3] }
  0x1d   : > { %v478_v11 = vsel %vm271_vm7, %v459_v60, %v460_v61  ;;  %v472_v13 = vrot.slane %v470_v3, 1  ;;  %v467_v15 = vsel %vm275_vm0, %v463_v4, %v466_v5  ;;  %v484_v16 = vrot.slane %v482_v6, 1  ;;  %v877_v28 = vld [vmem:[%s1020_s7 + $0x2] sm:$0x1]  ;;  %v878_v32 = vld [vmem:[%s1020_s7 + $0x4] sm:$0x1] }
  0x1e   : > { %v479_v17 = vsel %vm275_vm0, %v475_v10, %v478_v11  ;;  %v485_v18 = vshrl.u32 %v467_v15, 16  ;;  %v628_v29 = vrot.slane %v907_v26, 1  ;;  %v629_v30 = vrot.slane %v907_v26, 2 }
  0x1f   : > { %v490_v19 = vshll.u32 %v472_v13, 16  ;;  %v493_v20 = vshrl.u32 %v479_v17, 16  ;;  %v498_v21 = vshll.u32 %v484_v16, 16  ;;  %v630_v31 = vrot.slane %v907_v26, 3 }
  0x20   : > { %706 = vmatpush.bf16.msra.mxu0 %v942_v22  ;;  %v631_v33 = vrot.slane %v908_v27, 1  ;;  %v632_v34 = vrot.slane %v908_v27, 2  ;;  %v633_v35 = vrot.slane %v908_v27, 3  ;;  %v641_v37 = vsel %vm277_vm8, %v907_v26, %v628_v29 }
  0x21   : > { %v229_v49 = vld [vmem:[#allocation1] sm:$0xff]  ;;  %v492_v23 = vsel %vm1065_vm5, %v485_v18, %v490_v19  ;;  %v500_v24 = vsel %vm1065_vm5, %v493_v20, %v498_v21  ;;  %v642_v38 = vsel %vm279_vm9, %v629_v30, %v630_v31  ;;  %v636_v42 = vsel %vm267_vm6, %v907_v26, %v628_v29 }
  0x22   : > { %814 = vmatmul.msk.bf16.vlgmr.msra.gmra.mxu1 %vm208_vm15, %v229_v49  ;;  %334 = vst [vmem:[#allocation1] ss:$9 sm:$0xff] %v319_v47  ;;  %v653_v39 = vsel %vm277_vm8, %v908_v27, %v631_v33  ;;  %v654_v40 = vsel %vm279_vm9, %v632_v34, %v633_v35  ;;  %v643_v41 = vsel %vm281_vm10, %v641_v37, %v642_v38  ;;  %v893_v49 = vld [vmem:[%s1020_s7 + $0xa] sm:$0x1]  ;;  %v953_v20 = vld [vmem:[%s1156_s2] ss:$0 sm:$0xff] }
  0x23   : > { %337 = vst [vmem:[#allocation1 + $0x1] ss:$9 sm:$0xff] %v327_v48  ;;  %v639_v44 = vsel %vm271_vm7, %v629_v30, %v630_v31  ;;  %v655_v45 = vsel %vm281_vm10, %v653_v39, %v654_v40  ;;  %v648_v47 = vsel %vm267_vm6, %v908_v27, %v631_v33  ;;  %v651_v48 = vsel %vm271_vm7, %v632_v34, %v633_v35 }
  0x24   : > { %v645_v50 = vrot.slane %v643_v41, 1  ;;  %v640_v52 = vsel %vm275_vm0, %v636_v42, %v639_v44  ;;  %v657_v53 = vrot.slane %v655_v45, 1  ;;  %vm727_vm6 = vcmask 516096  }
  0x25   : > { %v658_v55 = vshrl.u32 %v640_v52, 16 }
  0x26   : > { %v663_v56 = vshll.u32 %v645_v50, 16 }
  0x28   : > { %v665_v59 = vsel %vm1065_vm5, %v658_v55, %v663_v56 }
  0x2a   : > { %v338_v62 = vld [vmem:[#allocation1] sm:$0xff] }
  0x2b   : > { %829 = vmatmul.msk.bf16.vlgmr.msra.gmra.mxu2 %vm208_vm15, %v338_v62  ;;  %376 = vst [vmem:[#allocation1] ss:$9 sm:$0xff] %v830_v54  ;;  %v652_v54 = vsel %vm275_vm0, %v648_v47, %v651_v48 }
  0x2c   : > { %379 = vst [vmem:[#allocation1 + $0x1] ss:$9 sm:$0xff] %v831_v58  ;;  %v666_v57 = vshrl.u32 %v652_v54, 16  ;;  %v671_v58 = vshll.u32 %v657_v53, 16 }
  0x2e   : > { %v673_v60 = vsel %vm1065_vm5, %v666_v57, %v671_v58 }
  0x33   : > { %v380_v14 = vld [vmem:[#allocation1] sm:$0xff] }
  0x34   : > { %844 = vmatmul.msk.bf16.vlgmr.msra.gmra.mxu3 %vm208_vm15, %v380_v14  ;;  %418 = vst [vmem:[#allocation1] ss:$9 sm:$0xff] %v845_v9 }
  0x35   : > { %421 = vst [vmem:[#allocation1 + $0x1] ss:$9 sm:$0xff] %v846_v12 }
  0x3c   : > { %v422_v25 = vld [vmem:[#allocation1] sm:$0xff] }
  0x3d   : > { %859 = vmatmul.msk.bf16.vlgmr.msrb.gmra.mxu0 %vm208_vm15, %v422_v25  ;;  %507 = vst [vmem:[#allocation1] ss:$9 sm:$0xff] %v492_v23 }
  0x3e   : > { %510 = vst [vmem:[#allocation1 + $0x1] ss:$9 sm:$0xff] %v500_v24 }
  0x45   : > { %v511_v36 = vld [vmem:[#allocation1] sm:$0xff] }
  0x46   : > { %876 = vmatmul.msk.bf16.vlgmr.msrb.gmra.mxu1 %vm208_vm15, %v511_v36  ;;  %549 = vst [vmem:[#allocation1] ss:$9 sm:$0xff] %v877_v28 }
  0x47   : > { %552 = vst [vmem:[#allocation1 + $0x1] ss:$9 sm:$0xff] %v878_v32 }
  0x4e   : > { %v553_v51 = vld [vmem:[#allocation1] sm:$0xff] }
  0x4f   : > { %891 = vmatmul.msk.bf16.vlgmr.msrb.gmra.mxu2 %vm208_vm15, %v553_v51  ;;  %591 = vst [vmem:[#allocation1] ss:$9 sm:$0xff] %v892_v46 }
  0x50   : > { %594 = vst [vmem:[#allocation1 + $0x1] ss:$9 sm:$0xff] %v893_v49 }
  0x57   : > { %v595_v61 = vld [vmem:[#allocation1] sm:$0xff] }
  0x58   : > { %906 = vmatmul.msk.bf16.vlgmr.msrb.gmra.mxu3 %vm208_vm15, %v595_v61  ;;  %680 = vst [vmem:[#allocation1] ss:$9 sm:$0xff] %v665_v59 }
  0x59   : > { %683 = vst [vmem:[#allocation1 + $0x1] ss:$9 sm:$0xff] %v673_v60 }
  0x60   : > { %v684_v62 = vld [vmem:[#allocation1] sm:$0xff] }
  0x61   : > { %923 = vmatmul.msk.bf16.vlgmr.msra.gmra.mxu0 %vm208_vm15, %v684_v62 }
  0x96   : > { %v220_v63 = vpop.f32.mrf.mxu0 }
  0x9e   : > { %v222_v0 = vpop.f32.mrf.mxu0 }
  0x9f   : > { %v253_v1 = vpop.f32.mrf.mxu1 }
  0xa0   : > { %v254_v9 = vadd.f32 %v253_v1, %v220_v63 }
  0xa7   : > { %v255_v2 = vpop.f32.mrf.mxu1 }
  0xae   : > { %v362_v3 = vpop.f32.mrf.mxu2 }
  0xaf   : > { %v366_v11 = vadd.f32 %v362_v3, %v254_v9 }
  0xb6   : > { %v364_v4 = vpop.f32.mrf.mxu2 }
  0xb7   : > { %v404_v5 = vpop.f32.mrf.mxu3 }
  0xb8   : > { %v408_v12 = vadd.f32 %v404_v5, %v366_v11 }
  0xba   : > { %v446_v6 = vpop.f32.mrf.mxu0 }
  0xbb   : > { %v450_v14 = vadd.f32 %v446_v6, %v408_v12 }
  0xbf   : > { %v406_v7 = vpop.f32.mrf.mxu3 }
  0xc2   : > { %v448_v8 = vpop.f32.mrf.mxu0 }
  0xc3   : > { %v535_v43 = vpop.f32.mrf.mxu1 }
  0xc4   : > { %v539_v15 = vadd.f32 %v535_v43, %v450_v14 }
  0xcb   : > { %v537_v10 = vpop.f32.mrf.mxu1 }
  0xd2   : > { %v577_v13 = vpop.f32.mrf.mxu2 }
  0xd3   : > { %v581_v16 = vadd.f32 %v577_v13, %v539_v15 }
  0xda   : > { %v579_v17 = vpop.f32.mrf.mxu2 }
  0xdb   : > { %v619_v18 = vpop.f32.mrf.mxu3 }
  0xdc   : > { %v623_v19 = vadd.f32 %v619_v18, %v581_v16 }
  0xde   : > { %v708_v21 = vpop.f32.mrf.mxu0 }
  0xdf   : > { %v712_v22 = vadd.f32 %v708_v21, %v623_v19 }
  0xe1   : > { %v716_v23 = vadd.f32 %v953_v20, %v712_v22 }
  0xe3   : > { %v717_v24 = vadd.f32 3.0, %v716_v23  ;;  %v621_v25 = vpop.f32.mrf.mxu3 }
  0xe5   : > { %v718_v26 = vmax.f32 %v717_v24, 0.0 }
  0xe6   : > { %v710_v27 = vpop.f32.mrf.mxu0 }
  0xe7   : > { %v719_v28 = vmin.f32 %v718_v26, 6.0 }
  0xe9   : > { %v720_v29 = vmul.f32 %v719_v28, %v716_v23 }
  0xeb   : > { %v721_v30 = vmul.f32 0.16666667, %v720_v29 }
  0xed   : > { %v723_v31 = vrot.slane %v721_v30, 2  ;;  %v725_v32 = vpack.c.bf16 %v721_v30, %v721_v30 }
  0xef   : > { %v726_v33 = vpack.c.bf16 %v723_v31, %v723_v31  ;;  %728 = vst.msk [vmem:[%s173_s8] sm:$0x1] %vm727_vm6, %v725_v32 }
  0xf1   : > { %729 = vst.msk [vmem:[%s173_s8 + $0x1] sm:$0x1] %vm727_vm6, %v726_v33 }
  0xf2 PF: > { %s13_s12 = sadd.s32 1, %s960_s12  }
  0xf3   : > { %p10_p5 = scmp.ge.s32.totalorder %s13_s12, 4  }
  0xf5   :  { %12 = sbr.rel (!%p10_p5) target bundleno = 1 (0x1), region = 84 }

// kernel: model_forward.20
= control target key start
LH: loop header
LB: loop body
LE: loop exit
PB: predicated region body
PF: predicated region fallthrough
CT: control target
= control target key end

     0   :  { %s1005_s12 = smov 0   ;;  %s1155_s0 = inlined_call_operand.vmem [shape: bf16[8,2,2,64], index: 0, kind: input, shape index: {}]   ;;  %s1156_s1 = inlined_call_operand.vmem [shape: bf16[9,64,64], index: 1, kind: input, shape index: {}]   ;;  %s1157_s2 = inlined_call_operand.vmem [shape: f32[1,64], index: 2, kind: input, shape index: {}]   ;;  %s1158_s3 = inlined_call_operand.vmem [shape: bf16[2,1,1,64], index: 3, kind: output, shape index: {}]  }
   0x1 LB: > { %s1011_s13 = sadd.s32 4294967295, %s983_s12   ;;  %p706_p0 = scmp.ge.s32.totalorder %s983_s12, 1  ;;  %s983_s12 = sphi %s1005_s12, %s13_s12  }
   0x2   : > { %p138_p1 = scmp.lt.s32.totalorder %s983_s12, 3 }
   0x4   : > { %p139_p2 = pnand %p706_p0, %p138_p1 }
   0x5   : > { %s707_s20 = sshll.u32 (!%p139_p2), %s1011_s13, 2  ;;  %p166_p4 = scmp.lt.s32.totalorder (!%p139_p2), %s1011_s13, 1 }
   0x6   : > { %142 = sbr.rel (%p139_p2) target bundleno = 203 (0xcb), region = 32  ;;  %p161_p3 = scmp.lt.s32.totalorder (!%p139_p2), %s707_s20, 7 }
   0xb   : > { %v940_v0 = vld [vmem:[%s1156_s1 + $0x38] sm:$0xff]  ;;  %v939_v4 = vld [vmem:[%s1156_s1 + $0x30] sm:$0xff]  ;;  %s1160_s20 = smov (!%p161_p3, %s707_s20), 7  ;;  %v938_v8 = vld [vmem:[%s1156_s1 + $0x28] sm:$0xff]  ;;  %vm215_vm0 = vcmask 523264   ;;  %s1162_s13 = smov (!%p166_p4, %s1011_s13), 1 }
   0xc   : > { %v936_v1 = vld [vmem:[%s1156_s1 + $0x18] sm:$0xff]  ;;  %223 = vmatpush.bf16.msra.mxu0 %v940_v0  ;;  %v935_v5 = vld [vmem:[%s1156_s1 + $0x10] sm:$0xff]  ;;  %s708_s4 = sshll.u32 %s1160_s20, 1  ;;  %v934_v9 = vld [vmem:[%s1156_s1 + $0x8] sm:$0xff]  ;;  %s168_s21 = scalar_lea.vmem %s1158_s3, %s1162_s13  ;;  %vm649_vm1 = vcmask 516096  }
   0xd   : > { %v944_v2 = vld [vmem:[%s1156_s1 + $0x58] sm:$0xff]  ;;  %263 = vmatpush.bf16.msra.mxu1 %v936_v1  ;;  %v943_v6 = vld [vmem:[%s1156_s1 + $0x50] sm:$0xff]  ;;  %s1049_s11 = scalar_lea.vmem %s1155_s0, %s708_s4  ;;  %v942_v10 = vld [vmem:[%s1156_s1 + $0x48] sm:$0xff]  ;;  %vm650_vm2 = vsmask.f32 256 }
   0xe   : > { %v948_v3 = vld [vmem:[%s1156_s1 + $0x78] sm:$0xff]  ;;  %316 = vmatpush.bf16.msra.mxu2 %v944_v2  ;;  %v947_v7 = vld [vmem:[%s1156_s1 + $0x70] sm:$0xff]  ;;  %v946_v11 = vld [vmem:[%s1156_s1 + $0x68] sm:$0xff] }
   0xf   : > { %368 = vmatpush.bf16.msra.mxu3 %v948_v3  ;;  %v171_v12 = vld [vmem:[%s1049_s11] sm:$0x1]  ;;  %v952_v17 = vld [vmem:[%s1156_s1 + $0x98] sm:$0xff]  ;;  %v709_v19 = vld [vmem:[%s1049_s11 + $0x2] sm:$0x1] }
  0x10   : > { %224 = vmatpush.bf16.msra.mxu0 %v939_v4  ;;  %281 = vst [vmem:[#allocation1] ss:$9 sm:$0xff] %v171_v12  ;;  %v937_v13 = vld [vmem:[%s1156_s1 + $0x20] sm:$0xff]  ;;  %v960_v18 = vld [vmem:[%s1156_s1 + $0xd8] sm:$0xff]  ;;  %v951_v25 = vld [vmem:[%s1156_s1 + $0x90] sm:$0xff] }
  0x11   : > { %264 = vmatpush.bf16.msra.mxu1 %v935_v5  ;;  %v933_v14 = vld [vmem:[%s1156_s1] sm:$0xff]  ;;  %v964_v20 = vld [vmem:[%s1156_s1 + $0xf8] sm:$0xff]  ;;  %v959_v26 = vld [vmem:[%s1156_s1 + $0xd0] sm:$0xff] }
  0x12   : > { %317 = vmatpush.bf16.msra.mxu2 %v943_v6  ;;  %v941_v15 = vld [vmem:[%s1156_s1 + $0x40] sm:$0xff]  ;;  %v956_v23 = vld [vmem:[%s1156_s1 + $0xb8] sm:$0xff]  ;;  %v963_v27 = vld [vmem:[%s1156_s1 + $0xf0] sm:$0xff] }
  0x13   : > { %369 = vmatpush.bf16.msra.mxu3 %v947_v7  ;;  %v945_v16 = vld [vmem:[%s1156_s1 + $0x60] sm:$0xff]  ;;  %v955_v28 = vld [vmem:[%s1156_s1 + $0xb0] sm:$0xff]  ;;  %v950_v29 = vld [vmem:[%s1156_s1 + $0x88] sm:$0xff] }
  0x14   : > { %225 = vmatpush.bf16.msra.mxu0 %v938_v8  ;;  %v777_v22 = vld [vmem:[%s1049_s11 + $0x4] sm:$0x1]  ;;  %v958_v30 = vld [vmem:[%s1156_s1 + $0xc8] sm:$0xff]  ;;  %v854_v34 = vld [vmem:[%s1049_s11 + $0x1] sm:$0x1] }
  0x15   : > { %265 = vmatpush.bf16.msra.mxu1 %v934_v9  ;;  %v962_v31 = vld [vmem:[%s1156_s1 + $0xe8] sm:$0xff]  ;;  %v949_v35 = vld [vmem:[%s1156_s1 + $0x80] sm:$0xff]  ;;  %v968_v37 = vld [vmem:[%s1156_s1 + $0x118] sm:$0xff] }
  0x16   : > { %318 = vmatpush.bf16.msra.mxu2 %v942_v10  ;;  %v954_v32 = vld [vmem:[%s1156_s1 + $0xa8] sm:$0xff]  ;;  %v957_v36 = vld [vmem:[%s1156_s1 + $0xc0] sm:$0xff]  ;;  %v967_v43 = vld [vmem:[%s1156_s1 + $0x110] sm:$0xff] }
  0x17   : > { %370 = vmatpush.bf16.msra.mxu3 %v946_v11  ;;  %v282_v21 = vld [vmem:[#allocation1] sm:$0xff]  ;;  %v966_v44 = vld [vmem:[%s1156_s1 + $0x108] sm:$0xff]  ;;  %vm651_vm3 = vmand %vm649_vm1, %vm650_vm2 }
  0x18   : > { %226 = vmatpush.bf16.msra.mxu0 %v937_v13  ;;  %v283_v24 = vshrl.u32 %v282_v21, 16  ;;  %439 = vst [vmem:[#allocation1] ss:$9 sm:$0xff] %v777_v22  ;;  %v961_v38 = vld [vmem:[%s1156_s1 + $0xe0] sm:$0xff] }
  0x19   : > { %266 = vmatpush.bf16.msra.mxu1 %v933_v14  ;;  %v953_v39 = vld [vmem:[%s1156_s1 + $0xa0] sm:$0xff] }
  0x1a   : > { %319 = vmatpush.bf16.msra.mxu2 %v941_v15  ;;  %v803_v40 = vld [vmem:[%s1049_s11 + $0x6] sm:$0x1]  ;;  %v880_v41 = vld [vmem:[%s1049_s11 + $0x3] sm:$0x1]  ;;  %v170_v7 = vld [vmem:[%s1157_s2] sm:$0x1] }
  0x1b   : > { %371 = vmatpush.bf16.msra.mxu3 %v945_v16  ;;  %734 = vmatmul.msk.bf16.vlgmr.msra.gmra.mxu0 %vm215_vm0, %v709_v19  ;;  %v965_v45 = vld [vmem:[%s1156_s1 + $0x100] sm:$0xff] }
  0x1c   : > { %420 = vmatpush.bf16.msrb.mxu0 %v952_v17  ;;  %751 = vmatmul.msk.bf16.vlgmr.msra.gmra.mxu1 %vm215_vm0, %v171_v12  ;;  %v652_v17 = vld [vmem:[%s168_s21] sm:$0x1] }
  0x1d   : > { %776 = vmatmul.msk.bf16.vlgmr.msra.gmra.mxu2 %vm215_vm0, %v283_v24  ;;  %474 = vmatpush.bf16.msrb.mxu1 %v956_v23 }
  0x1e   : > { %526 = vmatpush.bf16.msrb.mxu2 %v960_v18  ;;  %802 = vmatmul.msk.bf16.vlgmr.msra.gmra.mxu3 %vm215_vm0, %v777_v22 }
  0x1f   : > { %578 = vmatpush.bf16.msrb.mxu3 %v964_v20  ;;  %v440_v33 = vld [vmem:[#allocation1] sm:$0xff] }
  0x20   : > { %421 = vmatpush.bf16.msrb.mxu0 %v951_v25  ;;  %597 = vst [vmem:[#allocation1] ss:$9 sm:$0xff] %v854_v34  ;;  %v441_v42 = vshrl.u32 %v440_v33, 16 }
  0x21   : > { %475 = vmatpush.bf16.msrb.mxu1 %v955_v28 }
  0x22   : > { %527 = vmatpush.bf16.msrb.mxu2 %v959_v26 }
  0x23   : > { %579 = vmatpush.bf16.msrb.mxu3 %v963_v27 }
  0x24   : > { %422 = vmatpush.bf16.msrb.mxu0 %v950_v29 }
  0x25   : > { %476 = vmatpush.bf16.msrb.mxu1 %v954_v32 }
  0x26   : > { %528 = vmatpush.bf16.msrb.mxu2 %v958_v30 }
  0x27   : > { %580 = vmatpush.bf16.msrb.mxu3 %v962_v31  ;;  %v598_v46 = vld [vmem:[#allocation1] sm:$0xff] }
  0x28   : > { %423 = vmatpush.bf16.msrb.mxu0 %v949_v35  ;;  %v599_v47 = vshrl.u32 %v598_v46, 16 }
  0x29   : > { %477 = vmatpush.bf16.msrb.mxu1 %v953_v39 }
  0x2a   : > { %529 = vmatpush.bf16.msrb.mxu2 %v957_v36 }
  0x2b   : > { %581 = vmatpush.bf16.msrb.mxu3 %v961_v38  ;;  %828 = vmatmul.msk.bf16.vlgmr.msrb.gmra.mxu0 %vm215_vm0, %v803_v40 }
  0x2c   : > { %632 = vmatpush.bf16.msra.mxu0 %v968_v37  ;;  %853 = vmatmul.msk.bf16.vlgmr.msrb.gmra.mxu1 %vm215_vm0, %v441_v42 }
  0x2d   : > { %879 = vmatmul.msk.bf16.vlgmr.msrb.gmra.mxu2 %vm215_vm0, %v854_v34 }
  0x2e   : > { %905 = vmatmul.msk.bf16.vlgmr.msrb.gmra.mxu3 %vm215_vm0, %v880_v41 }
  0x30   : > { %633 = vmatpush.bf16.msra.mxu0 %v967_v43 }
  0x34   : > { %634 = vmatpush.bf16.msra.mxu0 %v966_v44 }
  0x38   : > { %635 = vmatpush.bf16.msra.mxu0 %v965_v45 }
  0x3b   : > { %930 = vmatmul.msk.bf16.vlgmr.msra.gmra.mxu0 %vm215_vm0, %v599_v47 }
  0x98   : > { %v228_v48 = vpop.f32.mrf.mxu0 }
  0x99   : > { %v268_v49 = vpop.f32.mrf.mxu1 }
  0x9a   : > { %v269_v54 = vadd.f32 %v268_v49, %v228_v48 }
  0xa0   : > { %v321_v50 = vpop.f32.mrf.mxu2  ;;  %v230_v52 = vpop.f32.mrf.mxu0 }
  0xa1   : > { %v373_v51 = vpop.f32.mrf.mxu3  ;;  %v270_v53 = vpop.f32.mrf.mxu1  ;;  %v325_v55 = vadd.f32 %v321_v50, %v269_v54 }
  0xa3   : > { %v377_v60 = vadd.f32 %v373_v51, %v325_v55 }
  0xa8   : > { %v323_v56 = vpop.f32.mrf.mxu2  ;;  %v425_v58 = vpop.f32.mrf.mxu0 }
  0xa9   : > { %v375_v57 = vpop.f32.mrf.mxu3  ;;  %v479_v59 = vpop.f32.mrf.mxu1  ;;  %v429_v61 = vadd.f32 %v425_v58, %v377_v60 }
  0xab   : > { %v483_v1 = vadd.f32 %v479_v59, %v429_v61 }
  0xb0   : > { %v531_v62 = vpop.f32.mrf.mxu2  ;;  %v427_v0 = vpop.f32.mrf.mxu0 }
  0xb1   : > { %v583_v63 = vpop.f32.mrf.mxu3  ;;  %v481_v2 = vpop.f32.mrf.mxu1  ;;  %v535_v3 = vadd.f32 %v531_v62, %v483_v1 }
  0xb3   : > { %v587_v4 = vadd.f32 %v583_v63, %v535_v3 }
  0xb8   : > { %v533_v5 = vpop.f32.mrf.mxu2  ;;  %v637_v8 = vpop.f32.mrf.mxu0 }
  0xb9   : > { %v585_v6 = vpop.f32.mrf.mxu3  ;;  %v641_v9 = vadd.f32 %v637_v8, %v587_v4 }
  0xbb   : > { %v642_v10 = vadd.f32 %v641_v9, %v170_v7 }
  0xbd   : > { %v643_v11 = vadd.f32 3.0, %v642_v10 }
  0xbf   : > { %v644_v12 = vmax.f32 %v643_v11, 0.0 }
  0xc0   : > { %v639_v13 = vpop.f32.mrf.mxu0 }
  0xc1   : > { %v645_v14 = vmin.f32 %v644_v12, 6.0 }
  0xc3   : > { %v646_v15 = vmul.f32 %v645_v14, %v642_v10 }
  0xc5   : > { %v647_v16 = vmul.f32 0.16666667, %v646_v15 }
  0xc7   : > { %v648_v18 = vpack.c.bf16 %v647_v16, %v647_v16 }
  0xc9   : > { %v653_v19 = vsel %vm651_vm3, %v648_v18, %v652_v17 }
  0xca   : > { %654 = vst [vmem:[%s168_s21] sm:$0x1] %v653_v19 }
  0xcb PF: > { %s13_s12 = sadd.s32 1, %s983_s12  }
  0xcc   : > { %p10_p5 = scmp.ge.s32.totalorder %s13_s12, 4  }
  0xce   :  { %12 = sbr.rel (!%p10_p5) target bundleno = 1 (0x1), region = 75 }

// kernel: model_forward.30
= control target key start
LH: loop header
LB: loop body
LE: loop exit
PB: predicated region body
PF: predicated region fallthrough
CT: control target
= control target key end

     0   :  { %vm36_vm0 = vcmask 261120   ;;  %vm59_vm1 = vcmask 253952   ;;  %s112_s1 = inlined_call_operand.vmem [shape: bf16[32,32], index: 1, kind: input, shape index: {}]   ;;  %s113_s2 = inlined_call_operand.vmem [shape: f32[1,32], index: 2, kind: input, shape index: {}]   ;;  %s114_s0 = inlined_call_operand.vmem [shape: bf16[2,32], index: 0, kind: input, shape index: {}]   ;;  %s115_s3 = inlined_call_operand.vmem [shape: bf16[2,32], index: 3, kind: output, shape index: {}]  }
   0x1   :  { %v75_v0 = vld [vmem:[%s112_s1 + $0x8] sm:$0xff]  ;;  %v74_v1 = vld [vmem:[%s112_s1] sm:$0xff] }
   0x2   :  { %46 = vmatpush.bf16.msra.mxu0 %v75_v0  ;;  %v15_v2 = vld [vmem:[%s114_s0] sm:$0x1] }
   0x3   :  { %v76_v3 = vld [vmem:[%s113_s2] ss:$0 sm:$0xff] }
   0x6   :  { %47 = vmatpush.bf16.msra.mxu0 %v74_v1 }
   0x9   :  { %73 = vmatmul.msk.bf16.vlgmr.msra.gmra.mxu0 %vm36_vm0, %v15_v2 }
  0x86   :  { %v49_v4 = vpop.f32.mrf.mxu0 }
  0x87   :  { %v50_v5 = vadd.f32 %v76_v3, %v49_v4 }
  0x89   :  { %v53_v6 = vadd.f32 3.0, %v50_v5 }
  0x8b   :  { %v54_v7 = vmax.f32 %v53_v6, 0.0 }
  0x8d   :  { %v55_v8 = vmin.f32 %v54_v7, 6.0 }
  0x8e   :  { %v51_v9 = vpop.f32.mrf.mxu0 }
  0x8f   :  { %v56_v10 = vmul.f32 %v55_v8, %v50_v5 }
  0x91   :  { %v57_v11 = vmul.f32 0.16666667, %v56_v10 }
  0x93   :  { %v58_v12 = vpack.c.bf16 %v57_v11, %v57_v11 }
  0x95   :  { %60 = vst.msk [vmem:[%s115_s3] sm:$0x1] %vm59_vm1, %v58_v12 }

// kernel: model_forward.21
= control target key start
LH: loop header
LB: loop body
LE: loop exit
PB: predicated region body
PF: predicated region fallthrough
CT: control target
= control target key end

     0   :  { %vm52_vm0 = vcmask 523264   ;;  %vm75_vm1 = vcmask 253952   ;;  %s144_s1 = inlined_call_operand.vmem [shape: bf16[64,32], index: 1, kind: input, shape index: {}]   ;;  %s145_s2 = inlined_call_operand.vmem [shape: f32[1,32], index: 2, kind: input, shape index: {}]   ;;  %s146_s0 = inlined_call_operand.vmem [shape: bf16[2,64], index: 0, kind: input, shape index: {}]   ;;  %s147_s3 = inlined_call_operand.vmem [shape: bf16[2,32], index: 3, kind: output, shape index: {}]  }
   0x1   :  { %v101_v0 = vld [vmem:[%s144_s1 + $0x18] sm:$0xff]  ;;  %v100_v1 = vld [vmem:[%s144_s1 + $0x10] sm:$0xff]  ;;  %v99_v2 = vld [vmem:[%s144_s1 + $0x8] sm:$0xff] }
   0x2   :  { %60 = vmatpush.bf16.msra.mxu0 %v101_v0  ;;  %v98_v3 = vld [vmem:[%s144_s1] sm:$0xff] }
   0x3   :  { %v15_v4 = vld [vmem:[%s146_s0] sm:$0x1] }
   0x4   :  { %v102_v5 = vld [vmem:[%s145_s2] ss:$0 sm:$0xff] }
   0x6   :  { %61 = vmatpush.bf16.msra.mxu0 %v100_v1 }
   0xa   :  { %62 = vmatpush.bf16.msra.mxu0 %v99_v2 }
   0xe   :  { %63 = vmatpush.bf16.msra.mxu0 %v98_v3 }
  0x11   :  { %97 = vmatmul.msk.bf16.vlgmr.msra.gmra.mxu0 %vm52_vm0, %v15_v4 }
  0x8e   :  { %v65_v6 = vpop.f32.mrf.mxu0 }
  0x8f   :  { %v66_v7 = vadd.f32 %v102_v5, %v65_v6 }
  0x91   :  { %v69_v8 = vadd.f32 3.0, %v66_v7 }
  0x93   :  { %v70_v9 = vmax.f32 %v69_v8, 0.0 }
  0x95   :  { %v71_v10 = vmin.f32 %v70_v9, 6.0 }
  0x96   :  { %v67_v11 = vpop.f32.mrf.mxu0 }
  0x97   :  { %v72_v12 = vmul.f32 %v71_v10, %v66_v7 }
  0x99   :  { %v73_v13 = vmul.f32 0.16666667, %v72_v12 }
  0x9b   :  { %v74_v14 = vpack.c.bf16 %v73_v13, %v73_v13 }
  0x9d   :  { %76 = vst.msk [vmem:[%s147_s3] sm:$0x1] %vm75_vm1, %v74_v14 }

// kernel: model_forward.28
= control target key start
LH: loop header
LB: loop body
LE: loop exit
PB: predicated region body
PF: predicated region fallthrough
CT: control target
= control target key end

     0   :  { %vm36_vm0 = vcmask 261120   ;;  %vm59_vm1 = vcmask 257024   ;;  %s112_s1 = inlined_call_operand.vmem [shape: bf16[32,32], index: 1, kind: input, shape index: {}]   ;;  %s113_s2 = inlined_call_operand.vmem [shape: f32[1,32], index: 2, kind: input, shape index: {}]   ;;  %s114_s0 = inlined_call_operand.vmem [shape: bf16[8,32], index: 0, kind: input, shape index: {}]   ;;  %s115_s3 = inlined_call_operand.vmem [shape: bf16[8,32], index: 3, kind: output, shape index: {}]  }
   0x1   :  { %v75_v0 = vld [vmem:[%s112_s1 + $0x8] sm:$0xff]  ;;  %v74_v1 = vld [vmem:[%s112_s1] sm:$0xff] }
   0x2   :  { %46 = vmatpush.bf16.msra.mxu0 %v75_v0  ;;  %v15_v2 = vld [vmem:[%s114_s0] sm:$0xf] }
   0x3   :  { %v76_v3 = vld [vmem:[%s113_s2] ss:$0 sm:$0xff] }
   0x6   :  { %47 = vmatpush.bf16.msra.mxu0 %v74_v1 }
   0x9   :  { %73 = vmatmul.msk.bf16.vlgmr.msra.gmra.mxu0 %vm36_vm0, %v15_v2 }
  0x86   :  { %v49_v4 = vpop.f32.mrf.mxu0 }
  0x87   :  { %v50_v5 = vadd.f32 %v76_v3, %v49_v4 }
  0x89   :  { %v53_v6 = vadd.f32 3.0, %v50_v5 }
  0x8b   :  { %v54_v7 = vmax.f32 %v53_v6, 0.0 }
  0x8d   :  { %v55_v8 = vmin.f32 %v54_v7, 6.0 }
  0x8e   :  { %v51_v9 = vpop.f32.mrf.mxu0 }
  0x8f   :  { %v56_v10 = vmul.f32 %v55_v8, %v50_v5 }
  0x91   :  { %v57_v11 = vmul.f32 0.16666667, %v56_v10 }
  0x93   :  { %v58_v12 = vpack.c.bf16 %v57_v11, %v57_v11 }
  0x95   :  { %60 = vst.msk [vmem:[%s115_s3] sm:$0xf] %vm59_vm1, %v58_v12 }

// kernel: model_forward.24
= control target key start
LH: loop header
LB: loop body
LE: loop exit
PB: predicated region body
PF: predicated region fallthrough
CT: control target
= control target key end

     0   :  { %vm43_vm0 = vcmask 261120   ;;  %vm99_vm1 = vcmask 257024   ;;  %s182_s3 = inlined_call_operand.vmem [shape: bf16[32,32], index: 3, kind: input, shape index: {}]   ;;  %s183_s2 = inlined_call_operand.vmem [shape: bf16[32,32], index: 2, kind: input, shape index: {}]   ;;  %s184_s1 = inlined_call_operand.vmem [shape: bf16[8,32], index: 1, kind: input, shape index: {}]   ;;  %s185_s0 = inlined_call_operand.vmem [shape: bf16[8,32], index: 0, kind: input, shape index: {}]   ;;  %s186_s4 = inlined_call_operand.vmem [shape: f32[1,32], index: 4, kind: input, shape index: {}]   ;;  %s187_s5 = inlined_call_operand.vmem [shape: bf16[8,32], index: 5, kind: output, shape index: {}]  }
   0x1   :  { %v126_v0 = vld [vmem:[%s182_s3 + $0x8] sm:$0xff]  ;;  %v125_v2 = vld [vmem:[%s182_s3] sm:$0xff] }
   0x2   :  { %v124_v1 = vld [vmem:[%s183_s2 + $0x8] sm:$0xff]  ;;  %53 = vmatpush.bf16.msra.mxu0 %v126_v0  ;;  %v123_v3 = vld [vmem:[%s183_s2] sm:$0xff] }
   0x3   :  { %81 = vmatpush.bf16.msra.mxu1 %v124_v1  ;;  %v26_v4 = vld [vmem:[%s184_s1] sm:$0xf] }
   0x4   :  { %v21_v5 = vld [vmem:[%s185_s0] sm:$0xf] }
   0x5   :  { %v127_v6 = vld [vmem:[%s186_s4] ss:$0 sm:$0xff] }
   0x6   :  { %54 = vmatpush.bf16.msra.mxu0 %v125_v2 }
   0x7   :  { %82 = vmatpush.bf16.msra.mxu1 %v123_v3 }
   0x9   :  { %113 = vmatmul.msk.bf16.vlgmr.msra.gmra.mxu0 %vm43_vm0, %v26_v4 }
   0xa   :  { %122 = vmatmul.msk.bf16.vlgmr.msra.gmra.mxu1 %vm43_vm0, %v21_v5 }
  0x86   :  { %v56_v7 = vpop.f32.mrf.mxu0 }
  0x87   :  { %v84_v8 = vpop.f32.mrf.mxu1 }
  0x88   :  { %v85_v9 = vadd.f32 %v84_v8, %v56_v7 }
  0x8a   :  { %v92_v10 = vadd.f32 %v127_v6, %v85_v9 }
  0x8c   :  { %v93_v11 = vadd.f32 3.0, %v92_v10 }
  0x8e   :  { %v94_v12 = vmax.f32 %v93_v11, 0.0  ;;  %v58_v13 = vpop.f32.mrf.mxu0 }
  0x8f   :  { %v86_v14 = vpop.f32.mrf.mxu1 }
  0x90   :  { %v95_v15 = vmin.f32 %v94_v12, 6.0 }
  0x92   :  { %v96_v16 = vmul.f32 %v95_v15, %v92_v10 }
  0x94   :  { %v97_v17 = vmul.f32 0.16666667, %v96_v16 }
  0x96   :  { %v98_v18 = vpack.c.bf16 %v97_v17, %v97_v17 }
  0x98   :  { %100 = vst.msk [vmem:[%s187_s5] sm:$0xf] %vm99_vm1, %v98_v18 }

// kernel: model_forward.25
= control target key start
LH: loop header
LB: loop body
LE: loop exit
PB: predicated region body
PF: predicated region fallthrough
CT: control target
= control target key end

     0   :  { %s513_s18 = smov 0   ;;  %s548_s0 = inlined_call_operand.vmem [shape: bf16[32,32], index: 0, kind: input, shape index: {}]   ;;  %s549_s1 = inlined_call_operand.vmem [shape: bf16[32,32], index: 1, kind: input, shape index: {}]   ;;  %s550_s2 = inlined_call_operand.vmem [shape: bf16[32,32], index: 2, kind: input, shape index: {}]   ;;  %s551_s3 = inlined_call_operand.vmem [shape: bf16[32,32], index: 3, kind: input, shape index: {}]   ;;  %s552_s4 = inlined_call_operand.vmem [shape: f32[1,32], index: 4, kind: input, shape index: {}]   ;;  %s553_s5 = inlined_call_operand.vmem [shape: bf16[32,32], index: 5, kind: output, shape index: {}]  }
   0x1 LB: > { %s421_s19 = sadd.s32 4294967295, %s481_s18   ;;  %p425_p0 = scmp.ge.s32.totalorder %s481_s18, 1  ;;  %s481_s18 = sphi %s513_s18, %s15_s18  }
   0x2   : > { %p199_p1 = scmp.lt.s32.totalorder %s481_s18, 3 }
   0x4   : > { %p200_p2 = pnand %p425_p0, %p199_p1 }
   0x5   : > { %s426_s24 = sshll.u32 (!%p200_p2), %s421_s19, 1 }
   0x6   : > { %203 = sbr.rel (%p200_p2) target bundleno = 171 (0xab), region = 40  ;;  %p233_p3 = scmp.lt.s32.totalorder (!%p200_p2), %s426_s24, 3 }
   0xb   : > { %v465_v0 = vld [vmem:[%s551_s3 + $0x8] sm:$0xff]  ;;  %v464_v2 = vld [vmem:[%s551_s3] sm:$0xff]  ;;  %s555_s24 = smov (!%p233_p3, %s426_s24), 3  ;;  %vm280_vm0 = vcmask 261120   ;;  %vm350_vm1 = vcmask 257024  }
   0xc   : > { %v462_v1 = vld [vmem:[%s550_s2 + $0x8] sm:$0xff]  ;;  %290 = vmatpush.bf16.msra.mxu0 %v465_v0  ;;  %v461_v3 = vld [vmem:[%s550_s2] sm:$0xff]  ;;  %s427_s29 = sshll.u32 %s555_s24, 2 }
   0xd   : > { %324 = vmatpush.bf16.msra.mxu1 %v462_v1  ;;  %s242_s7 = scalar_lea.vmem %s549_s1, %s427_s29  ;;  %s236_s10 = scalar_lea.vmem %s548_s0, %s427_s29  ;;  %v474_v7 = vld [vmem:[%s552_s4] ss:$0 sm:$0xff] }
   0xe   : > { %v463_v4 = vld [vmem:[%s242_s7] sm:$0xff]  ;;  %s248_s15 = scalar_lea.vmem %s553_s5, %s427_s29 }
   0xf   : > { %v460_v5 = vld [vmem:[%s236_s10] sm:$0xff] }
  0x10   : > { %291 = vmatpush.bf16.msra.mxu0 %v464_v2 }
  0x11   : > { %325 = vmatpush.bf16.msra.mxu1 %v461_v3 }
  0x13   : > { %444 = vmatmul.msk.bf16.vlgmr.msra.gmra.mxu0 %vm280_vm0, %v463_v4 }
  0x14   : > { %457 = vmatmul.msk.bf16.vlgmr.msra.gmra.mxu1 %vm280_vm0, %v460_v5 }
  0x90   : > { %v293_v6 = vpop.f32.mrf.mxu0 }
  0x91   : > { %v327_v8 = vpop.f32.mrf.mxu1 }
  0x92   : > { %v328_v9 = vadd.f32 %v327_v8, %v293_v6 }
  0x94   : > { %v336_v10 = vadd.f32 %v474_v7, %v328_v9 }
  0x96   : > { %v338_v11 = vadd.f32 3.0, %v336_v10 }
  0x98   : > { %v340_v12 = vmax.f32 %v338_v11, 0.0  ;;  %v295_v13 = vpop.f32.mrf.mxu0 }
  0x99   : > { %v329_v14 = vpop.f32.mrf.mxu1 }
  0x9a   : > { %v342_v15 = vmin.f32 %v340_v12, 6.0  ;;  %v330_v16 = vadd.f32 %v329_v14, %v295_v13 }
  0x9c   : > { %v344_v17 = vmul.f32 %v342_v15, %v336_v10  ;;  %v337_v18 = vadd.f32 %v474_v7, %v330_v16 }
  0x9e   : > { %v346_v19 = vmul.f32 0.16666667, %v344_v17  ;;  %v339_v20 = vadd.f32 3.0, %v337_v18 }
  0xa0   : > { %v348_v21 = vpack.c.bf16 %v346_v19, %v346_v19  ;;  %v341_v22 = vmax.f32 %v339_v20, 0.0 }
  0xa2   : > { %351 = vst.msk [vmem:[%s248_s15] sm:$0xf] %vm350_vm1, %v348_v21  ;;  %v343_v23 = vmin.f32 %v341_v22, 6.0 }
  0xa4   : > { %v345_v24 = vmul.f32 %v343_v23, %v337_v18 }
  0xa6   : > { %v347_v25 = vmul.f32 0.16666667, %v345_v24 }
  0xa8   : > { %v349_v26 = vpack.c.bf16 %v347_v25, %v347_v25 }
  0xaa   : > { %352 = vst.msk [vmem:[%s248_s15 + $0x4] sm:$0xf] %vm350_vm1, %v349_v26 }
  0xab PF: > { %s15_s18 = sadd.s32 1, %s481_s18  }
  0xac   : > { %p12_p4 = scmp.ge.s32.totalorder %s15_s18, 4  }
  0xae   :  { %14 = sbr.rel (!%p12_p4) target bundleno = 1 (0x1), region = 73 }

// kernel: model_forward.31
= control target key start
LH: loop header
LB: loop body
LE: loop exit
PB: predicated region body
PF: predicated region fallthrough
CT: control target
= control target key end

     0   :  { %s907_s18 = smov 0   ;;  %s1017_s0 = inlined_call_operand.vmem [shape: bf16[2,3,3,32], index: 0, kind: input, shape index: {}]   ;;  %s1018_s1 = inlined_call_operand.vmem [shape: bf16[9,32,64], index: 1, kind: input, shape index: {}]   ;;  %s1019_s2 = inlined_call_operand.vmem [shape: f32[1,64], index: 2, kind: input, shape index: {}]   ;;  %s1020_s3 = inlined_call_operand.vmem [shape: bf16[64,8], index: 3, kind: input, shape index: {}]   ;;  %s1021_s4 = inlined_call_operand.vmem [shape: f32[1,8], index: 4, kind: input, shape index: {}]   ;;  %s1022_s5 = inlined_call_operand.vmem [shape: f32[2,1,1,8], index: 5, kind: output, shape index: {}]  }
   0x1 LB: > { %s691_s19 = sadd.s32 4294967295, %s875_s18   ;;  %p695_p0 = scmp.ge.s32.totalorder %s875_s18, 1  ;;  %s875_s18 = sphi %s907_s18, %s15_s18  }
   0x2   : > { %p187_p1 = scmp.lt.s32.totalorder %s875_s18, 3 }
   0x4   : > { %p188_p2 = pnand %p695_p0, %p187_p1 }
   0x5   : > { %p213_p3 = scmp.lt.s32.totalorder (!%p188_p2), %s691_s19, 1 }
   0x6   : > { %191 = sbr.rel (%p188_p2) target bundleno = 366 (0x16e), region = 40 }
   0xb   : > { %v837_v0 = vld [vmem:[%s1018_s1 + $0x18] sm:$0xff]  ;;  %v835_v1 = vld [vmem:[%s1018_s1 + $0x8] sm:$0xff]  ;;  %v836_v4 = vld [vmem:[%s1018_s1 + $0x10] sm:$0xff]  ;;  %s1024_s19 = smov (!%p213_p3, %s691_s19), 1  ;;  %vm250_vm0 = vcmask 261120   ;;  %vm602_vm1 = vcmask 523264  }
   0xc   : > { %v839_v2 = vld [vmem:[%s1018_s1 + $0x28] sm:$0xff]  ;;  %v841_v3 = vld [vmem:[%s1018_s1 + $0x38] sm:$0xff]  ;;  %260 = vmatpush.bf16.msra.mxu0 %v837_v0  ;;  %287 = vmatpush.bf16.msra.mxu1 %v835_v1  ;;  %v834_v5 = vld [vmem:[%s1018_s1] sm:$0xff]  ;;  %s856_s11 = smul.u32 6, %s1024_s19  ;;  %s220_s28 = scalar_lea.vmem %s1022_s5, %s1024_s19  ;;  %vm642_vm7 = vcmask 57344  }
   0xd   : > { %326 = vmatpush.bf16.msra.mxu2 %v839_v2  ;;  %362 = vmatpush.bf16.msra.mxu3 %v841_v3  ;;  %v838_v6 = vld [vmem:[%s1018_s1 + $0x20] sm:$0xff]  ;;  %v840_v7 = vld [vmem:[%s1018_s1 + $0x30] sm:$0xff]  ;;  %v843_v8 = vld [vmem:[%s1018_s1 + $0x48] sm:$0xff] }
   0xe   : > { %v847_v9 = vld [vmem:[%s1018_s1 + $0x68] sm:$0xff]  ;;  %v849_v10 = vld [vmem:[%s1018_s1 + $0x78] sm:$0xff]  ;;  %s954_s22 = scalar_lea.vmem %s1017_s0, %s856_s11  ;;  %v842_v13 = vld [vmem:[%s1018_s1 + $0x40] sm:$0xff] }
   0xf   : > { %v845_v11 = vld [vmem:[%s1018_s1 + $0x58] sm:$0xff]  ;;  %v223_v12 = vld [vmem:[%s954_s22] sm:$0x1]  ;;  %v732_v15 = vld [vmem:[%s954_s22 + $0x2] sm:$0x1] }
  0x10   : > { %261 = vmatpush.bf16.msra.mxu0 %v836_v4  ;;  %288 = vmatpush.bf16.msra.mxu1 %v834_v5  ;;  %234 = vst [vmem:[#allocation1] ss:$4 sm:$0xff] %v223_v12  ;;  %v846_v14 = vld [vmem:[%s1018_s1 + $0x60] sm:$0xff]  ;;  %v844_v16 = vld [vmem:[%s1018_s1 + $0x50] sm:$0xff]  ;;  %v851_v20 = vld [vmem:[%s1018_s1 + $0x88] sm:$0xff] }
  0x11   : > { %327 = vmatpush.bf16.msra.mxu2 %v838_v6  ;;  %363 = vmatpush.bf16.msra.mxu3 %v840_v7  ;;  %v848_v17 = vld [vmem:[%s1018_s1 + $0x70] sm:$0xff]  ;;  %v294_v18 = vld [vmem:[%s954_s22] sm:$0x2]  ;;  %v759_v25 = vld [vmem:[%s954_s22 + $0x2] sm:$0x2] }
  0x12   : > { %v850_v22 = vld [vmem:[%s1018_s1 + $0x80] sm:$0xff]  ;;  %v855_v42 = vld [vmem:[%s1020_s3 + $0x18] sm:$0xff]  ;;  %v854_v43 = vld [vmem:[%s1020_s3 + $0x10] sm:$0xff] }
  0x13   : > { %718 = vmatmul.msk.bf16.vlgmr.msra.gmra.mxu1 %vm250_vm0, %v223_v12  ;;  %v773_v28 = vld [vmem:[%s954_s22 + $0x4] sm:$0x1]  ;;  %v800_v31 = vld [vmem:[%s954_s22 + $0x4] sm:$0x2]  ;;  %v853_v46 = vld [vmem:[%s1020_s3 + $0x8] sm:$0xff] }
  0x14   : > { %400 = vmatpush.bf16.msrb.mxu0 %v843_v8  ;;  %745 = vmatmul.msk.bf16.vlgmr.msra.gmra.mxu3 %vm250_vm0, %v732_v15  ;;  %v852_v47 = vld [vmem:[%s1020_s3] sm:$0xff] }
  0x15   : > { %476 = vmatpush.bf16.msrb.mxu2 %v847_v9  ;;  %514 = vmatpush.bf16.msrb.mxu3 %v849_v10  ;;  %v222_v62 = vld [vmem:[%s1019_s2] sm:$0x1] }
  0x16   : > { %440 = vmatpush.bf16.msrb.mxu1 %v845_v11  ;;  %v577_v10 = vld [vmem:[%s1021_s4] sm:$0x1] }
  0x17   : > { %v235_v19 = vld.sshfl [vmem:[#allocation1] sm:$0xff pattern:$0x73625140] }
  0x18   : > { %401 = vmatpush.bf16.msrb.mxu0 %v842_v13  ;;  %v236_v21 = vshrl.u32 %v235_v19, 16  ;;  %301 = vst [vmem:[#allocation1] ss:$4 sm:$0xff] %v294_v18  ;;  %v619_v18 = vlaneseq }
  0x19   : > { %477 = vmatpush.bf16.msrb.mxu2 %v846_v14  ;;  %515 = vmatpush.bf16.msrb.mxu3 %v848_v17 }
  0x1a   : > { %441 = vmatpush.bf16.msrb.mxu1 %v844_v16  ;;  %709 = vmatmul.msk.bf16.vlgmr.msra.gmra.mxu0 %vm250_vm0, %v236_v21  ;;  %v620_v21 = vand.u32 127, %v619_v18 }
  0x1c   : > { %554 = vmatpush.bf16.msra.mxu0 %v851_v20  ;;  %vm621_vm4 = vcmp.lt.s32.totalorder %v620_v21, 4 }
  0x1e   : > { %610 = vmatpush.bf16.msra.mxu1 %v855_v42 }
  0x1f   : > { %v302_v23 = vld.sshfl [vmem:[#allocation1] sm:$0xff pattern:$0x73625140] }
  0x20   : > { %555 = vmatpush.bf16.msra.mxu0 %v850_v22  ;;  %v304_v24 = vrot.slane %v302_v23, 1  ;;  %375 = vst [vmem:[#allocation1] ss:$4 sm:$0xff] %v732_v15 }
  0x22   : > { %731 = vmatmul.msk.bf16.vlgmr.msra.gmra.mxu2 %vm250_vm0, %v304_v24  ;;  %611 = vmatpush.bf16.msra.mxu1 %v854_v43 }
  0x26   : > { %612 = vmatpush.bf16.msra.mxu1 %v853_v46 }
  0x27   : > { %v376_v26 = vld.sshfl [vmem:[#allocation1] sm:$0xff pattern:$0x73625140] }
  0x28   : > { %v377_v27 = vshrl.u32 %v376_v26, 16  ;;  %415 = vst [vmem:[#allocation1] ss:$4 sm:$0xff] %v759_v25 }
  0x2a   : > { %758 = vmatmul.msk.bf16.vlgmr.msrb.gmra.mxu0 %vm250_vm0, %v377_v27  ;;  %613 = vmatpush.bf16.msra.mxu1 %v852_v47 }
  0x2f   : > { %v416_v29 = vld.sshfl [vmem:[#allocation1] sm:$0xff pattern:$0x73625140] }
  0x30   : > { %v418_v30 = vrot.slane %v416_v29, 1  ;;  %489 = vst [vmem:[#allocation1] ss:$4 sm:$0xff] %v773_v28 }
  0x32   : > { %772 = vmatmul.msk.bf16.vlgmr.msrb.gmra.mxu1 %vm250_vm0, %v418_v30  ;;  %786 = vmatmul.msk.bf16.vlgmr.msrb.gmra.mxu2 %vm250_vm0, %v773_v28 }
  0x37   : > { %v490_v32 = vld.sshfl [vmem:[#allocation1] sm:$0xff pattern:$0x73625140] }
  0x38   : > { %v491_v33 = vshrl.u32 %v490_v32, 16  ;;  %529 = vst [vmem:[#allocation1] ss:$4 sm:$0xff] %v800_v31 }
  0x3a   : > { %799 = vmatmul.msk.bf16.vlgmr.msrb.gmra.mxu3 %vm250_vm0, %v491_v33 }
  0x3f   : > { %v530_v34 = vld.sshfl [vmem:[#allocation1] sm:$0xff pattern:$0x73625140] }
  0x40   : > { %v532_v35 = vrot.slane %v530_v34, 1 }
  0x42   : > { %813 = vmatmul.msk.bf16.vlgmr.msra.gmra.mxu0 %vm250_vm0, %v532_v35 }
  0x90   : > { %v290_v36 = vpop.f32.mrf.mxu1 }
  0x97   : > { %v365_v37 = vpop.f32.mrf.mxu3  ;;  %v263_v39 = vpop.f32.mrf.mxu0 }
  0x98   : > { %v292_v38 = vpop.f32.mrf.mxu1  ;;  %v291_v49 = vadd.f32 %v290_v36, %v263_v39 }
  0x9f   : > { %v367_v40 = vpop.f32.mrf.mxu3  ;;  %v265_v41 = vpop.f32.mrf.mxu0 }
  0xa5   : > { %v329_v44 = vpop.f32.mrf.mxu2 }
  0xa6   : > { %v333_v52 = vadd.f32 %v329_v44, %v291_v49 }
  0xa7   : > { %v403_v45 = vpop.f32.mrf.mxu0 }
  0xa8   : > { %v369_v53 = vadd.f32 %v365_v37, %v333_v52 }
  0xaa   : > { %v407_v56 = vadd.f32 %v403_v45, %v369_v53 }
  0xad   : > { %v331_v48 = vpop.f32.mrf.mxu2 }
  0xaf   : > { %v405_v50 = vpop.f32.mrf.mxu0  ;;  %v443_v51 = vpop.f32.mrf.mxu1 }
  0xb0   : > { %v447_v57 = vadd.f32 %v443_v51, %v407_v56 }
  0xb5   : > { %v479_v54 = vpop.f32.mrf.mxu2 }
  0xb6   : > { %v483_v58 = vadd.f32 %v479_v54, %v447_v57 }
  0xb7   : > { %v445_v55 = vpop.f32.mrf.mxu1 }
  0xbd   : > { %v481_v59 = vpop.f32.mrf.mxu2  ;;  %v517_v60 = vpop.f32.mrf.mxu3 }
  0xbe   : > { %v521_v61 = vadd.f32 %v517_v60, %v483_v58 }
  0xbf   : > { %v557_v63 = vpop.f32.mrf.mxu0 }
  0xc0   : > { %v561_v0 = vadd.f32 %v557_v63, %v521_v61 }
  0xc2   : > { %v562_v1 = vadd.f32 %v561_v0, %v222_v62 }
  0xc4   : > { %v563_v2 = vadd.f32 3.0, %v562_v1 }
  0xc5   : > { %v519_v3 = vpop.f32.mrf.mxu3 }
  0xc6   : > { %v564_v4 = vmax.f32 %v563_v2, 0.0 }
  0xc7   : > { %v559_v5 = vpop.f32.mrf.mxu0 }
  0xc8   : > { %v565_v6 = vmin.f32 %v564_v4, 6.0 }
  0xca   : > { %v566_v7 = vmul.f32 %v565_v6, %v562_v1 }
  0xcc   : > { %v567_v8 = vmul.f32 0.16666667, %v566_v7 }
  0xce   : > { %v568_v9 = vpack.c.bf16 %v567_v8, %v567_v8 }
  0xd0   : > { %830 = vmatmul.msk.bf16.vlgmr.msra.gmra.mxu1 %vm602_vm1, %v568_v9 }
 0x14d   : > { %v615_v11 = vpop.f32.mrf.mxu1 }
 0x14e   : > { %v616_v12 = vadd.f32 %v615_v11, %v577_v10 }
 0x150   : > { %v831_v13 = vmul.f32 -1.442695, %v616_v12 }
 0x152   : > { %865 = vpow2.f32 %v831_v13 }
 0x155   : > { %v617_v14 = vpop.f32.mrf.mxu1 }
 0x158   : > { %v866_v15 = vpop.eup %865 }
 0x159   : > { %v625_v16 = vadd.f32 1.0, %v866_v15 }
 0x15b   : > { %867 = vrcp.f32 %v625_v16  ;;  %v637_v22 = vand.u32 2147483648, %v625_v16  ;;  %v635_v24 = vand.u32 2147483647, %v625_v16  ;;  %vm631_vm3 = vweird.f32 %v625_v16 }
 0x15d   : > { %v638_v26 = vor.u32 1.1754944e-38, %v637_v22  ;;  %vm636_vm6 = vcmp.eq.f32.partialorder %v635_v24, 8.507059e+37 }
 0x161   : > { %v868_v17 = vpop.eup %867 }
 0x162   : > { %v627_v19 = vmul.f32 %v868_v17, %v625_v16  ;;  %vm632_vm2 = vweird.f32 %v868_v17 }
 0x163   : > { %vm633_vm5 = vmor %vm631_vm3, %vm632_vm2 }
 0x164   : > { %v628_v20 = vsub.f32 1.0, %v627_v19 }
 0x166   : > { %v629_v23 = vmul.f32 %v868_v17, %v628_v20 }
 0x168   : > { %v630_v25 = vadd.f32 %v868_v17, %v629_v23 }
 0x16a   : > { %v634_v27 = vsel %vm633_vm5, %v868_v17, %v630_v25 }
 0x16b   : > { %v639_v28 = vsel %vm636_vm6, %v638_v26, %v634_v27 }
 0x16c   : > { %v641_v29 = vsel %vm621_vm4, %v639_v28, %v616_v12 }
 0x16d   : > { %643 = vst.msk [vmem:[%s220_s28] sm:$0x1] %vm642_vm7, %v641_v29 }
 0x16e PF: > { %s15_s18 = sadd.s32 1, %s875_s18  }
 0x16f   : > { %p12_p4 = scmp.ge.s32.totalorder %s15_s18, 4  }
 0x171   :  { %14 = sbr.rel (!%p12_p4) target bundleno = 1 (0x1), region = 80 }

// kernel: model_forward.29
= control target key start
LH: loop header
LB: loop body
LE: loop exit
PB: predicated region body
PF: predicated region fallthrough
CT: control target
= control target key end

     0   :  { %s1162_s18 = smov 0   ;;  %s1352_s0 = inlined_call_operand.vmem [shape: bf16[2,4,4,32], index: 0, kind: input, shape index: {}]   ;;  %s1353_s1 = inlined_call_operand.vmem [shape: bf16[9,32,64], index: 1, kind: input, shape index: {}]   ;;  %s1354_s2 = inlined_call_operand.vmem [shape: f32[1,64], index: 2, kind: input, shape index: {}]   ;;  %s1355_s3 = inlined_call_operand.vmem [shape: bf16[64,8], index: 3, kind: input, shape index: {}]   ;;  %s1356_s4 = inlined_call_operand.vmem [shape: f32[1,8], index: 4, kind: input, shape index: {}]   ;;  %s1357_s5 = inlined_call_operand.vmem [shape: f32[2,2,2,8], index: 5, kind: output, shape index: {}]  }
   0x1 LB: > { %s926_s19 = sadd.s32 4294967295, %s1130_s18   ;;  %p930_p0 = scmp.ge.s32.totalorder %s1130_s18, 1  ;;  %s1130_s18 = sphi %s1162_s18, %s15_s18  }
   0x2   : > { %p187_p1 = scmp.lt.s32.totalorder %s1130_s18, 3 }
   0x4   : > { %p188_p2 = pnand %p930_p0, %p187_p1 }
   0x5   : > { %p215_p3 = scmp.lt.s32.totalorder (!%p188_p2), %s926_s19, 1 }
   0x6   : > { %191 = sbr.rel (%p188_p2) target bundleno = 433 (0x1b1), region = 40 }
   0xb   : > { %v1091_v0 = vld [vmem:[%s1353_s1 + $0x18] sm:$0xff]  ;;  %v1089_v1 = vld [vmem:[%s1353_s1 + $0x8] sm:$0xff]  ;;  %v1090_v3 = vld [vmem:[%s1353_s1 + $0x10] sm:$0xff]  ;;  %s1363_s19 = smov (!%p215_p3, %s926_s19), 1  ;;  %vm273_vm0 = vsmask.f32 256 }
   0xc   : > { %v1093_v2 = vld [vmem:[%s1353_s1 + $0x28] sm:$0xff]  ;;  %336 = vmatpush.bf16.msra.mxu0 %v1091_v0  ;;  %369 = vmatpush.bf16.msra.mxu1 %v1089_v1  ;;  %v1088_v4 = vld [vmem:[%s1353_s1] sm:$0xff]  ;;  %vm274_vm1 = vsmask.f32 1284  ;;  %vm276_vm3 = vsmask.f32 2312 }
   0xd   : > { %415 = vmatpush.bf16.msra.mxu2 %v1093_v2  ;;  %v1092_v5 = vld [vmem:[%s1353_s1 + $0x20] sm:$0xff]  ;;  %vm275_vm2 = vmor %vm273_vm0, %vm274_vm1  ;;  %vm278_vm4 = vsmask.f32 3340  ;;  %s1086_s7 = sshll.u32 %s1363_s19, 3  ;;  %vm243_vm5 = vcmask 1040384   ;;  %vm247_vm6 = vcmask 1042434  }
   0xe   : > { %vm277_vm7 = vmor %vm275_vm2, %vm276_vm3  ;;  %vm280_vm8 = vsmask.f32 4368  ;;  %s1194_s10 = scalar_lea.vmem %s1352_s0, %s1086_s7  ;;  %vm251_vm9 = vcmask 1041408   ;;  %vm282_vm11 = vsmask.f32 5396  ;;  %v1095_v7 = vld [vmem:[%s1353_s1 + $0x38] sm:$0xff] }
   0xf   : > { %vm1196_vm10 = vmor %vm277_vm7, %vm278_vm4  ;;  %v233_v8 = vld [vmem:[%s1194_s10] sm:$0x3]  ;;  %vm253_vm12 = vcmask 1041409   ;;  %vm255_vm13 = vcmask 1043459   ;;  %vm284_vm14 = vsmask.f32 6424  ;;  %457 = vmatpush.bf16.msra.mxu3 %v1095_v7 }
  0x10   : > { %337 = vmatpush.bf16.msra.mxu0 %v1090_v3  ;;  %370 = vmatpush.bf16.msra.mxu1 %v1088_v4  ;;  %v234_v9 = vld [vmem:[%s1194_s10 + $0x2] sm:$0x3]  ;;  %v237_v10 = vrot.slane %v233_v8, 1  ;;  %v238_v11 = vrot.slane %v233_v8, 2  ;;  %v239_v12 = vrot.slane %v233_v8, 3  ;;  %vm257_vm15 = vcmask 1042433   ;;  %vm281_vm0 = vmor %vm1196_vm10, %vm280_vm8 }
  0x11   : > { %416 = vmatpush.bf16.msra.mxu2 %v1092_v5  ;;  %v240_v13 = vrot.slane %v234_v9, 1  ;;  %v241_v14 = vrot.slane %v234_v9, 2  ;;  %v242_v15 = vrot.slane %v234_v9, 3  ;;  %vm283_vm1 = vmor %vm281_vm0, %vm282_vm11  ;;  %vm286_vm2 = vsmask.f32 7452  ;;  %v1094_v62 = vld [vmem:[%s1353_s1 + $0x30] sm:$0xff] }
  0x12   : > { %v246_v16 = vsel %vm243_vm5, %v233_v8, %v237_v10  ;;  %v250_v17 = vsel %vm247_vm6, %v238_v11, %v239_v12  ;;  %v254_v18 = vsel %vm253_vm12, %v233_v8, %v237_v10  ;;  %v256_v19 = vsel %vm255_vm13, %v238_v11, %v239_v12  ;;  %vm285_vm3 = vmor %vm283_vm1, %vm284_vm14  ;;  %v1034_v20 = vld [vmem:[%s1194_s10 + $0x4] sm:$0x3]  ;;  %v1035_v29 = vld [vmem:[%s1194_s10 + $0x6] sm:$0x3]  ;;  %s1087_s26 = sshll.u32 %s1363_s19, 2 }
  0x13   : > { %v252_v21 = vsel %vm251_vm9, %v246_v16, %v250_v17  ;;  %v258_v22 = vsel %vm257_vm15, %v254_v18, %v256_v19  ;;  %v263_v23 = vsel %vm243_vm5, %v234_v9, %v240_v13  ;;  %v266_v24 = vsel %vm247_vm6, %v241_v14, %v242_v15  ;;  %vm1225_vm4 = vmor %vm285_vm3, %vm286_vm2  ;;  %v227_v1 = vld [vmem:[%s1194_s10] sm:$0x1]  ;;  %458 = vmatpush.bf16.msra.mxu3 %v1094_v62  ;;  %v228_v2 = vld [vmem:[%s1194_s10 + $0x2] sm:$0x1]  ;;  %s224_s29 = scalar_lea.vmem %s1357_s5, %s1087_s26 }
  0x14   : > { %v260_v25 = vrot.slane %v258_v22, 1  ;;  %v267_v26 = vsel %vm251_vm9, %v263_v23, %v266_v24  ;;  %v268_v27 = vsel %vm253_vm12, %v234_v9, %v240_v13  ;;  %v269_v28 = vsel %vm255_vm13, %v241_v14, %v242_v15  ;;  %v377_v5 = vld [vmem:[%s1194_s10 + $0x2] sm:$0x2]  ;;  %v376_v6 = vld [vmem:[%s1194_s10] sm:$0x2]  ;;  %v1097_v10 = vld [vmem:[%s1353_s1 + $0x48] sm:$0xff] }
  0x15   : > { %v270_v30 = vsel %vm257_vm15, %v268_v27, %v269_v28  ;;  %v288_v32 = vshrl.u32 %v252_v21, 16  ;;  %v296_v33 = vshrl.u32 %v267_v26, 16  ;;  %v647_v34 = vrot.slane %v1034_v20, 1  ;;  %v987_v8 = vld [vmem:[%s1194_s10 + $0x2] sm:$0x3]  ;;  %v1099_v11 = vld [vmem:[%s1353_s1 + $0x58] sm:$0xff]  ;;  %546 = vmatpush.bf16.msrb.mxu0 %v1097_v10 }
  0x16   : > { %v272_v35 = vrot.slane %v270_v30, 1  ;;  %v293_v36 = vshll.u32 %v260_v25, 16  ;;  %v648_v37 = vrot.slane %v1034_v20, 2  ;;  %v649_v38 = vrot.slane %v1034_v20, 3  ;;  %v988_v9 = vld [vmem:[%s1194_s10 + $0x4] sm:$0x3]  ;;  %593 = vmatpush.bf16.msrb.mxu1 %v1099_v11 }
  0x17   : > { %v650_v39 = vrot.slane %v1035_v29, 1  ;;  %v651_v40 = vrot.slane %v1035_v29, 2  ;;  %v652_v41 = vrot.slane %v1035_v29, 3  ;;  %v655_v42 = vsel %vm243_vm5, %v1034_v20, %v647_v34  ;;  %v1101_v12 = vld [vmem:[%s1353_s1 + $0x68] sm:$0xff]  ;;  %v1096_v17 = vld [vmem:[%s1353_s1 + $0x40] sm:$0xff]  ;;  %v1098_v18 = vld [vmem:[%s1353_s1 + $0x50] sm:$0xff] }
  0x18   : > { %v295_v43 = vsel %vm1225_vm4, %v288_v32, %v293_v36  ;;  %v301_v44 = vshll.u32 %v272_v35, 16  ;;  %v658_v45 = vsel %vm247_vm6, %v648_v37, %v649_v38  ;;  %v660_v46 = vsel %vm253_vm12, %v1034_v20, %v647_v34  ;;  %635 = vmatpush.bf16.msrb.mxu2 %v1101_v12  ;;  %v1100_v22 = vld [vmem:[%s1353_s1 + $0x60] sm:$0xff]  ;;  %v1102_v31 = vld [vmem:[%s1353_s1 + $0x70] sm:$0xff] }
  0x19   : > { %310 = vst [vmem:[#allocation1] ss:$9 sm:$0xff] %v295_v43  ;;  %v659_v47 = vsel %vm251_vm9, %v655_v42, %v658_v45  ;;  %v661_v48 = vsel %vm255_vm13, %v648_v37, %v649_v38  ;;  %v667_v49 = vsel %vm243_vm5, %v1035_v29, %v650_v39  ;;  %v670_v50 = vsel %vm247_vm6, %v651_v40, %v652_v41  ;;  %v973_v36 = vld [vmem:[%s1194_s10 + $0x4] sm:$0x1]  ;;  %v1051_v62 = vld [vmem:[%s1194_s10 + $0x4] sm:$0x2] }
  0x1a   : > { %v303_v51 = vsel %vm1225_vm4, %v296_v33, %v301_v44  ;;  %v662_v52 = vsel %vm257_vm15, %v660_v46, %v661_v48  ;;  %v671_v53 = vsel %vm251_vm9, %v667_v49, %v670_v50  ;;  %v672_v54 = vsel %vm253_vm12, %v1035_v29, %v650_v39  ;;  %547 = vmatpush.bf16.msrb.mxu0 %v1096_v17  ;;  %v972_v33 = vld [vmem:[%s1194_s10 + $0x2] sm:$0x1]  ;;  %v1005_v49 = vld [vmem:[%s1194_s10 + $0x4] sm:$0x2]  ;;  %v1103_v50 = vld [vmem:[%s1353_s1 + $0x78] sm:$0xff] }
  0x1b   : > { %313 = vst [vmem:[#allocation1 + $0x1] ss:$9 sm:$0xff] %v303_v51  ;;  %v664_v55 = vrot.slane %v662_v52, 1  ;;  %v673_v56 = vsel %vm255_vm13, %v651_v40, %v652_v41  ;;  %v677_v57 = vshrl.u32 %v659_v47, 16  ;;  %v685_v61 = vshrl.u32 %v671_v53, 16  ;;  %594 = vmatpush.bf16.msrb.mxu1 %v1098_v18  ;;  %724 = vmatpush.bf16.msrb.mxu3 %v1103_v50  ;;  %v1107_v18 = vld [vmem:[%s1355_s3 + $0x8] sm:$0xff] }
  0x1c   : > { %v674_v58 = vsel %vm257_vm15, %v672_v54, %v673_v56  ;;  %vm327_vm7 = vcmask 261120   ;;  %v469_v13 = vrot.slane %v987_v8, 1  ;;  %v470_v15 = vrot.slane %v987_v8, 2  ;;  %636 = vmatpush.bf16.msrb.mxu2 %v1100_v22  ;;  %v1004_v51 = vld [vmem:[%s1194_s10 + $0x2] sm:$0x2] }
  0x1d   : > { %v676_v59 = vrot.slane %v674_v58, 1  ;;  %v682_v60 = vshll.u32 %v664_v55, 16  ;;  %v471_v16 = vrot.slane %v987_v8, 3  ;;  %v472_v19 = vrot.slane %v988_v9, 1  ;;  %v1105_v55 = vld [vmem:[%s1353_s1 + $0x88] sm:$0xff]  ;;  %v1104_v56 = vld [vmem:[%s1353_s1 + $0x80] sm:$0xff] }
  0x1e   : > { %v473_v20 = vrot.slane %v988_v9, 2  ;;  %v474_v21 = vrot.slane %v988_v9, 3  ;;  %v482_v24 = vsel %vm253_vm12, %v987_v8, %v469_v13  ;;  %v477_v29 = vsel %vm243_vm5, %v987_v8, %v469_v13  ;;  %v1020_v58 = vld [vmem:[%s1194_s10 + $0x6] sm:$0x1] }
  0x1f   : > { %v1250_v63 = vsel %vm1225_vm4, %v677_v57, %v682_v60  ;;  %v690_v0 = vshll.u32 %v676_v59, 16  ;;  %v483_v25 = vsel %vm255_vm13, %v470_v15, %v471_v16  ;;  %v494_v26 = vsel %vm253_vm12, %v988_v9, %v472_v19  ;;  %725 = vmatpush.bf16.msrb.mxu3 %v1102_v31  ;;  %v1019_v57 = vld [vmem:[%s1194_s10 + $0x4] sm:$0x1] }
  0x20   : > { %v495_v27 = vsel %vm255_vm13, %v473_v20, %v474_v21  ;;  %v484_v28 = vsel %vm257_vm15, %v482_v24, %v483_v25  ;;  %v480_v30 = vsel %vm247_vm6, %v470_v15, %v471_v16  ;;  %v489_v34 = vsel %vm243_vm5, %v988_v9, %v472_v19  ;;  %v1109_v15 = vld [vmem:[%s1355_s3 + $0x18] sm:$0xff]  ;;  %v1108_v16 = vld [vmem:[%s1355_s3 + $0x10] sm:$0xff] }
  0x21   : > { %v1256_v3 = vsel %vm1225_vm4, %v685_v61, %v690_v0  ;;  %v496_v32 = vsel %vm257_vm15, %v494_v26, %v495_v27  ;;  %v492_v35 = vsel %vm247_vm6, %v473_v20, %v474_v21  ;;  %v486_v37 = vrot.slane %v484_v28, 1  ;;  %v1052_v61 = vld [vmem:[%s1194_s10 + $0x6] sm:$0x2] }
  0x22   : > { %v314_v4 = vld [vmem:[#allocation1] sm:$0xff]  ;;  %v481_v39 = vsel %vm251_vm9, %v477_v29, %v480_v30  ;;  %v498_v40 = vrot.slane %v496_v32, 1  ;;  %v493_v41 = vsel %vm251_vm9, %v489_v34, %v492_v35  ;;  %vm825_vm5 = vcmask 523264  }
  0x23   : > { %949 = vmatmul.msk.bf16.vlgmr.msra.gmra.mxu0 %vm327_vm7, %v314_v4  ;;  %344 = vst [vmem:[#allocation1] ss:$9 sm:$0xff] %v227_v1  ;;  %v499_v42 = vshrl.u32 %v481_v39, 16  ;;  %v504_v43 = vshll.u32 %v486_v37, 16  ;;  %v507_v44 = vshrl.u32 %v493_v41, 16  ;;  %v1106_v20 = vld [vmem:[%s1355_s3] sm:$0xff]  ;;  %v842_v50 = vlaneseq }
  0x24   : > { %347 = vst [vmem:[#allocation1 + $0x1] ss:$9 sm:$0xff] %v228_v2  ;;  %v512_v45 = vshll.u32 %v498_v40, 16  ;;  %771 = vmatpush.bf16.msra.mxu0 %v1105_v55  ;;  %v1118_v30 = vld [vmem:[%s1354_s2] ss:$0 sm:$0xff]  ;;  %vm868_vm12 = vcmask 58368  }
  0x25   : > { %383 = vst [vmem:[#allocation1 + $0x10] sm:$0xff] %v377_v5  ;;  %v506_v46 = vsel %vm1225_vm4, %v499_v42, %v504_v43  ;;  %v1119_v42 = vld [vmem:[%s1356_s4] ss:$0 sm:$0xff] }
  0x26   : > { %v514_v47 = vsel %vm1225_vm4, %v507_v44, %v512_v45 }
  0x28   : > { %772 = vmatpush.bf16.msra.mxu0 %v1104_v56 }
  0x2b   : > { %v348_v7 = vld [vmem:[#allocation1] sm:$0xff] }
  0x2c   : > { %958 = vmatmul.msk.bf16.vlgmr.msra.gmra.mxu1 %vm327_vm7, %v348_v7  ;;  %379 = vst [vmem:[#allocation1] sm:$0xff] %v376_v6  ;;  %v385_v14 = vld [vmem:[#allocation1 + $0x11] ss:$2 sm:$0xff] }
  0x2d   : > { %833 = vmatpush.bf16.msra.mxu1 %v1109_v15 }
  0x31   : > { %834 = vmatpush.bf16.msra.mxu1 %v1108_v16 }
  0x33   : > { %v381_v23 = vld [vmem:[#allocation1 + $0x1] ss:$2 sm:$0xff] }
  0x34   : > { %391 = vst [vmem:[#allocation1] ss:$9 sm:$0xff] %v381_v23 }
  0x35   : > { %393 = vst [vmem:[#allocation1 + $0x1] ss:$9 sm:$0xff] %v385_v14  ;;  %835 = vmatpush.bf16.msra.mxu1 %v1107_v18 }
  0x39   : > { %836 = vmatpush.bf16.msra.mxu1 %v1106_v20 }
  0x3c   : > { %v394_v38 = vld [vmem:[#allocation1] sm:$0xff] }
  0x3d   : > { %971 = vmatmul.msk.bf16.vlgmr.msra.gmra.mxu2 %vm327_vm7, %v394_v38  ;;  %432 = vst [vmem:[#allocation1] ss:$9 sm:$0xff] %v972_v33 }
  0x3e   : > { %435 = vst [vmem:[#allocation1 + $0x1] ss:$9 sm:$0xff] %v973_v36 }
  0x45   : > { %v436_v48 = vld [vmem:[#allocation1] sm:$0xff] }
  0x46   : > { %986 = vmatmul.msk.bf16.vlgmr.msra.gmra.mxu3 %vm327_vm7, %v436_v48  ;;  %521 = vst [vmem:[#allocation1] ss:$9 sm:$0xff] %v506_v46 }
  0x47   : > { %524 = vst [vmem:[#allocation1 + $0x1] ss:$9 sm:$0xff] %v514_v47 }
  0x48   : > { %561 = vst [vmem:[#allocation1 + $0x10] sm:$0xff] %v1005_v49 }
  0x4e   : > { %v525_v52 = vld [vmem:[#allocation1] sm:$0xff] }
  0x4f   : > { %1003 = vmatmul.msk.bf16.vlgmr.msrb.gmra.mxu0 %vm327_vm7, %v525_v52  ;;  %557 = vst [vmem:[#allocation1] sm:$0xff] %v1004_v51  ;;  %v563_v53 = vld [vmem:[#allocation1 + $0x11] ss:$2 sm:$0xff]  ;;  %v843_v52 = vand.u32 127, %v842_v50 }
  0x51   : > { %vm844_vm9 = vcmp.lt.s32.totalorder %v843_v52, 4 }
  0x56   : > { %v559_v54 = vld [vmem:[#allocation1 + $0x1] ss:$2 sm:$0xff] }
  0x57   : > { %569 = vst [vmem:[#allocation1] ss:$9 sm:$0xff] %v559_v54 }
  0x58   : > { %571 = vst [vmem:[#allocation1 + $0x1] ss:$9 sm:$0xff] %v563_v53 }
  0x5f   : > { %v572_v59 = vld [vmem:[#allocation1] sm:$0xff] }
  0x60   : > { %1018 = vmatmul.msk.bf16.vlgmr.msrb.gmra.mxu1 %vm327_vm7, %v572_v59  ;;  %610 = vst [vmem:[#allocation1] ss:$9 sm:$0xff] %v1019_v57 }
  0x61   : > { %613 = vst [vmem:[#allocation1 + $0x1] ss:$9 sm:$0xff] %v1020_v58 }
  0x68   : > { %v614_v60 = vld [vmem:[#allocation1] sm:$0xff] }
  0x69   : > { %1033 = vmatmul.msk.bf16.vlgmr.msrb.gmra.mxu2 %vm327_vm7, %v614_v60  ;;  %699 = vst [vmem:[#allocation1] ss:$9 sm:$0xff] %v1250_v63 }
  0x6a   : > { %702 = vst [vmem:[#allocation1 + $0x1] ss:$9 sm:$0xff] %v1256_v3 }
  0x6b   : > { %739 = vst [vmem:[#allocation1 + $0x10] sm:$0xff] %v1052_v61 }
  0x71   : > { %v703_v0 = vld [vmem:[#allocation1] sm:$0xff] }
  0x72   : > { %1050 = vmatmul.msk.bf16.vlgmr.msrb.gmra.mxu3 %vm327_vm7, %v703_v0  ;;  %735 = vst [vmem:[#allocation1] sm:$0xff] %v1051_v62  ;;  %v741_v1 = vld [vmem:[#allocation1 + $0x11] ss:$2 sm:$0xff] }
  0x79   : > { %v737_v2 = vld [vmem:[#allocation1 + $0x1] ss:$2 sm:$0xff] }
  0x7a   : > { %747 = vst [vmem:[#allocation1] ss:$9 sm:$0xff] %v737_v2 }
  0x7b   : > { %749 = vst [vmem:[#allocation1 + $0x1] ss:$9 sm:$0xff] %v741_v1 }
  0x82   : > { %v750_v4 = vld [vmem:[#allocation1] sm:$0xff] }
  0x83   : > { %1065 = vmatmul.msk.bf16.vlgmr.msra.gmra.mxu0 %vm327_vm7, %v750_v4 }
  0xa0   : > { %v339_v5 = vpop.f32.mrf.mxu0 }
  0xa8   : > { %v341_v6 = vpop.f32.mrf.mxu0 }
  0xa9   : > { %v372_v7 = vpop.f32.mrf.mxu1 }
  0xaa   : > { %v373_v8 = vadd.f32 %v372_v7, %v339_v5 }
  0xb1   : > { %v374_v63 = vpop.f32.mrf.mxu1 }
  0xc0   : > { %v418_v9 = vpop.f32.mrf.mxu2 }
  0xc1   : > { %v422_v21 = vadd.f32 %v418_v9, %v373_v8 }
  0xc8   : > { %v420_v3 = vpop.f32.mrf.mxu2 }
  0xc9   : > { %v460_v10 = vpop.f32.mrf.mxu3 }
  0xca   : > { %v464_v22 = vadd.f32 %v460_v10, %v422_v21 }
  0xcc   : > { %v549_v11 = vpop.f32.mrf.mxu0 }
  0xcd   : > { %v553_v25 = vadd.f32 %v549_v11, %v464_v22 }
  0xd1   : > { %v462_v12 = vpop.f32.mrf.mxu3 }
  0xd4   : > { %v551_v13 = vpop.f32.mrf.mxu0 }
  0xdd   : > { %v596_v14 = vpop.f32.mrf.mxu1 }
  0xde   : > { %v600_v26 = vadd.f32 %v596_v14, %v553_v25 }
  0xe5   : > { %v598_v17 = vpop.f32.mrf.mxu1 }
  0xec   : > { %v638_v19 = vpop.f32.mrf.mxu2 }
  0xed   : > { %v642_v27 = vadd.f32 %v638_v19, %v600_v26 }
  0xf4   : > { %v640_v23 = vpop.f32.mrf.mxu2 }
  0xf5   : > { %v727_v24 = vpop.f32.mrf.mxu3 }
  0xf6   : > { %v731_v29 = vadd.f32 %v727_v24, %v642_v27 }
  0xfd   : > { %v729_v28 = vpop.f32.mrf.mxu3 }
 0x100   : > { %v774_v32 = vpop.f32.mrf.mxu0 }
 0x101   : > { %v778_v33 = vadd.f32 %v774_v32, %v731_v29 }
 0x103   : > { %v782_v34 = vadd.f32 %v1118_v30, %v778_v33 }
 0x105   : > { %v783_v35 = vadd.f32 3.0, %v782_v34 }
 0x107   : > { %v784_v36 = vmax.f32 %v783_v35, 0.0 }
 0x108   : > { %v776_v37 = vpop.f32.mrf.mxu0 }
 0x109   : > { %v785_v38 = vmin.f32 %v784_v36, 6.0 }
 0x10b   : > { %v786_v39 = vmul.f32 %v785_v38, %v782_v34 }
 0x10d   : > { %v787_v40 = vmul.f32 0.16666667, %v786_v39 }
 0x10f   : > { %v788_v41 = vpack.c.bf16 %v787_v40, %v787_v40 }
 0x111   : > { %1082 = vmatmul.msk.bf16.vlgmr.msra.gmra.mxu1 %vm825_vm5, %v788_v41 }
 0x18e   : > { %v838_v43 = vpop.f32.mrf.mxu1 }
 0x18f   : > { %v839_v44 = vadd.f32 %v1119_v42, %v838_v43 }
 0x191   : > { %v1083_v45 = vmul.f32 -1.442695, %v839_v44 }
 0x193   : > { %1120 = vpow2.f32 %v1083_v45 }
 0x196   : > { %v840_v46 = vpop.f32.mrf.mxu1 }
 0x199   : > { %v1121_v47 = vpop.eup %1120 }
 0x19a   : > { %v848_v48 = vadd.f32 1.0, %v1121_v47 }
 0x19c   : > { %1122 = vrcp.f32 %v848_v48  ;;  %v860_v53 = vand.u32 2147483648, %v848_v48  ;;  %v858_v55 = vand.u32 2147483647, %v848_v48  ;;  %vm854_vm8 = vweird.f32 %v848_v48 }
 0x19e   : > { %v861_v57 = vor.u32 1.1754944e-38, %v860_v53  ;;  %vm859_vm11 = vcmp.eq.f32.partialorder %v858_v55, 8.507059e+37 }
 0x1a2   : > { %v1123_v49 = vpop.eup %1122 }
 0x1a3   : > { %v850_v51 = vmul.f32 %v1123_v49, %v848_v48  ;;  %vm855_vm6 = vweird.f32 %v1123_v49 }
 0x1a4   : > { %vm856_vm10 = vmor %vm854_vm8, %vm855_vm6 }
 0x1a5   : > { %v851_v31 = vsub.f32 1.0, %v850_v51 }
 0x1a7   : > { %v852_v54 = vmul.f32 %v1123_v49, %v851_v31 }
 0x1a9   : > { %v853_v56 = vadd.f32 %v1123_v49, %v852_v54 }
 0x1ab   : > { %v857_v58 = vsel %vm856_vm10, %v1123_v49, %v853_v56 }
 0x1ac   : > { %v862_v59 = vsel %vm859_vm11, %v861_v57, %v857_v58 }
 0x1ad   : > { %v864_v60 = vsel %vm844_vm9, %v862_v59, %v839_v44 }
 0x1ae   : > { %v866_v61 = vrot.slane %v864_v60, 2  ;;  %869 = vst.msk [vmem:[%s224_s29] sm:$0x3] %vm868_vm12, %v864_v60 }
 0x1b0   : > { %870 = vst.msk [vmem:[%s224_s29 + $0x2] sm:$0x3] %vm868_vm12, %v866_v61 }
 0x1b1 PF: > { %s15_s18 = sadd.s32 1, %s1130_s18  }
 0x1b2   : > { %p12_p4 = scmp.ge.s32.totalorder %s15_s18, 4  }
 0x1b4   :  { %14 = sbr.rel (!%p12_p4) target bundleno = 1 (0x1), region = 95 }

// kernel: model_forward.27
= control target key start
LH: loop header
LB: loop body
LE: loop exit
PB: predicated region body
PF: predicated region fallthrough
CT: control target
= control target key end

     0   :  { %s1557_s18 = smov 0   ;;  %s1809_s0 = inlined_call_operand.vmem [shape: bf16[2,6,6,32], index: 0, kind: input, shape index: {}]   ;;  %s1810_s1 = inlined_call_operand.vmem [shape: bf16[9,32,64], index: 1, kind: input, shape index: {}]   ;;  %s1811_s2 = inlined_call_operand.vmem [shape: f32[1,64], index: 2, kind: input, shape index: {}]   ;;  %s1812_s3 = inlined_call_operand.vmem [shape: bf16[64,8], index: 3, kind: input, shape index: {}]   ;;  %s1813_s4 = inlined_call_operand.vmem [shape: f32[1,8], index: 4, kind: input, shape index: {}]   ;;  %s1814_s5 = inlined_call_operand.vmem [shape: f32[2,4,4,8], index: 5, kind: output, shape index: {}]  }
   0x1 LB: > { %s1287_s19 = sadd.s32 4294967295, %s1525_s18   ;;  %p1291_p0 = scmp.ge.s32.totalorder %s1525_s18, 1  ;;  %s1525_s18 = sphi %s1557_s18, %s15_s18  }
   0x2   : > { %p187_p1 = scmp.lt.s32.totalorder %s1525_s18, 3 }
   0x4   : > { %p188_p2 = pnand %p1291_p0, %p187_p1 }
   0x5   : > { %p215_p3 = scmp.lt.s32.totalorder (!%p188_p2), %s1287_s19, 1 }
   0x6   : > { %191 = sbr.rel (%p188_p2) target bundleno = 448 (0x1c0), region = 40 }
   0xb   : > { %v1481_v0 = vld [vmem:[%s1810_s1 + $0x18] sm:$0xff]  ;;  %v1483_v1 = vld [vmem:[%s1810_s1 + $0x28] sm:$0xff]  ;;  %v1480_v2 = vld [vmem:[%s1810_s1 + $0x10] sm:$0xff]  ;;  %s1820_s19 = smov (!%p215_p3, %s1287_s19), 1  ;;  %vm247_vm0 = vcmask 1041408   ;;  %vm251_vm1 = vcmask 1043458  }
   0xc   : > { %370 = vmatpush.bf16.msra.mxu0 %v1481_v0  ;;  %518 = vmatpush.bf16.msra.mxu2 %v1483_v1  ;;  %v1479_v3 = vld [vmem:[%s1810_s1 + $0x8] sm:$0xff]  ;;  %v1482_v4 = vld [vmem:[%s1810_s1 + $0x20] sm:$0xff]  ;;  %v1485_v5 = vld [vmem:[%s1810_s1 + $0x38] sm:$0xff]  ;;  %s1500_s7 = smul.u32 24, %s1820_s19  ;;  %vm273_vm2 = vsmask.f32 1280 }
   0xd   : > { %410 = vmatpush.bf16.msra.mxu1 %v1479_v3  ;;  %570 = vmatpush.bf16.msra.mxu3 %v1485_v5  ;;  %vm274_vm3 = vsmask.f32 3336  ;;  %vm276_vm4 = vsmask.f32 5392  ;;  %vm278_vm7 = vsmask.f32 7448 }
   0xe   : > { %s1589_s10 = scalar_lea.vmem %s1809_s0, %s1500_s7  ;;  %vm275_vm5 = vmor %vm273_vm2, %vm274_vm3  ;;  %v1478_v62 = vld [vmem:[%s1810_s1] sm:$0xff]  ;;  %v1484_v63 = vld [vmem:[%s1810_s1 + $0x30] sm:$0xff]  ;;  %vm458_vm9 = vcmask 1040384   ;;  %vm459_vm10 = vcmask 1042434   ;;  %vm361_vm11 = vcmask 261120   ;;  %vm461_vm13 = vcmask 1044484  }
   0xf   : > { %v235_v6 = vld [vmem:[%s1589_s10] sm:$0x7]  ;;  %v236_v7 = vld [vmem:[%s1589_s10 + $0x4] sm:$0x7]  ;;  %v237_v8 = vld [vmem:[%s1589_s10 + $0x8] sm:$0x7] }
  0x10   : > { %371 = vmatpush.bf16.msra.mxu0 %v1480_v2  ;;  %519 = vmatpush.bf16.msra.mxu2 %v1482_v4  ;;  %v238_v9 = vld [vmem:[%s1589_s10 + $0xc] sm:$0x7]  ;;  %v243_v10 = vrot.slane %v235_v6, 2  ;;  %v244_v11 = vrot.slane %v236_v7, 2  ;;  %v245_v12 = vrot.slane %v237_v8, 2  ;;  %vm277_vm6 = vmor %vm275_vm5, %vm276_vm4  ;;  %vm463_vm15 = vcmask 1046534  }
  0x11   : > { %v246_v13 = vrot.slane %v238_v9, 2  ;;  %vm1605_vm8 = vmor %vm277_vm6, %vm278_vm7  ;;  %411 = vmatpush.bf16.msra.mxu1 %v1478_v62  ;;  %571 = vmatpush.bf16.msra.mxu3 %v1484_v63  ;;  %v418_v1 = vld [vmem:[%s1589_s10] sm:$0x6]  ;;  %v419_v2 = vld [vmem:[%s1589_s10 + $0x4] sm:$0x6]  ;;  %s1477_s26 = sshll.u32 %s1820_s19, 4 }
  0x12   : > { %v250_v14 = vsel %vm247_vm0, %v235_v6, %v243_v10  ;;  %v252_v15 = vsel %vm251_vm1, %v235_v6, %v243_v10  ;;  %v257_v16 = vsel %vm247_vm0, %v236_v7, %v244_v11  ;;  %v258_v17 = vsel %vm251_vm1, %v236_v7, %v244_v11  ;;  %v420_v3 = vld [vmem:[%s1589_s10 + $0x8] sm:$0x6]  ;;  %v227_v4 = vld [vmem:[%s1589_s10] sm:$0x3]  ;;  %v421_v5 = vld [vmem:[%s1589_s10 + $0xc] sm:$0x6]  ;;  %s224_s29 = scalar_lea.vmem %s1814_s5, %s1477_s26 }
  0x13   : > { %v254_v18 = vrot.slane %v252_v15, 2  ;;  %v260_v19 = vrot.slane %v258_v17, 2  ;;  %v263_v20 = vsel %vm247_vm0, %v237_v8, %v245_v12  ;;  %v264_v21 = vsel %vm251_vm1, %v237_v8, %v245_v12  ;;  %v228_v7 = vld [vmem:[%s1589_s10 + $0x4] sm:$0x3]  ;;  %v229_v8 = vld [vmem:[%s1589_s10 + $0x8] sm:$0x3]  ;;  %vm460_vm12 = vmor %vm458_vm9, %vm459_vm10 }
  0x14   : > { %v266_v22 = vrot.slane %v264_v21, 2  ;;  %v269_v23 = vsel %vm247_vm0, %v238_v9, %v246_v13  ;;  %v270_v24 = vsel %vm251_vm1, %v238_v9, %v246_v13  ;;  %v280_v25 = vshrl.u32 %v250_v14, 16  ;;  %v230_v12 = vld [vmem:[%s1589_s10 + $0xc] sm:$0x3]  ;;  %vm462_vm14 = vmor %vm460_vm12, %vm461_vm13 }
  0x15   : > { %v272_v26 = vrot.slane %v270_v24, 2  ;;  %v283_v27 = vshll.u32 %v250_v14, 16  ;;  %v289_v28 = vshll.u32 %v254_v18, 16  ;;  %v293_v29 = vshrl.u32 %v257_v16, 16  ;;  %v1487_v14 = vld [vmem:[%s1810_s1 + $0x48] sm:$0xff]  ;;  %vm1647_vm2 = vmor %vm462_vm14, %vm463_vm15 }
  0x16   : > { %v282_v30 = vrot.slane %v280_v25, 6  ;;  %v296_v31 = vshll.u32 %v257_v16, 16  ;;  %v302_v32 = vshll.u32 %v260_v19, 16  ;;  %v306_v33 = vshrl.u32 %v263_v20, 16  ;;  %705 = vmatpush.bf16.msrb.mxu0 %v1487_v14  ;;  %v1486_v19 = vld [vmem:[%s1810_s1 + $0x40] sm:$0xff] }
  0x17   : > { %v285_v34 = vrot.slane %v283_v27, 7  ;;  %v295_v35 = vrot.slane %v293_v29, 6  ;;  %v309_v36 = vshll.u32 %v263_v20, 16  ;;  %v291_v37 = vrot.slane %v289_v28, 7  ;;  %v1498_v27 = vld [vmem:[%s1812_s3 + $0x10] sm:$0xff] }
  0x18   : > { %v298_v38 = vrot.slane %v296_v31, 7  ;;  %v308_v39 = vrot.slane %v306_v33, 6  ;;  %v315_v40 = vshll.u32 %v266_v22, 16  ;;  %v319_v43 = vshrl.u32 %v269_v23, 16  ;;  %v1357_v33 = vld [vmem:[%s1589_s10 + $0xc] sm:$0x7] }
  0x19   : > { %v286_v41 = vor.u32 %v285_v34, %v282_v30  ;;  %v311_v42 = vrot.slane %v309_v36, 7  ;;  %v322_v44 = vshll.u32 %v269_v23, 16  ;;  %v304_v47 = vrot.slane %v302_v32, 7  ;;  %v1356_v30 = vld [vmem:[%s1589_s10 + $0x8] sm:$0x7] }
  0x1a   : > { %v299_v46 = vor.u32 %v298_v38, %v295_v35  ;;  %v317_v48 = vrot.slane %v315_v40, 7  ;;  %v328_v49 = vshll.u32 %v272_v26, 16  ;;  %v321_v52 = vrot.slane %v319_v43, 6  ;;  %v1355_v26 = vld [vmem:[%s1589_s10 + $0x4] sm:$0x7]  ;;  %706 = vmatpush.bf16.msrb.mxu0 %v1486_v19 }
  0x1b   : > { %v287_v50 = vrot.slane %v286_v41, 2  ;;  %v312_v51 = vor.u32 %v311_v42, %v308_v39  ;;  %v324_v53 = vrot.slane %v322_v44, 7  ;;  %v426_v6 = vrot.slane %v418_v1, 2  ;;  %v1358_v36 = vld [vmem:[%s1589_s10 + $0x10] sm:$0x7] }
  0x1c   : > { %v300_v54 = vrot.slane %v299_v46, 2  ;;  %v330_v58 = vrot.slane %v328_v49, 7  ;;  %v427_v9 = vrot.slane %v419_v2, 2  ;;  %v428_v11 = vrot.slane %v420_v3, 2 }
  0x1d   : > { %v292_v55 = vsel %vm1605_vm8, %v287_v50, %v291_v37  ;;  %v313_v56 = vrot.slane %v312_v51, 2  ;;  %v325_v57 = vor.u32 %v324_v53, %v321_v52  ;;  %v429_v13 = vrot.slane %v421_v5, 2  ;;  %v1491_v50 = vld [vmem:[%s1810_s1 + $0x68] sm:$0xff]  ;;  %v1488_v52 = vld [vmem:[%s1810_s1 + $0x50] sm:$0xff] }
  0x1e   : > { %v305_v59 = vsel %vm1605_vm8, %v300_v54, %v304_v47  ;;  %338 = vst [vmem:[#allocation1] ss:$4 sm:$0xff] %v292_v55  ;;  %v432_v15 = vsel %vm247_vm0, %v418_v1, %v426_v6  ;;  %v434_v16 = vsel %vm251_vm1, %v418_v1, %v426_v6  ;;  %v439_v17 = vsel %vm247_vm0, %v419_v2, %v427_v9  ;;  %v1338_v1 = vld [vmem:[%s1589_s10 + $0x4] sm:$0x3]  ;;  %v1339_v6 = vld [vmem:[%s1589_s10 + $0x8] sm:$0x3] }
  0x1f   : > { %v318_v60 = vsel %vm1605_vm8, %v313_v56, %v317_v48  ;;  %v326_v61 = vrot.slane %v325_v57, 2  ;;  %341 = vst [vmem:[#allocation1 + $0x1] ss:$4 sm:$0xff] %v305_v59  ;;  %v441_v18 = vsel %vm251_vm1, %v419_v2, %v427_v9  ;;  %v446_v20 = vsel %vm247_vm0, %v420_v3, %v428_v11  ;;  %v1489_v48 = vld [vmem:[%s1810_s1 + $0x58] sm:$0xff]  ;;  %860 = vmatpush.bf16.msrb.mxu2 %v1491_v50 }
  0x20   : > { %344 = vst [vmem:[#allocation1 + $0x2] ss:$4 sm:$0xff] %v318_v60  ;;  %v448_v21 = vsel %vm251_vm1, %v420_v3, %v428_v11  ;;  %v453_v22 = vsel %vm247_vm0, %v421_v5, %v429_v13  ;;  %v455_v23 = vsel %vm251_vm1, %v421_v5, %v429_v13  ;;  %v1317_v24 = vrot.slane %v432_v15, 9  ;;  %808 = vmatpush.bf16.msrb.mxu1 %v1489_v48 }
  0x21   : > { %v331_v0 = vsel %vm1605_vm8, %v326_v61, %v330_v58  ;;  %v1318_v25 = vrot.slane %v434_v16, 9  ;;  %v1319_v28 = vrot.slane %v439_v17, 9  ;;  %v1320_v29 = vrot.slane %v441_v18, 9  ;;  %v1341_v18 = vld [vmem:[%s1589_s10 + $0x10] sm:$0x3] }
  0x22   : > { %347 = vst [vmem:[#allocation1 + $0x3] ss:$4 sm:$0xff] %v331_v0  ;;  %v1321_v31 = vrot.slane %v446_v20, 9  ;;  %v1322_v32 = vrot.slane %v448_v21, 9  ;;  %v1323_v34 = vrot.slane %v453_v22, 9  ;;  %v1324_v35 = vrot.slane %v455_v23, 9 }
  0x23   : > { %v588_v37 = vrot.slane %v1355_v26, 2  ;;  %v468_v38 = vsel %vm1647_vm2, %v1317_v24, %v1318_v25  ;;  %v589_v39 = vrot.slane %v1356_v30, 2  ;;  %v472_v40 = vsel %vm1647_vm2, %v1319_v28, %v1320_v29  ;;  %v1493_v23 = vld [vmem:[%s1810_s1 + $0x78] sm:$0xff]  ;;  %v1490_v24 = vld [vmem:[%s1810_s1 + $0x60] sm:$0xff] }
  0x24   : > { %v590_v41 = vrot.slane %v1357_v33, 2  ;;  %v476_v43 = vsel %vm1647_vm2, %v1321_v31, %v1322_v32  ;;  %v591_v44 = vrot.slane %v1358_v36, 2  ;;  %v480_v46 = vsel %vm1647_vm2, %v1323_v34, %v1324_v35  ;;  %809 = vmatpush.bf16.msrb.mxu1 %v1488_v52  ;;  %995 = vmatpush.bf16.msrb.mxu3 %v1493_v23  ;;  %v1372_v34 = vld [vmem:[%s1589_s10 + $0x4] sm:$0x6] }
  0x25   : > { %v594_v47 = vsel %vm247_vm0, %v1355_v26, %v588_v37  ;;  %v600_v49 = vsel %vm247_vm0, %v1356_v30, %v589_v39  ;;  %v595_v56 = vsel %vm251_vm1, %v1355_v26, %v588_v37  ;;  %v601_v59 = vsel %vm251_vm1, %v1356_v30, %v589_v39  ;;  %861 = vmatpush.bf16.msrb.mxu2 %v1490_v24  ;;  %v1373_v37 = vld [vmem:[%s1589_s10 + $0x8] sm:$0x6] }
  0x26   : > { %v606_v51 = vsel %vm247_vm0, %v1357_v33, %v590_v41  ;;  %v612_v53 = vsel %vm247_vm0, %v1358_v36, %v591_v44  ;;  %v616_v54 = vshrl.u32 %v594_v47, 16  ;;  %v619_v55 = vshll.u32 %v594_v47, 16 }
  0x27   : > { %v629_v57 = vshrl.u32 %v600_v49, 16  ;;  %v632_v58 = vshll.u32 %v600_v49, 16  ;;  %v642_v60 = vshrl.u32 %v606_v51, 16  ;;  %v645_v61 = vshll.u32 %v606_v51, 16 }
  0x28   : > { %v607_v62 = vsel %vm251_vm1, %v1357_v33, %v590_v41  ;;  %v655_v63 = vshrl.u32 %v612_v53, 16  ;;  %v658_v0 = vshll.u32 %v612_v53, 16  ;;  %v597_v2 = vrot.slane %v595_v56, 2 }
  0x29   : > { %v348_v10 = vld.sshfl [vmem:[#allocation1] sm:$0xff pattern:$0x73625140]  ;;  %v613_v3 = vsel %vm251_vm1, %v1358_v36, %v591_v44  ;;  %v621_v5 = vrot.slane %v619_v55, 7  ;;  %v634_v9 = vrot.slane %v632_v58, 7  ;;  %v609_v11 = vrot.slane %v607_v62, 2 }
  0x2a   : > { %1307 = vmatmul.msk.bf16.vlgmr.msra.gmra.mxu0 %vm361_vm11, %v348_v10  ;;  %379 = vst [vmem:[#allocation1] ss:$4 sm:$0xff] %v227_v4  ;;  %v618_v4 = vrot.slane %v616_v54, 6  ;;  %v1340_v10 = vld [vmem:[%s1589_s10 + $0xc] sm:$0x3]  ;;  %v647_v13 = vrot.slane %v645_v61, 7 }
  0x2b   : > { %382 = vst [vmem:[#allocation1 + $0x1] ss:$4 sm:$0xff] %v228_v7  ;;  %v603_v7 = vrot.slane %v601_v59, 2  ;;  %v615_v15 = vrot.slane %v613_v3, 2  ;;  %v657_v16 = vrot.slane %v655_v63, 6  ;;  %v660_v17 = vrot.slane %v658_v0, 7 }
  0x2c   : > { %385 = vst [vmem:[#allocation1 + $0x2] ss:$4 sm:$0xff] %v229_v8  ;;  %v631_v8 = vrot.slane %v629_v57, 6  ;;  %v622_v19 = vor.u32 %v621_v5, %v618_v4  ;;  %v625_v20 = vshll.u32 %v597_v2, 16  ;;  %v651_v26 = vshll.u32 %v609_v11, 16  ;;  %v1492_v54 = vld [vmem:[%s1810_s1 + $0x70] sm:$0xff] }
  0x2d   : > { %388 = vst [vmem:[#allocation1 + $0x3] ss:$4 sm:$0xff] %v230_v12  ;;  %v644_v12 = vrot.slane %v642_v60, 6  ;;  %v638_v22 = vshll.u32 %v603_v7, 16  ;;  %v661_v28 = vor.u32 %v660_v17, %v657_v16  ;;  %v664_v29 = vshll.u32 %v615_v15, 16  ;;  %v1495_v55 = vld [vmem:[%s1810_s1 + $0x88] sm:$0xff]  ;;  %996 = vmatpush.bf16.msrb.mxu3 %v1492_v54 }
  0x2e   : > { %v635_v21 = vor.u32 %v634_v9, %v631_v8  ;;  %v623_v30 = vrot.slane %v622_v19, 2  ;;  %v627_v31 = vrot.slane %v625_v20, 7  ;;  %v653_v36 = vrot.slane %v651_v26, 7  ;;  %1098 = vmatpush.bf16.msra.mxu0 %v1495_v55  ;;  %v1414_v0 = vld [vmem:[%s1589_s10 + $0x8] sm:$0x7] }
  0x2f   : > { %v648_v25 = vor.u32 %v647_v13, %v644_v12  ;;  %v640_v33 = vrot.slane %v638_v22, 7  ;;  %v666_v39 = vrot.slane %v664_v29, 7  ;;  %v1415_v3 = vld [vmem:[%s1589_s10 + $0xc] sm:$0x7]  ;;  %v1417_v9 = vld [vmem:[%s1589_s10 + $0x14] sm:$0x7] }
  0x30   : > { %v636_v32 = vrot.slane %v635_v21, 2  ;;  %v628_v41 = vsel %vm1605_vm8, %v623_v30, %v627_v31  ;;  %v879_v12 = vrot.slane %v1415_v3, 2  ;;  %v881_v17 = vrot.slane %v1417_v9, 2  ;;  %v1494_v29 = vld [vmem:[%s1810_s1 + $0x80] sm:$0xff]  ;;  %v1400_v54 = vld [vmem:[%s1589_s10 + $0x14] sm:$0x3] }
  0x31   : > { %v649_v35 = vrot.slane %v648_v25, 2  ;;  %vm1227_vm7 = vcmask 60416  }
  0x32   : > { %v641_v44 = vsel %vm1605_vm8, %v636_v32, %v640_v33  ;;  %v890_v20 = vsel %vm247_vm0, %v1415_v3, %v879_v12  ;;  %v902_v22 = vsel %vm247_vm0, %v1417_v9, %v881_v17  ;;  %v891_v30 = vsel %vm251_vm1, %v1415_v3, %v879_v12  ;;  %1099 = vmatpush.bf16.msra.mxu0 %v1494_v29  ;;  %v1431_v3 = vld [vmem:[%s1589_s10 + $0x8] sm:$0x6] }
  0x33   : > { %v654_v48 = vsel %vm1605_vm8, %v649_v35, %v653_v36  ;;  %v919_v26 = vshrl.u32 %v890_v20, 16  ;;  %v948_v35 = vshll.u32 %v902_v22, 16  ;;  %v1397_v36 = vld [vmem:[%s1589_s10 + $0x8] sm:$0x3]  ;;  %v1013_v12 = vrot.slane %v1431_v3, 2 }
  0x34   : > { %v389_v42 = vld.sshfl [vmem:[#allocation1] sm:$0xff pattern:$0x73625140] }
  0x35   : > { %487 = vst [vmem:[#allocation1] ss:$4 sm:$0xff] %v468_v38  ;;  %1316 = vmatmul.msk.bf16.vlgmr.msra.gmra.mxu1 %vm361_vm11, %v389_v42  ;;  %v662_v38 = vrot.slane %v661_v28, 2  ;;  %v1375_v42 = vld [vmem:[%s1589_s10 + $0x10] sm:$0x6]  ;;  %v922_v28 = vshll.u32 %v890_v20, 16  ;;  %v1019_v20 = vsel %vm247_vm0, %v1431_v3, %v1013_v12 }
  0x36   : > { %490 = vst [vmem:[#allocation1 + $0x1] ss:$4 sm:$0xff] %v472_v40  ;;  %v1374_v40 = vld [vmem:[%s1589_s10 + $0xc] sm:$0x6]  ;;  %v726_v51 = vrot.slane %v1375_v42, 2 }
  0x37   : > { %493 = vst [vmem:[#allocation1 + $0x2] ss:$4 sm:$0xff] %v476_v43  ;;  %v723_v43 = vrot.slane %v1372_v34, 2  ;;  %v725_v49 = vrot.slane %v1374_v40, 2  ;;  %v667_v50 = vsel %vm1605_vm8, %v662_v38, %v666_v39  ;;  %v903_v38 = vsel %vm251_vm1, %v1417_v9, %v881_v17  ;;  %v1433_v9 = vld [vmem:[%s1589_s10 + $0x10] sm:$0x6] }
  0x38   : > { %496 = vst [vmem:[#allocation1 + $0x3] ss:$4 sm:$0xff] %v480_v46  ;;  %v724_v46 = vrot.slane %v1373_v37, 2  ;;  %v750_v60 = vsel %vm247_vm0, %v1375_v42, %v726_v51  ;;  %v752_v61 = vsel %vm251_vm1, %v1375_v42, %v726_v51  ;;  %v893_v42 = vrot.slane %v891_v30, 2 }
  0x39   : > { %v729_v52 = vsel %vm247_vm0, %v1372_v34, %v723_v43  ;;  %v731_v53 = vsel %vm251_vm1, %v1372_v34, %v723_v43  ;;  %v743_v58 = vsel %vm247_vm0, %v1374_v40, %v725_v49  ;;  %v745_v59 = vsel %vm251_vm1, %v1374_v40, %v725_v49 }
  0x3a   : > { %v736_v56 = vsel %vm247_vm0, %v1373_v37, %v724_v46  ;;  %v738_v57 = vsel %vm251_vm1, %v1373_v37, %v724_v46  ;;  %v1376_v62 = vrot.slane %v729_v52, 9  ;;  %v1377_v63 = vrot.slane %v731_v53, 9  ;;  %v1399_v46 = vld [vmem:[%s1589_s10 + $0x10] sm:$0x3] }
  0x3b   : > { %v1379_v2 = vrot.slane %v738_v57, 9  ;;  %v1380_v4 = vrot.slane %v743_v58, 9  ;;  %v1381_v5 = vrot.slane %v745_v59, 9  ;;  %v1382_v7 = vrot.slane %v750_v60, 9 }
  0x3c   : > { %v1383_v8 = vrot.slane %v752_v61, 9  ;;  %v758_v11 = vsel %vm1647_vm2, %v1376_v62, %v1377_v63  ;;  %v945_v34 = vshrl.u32 %v902_v22, 16  ;;  %v921_v43 = vrot.slane %v919_v26, 6 }
  0x3d   : > { %v766_v16 = vsel %vm1647_vm2, %v1380_v4, %v1381_v5  ;;  %v905_v51 = vrot.slane %v903_v38, 2  ;;  %v950_v53 = vrot.slane %v948_v35, 7  ;;  %v928_v58 = vshll.u32 %v893_v42, 16 }
  0x3e   : > { %v947_v52 = vrot.slane %v945_v34, 6  ;;  %v1015_v17 = vrot.slane %v1433_v9, 2 }
  0x3f   : > { %v497_v14 = vld.sshfl [vmem:[#allocation1] sm:$0xff pattern:$0x73625140]  ;;  %v954_v62 = vshll.u32 %v905_v51, 16 }
  0x40   : > { %1337 = vmatmul.msk.bf16.vlgmr.msra.gmra.mxu2 %vm361_vm11, %v497_v14  ;;  %539 = vst [vmem:[#allocation1] ss:$4 sm:$0xff] %v1338_v1  ;;  %v1378_v1 = vrot.slane %v736_v56, 9  ;;  %v951_v61 = vor.u32 %v950_v53, %v947_v52 }
  0x41   : > { %542 = vst [vmem:[#allocation1 + $0x1] ss:$4 sm:$0xff] %v1339_v6  ;;  %v1416_v6 = vld [vmem:[%s1589_s10 + $0x10] sm:$0x7] }
  0x42   : > { %545 = vst [vmem:[#allocation1 + $0x2] ss:$4 sm:$0xff] %v1340_v10  ;;  %v878_v10 = vrot.slane %v1414_v0, 2  ;;  %v762_v13 = vsel %vm1647_vm2, %v1378_v1, %v1379_v2  ;;  %v880_v14 = vrot.slane %v1416_v6, 2  ;;  %v930_v2 = vrot.slane %v928_v58, 7  ;;  %v1496_v58 = vld [vmem:[%s1812_s3] sm:$0xff] }
  0x43   : > { %548 = vst [vmem:[#allocation1 + $0x3] ss:$4 sm:$0xff] %v1341_v18  ;;  %v770_v18 = vsel %vm1647_vm2, %v1382_v7, %v1383_v8  ;;  %v952_v7 = vrot.slane %v951_v61, 2  ;;  %v956_v8 = vrot.slane %v954_v62, 7 }
  0x44   : > { %v884_v19 = vsel %vm247_vm0, %v1414_v0, %v878_v10  ;;  %v896_v21 = vsel %vm247_vm0, %v1416_v6, %v880_v14  ;;  %v885_v25 = vsel %vm251_vm1, %v1414_v0, %v878_v10  ;;  %v897_v33 = vsel %vm251_vm1, %v1416_v6, %v880_v14  ;;  %v1432_v6 = vld [vmem:[%s1589_s10 + $0xc] sm:$0x6] }
  0x45   : > { %v906_v23 = vshrl.u32 %v884_v19, 16  ;;  %v909_v24 = vshll.u32 %v884_v19, 16  ;;  %v932_v31 = vshrl.u32 %v896_v21, 16  ;;  %v935_v32 = vshll.u32 %v896_v21, 16 }
  0x46   : > { %v887_v37 = vrot.slane %v885_v25, 2  ;;  %v1014_v14 = vrot.slane %v1432_v6, 2  ;;  %v1021_v21 = vsel %vm251_vm1, %v1431_v3, %v1013_v12  ;;  %v1035_v25 = vsel %vm251_vm1, %v1433_v9, %v1015_v17 }
  0x47   : > { %v908_v39 = vrot.slane %v906_v23, 6  ;;  %v911_v40 = vrot.slane %v909_v24, 7  ;;  %v937_v49 = vrot.slane %v935_v32, 7  ;;  %v1033_v24 = vsel %vm247_vm0, %v1433_v9, %v1015_v17 }
  0x48   : > { %v915_v56 = vshll.u32 %v887_v37, 16  ;;  %v1026_v22 = vsel %vm247_vm0, %v1432_v6, %v1014_v14  ;;  %v1028_v23 = vsel %vm251_vm1, %v1432_v6, %v1014_v14  ;;  %v1436_v29 = vrot.slane %v1021_v21, 9 }
  0x49   : > { %v912_v55 = vor.u32 %v911_v40, %v908_v39  ;;  %v1437_v30 = vrot.slane %v1026_v22, 9  ;;  %v1439_v32 = vrot.slane %v1033_v24, 9 }
  0x4a   : > { %v549_v47 = vld.sshfl [vmem:[#allocation1] sm:$0xff pattern:$0x73625140]  ;;  %v917_v0 = vrot.slane %v915_v56, 7 }
  0x4b   : > { %1354 = vmatmul.msk.bf16.vlgmr.msra.gmra.mxu3 %vm361_vm11, %v549_v47  ;;  %674 = vst [vmem:[#allocation1] ss:$4 sm:$0xff] %v628_v41  ;;  %v1398_v41 = vld [vmem:[%s1589_s10 + $0xc] sm:$0x3]  ;;  %v899_v47 = vrot.slane %v897_v33, 2  ;;  %v913_v63 = vrot.slane %v912_v55, 2 }
  0x4c   : > { %677 = vst [vmem:[#allocation1 + $0x1] ss:$4 sm:$0xff] %v641_v44  ;;  %v924_v44 = vrot.slane %v922_v28, 7  ;;  %v1435_v28 = vrot.slane %v1019_v20, 9  ;;  %v1440_v33 = vrot.slane %v1035_v25, 9 }
  0x4d   : > { %680 = vst [vmem:[#allocation1 + $0x2] ss:$4 sm:$0xff] %v654_v48  ;;  %v934_v48 = vrot.slane %v932_v31, 6  ;;  %v941_v60 = vshll.u32 %v899_v47, 16  ;;  %v918_v10 = vsel %vm1605_vm8, %v913_v63, %v917_v0  ;;  %v1438_v31 = vrot.slane %v1028_v23, 9  ;;  %v1499_v47 = vld [vmem:[%s1812_s3 + $0x18] sm:$0xff] }
  0x4e   : > { %683 = vst [vmem:[#allocation1 + $0x3] ss:$4 sm:$0xff] %v667_v50  ;;  %v925_v57 = vor.u32 %v924_v44, %v921_v43  ;;  %v1056_v39 = vsel %vm1647_vm2, %v1439_v32, %v1440_v33  ;;  %1168 = vmatpush.bf16.msra.mxu1 %v1499_v47 }
  0x4f   : > { %v938_v59 = vor.u32 %v937_v49, %v934_v48  ;;  %v943_v5 = vrot.slane %v941_v60, 7  ;;  %v1052_v37 = vsel %vm1647_vm2, %v1437_v30, %v1438_v31  ;;  %v1510_v30 = vld [vmem:[%s1813_s4] ss:$0 sm:$0xff] }
  0x50   : > { %v926_v1 = vrot.slane %v925_v57, 2 }
  0x51   : > { %v939_v4 = vrot.slane %v938_v59, 2 }
  0x52   : > { %1169 = vmatpush.bf16.msra.mxu1 %v1498_v27 }
  0x55   : > { %v684_v15 = vld.sshfl [vmem:[#allocation1] sm:$0xff pattern:$0x73625140] }
  0x56   : > { %1371 = vmatmul.msk.bf16.vlgmr.msrb.gmra.mxu0 %vm361_vm11, %v684_v15  ;;  %777 = vst [vmem:[#allocation1] ss:$4 sm:$0xff] %v758_v11  ;;  %v1434_v11 = vld [vmem:[%s1589_s10 + $0x14] sm:$0x6] }
  0x57   : > { %780 = vst [vmem:[#allocation1 + $0x1] ss:$4 sm:$0xff] %v762_v13  ;;  %v931_v13 = vsel %vm1605_vm8, %v926_v1, %v930_v2  ;;  %v1016_v19 = vrot.slane %v1434_v11, 2 }
  0x58   : > { %783 = vst [vmem:[#allocation1 + $0x2] ss:$4 sm:$0xff] %v766_v16  ;;  %v944_v16 = vsel %vm1605_vm8, %v939_v4, %v943_v5 }
  0x59   : > { %786 = vst [vmem:[#allocation1 + $0x3] ss:$4 sm:$0xff] %v770_v18  ;;  %v957_v18 = vsel %vm1605_vm8, %v952_v7, %v956_v8  ;;  %v1040_v45 = vsel %vm247_vm0, %v1434_v11, %v1016_v19  ;;  %v1042_v26 = vsel %vm251_vm1, %v1434_v11, %v1016_v19  ;;  %v1509_v7 = vld [vmem:[%s1811_s2] ss:$0 sm:$0xff]  ;;  %vm1160_vm0 = vcmask 523264  }
  0x5a   : > { %v1441_v34 = vrot.slane %v1040_v45, 9  ;;  %v1442_v35 = vrot.slane %v1042_v26, 9 }
  0x5c   : > { %v1060_v40 = vsel %vm1647_vm2, %v1441_v34, %v1442_v35 }
  0x60   : > { %v787_v50 = vld.sshfl [vmem:[#allocation1] sm:$0xff pattern:$0x73625140] }
  0x61   : > { %1396 = vmatmul.msk.bf16.vlgmr.msrb.gmra.mxu1 %vm361_vm11, %v787_v50  ;;  %829 = vst [vmem:[#allocation1] ss:$4 sm:$0xff] %v1397_v36  ;;  %v1048_v36 = vsel %vm1647_vm2, %v1435_v28, %v1436_v29 }
  0x62   : > { %832 = vst [vmem:[#allocation1 + $0x1] ss:$4 sm:$0xff] %v1398_v41 }
  0x63   : > { %835 = vst [vmem:[#allocation1 + $0x2] ss:$4 sm:$0xff] %v1399_v46 }
  0x64   : > { %838 = vst [vmem:[#allocation1 + $0x3] ss:$4 sm:$0xff] %v1400_v54  ;;  %v1497_v54 = vld [vmem:[%s1812_s3 + $0x8] sm:$0xff] }
  0x65   : > { %1170 = vmatpush.bf16.msra.mxu1 %v1497_v54 }
  0x69   : > { %1171 = vmatpush.bf16.msra.mxu1 %v1496_v58 }
  0x6b   : > { %v839_v15 = vld.sshfl [vmem:[#allocation1] sm:$0xff pattern:$0x73625140] }
  0x6c   : > { %1413 = vmatmul.msk.bf16.vlgmr.msrb.gmra.mxu2 %vm361_vm11, %v839_v15  ;;  %964 = vst [vmem:[#allocation1] ss:$4 sm:$0xff] %v918_v10 }
  0x6d   : > { %967 = vst [vmem:[#allocation1 + $0x1] ss:$4 sm:$0xff] %v931_v13 }
  0x6e   : > { %970 = vst [vmem:[#allocation1 + $0x2] ss:$4 sm:$0xff] %v944_v16 }
  0x6f   : > { %973 = vst [vmem:[#allocation1 + $0x3] ss:$4 sm:$0xff] %v957_v18 }
  0x76   : > { %v974_v38 = vld.sshfl [vmem:[#allocation1] sm:$0xff pattern:$0x73625140] }
  0x77   : > { %1430 = vmatmul.msk.bf16.vlgmr.msrb.gmra.mxu3 %vm361_vm11, %v974_v38  ;;  %1067 = vst [vmem:[#allocation1] ss:$4 sm:$0xff] %v1048_v36 }
  0x78   : > { %1070 = vst [vmem:[#allocation1 + $0x1] ss:$4 sm:$0xff] %v1052_v37 }
  0x79   : > { %1073 = vst [vmem:[#allocation1 + $0x2] ss:$4 sm:$0xff] %v1056_v39 }
  0x7a   : > { %1076 = vst [vmem:[#allocation1 + $0x3] ss:$4 sm:$0xff] %v1060_v40 }
  0x81   : > { %v1077_v41 = vld.sshfl [vmem:[#allocation1] sm:$0xff pattern:$0x73625140] }
  0x82   : > { %1455 = vmatmul.msk.bf16.vlgmr.msra.gmra.mxu0 %vm361_vm11, %v1077_v41  ;;  %v1178_v41 = vlaneseq }
  0xa7   : > { %v373_v42 = vpop.f32.mrf.mxu0 }
  0xaf   : > { %v375_v44 = vpop.f32.mrf.mxu0 }
  0xb2   : > { %v413_v43 = vpop.f32.mrf.mxu1 }
  0xb3   : > { %v414_v48 = vadd.f32 %v413_v43, %v373_v42 }
  0xba   : > { %v415_v50 = vpop.f32.mrf.mxu1 }
  0xbb   : > { %v416_v59 = vadd.f32 %v415_v50, %v375_v44 }
  0xc3   : > { %v521_v46 = vpop.f32.mrf.mxu2 }
  0xc4   : > { %v526_v51 = vadd.f32 %v521_v46, %v414_v48  ;;  %v1179_v46 = vand.u32 127, %v1178_v41 }
  0xc6   : > { %vm1180_vm4 = vcmp.lt.s32.totalorder %v1179_v46, 4 }
  0xcb   : > { %v523_v53 = vpop.f32.mrf.mxu2 }
  0xcc   : > { %v527_v63 = vadd.f32 %v523_v53, %v416_v59 }
  0xce   : > { %v573_v49 = vpop.f32.mrf.mxu3 }
  0xcf   : > { %v578_v55 = vadd.f32 %v573_v49, %v526_v51 }
  0xd3   : > { %v708_v52 = vpop.f32.mrf.mxu0 }
  0xd4   : > { %v713_v60 = vadd.f32 %v708_v52, %v578_v55 }
  0xd6   : > { %v575_v56 = vpop.f32.mrf.mxu3 }
  0xd7   : > { %v579_v1 = vadd.f32 %v575_v56, %v527_v63 }
  0xdb   : > { %v710_v62 = vpop.f32.mrf.mxu0 }
  0xdc   : > { %v714_v6 = vadd.f32 %v710_v62, %v579_v1 }
  0xde   : > { %v811_v57 = vpop.f32.mrf.mxu1 }
  0xdf   : > { %v816_v0 = vadd.f32 %v811_v57, %v713_v60 }
  0xe6   : > { %v813_v5 = vpop.f32.mrf.mxu1 }
  0xe7   : > { %v817_v10 = vadd.f32 %v813_v5, %v714_v6 }
  0xef   : > { %v863_v61 = vpop.f32.mrf.mxu2 }
  0xf0   : > { %v868_v2 = vadd.f32 %v863_v61, %v816_v0 }
  0xf7   : > { %v865_v8 = vpop.f32.mrf.mxu2 }
  0xf8   : > { %v869_v12 = vadd.f32 %v865_v8, %v817_v10 }
  0xfa   : > { %v998_v3 = vpop.f32.mrf.mxu3 }
  0xfb   : > { %v1003_v4 = vadd.f32 %v998_v3, %v868_v2 }
  0xff   : > { %v1101_v9 = vpop.f32.mrf.mxu0 }
 0x100   : > { %v1106_v11 = vadd.f32 %v1101_v9, %v1003_v4 }
 0x102   : > { %v1111_v13 = vadd.f32 %v1509_v7, %v1106_v11  ;;  %v1000_v14 = vpop.f32.mrf.mxu3 }
 0x103   : > { %v1004_v16 = vadd.f32 %v1000_v14, %v869_v12 }
 0x104   : > { %v1113_v15 = vadd.f32 3.0, %v1111_v13 }
 0x106   : > { %v1115_v18 = vmax.f32 %v1113_v15, 0.0 }
 0x107   : > { %v1103_v17 = vpop.f32.mrf.mxu0 }
 0x108   : > { %v1107_v19 = vadd.f32 %v1103_v17, %v1004_v16  ;;  %v1117_v21 = vmin.f32 %v1115_v18, 6.0 }
 0x10a   : > { %v1112_v20 = vadd.f32 %v1509_v7, %v1107_v19  ;;  %v1119_v24 = vmul.f32 %v1117_v21, %v1111_v13 }
 0x10c   : > { %v1114_v22 = vadd.f32 3.0, %v1112_v20  ;;  %v1121_v26 = vmul.f32 0.16666667, %v1119_v24 }
 0x10e   : > { %v1116_v23 = vmax.f32 %v1114_v22, 0.0 }
 0x110   : > { %v1118_v25 = vmin.f32 %v1116_v23, 6.0 }
 0x112   : > { %v1120_v45 = vmul.f32 %v1118_v25, %v1112_v20 }
 0x114   : > { %v1122_v28 = vmul.f32 0.16666667, %v1120_v45 }
 0x116   : > { %v1123_v29 = vpack.c.bf16 %v1122_v28, %v1121_v26 }
 0x118   : > { %1472 = vmatmul.msk.bf16.vlgmr.msra.gmra.mxu1 %vm1160_vm0, %v1123_v29 }
 0x195   : > { %v1173_v31 = vpop.f32.mrf.mxu1 }
 0x196   : > { %v1174_v32 = vadd.f32 %v1510_v30, %v1173_v31 }
 0x198   : > { %v1473_v33 = vmul.f32 -1.442695, %v1174_v32 }
 0x19a   : > { %1511 = vpow2.f32 %v1473_v33 }
 0x19d   : > { %v1175_v34 = vpop.f32.mrf.mxu1 }
 0x19e   : > { %v1176_v35 = vadd.f32 %v1510_v30, %v1175_v34 }
 0x1a0   : > { %v1512_v36 = vpop.eup %1511  ;;  %v1474_v37 = vmul.f32 -1.442695, %v1176_v35 }
 0x1a1   : > { %v1187_v38 = vadd.f32 1.0, %v1512_v36 }
 0x1a2   : > { %1513 = vpow2.f32 %v1474_v37 }
 0x1a3   : > { %1515 = vrcp.f32 %v1187_v38  ;;  %v1200_v47 = vand.u32 2147483648, %v1187_v38  ;;  %v1198_v49 = vand.u32 2147483647, %v1187_v38  ;;  %vm1194_vm3 = vweird.f32 %v1187_v38 }
 0x1a5   : > { %v1201_v51 = vor.u32 1.1754944e-38, %v1200_v47  ;;  %vm1199_vm6 = vcmp.eq.f32.partialorder %v1198_v49, 8.507059e+37 }
 0x1a8   : > { %v1514_v39 = vpop.eup %1513 }
 0x1a9   : > { %v1516_v40 = vpop.eup %1515  ;;  %v1188_v42 = vadd.f32 1.0, %v1514_v39 }
 0x1aa   : > { %v1190_v43 = vmul.f32 %v1516_v40, %v1187_v38  ;;  %vm1195_vm1 = vweird.f32 %v1516_v40 }
 0x1ab   : > { %1517 = vrcp.f32 %v1188_v42  ;;  %vm1196_vm5 = vmor %vm1194_vm3, %vm1195_vm1  ;;  %v1215_v58 = vand.u32 2147483648, %v1188_v42  ;;  %v1213_v60 = vand.u32 2147483647, %v1188_v42  ;;  %vm1209_vm9 = vweird.f32 %v1188_v42 }
 0x1ac   : > { %v1191_v44 = vsub.f32 1.0, %v1190_v43 }
 0x1ad   : > { %v1216_v62 = vor.u32 1.1754944e-38, %v1215_v58  ;;  %vm1214_vm11 = vcmp.eq.f32.partialorder %v1213_v60, 8.507059e+37 }
 0x1ae   : > { %v1192_v48 = vmul.f32 %v1516_v40, %v1191_v44 }
 0x1b0   : > { %v1193_v50 = vadd.f32 %v1516_v40, %v1192_v48 }
 0x1b1   : > { %v1518_v27 = vpop.eup %1517 }
 0x1b2   : > { %v1197_v52 = vsel %vm1196_vm5, %v1516_v40, %v1193_v50  ;;  %v1205_v53 = vmul.f32 %v1518_v27, %v1188_v42  ;;  %vm1210_vm8 = vweird.f32 %v1518_v27 }
 0x1b3   : > { %v1202_v54 = vsel %vm1199_vm6, %v1201_v51, %v1197_v52  ;;  %vm1211_vm10 = vmor %vm1209_vm9, %vm1210_vm8 }
 0x1b4   : > { %v1219_v55 = vsel %vm1180_vm4, %v1202_v54, %v1174_v32  ;;  %v1206_v56 = vsub.f32 1.0, %v1205_v53 }
 0x1b5   : > { %v1223_v57 = vrot.slane %v1219_v55, 4  ;;  %1228 = vst.msk [vmem:[%s224_s29] sm:$0xf] %vm1227_vm7, %v1219_v55 }
 0x1b6   : > { %v1207_v59 = vmul.f32 %v1518_v27, %v1206_v56 }
 0x1b7   : > { %1229 = vst.msk [vmem:[%s224_s29 + $0x4] sm:$0xf] %vm1227_vm7, %v1223_v57 }
 0x1b8   : > { %v1208_v61 = vadd.f32 %v1518_v27, %v1207_v59 }
 0x1ba   : > { %v1212_v63 = vsel %vm1211_vm10, %v1518_v27, %v1208_v61 }
 0x1bb   : > { %v1217_v0 = vsel %vm1214_vm11, %v1216_v62, %v1212_v63 }
 0x1bc   : > { %v1220_v1 = vsel %vm1180_vm4, %v1217_v0, %v1176_v35 }
 0x1bd   : > { %v1224_v2 = vrot.slane %v1220_v1, 4  ;;  %1230 = vst.msk [vmem:[%s224_s29 + $0x8] sm:$0xf] %vm1227_vm7, %v1220_v1 }
 0x1bf   : > { %1231 = vst.msk [vmem:[%s224_s29 + $0xc] sm:$0xf] %vm1227_vm7, %v1224_v2 }
 0x1c0 PF: > { %s15_s18 = sadd.s32 1, %s1525_s18  }
 0x1c1   : > { %p12_p4 = scmp.ge.s32.totalorder %s15_s18, 4  }
 0x1c3   :  { %14 = sbr.rel (!%p12_p4) target bundleno = 1 (0x1), region = 107 }

</bundles_post_ra>
